<compile_context>
chip_gen: v7x
topology: tpu7x:2x2x1
jax: 0.10.0
libtpu: 0.0.40
codegen_flags: <defaults>
</compile_context>

<pallas_src>
import functools

import jax
import jax.numpy as jnp
from jax.experimental import pallas as pl
from jax.experimental.pallas import tpu as pltpu


_BN_EPS = 1e-5
_TN_MAX = 1024          # point-axis tile target (multiple of 128)


def _round_up(x, m):
    return ((x + m - 1) // m) * m


def _plan_point_tiling(n):
    """Pick (TN, n_split, tiles_per_split, padded_N) for the point axis.

    Prefers the largest tile <= _TN_MAX whose edge-padding waste is <= ~12.5%,
    then splits the tiles 2-way (outer parallel axis) so both v7x TensorCores
    stay busy even when the batch is small.
    """
    tn = 128
    for cand in (1024, 512, 256, 128):
        pad = _round_up(n, cand)
        if (pad - n) * 8 <= pad:                       # <= 12.5% padded points
            tn = cand
            break
    n_tiles = _round_up(n, tn) // tn
    n_split = 1
    if n_tiles >= 2:
        n_split = 2
        if n_tiles % 2:
            if tn * 8 <= n:                            # extra tile adds <= ~12.5%
                n_tiles += 1
            else:
                n_split = 1
    elif tn >= 256:                                    # one big tile -> split it
        tn //= 2
        n_tiles, n_split = 2, 2
    n_pad = n_tiles * tn
    return tn, n_split, n_tiles // n_split, n_pad


def _trunk_vmem_limit_bytes(tn, cin, c1, c2, c3, per_batch_w1):
    """Accurate (8,128)-padded VMEM budget for the trunk kernel + headroom."""
    def padded(rows, cols, itemsize):
        return _round_up(rows, 8) * _round_up(cols, 128) * itemsize

    need = (2 * padded(cin, tn, 4)                               # x, double buffered
            + (2 if per_batch_w1 else 1) * padded(c1, cin, 4)    # conv1 weight
            + padded(c1, 1, 4) + padded(c2, c1, 2)               # single-buffered
            + padded(c2, 1, 4) + padded(c3, c2, 2)               #   constant weights
            + padded(c3, 1, 4)                                   #   and biases
            + 2 * padded(c3, 1, 4)                               # output block
            + padded(c3, 1, 4)                                   # gmax scratch
            + tn * (c1 + c2 + c3) * 4 + tn * (c1 + c2) * 2       # live intermediates
            + (6 << 20))                                         # compiler temporaries
    return int(min(max(need, 32 << 20), 48 << 20))


# ---------------------------------------------------------------------------
# Kernel bodies (channels-first: activations are (C, TN))
# ---------------------------------------------------------------------------
def _mlp3_maxpool_kernel(x_ref, w1_ref, b1_ref, w2_ref, b2_ref, w3_ref, b3_ref,
                         out_ref, gmax_ref):
    """One (Cin, TN) tile of points through the 3-layer ReLU MLP; fold the
    per-tile channel-wise max into the running-max VMEM accumulator."""
    n = pl.program_id(2)

    @pl.when(n == 0)
    def _init():
        gmax_ref[...] = jnp.full(gmax_ref.shape, -jnp.inf, dtype=gmax_ref.dtype)

    x = x_ref[0]                                     # (Cin, TN) f32
    w1 = w1_ref[0]                                   # (C1, Cin) f32
    cin = w1.shape[1]
    # Layer 1: Cin is tiny (3) -> broadcast multiply-adds on the VPU; the MXU
    # is reserved for the wide layers.
    h = w1[:, 0:1] * x[0:1, :]
    for c in range(1, cin):
        h = h + w1[:, c:c + 1] * x[c:c + 1, :]
    h = jnp.maximum(h + b1_ref[...], 0.0)            # (C1, TN) f32
    # Layers 2 & 3: bf16 operands, f32 MXU accumulation, bias/ReLU in f32.
    h = jnp.dot(w2_ref[...], h.astype(jnp.bfloat16),
                preferred_element_type=jnp.float32)
    h = jnp.maximum(h + b2_ref[...], 0.0)            # (C2, TN)
    h = jnp.dot(w3_ref[...], h.astype(jnp.bfloat16),
                preferred_element_type=jnp.float32)
    h = jnp.maximum(h + b3_ref[...], 0.0)            # (C3, TN)
    gmax_ref[...] = jnp.maximum(gmax_ref[...],
                                jnp.max(h, axis=1, keepdims=True))

    @pl.when(n == pl.num_programs(2) - 1)
    def _finalize():
        out_ref[0, 0] = gmax_ref[...]                # (C3, 1)


def _tnet_fc_head_kernel(g_ref, w1_ref, b1_ref, w2_ref, b2_ref, w3_ref, b3_ref,
                         out_ref):
    """Batched FC head 1024 -> 512 -> 256 -> k*k on the pooled features."""
    t = jnp.dot(g_ref[...].astype(jnp.bfloat16), w1_ref[...],
                preferred_element_type=jnp.float32)
    t = jnp.maximum(t + b1_ref[...], 0.0)
    t = jnp.dot(t.astype(jnp.bfloat16), w2_ref[...],
                preferred_element_type=jnp.float32)
    t = jnp.maximum(t + b2_ref[...], 0.0)
    t = jnp.dot(t.astype(jnp.bfloat16), w3_ref[...],
                preferred_element_type=jnp.float32)
    out_ref[...] = t + b3_ref[...]                   # (B, k*k)


# ---------------------------------------------------------------------------
# pallas_call wrappers
# ---------------------------------------------------------------------------
def mlp3_maxpool_cf(x_cf, w1, b1, w2, b2, w3, b3, *, tn, n_split, npt):
    """Per-point 3-layer ReLU MLP + partial max over the point axis.

    x_cf: (B, Cin, Npad) f32 channels-first.  w1: (1 or B, C1, Cin) f32 (per
    batch when the learned input transform has been folded in).  w2/w3 bf16
    (Cout, Cin); biases f32 (C, 1).  Returns (B, n_split, C3) partial maxima.
    """
    B, Cin, Npad = x_cf.shape
    C1, C2, C3 = w1.shape[1], w2.shape[0], w3.shape[0]
    per_batch_w1 = w1.shape[0] != 1

    keep = pl.Buffered(1)                           # constant blocks: 1 buffer
    const2 = lambda b, s, n: (0, 0)

    def const_spec(shape):
        return pl.BlockSpec(shape, const2, pipeline_mode=keep)

    if per_batch_w1:
        w1_spec = pl.BlockSpec((1, C1, Cin), lambda b, s, n: (b, 0, 0))
    else:
        w1_spec = pl.BlockSpec((1, C1, Cin), lambda b, s, n: (0, 0, 0),
                               pipeline_mode=keep)

    out = pl.pallas_call(
        _mlp3_maxpool_kernel,
        out_shape=jax.ShapeDtypeStruct((B, n_split, C3, 1), jnp.float32),
        grid=(B, n_split, npt),
        in_specs=[
            pl.BlockSpec((1, Cin, tn), lambda b, s, n: (b, 0, s * npt + n)),
            w1_spec,
            const_spec((C1, 1)),
            const_spec((C2, C1)),
            const_spec((C2, 1)),
            const_spec((C3, C2)),
            const_spec((C3, 1)),
        ],
        out_specs=pl.BlockSpec((1, 1, C3, 1), lambda b, s, n: (b, s, 0, 0)),
        scratch_shapes=[pltpu.VMEM((C3, 1), jnp.float32)],
        compiler_params=pltpu.CompilerParams(
            dimension_semantics=("parallel", "parallel", "arbitrary"),
            vmem_limit_bytes=_trunk_vmem_limit_bytes(tn, Cin, C1, C2, C3,
                                                     per_batch_w1)),
    )(x_cf, w1, b1, w2, b2, w3, b3)
    return out.reshape(B, n_split, C3)


def tnet_fc_head(g, fc_params, k):
    """g: (B, 1024) pooled TNet feature -> raw (B, k*k) transform."""
    B = g.shape[0]
    fw1, fb1, fw2, fb2, fw3, fb3 = fc_params
    return pl.pallas_call(
        _tnet_fc_head_kernel,
        out_shape=jax.ShapeDtypeStruct((B, k * k), jnp.float32),
    )(g, fw1, fb1, fw2, fb2, fw3, fb3)


# ---------------------------------------------------------------------------
# Deterministic parameter construction (Conv/Linear weights + eval-mode BN
# folded into weight/bias).  Wide-layer weights are stored in bf16.
# ---------------------------------------------------------------------------
def _bn_fold(key, cout):
    kg, kb, km, kv = jax.random.split(key, 4)
    gamma = 1.0 + 0.1 * jax.random.normal(kg, (cout,), jnp.float32)
    beta = 0.1 * jax.random.normal(kb, (cout,), jnp.float32)
    mean = 0.1 * jax.random.normal(km, (cout,), jnp.float32)
    var = 1.0 + 0.1 * jnp.abs(jax.random.normal(kv, (cout,), jnp.float32))
    s = gamma / jnp.sqrt(var + _BN_EPS)
    return s, beta - mean * s


def _conv_bn_cf(key, cin, cout, w_dtype=jnp.bfloat16):
    """Conv1d(k=1, bias=False)+BN, channels-first: ((cout,cin), (cout,1))."""
    kw, kbn = jax.random.split(key)
    w = jax.random.normal(kw, (cout, cin), jnp.float32) / jnp.sqrt(float(cin))
    s, b = _bn_fold(kbn, cout)
    return (w * s[:, None]).astype(w_dtype), b.reshape(cout, 1)


def _fc_bn_rm(key, cin, cout, w_dtype=jnp.bfloat16):
    """Linear(bias=False)+BN, rows-major: ((cin,cout), (1,cout))."""
    kw, kbn = jax.random.split(key)
    w = jax.random.normal(kw, (cout, cin), jnp.float32) / jnp.sqrt(float(cin))
    s, b = _bn_fold(kbn, cout)
    return (w * s[:, None]).T.astype(w_dtype), b.reshape(1, cout)


def _linear_rm(key, cin, cout, w_dtype=jnp.bfloat16):
    kw, kb = jax.random.split(key)
    w = jax.random.normal(kw, (cout, cin), jnp.float32) / jnp.sqrt(float(cin))
    b = 0.1 * jax.random.normal(kb, (cout,), jnp.float32)
    return w.T.astype(w_dtype), b.reshape(1, cout)


def init_params(key, in_channels=3):
    k = in_channels if in_channels <= 3 else 3
    keys = jax.random.split(key, 9)
    # TNet(k): conv 3->64->128->1024 (+BN,ReLU), fc 1024->512->256->k*k.
    tw1, tb1 = _conv_bn_cf(keys[0], k, 64, w_dtype=jnp.float32)
    tw2, tb2 = _conv_bn_cf(keys[1], 64, 128)
    tw3, tb3 = _conv_bn_cf(keys[2], 128, 1024)
    tf1, tfb1 = _fc_bn_rm(keys[3], 1024, 512)
    tf2, tfb2 = _fc_bn_rm(keys[4], 512, 256)
    tf3, tfb3 = _linear_rm(keys[5], 256, k * k)
    # Main branch: conv1 in_channels->64, mlp 64->128->1024 (+BN,ReLU each).
    mw1, mb1 = _conv_bn_cf(keys[6], in_channels, 64, w_dtype=jnp.float32)
    mw2, mb2 = _conv_bn_cf(keys[7], 64, 128)
    mw3, mb3 = _conv_bn_cf(keys[8], 128, 1024)
    return {
        "k": k,
        "tnet_conv": (tw1.reshape(1, 64, k), tb1, tw2, tb2, tw3, tb3),
        "tnet_fc": (tf1, tfb1, tf2, tfb2, tf3, tfb3),
        "main_conv1": (mw1, mb1),                     # (64, in_channels) f32
        "main_mlp": (mw2, mb2, mw3, mb3),
    }


# ---------------------------------------------------------------------------
# FeatureNet forward (classification=True, feature_transform=False defaults).
# ---------------------------------------------------------------------------
def feature_net_forward(x, params):
    """x: (B, 3, N) float32 (PyTorch NCW layout).
    Returns (global_feat (B, 1024), trans_in (B, 3, 3), None)."""
    B, C, N = x.shape
    k = params["k"]
    # TODO(synk): in_channels > 3 (coords/feature split + concat),
    # feature_transform=True (TNet64) and the segmentation concat branch
    # (classification=False) are not exercised by the default config and are
    # not implemented.
    tn, n_split, npt, n_pad = _plan_point_tiling(N)
    if n_pad != N:
        # Edge-replicate points: duplicates of real points leave the
        # channel-wise max unchanged, so no in-kernel masking is needed.
        x = jnp.pad(x, ((0, 0), (0, 0), (0, n_pad - N)), mode="edge")

    # Input TNet: shared trunk kernel + tiny batched FC-head kernel.
    t_part = mlp3_maxpool_cf(x, *params["tnet_conv"],
                             tn=tn, n_split=n_split, npt=npt)
    t_pool = jnp.max(t_part, axis=1)                       # (B, 1024)
    raw = tnet_fc_head(t_pool, params["tnet_fc"], k)       # (B, k*k)
    trans_in = raw.reshape(B, k, k) + jnp.eye(k, dtype=jnp.float32)[None]

    # Fold the learned input transform into the first main-branch weight:
    # conv1 applied to bmm(x^T, T)^T  ==  (W1 @ T^T) applied channels-first.
    w1_cf, b1_main = params["main_conv1"]                  # (64, C) f32
    w1_eff = jnp.einsum("od,bcd->boc", w1_cf, trans_in)    # (B, 64, C) f32

    # Main trunk: conv1 + mlp + global max-pool (ReLU after every BN, per spec).
    g_part = mlp3_maxpool_cf(x, w1_eff, b1_main, *params["main_mlp"],
                             tn=tn, n_split=n_split, npt=npt)
    global_feat = jnp.max(g_part, axis=1)                  # (B, 1024)
    return global_feat, trans_in, None


if __name__ == "__main__":
    key = jax.random.PRNGKey(0)
    kx, kp = jax.random.split(key)
    B, C, N = 2, 3, 512          # small demo; point axis runs as 2 splits x 256
    x = jax.random.normal(kx, (B, C, N), jnp.float32)
    params = init_params(kp, in_channels=C)

    fwd = jax.jit(functools.partial(feature_net_forward, params=params))
    global_feat, trans_in, trans_feat = fwd(x)
    jax.block_until_ready((global_feat, trans_in))

    assert global_feat.shape == (B, 1024) and global_feat.dtype == jnp.float32
    assert trans_in.shape == (B, C, C) and trans_feat is None
    print("KERNEL_OK")
</pallas_src>

<mosaic_0001>
module attributes {stable_mosaic.version = 11 : i64} {
  func.func @_mlp3_maxpool_kernel(%arg0: i32, %arg1: i32, %arg2: i32, %arg3: memref<1x3x256xf32, #tpu.memory_space<vmem>>, %arg4: memref<1x64x3xf32, #tpu.memory_space<vmem>>, %arg5: memref<64x1xf32, #tpu.memory_space<vmem>>, %arg6: memref<128x64xbf16, #tpu.memory_space<vmem>>, %arg7: memref<128x1xf32, #tpu.memory_space<vmem>>, %arg8: memref<1024x128xbf16, #tpu.memory_space<vmem>>, %arg9: memref<1024x1xf32, #tpu.memory_space<vmem>>, %arg10: memref<1x1x1024x1xf32, #tpu.memory_space<vmem>>, %arg11: memref<1024x1xf32, #tpu.memory_space<vmem>>) attributes {dimension_semantics = [#tpu.dimension_semantics<parallel>, #tpu.dimension_semantics<parallel>, #tpu.dimension_semantics<arbitrary>], iteration_bounds = array<i64: 2, 2, 1>, scalar_prefetch = 0 : i64, scratch_operands = 1 : i64, tpu.core_type = #tpu.core_type<tc>, window_params = [{transform_indices = @transform_0, window_bounds = array<i64: 1, 3, 256>}, {pipeline_mode = #tpu.pipeline_mode<synchronous>, transform_indices = @transform_1, window_bounds = array<i64: 1, 64, 3>}, {pipeline_mode = #tpu.pipeline_mode<synchronous>, transform_indices = @transform_2, window_bounds = array<i64: 64, 1>}, {pipeline_mode = #tpu.pipeline_mode<synchronous>, transform_indices = @transform_3, window_bounds = array<i64: 128, 64>}, {pipeline_mode = #tpu.pipeline_mode<synchronous>, transform_indices = @transform_4, window_bounds = array<i64: 128, 1>}, {pipeline_mode = #tpu.pipeline_mode<synchronous>, transform_indices = @transform_5, window_bounds = array<i64: 1024, 128>}, {pipeline_mode = #tpu.pipeline_mode<synchronous>, transform_indices = @transform_6, window_bounds = array<i64: 1024, 1>}, {transform_indices = @transform_7, window_bounds = array<i64: 1, 1, 1024, 1>}]} {
    %c0_i32 = arith.constant 0 : i32
    %0 = arith.cmpi eq, %arg2, %c0_i32 : i32
    %1 = arith.extui %0 : i1 to i32
    %c0_i32_0 = arith.constant 0 : i32
    %2 = arith.cmpi ne, %1, %c0_i32_0 : i32
    scf.if %2 {
      %cst_27 = arith.constant 0xFF800000 : f32
      %53 = vector.broadcast %cst_27 : f32 to vector<1024x1xf32>
      %c0_28 = arith.constant 0 : index
      %c0_29 = arith.constant 0 : index
      %54 = vector.load %arg11[%c0_28, %c0_29] : memref<1024x1xf32, #tpu.memory_space<vmem>>, vector<1024x1xf32>
      tpu.vector_store %arg11[%c0_28, %c0_29], %53 {strides = array<i32>} : memref<1024x1xf32, #tpu.memory_space<vmem>>, vector<1024x1xf32>,
    } else {
    }
    %c0 = arith.constant 0 : index
    %c0_1 = arith.constant 0 : index
    %c0_2 = arith.constant 0 : index
    %3 = vector.load %arg3[%c0, %c0_1, %c0_2] : memref<1x3x256xf32, #tpu.memory_space<vmem>>, vector<1x3x256xf32>
    %4 = vector.shape_cast %3 : vector<1x3x256xf32> to vector<3x256xf32>
    %c0_3 = arith.constant 0 : index
    %c0_4 = arith.constant 0 : index
    %c0_5 = arith.constant 0 : index
    %5 = vector.load %arg4[%c0_3, %c0_4, %c0_5] : memref<1x64x3xf32, #tpu.memory_space<vmem>>, vector<1x64x3xf32>
    %6 = vector.shape_cast %5 : vector<1x64x3xf32> to vector<64x3xf32>
    %7 = vector.extract_strided_slice %6 {offsets = [0, 0], sizes = [64, 1], strides = [1, 1]} : vector<64x3xf32> to vector<64x1xf32>
    %8 = vector.extract_strided_slice %4 {offsets = [0, 0], sizes = [1, 256], strides = [1, 1]} : vector<3x256xf32> to vector<1x256xf32>
    %9 = vector.broadcast %7 : vector<64x1xf32> to vector<64x256xf32>
    %10 = vector.broadcast %8 : vector<1x256xf32> to vector<64x256xf32>
    %11 = arith.mulf %9, %10 : vector<64x256xf32>
    %12 = vector.extract_strided_slice %6 {offsets = [0, 1], sizes = [64, 1], strides = [1, 1]} : vector<64x3xf32> to vector<64x1xf32>
    %13 = vector.extract_strided_slice %4 {offsets = [1, 0], sizes = [1, 256], strides = [1, 1]} : vector<3x256xf32> to vector<1x256xf32>
    %14 = vector.broadcast %12 : vector<64x1xf32> to vector<64x256xf32>
    %15 = vector.broadcast %13 : vector<1x256xf32> to vector<64x256xf32>
    %16 = arith.mulf %14, %15 : vector<64x256xf32>
    %17 = arith.addf %11, %16 : vector<64x256xf32>
    %18 = vector.extract_strided_slice %6 {offsets = [0, 2], sizes = [64, 1], strides = [1, 1]} : vector<64x3xf32> to vector<64x1xf32>
    %19 = vector.extract_strided_slice %4 {offsets = [2, 0], sizes = [1, 256], strides = [1, 1]} : vector<3x256xf32> to vector<1x256xf32>
    %20 = vector.broadcast %18 : vector<64x1xf32> to vector<64x256xf32>
    %21 = vector.broadcast %19 : vector<1x256xf32> to vector<64x256xf32>
    %22 = arith.mulf %20, %21 : vector<64x256xf32>
    %23 = arith.addf %17, %22 : vector<64x256xf32>
    %c0_6 = arith.constant 0 : index
    %c0_7 = arith.constant 0 : index
    %24 = vector.load %arg5[%c0_6, %c0_7] : memref<64x1xf32, #tpu.memory_space<vmem>>, vector<64x1xf32>
    %25 = vector.broadcast %24 : vector<64x1xf32> to vector<64x256xf32>
    %26 = arith.addf %23, %25 : vector<64x256xf32>
    %cst = arith.constant 0.000000e+00 : f32
    %27 = vector.broadcast %cst : f32 to vector<64x256xf32>
    %28 = arith.maximumf %26, %27 : vector<64x256xf32>
    %c0_8 = arith.constant 0 : index
    %c0_9 = arith.constant 0 : index
    %29 = vector.load %arg6[%c0_8, %c0_9] : memref<128x64xbf16, #tpu.memory_space<vmem>>, vector<128x64xbf16>
    %30 = arith.truncf %28 : vector<64x256xf32> to vector<64x256xbf16>
    %cst_10 = arith.constant dense<0.000000e+00> : vector<128x256xf32>
    %31 = tpu.matmul %29, %30, %cst_10 {dimension_numbers = #tpu.dot_dimension_numbers<[1], [0], [0], [1], [0, 0, 1, 1], [], []>} : vector<128x64xbf16>, vector<64x256xbf16>, vector<128x256xf32> -> vector<128x256xf32>
    %c0_11 = arith.constant 0 : index
    %c0_12 = arith.constant 0 : index
    %32 = vector.load %arg7[%c0_11, %c0_12] : memref<128x1xf32, #tpu.memory_space<vmem>>, vector<128x1xf32>
    %33 = vector.broadcast %32 : vector<128x1xf32> to vector<128x256xf32>
    %34 = arith.addf %31, %33 : vector<128x256xf32>
    %cst_13 = arith.constant 0.000000e+00 : f32
    %35 = vector.broadcast %cst_13 : f32 to vector<128x256xf32>
    %36 = arith.maximumf %34, %35 : vector<128x256xf32>
    %c0_14 = arith.constant 0 : index
    %c0_15 = arith.constant 0 : index
    %37 = vector.load %arg8[%c0_14, %c0_15] : memref<1024x128xbf16, #tpu.memory_space<vmem>>, vector<1024x128xbf16>
    %38 = arith.truncf %36 : vector<128x256xf32> to vector<128x256xbf16>
    %cst_16 = arith.constant dense<0.000000e+00> : vector<1024x256xf32>
    %39 = tpu.matmul %37, %38, %cst_16 {dimension_numbers = #tpu.dot_dimension_numbers<[1], [0], [0], [1], [0, 0, 1, 1], [], []>} : vector<1024x128xbf16>, vector<128x256xbf16>, vector<1024x256xf32> -> vector<1024x256xf32>
    %c0_17 = arith.constant 0 : index
    %c0_18 = arith.constant 0 : index
    %40 = vector.load %arg9[%c0_17, %c0_18] : memref<1024x1xf32, #tpu.memory_space<vmem>>, vector<1024x1xf32>
    %41 = vector.broadcast %40 : vector<1024x1xf32> to vector<1024x256xf32>
    %42 = arith.addf %39, %41 : vector<1024x256xf32>
    %cst_19 = arith.constant 0.000000e+00 : f32
    %43 = vector.broadcast %cst_19 : f32 to vector<1024x256xf32>
    %44 = arith.maximumf %42, %43 : vector<1024x256xf32>
    %c0_20 = arith.constant 0 : index
    %c0_21 = arith.constant 0 : index
    %45 = vector.load %arg11[%c0_20, %c0_21] : memref<1024x1xf32, #tpu.memory_space<vmem>>, vector<1024x1xf32>
    %cst_22 = arith.constant dense<0xFF800000> : vector<1024xf32>
    %46 = vector.multi_reduction <maximumf>, %44, %cst_22 [1] : vector<1024x256xf32> to vector<1024xf32>
    %47 = vector.shape_cast %46 : vector<1024xf32> to vector<1024x1xf32>
    %48 = arith.maximumf %45, %47 : vector<1024x1xf32>
    %c0_23 = arith.constant 0 : index
    %c0_24 = arith.constant 0 : index
    %49 = vector.load %arg11[%c0_23, %c0_24] : memref<1024x1xf32, #tpu.memory_space<vmem>>, vector<1024x1xf32>
    tpu.vector_store %arg11[%c0_23, %c0_24], %48 {strides = array<i32>} : memref<1024x1xf32, #tpu.memory_space<vmem>>, vector<1024x1xf32>,
    %c0_i32_25 = arith.constant 0 : i32
    %50 = arith.cmpi eq, %arg2, %c0_i32_25 : i32
    %51 = arith.extui %50 : i1 to i32
    %c0_i32_26 = arith.constant 0 : i32
    %52 = arith.cmpi ne, %51, %c0_i32_26 : i32
    scf.if %52 {
      %c0_27 = arith.constant 0 : index
      %c0_28 = arith.constant 0 : index
      %53 = vector.load %arg11[%c0_27, %c0_28] : memref<1024x1xf32, #tpu.memory_space<vmem>>, vector<1024x1xf32>
      %c0_29 = arith.constant 0 : index
      %c0_30 = arith.constant 0 : index
      %c0_31 = arith.constant 0 : index
      %c0_32 = arith.constant 0 : index
      %54 = vector.load %arg10[%c0_29, %c0_30, %c0_31, %c0_32] : memref<1x1x1024x1xf32, #tpu.memory_space<vmem>>, vector<1x1x1024x1xf32>
      %55 = vector.shape_cast %54 : vector<1x1x1024x1xf32> to vector<1024x1xf32>
      %56 = vector.shape_cast %53 : vector<1024x1xf32> to vector<1x1x1024x1xf32>
      tpu.vector_store %arg10[%c0_29, %c0_30, %c0_31, %c0_32], %56 {strides = array<i32>} : memref<1x1x1024x1xf32, #tpu.memory_space<vmem>>, vector<1x1x1024x1xf32>,
    } else {
    }
    return
  }
  func.func @transform_0(%arg0: i32, %arg1: i32, %arg2: i32) -> (i32, i32, i32) {
    %c1_i32 = arith.constant 1 : i32
    %0 = arith.muli %arg1, %c1_i32 : i32
    %1 = arith.addi %0, %arg2 : i32
    %c0_i32 = arith.constant 0 : i32
    %c0_i32_0 = arith.constant 0 : i32
    return %arg0, %c0_i32, %1 : i32, i32, i32
  }
  func.func @transform_1(%arg0: i32, %arg1: i32, %arg2: i32) -> (i32, i32, i32) {
    %c0_i32 = arith.constant 0 : i32
    %c0_i32_0 = arith.constant 0 : i32
    %c0_i32_1 = arith.constant 0 : i32
    %c0_i32_2 = arith.constant 0 : i32
    return %c0_i32, %c0_i32_0, %c0_i32_1 : i32, i32, i32
  }
  func.func @transform_2(%arg0: i32, %arg1: i32, %arg2: i32) -> (i32, i32) {
    %c0_i32 = arith.constant 0 : i32
    %c0_i32_0 = arith.constant 0 : i32
    %c0_i32_1 = arith.constant 0 : i32
    return %c0_i32, %c0_i32_0 : i32, i32
  }
  func.func @transform_3(%arg0: i32, %arg1: i32, %arg2: i32) -> (i32, i32) {
    %c0_i32 = arith.constant 0 : i32
    %c0_i32_0 = arith.constant 0 : i32
    %c0_i32_1 = arith.constant 0 : i32
    return %c0_i32, %c0_i32_0 : i32, i32
  }
  func.func @transform_4(%arg0: i32, %arg1: i32, %arg2: i32) -> (i32, i32) {
    %c0_i32 = arith.constant 0 : i32
    %c0_i32_0 = arith.constant 0 : i32
    %c0_i32_1 = arith.constant 0 : i32
    return %c0_i32, %c0_i32_0 : i32, i32
  }
  func.func @transform_5(%arg0: i32, %arg1: i32, %arg2: i32) -> (i32, i32) {
    %c0_i32 = arith.constant 0 : i32
    %c0_i32_0 = arith.constant 0 : i32
    %c0_i32_1 = arith.constant 0 : i32
    return %c0_i32, %c0_i32_0 : i32, i32
  }
  func.func @transform_6(%arg0: i32, %arg1: i32, %arg2: i32) -> (i32, i32) {
    %c0_i32 = arith.constant 0 : i32
    %c0_i32_0 = arith.constant 0 : i32
    %c0_i32_1 = arith.constant 0 : i32
    return %c0_i32, %c0_i32_0 : i32, i32
  }
  func.func @transform_7(%arg0: i32, %arg1: i32, %arg2: i32) -> (i32, i32, i32, i32) {
    %c0_i32 = arith.constant 0 : i32
    %c0_i32_0 = arith.constant 0 : i32
    %c0_i32_1 = arith.constant 0 : i32
    return %arg0, %arg1, %c0_i32, %c0_i32_0 : i32, i32, i32, i32
  }
}

module attributes {stable_mosaic.version = 11 : i64} {
  func.func @_tnet_fc_head_kernel(%arg0: memref<2x1024xf32, #tpu.memory_space<vmem>>, %arg1: memref<1024x512xbf16, #tpu.memory_space<vmem>>, %arg2: memref<1x512xf32, #tpu.memory_space<vmem>>, %arg3: memref<512x256xbf16, #tpu.memory_space<vmem>>, %arg4: memref<1x256xf32, #tpu.memory_space<vmem>>, %arg5: memref<256x9xbf16, #tpu.memory_space<vmem>>, %arg6: memref<1x9xf32, #tpu.memory_space<vmem>>, %arg7: memref<2x9xf32, #tpu.memory_space<vmem>>) attributes {dimension_semantics = [], scalar_prefetch = 0 : i64, scratch_operands = 0 : i64, tpu.core_type = #tpu.core_type<tc>} {
    %c0 = arith.constant 0 : index
    %c0_0 = arith.constant 0 : index
    %0 = vector.load %arg0[%c0, %c0_0] : memref<2x1024xf32, #tpu.memory_space<vmem>>, vector<2x1024xf32>
    %1 = arith.truncf %0 : vector<2x1024xf32> to vector<2x1024xbf16>
    %c0_1 = arith.constant 0 : index
    %c0_2 = arith.constant 0 : index
    %2 = vector.load %arg1[%c0_1, %c0_2] : memref<1024x512xbf16, #tpu.memory_space<vmem>>, vector<1024x512xbf16>
    %cst = arith.constant dense<0.000000e+00> : vector<2x512xf32>
    %3 = tpu.matmul %1, %2, %cst {dimension_numbers = #tpu.dot_dimension_numbers<[1], [0], [0], [1], [0, 0, 1, 1], [], []>} : vector<2x1024xbf16>, vector<1024x512xbf16>, vector<2x512xf32> -> vector<2x512xf32>
    %c0_3 = arith.constant 0 : index
    %c0_4 = arith.constant 0 : index
    %4 = vector.load %arg2[%c0_3, %c0_4] : memref<1x512xf32, #tpu.memory_space<vmem>>, vector<1x512xf32>
    %5 = vector.broadcast %4 : vector<1x512xf32> to vector<2x512xf32>
    %6 = arith.addf %3, %5 : vector<2x512xf32>
    %cst_5 = arith.constant 0.000000e+00 : f32
    %7 = vector.broadcast %cst_5 : f32 to vector<2x512xf32>
    %8 = arith.maximumf %6, %7 : vector<2x512xf32>
    %9 = arith.truncf %8 : vector<2x512xf32> to vector<2x512xbf16>
    %c0_6 = arith.constant 0 : index
    %c0_7 = arith.constant 0 : index
    %10 = vector.load %arg3[%c0_6, %c0_7] : memref<512x256xbf16, #tpu.memory_space<vmem>>, vector<512x256xbf16>
    %cst_8 = arith.constant dense<0.000000e+00> : vector<2x256xf32>
    %11 = tpu.matmul %9, %10, %cst_8 {dimension_numbers = #tpu.dot_dimension_numbers<[1], [0], [0], [1], [0, 0, 1, 1], [], []>} : vector<2x512xbf16>, vector<512x256xbf16>, vector<2x256xf32> -> vector<2x256xf32>
    %c0_9 = arith.constant 0 : index
    %c0_10 = arith.constant 0 : index
    %12 = vector.load %arg4[%c0_9, %c0_10] : memref<1x256xf32, #tpu.memory_space<vmem>>, vector<1x256xf32>
    %13 = vector.broadcast %12 : vector<1x256xf32> to vector<2x256xf32>
    %14 = arith.addf %11, %13 : vector<2x256xf32>
    %cst_11 = arith.constant 0.000000e+00 : f32
    %15 = vector.broadcast %cst_11 : f32 to vector<2x256xf32>
    %16 = arith.maximumf %14, %15 : vector<2x256xf32>
    %17 = arith.truncf %16 : vector<2x256xf32> to vector<2x256xbf16>
    %c0_12 = arith.constant 0 : index
    %c0_13 = arith.constant 0 : index
    %18 = vector.load %arg5[%c0_12, %c0_13] : memref<256x9xbf16, #tpu.memory_space<vmem>>, vector<256x9xbf16>
    %cst_14 = arith.constant dense<0.000000e+00> : vector<2x9xf32>
    %19 = tpu.matmul %17, %18, %cst_14 {dimension_numbers = #tpu.dot_dimension_numbers<[1], [0], [0], [1], [0, 0, 1, 1], [], []>} : vector<2x256xbf16>, vector<256x9xbf16>, vector<2x9xf32> -> vector<2x9xf32>
    %c0_15 = arith.constant 0 : index
    %c0_16 = arith.constant 0 : index
    %20 = vector.load %arg6[%c0_15, %c0_16] : memref<1x9xf32, #tpu.memory_space<vmem>>, vector<1x9xf32>
    %21 = vector.broadcast %20 : vector<1x9xf32> to vector<2x9xf32>
    %22 = arith.addf %19, %21 : vector<2x9xf32>
    %c0_17 = arith.constant 0 : index
    %c0_18 = arith.constant 0 : index
    %23 = vector.load %arg7[%c0_17, %c0_18] : memref<2x9xf32, #tpu.memory_space<vmem>>, vector<2x9xf32>
    tpu.vector_store %arg7[%c0_17, %c0_18], %22 {strides = array<i32>} : memref<2x9xf32, #tpu.memory_space<vmem>>, vector<2x9xf32>,
    return
  }
}

module attributes {stable_mosaic.version = 11 : i64} {
  func.func @_mlp3_maxpool_kernel(%arg0: i32, %arg1: i32, %arg2: i32, %arg3: memref<1x3x256xf32, #tpu.memory_space<vmem>>, %arg4: memref<1x64x3xf32, #tpu.memory_space<vmem>>, %arg5: memref<64x1xf32, #tpu.memory_space<vmem>>, %arg6: memref<128x64xbf16, #tpu.memory_space<vmem>>, %arg7: memref<128x1xf32, #tpu.memory_space<vmem>>, %arg8: memref<1024x128xbf16, #tpu.memory_space<vmem>>, %arg9: memref<1024x1xf32, #tpu.memory_space<vmem>>, %arg10: memref<1x1x1024x1xf32, #tpu.memory_space<vmem>>, %arg11: memref<1024x1xf32, #tpu.memory_space<vmem>>) attributes {dimension_semantics = [#tpu.dimension_semantics<parallel>, #tpu.dimension_semantics<parallel>, #tpu.dimension_semantics<arbitrary>], iteration_bounds = array<i64: 2, 2, 1>, scalar_prefetch = 0 : i64, scratch_operands = 1 : i64, tpu.core_type = #tpu.core_type<tc>, window_params = [{transform_indices = @transform_0, window_bounds = array<i64: 1, 3, 256>}, {transform_indices = @transform_1, window_bounds = array<i64: 1, 64, 3>}, {pipeline_mode = #tpu.pipeline_mode<synchronous>, transform_indices = @transform_2, window_bounds = array<i64: 64, 1>}, {pipeline_mode = #tpu.pipeline_mode<synchronous>, transform_indices = @transform_3, window_bounds = array<i64: 128, 64>}, {pipeline_mode = #tpu.pipeline_mode<synchronous>, transform_indices = @transform_4, window_bounds = array<i64: 128, 1>}, {pipeline_mode = #tpu.pipeline_mode<synchronous>, transform_indices = @transform_5, window_bounds = array<i64: 1024, 128>}, {pipeline_mode = #tpu.pipeline_mode<synchronous>, transform_indices = @transform_6, window_bounds = array<i64: 1024, 1>}, {transform_indices = @transform_7, window_bounds = array<i64: 1, 1, 1024, 1>}]} {
    %c0_i32 = arith.constant 0 : i32
    %0 = arith.cmpi eq, %arg2, %c0_i32 : i32
    %1 = arith.extui %0 : i1 to i32
    %c0_i32_0 = arith.constant 0 : i32
    %2 = arith.cmpi ne, %1, %c0_i32_0 : i32
    scf.if %2 {
      %cst_27 = arith.constant 0xFF800000 : f32
      %53 = vector.broadcast %cst_27 : f32 to vector<1024x1xf32>
      %c0_28 = arith.constant 0 : index
      %c0_29 = arith.constant 0 : index
      %54 = vector.load %arg11[%c0_28, %c0_29] : memref<1024x1xf32, #tpu.memory_space<vmem>>, vector<1024x1xf32>
      tpu.vector_store %arg11[%c0_28, %c0_29], %53 {strides = array<i32>} : memref<1024x1xf32, #tpu.memory_space<vmem>>, vector<1024x1xf32>,
    } else {
    }
    %c0 = arith.constant 0 : index
    %c0_1 = arith.constant 0 : index
    %c0_2 = arith.constant 0 : index
    %3 = vector.load %arg3[%c0, %c0_1, %c0_2] : memref<1x3x256xf32, #tpu.memory_space<vmem>>, vector<1x3x256xf32>
    %4 = vector.shape_cast %3 : vector<1x3x256xf32> to vector<3x256xf32>
    %c0_3 = arith.constant 0 : index
    %c0_4 = arith.constant 0 : index
    %c0_5 = arith.constant 0 : index
    %5 = vector.load %arg4[%c0_3, %c0_4, %c0_5] : memref<1x64x3xf32, #tpu.memory_space<vmem>>, vector<1x64x3xf32>
    %6 = vector.shape_cast %5 : vector<1x64x3xf32> to vector<64x3xf32>
    %7 = vector.extract_strided_slice %6 {offsets = [0, 0], sizes = [64, 1], strides = [1, 1]} : vector<64x3xf32> to vector<64x1xf32>
    %8 = vector.extract_strided_slice %4 {offsets = [0, 0], sizes = [1, 256], strides = [1, 1]} : vector<3x256xf32> to vector<1x256xf32>
    %9 = vector.broadcast %7 : vector<64x1xf32> to vector<64x256xf32>
    %10 = vector.broadcast %8 : vector<1x256xf32> to vector<64x256xf32>
    %11 = arith.mulf %9, %10 : vector<64x256xf32>
    %12 = vector.extract_strided_slice %6 {offsets = [0, 1], sizes = [64, 1], strides = [1, 1]} : vector<64x3xf32> to vector<64x1xf32>
    %13 = vector.extract_strided_slice %4 {offsets = [1, 0], sizes = [1, 256], strides = [1, 1]} : vector<3x256xf32> to vector<1x256xf32>
    %14 = vector.broadcast %12 : vector<64x1xf32> to vector<64x256xf32>
    %15 = vector.broadcast %13 : vector<1x256xf32> to vector<64x256xf32>
    %16 = arith.mulf %14, %15 : vector<64x256xf32>
    %17 = arith.addf %11, %16 : vector<64x256xf32>
    %18 = vector.extract_strided_slice %6 {offsets = [0, 2], sizes = [64, 1], strides = [1, 1]} : vector<64x3xf32> to vector<64x1xf32>
    %19 = vector.extract_strided_slice %4 {offsets = [2, 0], sizes = [1, 256], strides = [1, 1]} : vector<3x256xf32> to vector<1x256xf32>
    %20 = vector.broadcast %18 : vector<64x1xf32> to vector<64x256xf32>
    %21 = vector.broadcast %19 : vector<1x256xf32> to vector<64x256xf32>
    %22 = arith.mulf %20, %21 : vector<64x256xf32>
    %23 = arith.addf %17, %22 : vector<64x256xf32>
    %c0_6 = arith.constant 0 : index
    %c0_7 = arith.constant 0 : index
    %24 = vector.load %arg5[%c0_6, %c0_7] : memref<64x1xf32, #tpu.memory_space<vmem>>, vector<64x1xf32>
    %25 = vector.broadcast %24 : vector<64x1xf32> to vector<64x256xf32>
    %26 = arith.addf %23, %25 : vector<64x256xf32>
    %cst = arith.constant 0.000000e+00 : f32
    %27 = vector.broadcast %cst : f32 to vector<64x256xf32>
    %28 = arith.maximumf %26, %27 : vector<64x256xf32>
    %c0_8 = arith.constant 0 : index
    %c0_9 = arith.constant 0 : index
    %29 = vector.load %arg6[%c0_8, %c0_9] : memref<128x64xbf16, #tpu.memory_space<vmem>>, vector<128x64xbf16>
    %30 = arith.truncf %28 : vector<64x256xf32> to vector<64x256xbf16>
    %cst_10 = arith.constant dense<0.000000e+00> : vector<128x256xf32>
    %31 = tpu.matmul %29, %30, %cst_10 {dimension_numbers = #tpu.dot_dimension_numbers<[1], [0], [0], [1], [0, 0, 1, 1], [], []>} : vector<128x64xbf16>, vector<64x256xbf16>, vector<128x256xf32> -> vector<128x256xf32>
    %c0_11 = arith.constant 0 : index
    %c0_12 = arith.constant 0 : index
    %32 = vector.load %arg7[%c0_11, %c0_12] : memref<128x1xf32, #tpu.memory_space<vmem>>, vector<128x1xf32>
    %33 = vector.broadcast %32 : vector<128x1xf32> to vector<128x256xf32>
    %34 = arith.addf %31, %33 : vector<128x256xf32>
    %cst_13 = arith.constant 0.000000e+00 : f32
    %35 = vector.broadcast %cst_13 : f32 to vector<128x256xf32>
    %36 = arith.maximumf %34, %35 : vector<128x256xf32>
    %c0_14 = arith.constant 0 : index
    %c0_15 = arith.constant 0 : index
    %37 = vector.load %arg8[%c0_14, %c0_15] : memref<1024x128xbf16, #tpu.memory_space<vmem>>, vector<1024x128xbf16>
    %38 = arith.truncf %36 : vector<128x256xf32> to vector<128x256xbf16>
    %cst_16 = arith.constant dense<0.000000e+00> : vector<1024x256xf32>
    %39 = tpu.matmul %37, %38, %cst_16 {dimension_numbers = #tpu.dot_dimension_numbers<[1], [0], [0], [1], [0, 0, 1, 1], [], []>} : vector<1024x128xbf16>, vector<128x256xbf16>, vector<1024x256xf32> -> vector<1024x256xf32>
    %c0_17 = arith.constant 0 : index
    %c0_18 = arith.constant 0 : index
    %40 = vector.load %arg9[%c0_17, %c0_18] : memref<1024x1xf32, #tpu.memory_space<vmem>>, vector<1024x1xf32>
    %41 = vector.broadcast %40 : vector<1024x1xf32> to vector<1024x256xf32>
    %42 = arith.addf %39, %41 : vector<1024x256xf32>
    %cst_19 = arith.constant 0.000000e+00 : f32
    %43 = vector.broadcast %cst_19 : f32 to vector<1024x256xf32>
    %44 = arith.maximumf %42, %43 : vector<1024x256xf32>
    %c0_20 = arith.constant 0 : index
    %c0_21 = arith.constant 0 : index
    %45 = vector.load %arg11[%c0_20, %c0_21] : memref<1024x1xf32, #tpu.memory_space<vmem>>, vector<1024x1xf32>
    %cst_22 = arith.constant dense<0xFF800000> : vector<1024xf32>
    %46 = vector.multi_reduction <maximumf>, %44, %cst_22 [1] : vector<1024x256xf32> to vector<1024xf32>
    %47 = vector.shape_cast %46 : vector<1024xf32> to vector<1024x1xf32>
    %48 = arith.maximumf %45, %47 : vector<1024x1xf32>
    %c0_23 = arith.constant 0 : index
    %c0_24 = arith.constant 0 : index
    %49 = vector.load %arg11[%c0_23, %c0_24] : memref<1024x1xf32, #tpu.memory_space<vmem>>, vector<1024x1xf32>
    tpu.vector_store %arg11[%c0_23, %c0_24], %48 {strides = array<i32>} : memref<1024x1xf32, #tpu.memory_space<vmem>>, vector<1024x1xf32>,
    %c0_i32_25 = arith.constant 0 : i32
    %50 = arith.cmpi eq, %arg2, %c0_i32_25 : i32
    %51 = arith.extui %50 : i1 to i32
    %c0_i32_26 = arith.constant 0 : i32
    %52 = arith.cmpi ne, %51, %c0_i32_26 : i32
    scf.if %52 {
      %c0_27 = arith.constant 0 : index
      %c0_28 = arith.constant 0 : index
      %53 = vector.load %arg11[%c0_27, %c0_28] : memref<1024x1xf32, #tpu.memory_space<vmem>>, vector<1024x1xf32>
      %c0_29 = arith.constant 0 : index
      %c0_30 = arith.constant 0 : index
      %c0_31 = arith.constant 0 : index
      %c0_32 = arith.constant 0 : index
      %54 = vector.load %arg10[%c0_29, %c0_30, %c0_31, %c0_32] : memref<1x1x1024x1xf32, #tpu.memory_space<vmem>>, vector<1x1x1024x1xf32>
      %55 = vector.shape_cast %54 : vector<1x1x1024x1xf32> to vector<1024x1xf32>
      %56 = vector.shape_cast %53 : vector<1024x1xf32> to vector<1x1x1024x1xf32>
      tpu.vector_store %arg10[%c0_29, %c0_30, %c0_31, %c0_32], %56 {strides = array<i32>} : memref<1x1x1024x1xf32, #tpu.memory_space<vmem>>, vector<1x1x1024x1xf32>,
    } else {
    }
    return
  }
  func.func @transform_0(%arg0: i32, %arg1: i32, %arg2: i32) -> (i32, i32, i32) {
    %c1_i32 = arith.constant 1 : i32
    %0 = arith.muli %arg1, %c1_i32 : i32
    %1 = arith.addi %0, %arg2 : i32
    %c0_i32 = arith.constant 0 : i32
    %c0_i32_0 = arith.constant 0 : i32
    return %arg0, %c0_i32, %1 : i32, i32, i32
  }
  func.func @transform_1(%arg0: i32, %arg1: i32, %arg2: i32) -> (i32, i32, i32) {
    %c0_i32 = arith.constant 0 : i32
    %c0_i32_0 = arith.constant 0 : i32
    %c0_i32_1 = arith.constant 0 : i32
    return %arg0, %c0_i32, %c0_i32_0 : i32, i32, i32
  }
  func.func @transform_2(%arg0: i32, %arg1: i32, %arg2: i32) -> (i32, i32) {
    %c0_i32 = arith.constant 0 : i32
    %c0_i32_0 = arith.constant 0 : i32
    %c0_i32_1 = arith.constant 0 : i32
    return %c0_i32, %c0_i32_0 : i32, i32
  }
  func.func @transform_3(%arg0: i32, %arg1: i32, %arg2: i32) -> (i32, i32) {
    %c0_i32 = arith.constant 0 : i32
    %c0_i32_0 = arith.constant 0 : i32
    %c0_i32_1 = arith.constant 0 : i32
    return %c0_i32, %c0_i32_0 : i32, i32
  }
  func.func @transform_4(%arg0: i32, %arg1: i32, %arg2: i32) -> (i32, i32) {
    %c0_i32 = arith.constant 0 : i32
    %c0_i32_0 = arith.constant 0 : i32
    %c0_i32_1 = arith.constant 0 : i32
    return %c0_i32, %c0_i32_0 : i32, i32
  }
  func.func @transform_5(%arg0: i32, %arg1: i32, %arg2: i32) -> (i32, i32) {
    %c0_i32 = arith.constant 0 : i32
    %c0_i32_0 = arith.constant 0 : i32
    %c0_i32_1 = arith.constant 0 : i32
    return %c0_i32, %c0_i32_0 : i32, i32
  }
  func.func @transform_6(%arg0: i32, %arg1: i32, %arg2: i32) -> (i32, i32) {
    %c0_i32 = arith.constant 0 : i32
    %c0_i32_0 = arith.constant 0 : i32
    %c0_i32_1 = arith.constant 0 : i32
    return %c0_i32, %c0_i32_0 : i32, i32
  }
  func.func @transform_7(%arg0: i32, %arg1: i32, %arg2: i32) -> (i32, i32, i32, i32) {
    %c0_i32 = arith.constant 0 : i32
    %c0_i32_0 = arith.constant 0 : i32
    %c0_i32_1 = arith.constant 0 : i32
    return %arg0, %arg1, %c0_i32, %c0_i32_0 : i32, i32, i32, i32
  }
}

</mosaic_0001>

<bundles_post_ra>
// kernel: feature_net_forward.4
= control target key start
LH: loop header
LB: loop body
LE: loop exit
PB: predicated region body
PF: predicated region fallthrough
CT: control target
= control target key end

     0   :  { %v3528_v36 = vmov 1983009808   ;;  %v35_v38 = vlaneseq  ;;  %vm2632_vm0 = vcmask 66560   ;;  %s4667_s1 = inlined_call_operand.vmem [shape: bf16[1024,512], index: 1, kind: input, shape index: {}]   ;;  %s4668_s0 = inlined_call_operand.vmem [shape: f32[2,1024], index: 0, kind: input, shape index: {}]   ;;  %s4669_s3 = inlined_call_operand.vmem [shape: bf16[512,256], index: 3, kind: input, shape index: {}]   ;;  %s4670_s2 = inlined_call_operand.vmem [shape: f32[1,512], index: 2, kind: input, shape index: {}]   ;;  %s4671_s5 = inlined_call_operand.vmem [shape: bf16[256,9], index: 5, kind: input, shape index: {}]   ;;  %s4672_s4 = inlined_call_operand.vmem [shape: f32[1,256], index: 4, kind: input, shape index: {}]   ;;  %s4673_s6 = inlined_call_operand.vmem [shape: f32[1,9], index: 6, kind: input, shape index: {}]   ;;  %s4674_s7 = inlined_call_operand.vmem [shape: f32[2,9], index: 7, kind: output, shape index: {}]  }
   0x1   :  { %v3030_v0 = vld [vmem:[%s4667_s1 + $0x4] ss:$16 sps:$4 sm:$0xff]   ;;  %v3034_v2 = vld [vmem:[%s4667_s1] ss:$16 sps:$4 sm:$0xff]   ;;  %v33_v37 = vunpack.c.l.s4 %v3528_v36 }
   0x2   :  { %v3032_v1 = vld [vmem:[%s4667_s1 + $0x204] ss:$16 sps:$4 sm:$0xff]   ;;  %1639 = vmatprep.subr.bf16.mxu1 %v3030_v0  ;;  %v3035_v3 = vld [vmem:[%s4667_s1 + $0x200] ss:$16 sps:$4 sm:$0xff]   ;;  %v3686_v43 = vshrl.u32 %v35_v38, 7 }
   0x3   :  { %1680 = vmatprep.subr.bf16.mxu0 %v3032_v1  ;;  %v3036_v4 = vld [vmem:[%s4667_s1 + $0x24] ss:$16 sps:$4 sm:$0xff]   ;;  %1640 = vmatpush1.bf16.msra.mxu1 %v3034_v2  ;;  %v3040_v6 = vld [vmem:[%s4667_s1 + $0x20] ss:$16 sps:$4 sm:$0xff]   ;;  %v34_v42 = vunpack.c.0.s8 %v33_v37  ;;  %v3157_v37 = vld [vmem:[%s4667_s1 + $0x8c] ss:$16 sps:$4 sm:$0xff]  }
   0x4   :  { %1681 = vmatpush1.bf16.msra.mxu0 %v3035_v3  ;;  %v3038_v5 = vld [vmem:[%s4667_s1 + $0x224] ss:$16 sps:$4 sm:$0xff]   ;;  %1641 = vmatprep.subr.bf16.mxu1 %v3036_v4  ;;  %v3041_v7 = vld [vmem:[%s4667_s1 + $0x220] ss:$16 sps:$4 sm:$0xff]  }
   0x5   :  { %1682 = vmatprep.subr.bf16.mxu0 %v3038_v5  ;;  %v3042_v8 = vld [vmem:[%s4667_s1 + $0x44] ss:$16 sps:$4 sm:$0xff]   ;;  %v3046_v10 = vld [vmem:[%s4667_s1 + $0x40] ss:$16 sps:$4 sm:$0xff]   ;;  %v3704_v49 = vsub.s32 %v34_v42, %v3686_v43 }
   0x6   :  { %v3044_v9 = vld [vmem:[%s4667_s1 + $0x244] ss:$16 sps:$4 sm:$0xff]   ;;  %v3047_v11 = vld [vmem:[%s4667_s1 + $0x240] ss:$16 sps:$4 sm:$0xff]  }
   0x7   :  { %1642 = vmatpush1.bf16.msra.mxu1 %v3040_v6  ;;  %v3048_v12 = vld [vmem:[%s4667_s1 + $0x64] ss:$16 sps:$4 sm:$0xff]   ;;  %v3052_v14 = vld [vmem:[%s4667_s1 + $0x60] ss:$16 sps:$4 sm:$0xff]  }
   0x8   :  { %1683 = vmatpush1.bf16.msra.mxu0 %v3041_v7  ;;  %1643 = vmatprep.subr.bf16.mxu1 %v3042_v8  ;;  %v3050_v13 = vld [vmem:[%s4667_s1 + $0x264] ss:$16 sps:$4 sm:$0xff]   ;;  %v3053_v15 = vld [vmem:[%s4667_s1 + $0x260] ss:$16 sps:$4 sm:$0xff]   ;;  %v3759_v8 = vld [vmem:[%s4668_s0 + $0x8] sm:$0xff] }
   0x9   :  { %1684 = vmatprep.subr.bf16.mxu0 %v3044_v9  ;;  %v3054_v16 = vld [vmem:[%s4667_s1 + $0x84] ss:$16 sps:$4 sm:$0xff]   ;;  %v3058_v18 = vld [vmem:[%s4667_s1 + $0x80] ss:$16 sps:$4 sm:$0xff]  }
   0xa   :  { %v3056_v17 = vld [vmem:[%s4667_s1 + $0x284] ss:$16 sps:$4 sm:$0xff]   ;;  %v3059_v19 = vld [vmem:[%s4667_s1 + $0x280] ss:$16 sps:$4 sm:$0xff]  }
   0xb   :  { %1644 = vmatpush1.bf16.msra.mxu1 %v3046_v10  ;;  %v3060_v20 = vld [vmem:[%s4667_s1 + $0xa4] ss:$16 sps:$4 sm:$0xff]   ;;  %v3064_v22 = vld [vmem:[%s4667_s1 + $0xa0] ss:$16 sps:$4 sm:$0xff]  }
   0xc   :  { %1685 = vmatpush1.bf16.msra.mxu0 %v3047_v11  ;;  %1645 = vmatprep.subr.bf16.mxu1 %v3048_v12  ;;  %v3062_v21 = vld [vmem:[%s4667_s1 + $0x2a4] ss:$16 sps:$4 sm:$0xff]   ;;  %v3065_v23 = vld [vmem:[%s4667_s1 + $0x2a0] ss:$16 sps:$4 sm:$0xff]  }
   0xd   :  { %1686 = vmatprep.subr.bf16.mxu0 %v3050_v13  ;;  %v3066_v24 = vld [vmem:[%s4667_s1 + $0xc4] ss:$16 sps:$4 sm:$0xff]   ;;  %v3070_v26 = vld [vmem:[%s4667_s1 + $0xc0] ss:$16 sps:$4 sm:$0xff]   ;;  %v3775_v13 = vrot.slane %v3759_v8, %v3704_v49 }
   0xe   :  { %v3068_v25 = vld [vmem:[%s4667_s1 + $0x2c4] ss:$16 sps:$4 sm:$0xff]   ;;  %v3071_v27 = vld [vmem:[%s4667_s1 + $0x2c0] ss:$16 sps:$4 sm:$0xff]  }
   0xf   :  { %1646 = vmatpush1.bf16.msra.mxu1 %v3052_v14  ;;  %v3072_v28 = vld [vmem:[%s4667_s1 + $0xe4] ss:$16 sps:$4 sm:$0xff]   ;;  %v3076_v30 = vld [vmem:[%s4667_s1 + $0xe0] ss:$16 sps:$4 sm:$0xff]  }
  0x10   :  { %1687 = vmatpush1.bf16.msra.mxu0 %v3053_v15  ;;  %1647 = vmatprep.subr.bf16.mxu1 %v3054_v16  ;;  %v3074_v29 = vld [vmem:[%s4667_s1 + $0x2e4] ss:$16 sps:$4 sm:$0xff]   ;;  %v3077_v31 = vld [vmem:[%s4667_s1 + $0x2e0] ss:$16 sps:$4 sm:$0xff]  }
  0x11   :  { %1688 = vmatprep.subr.bf16.mxu0 %v3056_v17  ;;  %v3078_v32 = vld [vmem:[%s4667_s1 + $0x104] ss:$16 sps:$4 sm:$0xff]   ;;  %v3082_v34 = vld [vmem:[%s4667_s1 + $0x100] ss:$16 sps:$4 sm:$0xff]   ;;  %v3133_v17 = vld [vmem:[%s4667_s1 + $0xc] ss:$16 sps:$4 sm:$0xff]  }
  0x12   :  { %v3080_v33 = vld [vmem:[%s4667_s1 + $0x304] ss:$16 sps:$4 sm:$0xff]   ;;  %v3083_v35 = vld [vmem:[%s4667_s1 + $0x300] ss:$16 sps:$4 sm:$0xff]  }
  0x13   :  { %1648 = vmatpush1.bf16.msra.mxu1 %v3058_v18  ;;  %v3084_v39 = vld [vmem:[%s4667_s1 + $0x124] ss:$16 sps:$4 sm:$0xff]   ;;  %v3088_v41 = vld [vmem:[%s4667_s1 + $0x120] ss:$16 sps:$4 sm:$0xff]   ;;  %v63_v18 = vcombine.high %v3775_v13, %v3775_v13 }
  0x14   :  { %1689 = vmatpush1.bf16.msra.mxu0 %v3059_v19  ;;  %1649 = vmatprep.subr.bf16.mxu1 %v3060_v20  ;;  %v3086_v40 = vld [vmem:[%s4667_s1 + $0x324] ss:$16 sps:$4 sm:$0xff]   ;;  %v3089_v44 = vld [vmem:[%s4667_s1 + $0x320] ss:$16 sps:$4 sm:$0xff]  }
  0x15   :  { %1690 = vmatprep.subr.bf16.mxu0 %v3062_v21  ;;  %v3090_v45 = vld [vmem:[%s4667_s1 + $0x144] ss:$16 sps:$4 sm:$0xff]   ;;  %v3094_v47 = vld [vmem:[%s4667_s1 + $0x140] ss:$16 sps:$4 sm:$0xff]  }
  0x16   :  { %v3092_v46 = vld [vmem:[%s4667_s1 + $0x344] ss:$16 sps:$4 sm:$0xff]   ;;  %v3095_v48 = vld [vmem:[%s4667_s1 + $0x340] ss:$16 sps:$4 sm:$0xff]  }
  0x17   :  { %1650 = vmatpush1.bf16.msra.mxu1 %v3064_v22  ;;  %v3096_v50 = vld [vmem:[%s4667_s1 + $0x164] ss:$16 sps:$4 sm:$0xff]   ;;  %v3100_v55 = vld [vmem:[%s4667_s1 + $0x160] ss:$16 sps:$4 sm:$0xff]   ;;  %v3131_v22 = vld [vmem:[%s4667_s1 + $0x8] ss:$16 sps:$4 sm:$0xff]  }
  0x18   :  { %1691 = vmatpush1.bf16.msra.mxu0 %v3065_v23  ;;  %1651 = vmatprep.subr.bf16.mxu1 %v3066_v24  ;;  %v3098_v51 = vld [vmem:[%s4667_s1 + $0x364] ss:$16 sps:$4 sm:$0xff]   ;;  %v3101_v56 = vld [vmem:[%s4667_s1 + $0x360] ss:$16 sps:$4 sm:$0xff]   ;;  %v3139_v24 = vld [vmem:[%s4667_s1 + $0x2c] ss:$16 sps:$4 sm:$0xff]  }
  0x19   :  { %1692 = vmatprep.subr.bf16.mxu0 %v3068_v25  ;;  %v27_v52 = vld [vmem:[%s4668_s0] sm:$0xff]  ;;  %v3807_v25 = vpack.c.bf16 %v63_v18, %v63_v18  ;;  %v3217_v18 = vld [vmem:[%s4667_s1 + $0x1cc] ss:$16 sps:$4 sm:$0xff]  }
  0x1a   :  { %v38_v53 = vrot.slane %v27_v52, %v3704_v49  ;;  %v31_v54 = vcombine.high %v27_v52, %v27_v52  ;;  %v3102_v57 = vld [vmem:[%s4667_s1 + $0x184] ss:$16 sps:$4 sm:$0xff]   ;;  %v3106_v63 = vld [vmem:[%s4667_s1 + $0x180] ss:$16 sps:$4 sm:$0xff]  }
  0x1b   :  { %1652 = vmatpush1.bf16.msra.mxu1 %v3070_v26  ;;  %v3104_v58 = vld [vmem:[%s4667_s1 + $0x384] ss:$16 sps:$4 sm:$0xff]   ;;  %v3107_v0 = vld [vmem:[%s4667_s1 + $0x380] ss:$16 sps:$4 sm:$0xff]  }
  0x1c   :  { %1693 = vmatpush1.bf16.msra.mxu0 %v3071_v27  ;;  %1653 = vmatprep.subr.bf16.mxu1 %v3072_v28  ;;  %v46_v59 = vcombine.high %v38_v53, %v38_v53  ;;  %v45_v60 = vrot.slane %v31_v54, %v3704_v49  ;;  %v3108_v1 = vld [vmem:[%s4667_s1 + $0x1a4] ss:$16 sps:$4 sm:$0xff]   ;;  %v3112_v4 = vld [vmem:[%s4667_s1 + $0x1a0] ss:$16 sps:$4 sm:$0xff]   ;;  %v3791_v19 = vpack.c.bf16 %v38_v53, %v38_v53  ;;  %v3137_v27 = vld [vmem:[%s4667_s1 + $0x28] ss:$16 sps:$4 sm:$0xff]  }
  0x1d   :  { %1694 = vmatprep.subr.bf16.mxu0 %v3074_v29  ;;  %v3110_v2 = vld [vmem:[%s4667_s1 + $0x3a4] ss:$16 sps:$4 sm:$0xff]   ;;  %v3113_v5 = vld [vmem:[%s4667_s1 + $0x3a0] ss:$16 sps:$4 sm:$0xff]   ;;  %v3145_v29 = vld [vmem:[%s4667_s1 + $0x4c] ss:$16 sps:$4 sm:$0xff]  }
  0x1e   :  { %v74_v61 = vpack.c.bf16 %v46_v59, %v46_v59  ;;  %v47_v62 = vcombine.high %v45_v60, %v45_v60  ;;  %v3114_v6 = vld [vmem:[%s4667_s1 + $0x1c4] ss:$16 sps:$4 sm:$0xff]   ;;  %v3118_v9 = vld [vmem:[%s4667_s1 + $0x1c0] ss:$16 sps:$4 sm:$0xff]   ;;  %v3793_v20 = vpack.c.bf16 %v45_v60, %v45_v60  ;;  %v3173_v53 = vld [vmem:[%s4667_s1 + $0xe8] ss:$16 sps:$4 sm:$0xff]  }
  0x1f   :  { %1654 = vmatpush1.bf16.msra.mxu1 %v3076_v30  ;;  %v3116_v7 = vld [vmem:[%s4667_s1 + $0x3c4] ss:$16 sps:$4 sm:$0xff]   ;;  %v3119_v10 = vld [vmem:[%s4667_s1 + $0x3c0] ss:$16 sps:$4 sm:$0xff]   ;;  %v3187_v59 = vld [vmem:[%s4667_s1 + $0x12c] ss:$16 sps:$4 sm:$0xff]  }
  0x20   :  { %1695 = vmatpush1.bf16.msra.mxu0 %v3077_v31  ;;  %1655 = vmatprep.subr.bf16.mxu1 %v3078_v32  ;;  %v3741_v3 = vpack.c.bf16 %v47_v62, %v47_v62  ;;  %v3120_v11 = vld [vmem:[%s4667_s1 + $0x1e4] ss:$16 sps:$4 sm:$0xff]   ;;  %v3124_v14 = vld [vmem:[%s4667_s1 + $0x1e0] ss:$16 sps:$4 sm:$0xff]   ;;  %v3143_v31 = vld [vmem:[%s4667_s1 + $0x48] ss:$16 sps:$4 sm:$0xff]  }
  0x21   :  { %1696 = vmatprep.subr.bf16.mxu0 %v3080_v33  ;;  %1671 = vmatprep.mubr.bf16.mxu1 %v74_v61  ;;  %v3122_v12 = vld [vmem:[%s4667_s1 + $0x3e4] ss:$16 sps:$4 sm:$0xff]   ;;  %v3125_v15 = vld [vmem:[%s4667_s1 + $0x3e0] ss:$16 sps:$4 sm:$0xff]   ;;  %v3151_v33 = vld [vmem:[%s4667_s1 + $0x6c] ss:$16 sps:$4 sm:$0xff]  }
  0x22   :  { %1712 = vmatprep.mubr.bf16.mxu0 %v3741_v3  ;;  %v3130_v16 = vld [vmem:[%s4667_s1 + $0x404] ss:$16 sps:$4 sm:$0xff]   ;;  %v3128_v21 = vld [vmem:[%s4667_s1 + $0x400] ss:$16 sps:$4 sm:$0xff]  }
  0x23   :  { %1656 = vmatpush1.bf16.msra.mxu1 %v3082_v34  ;;  %v3136_v23 = vld [vmem:[%s4667_s1 + $0x424] ss:$16 sps:$4 sm:$0xff]   ;;  %v3134_v26 = vld [vmem:[%s4667_s1 + $0x420] ss:$16 sps:$4 sm:$0xff]  }
  0x24   :  { %1697 = vmatpush1.bf16.msra.mxu0 %v3083_v35  ;;  %1657 = vmatprep.subr.bf16.mxu1 %v3084_v39  ;;  %v3142_v28 = vld [vmem:[%s4667_s1 + $0x444] ss:$16 sps:$4 sm:$0xff]   ;;  %v3140_v30 = vld [vmem:[%s4667_s1 + $0x440] ss:$16 sps:$4 sm:$0xff]   ;;  %v3149_v35 = vld [vmem:[%s4667_s1 + $0x68] ss:$16 sps:$4 sm:$0xff]  }
  0x25   :  { %1698 = vmatprep.subr.bf16.mxu0 %v3086_v40  ;;  %v3148_v32 = vld [vmem:[%s4667_s1 + $0x464] ss:$16 sps:$4 sm:$0xff]   ;;  %v3146_v34 = vld [vmem:[%s4667_s1 + $0x460] ss:$16 sps:$4 sm:$0xff]   ;;  %v3155_v39 = vld [vmem:[%s4667_s1 + $0x88] ss:$16 sps:$4 sm:$0xff]  }
  0x26   :  { %v3154_v36 = vld [vmem:[%s4667_s1 + $0x484] ss:$16 sps:$4 sm:$0xff]   ;;  %v3152_v38 = vld [vmem:[%s4667_s1 + $0x480] ss:$16 sps:$4 sm:$0xff]  }
  0x27   :  { %1658 = vmatpush1.bf16.msra.mxu1 %v3088_v41  ;;  %v3160_v40 = vld [vmem:[%s4667_s1 + $0x4a4] ss:$16 sps:$4 sm:$0xff]   ;;  %v3163_v41 = vld [vmem:[%s4667_s1 + $0xac] ss:$16 sps:$4 sm:$0xff]   ;;  %v3158_v42 = vld [vmem:[%s4667_s1 + $0x4a0] ss:$16 sps:$4 sm:$0xff]  }
  0x28   :  { %1699 = vmatpush1.bf16.msra.mxu0 %v3089_v44  ;;  %1659 = vmatprep.subr.bf16.mxu1 %v3090_v45  ;;  %v3161_v44 = vld [vmem:[%s4667_s1 + $0xa8] ss:$16 sps:$4 sm:$0xff]   ;;  %v3166_v45 = vld [vmem:[%s4667_s1 + $0x4c4] ss:$16 sps:$4 sm:$0xff]   ;;  %v3170_v52 = vld [vmem:[%s4667_s1 + $0x4e0] ss:$16 sps:$4 sm:$0xff]  }
  0x29   :  { %1700 = vmatprep.subr.bf16.mxu0 %v3092_v46  ;;  %v3169_v46 = vld [vmem:[%s4667_s1 + $0xcc] ss:$16 sps:$4 sm:$0xff]   ;;  %v3178_v54 = vld [vmem:[%s4667_s1 + $0x504] ss:$16 sps:$4 sm:$0xff]   ;;  %v3182_v60 = vld [vmem:[%s4667_s1 + $0x520] ss:$16 sps:$4 sm:$0xff]  }
  0x2a   :  { %v3190_v62 = vld [vmem:[%s4667_s1 + $0x544] ss:$16 sps:$4 sm:$0xff]  }
  0x2b   :  { %1660 = vmatpush1.bf16.msra.mxu1 %v3094_v47  ;;  %v3164_v47 = vld [vmem:[%s4667_s1 + $0x4c0] ss:$16 sps:$4 sm:$0xff]  }
  0x2c   :  { %1701 = vmatpush1.bf16.msra.mxu0 %v3095_v48  ;;  %1661 = vmatprep.subr.bf16.mxu1 %v3096_v50  ;;  %v3167_v48 = vld [vmem:[%s4667_s1 + $0xc8] ss:$16 sps:$4 sm:$0xff]   ;;  %v3172_v50 = vld [vmem:[%s4667_s1 + $0x4e4] ss:$16 sps:$4 sm:$0xff]  }
  0x2d   :  { %1702 = vmatprep.subr.bf16.mxu0 %v3098_v51  ;;  %v3175_v51 = vld [vmem:[%s4667_s1 + $0xec] ss:$16 sps:$4 sm:$0xff]  }
  0x2f   :  { %1662 = vmatpush1.bf16.msra.mxu1 %v3100_v55  ;;  %v3181_v55 = vld [vmem:[%s4667_s1 + $0x10c] ss:$16 sps:$4 sm:$0xff]  }
  0x30   :  { %1703 = vmatpush1.bf16.msra.mxu0 %v3101_v56  ;;  %1663 = vmatprep.subr.bf16.mxu1 %v3102_v57  ;;  %v3176_v56 = vld [vmem:[%s4667_s1 + $0x500] ss:$16 sps:$4 sm:$0xff]   ;;  %v3179_v57 = vld [vmem:[%s4667_s1 + $0x108] ss:$16 sps:$4 sm:$0xff]  }
  0x31   :  { %1704 = vmatprep.subr.bf16.mxu0 %v3104_v58  ;;  %v3184_v58 = vld [vmem:[%s4667_s1 + $0x524] ss:$16 sps:$4 sm:$0xff]  }
  0x33   :  { %1664 = vmatpush1.bf16.msra.mxu1 %v3106_v63  ;;  %v3193_v63 = vld [vmem:[%s4667_s1 + $0x14c] ss:$16 sps:$4 sm:$0xff]  }
  0x34   :  { %1705 = vmatpush1.bf16.msra.mxu0 %v3107_v0  ;;  %1665 = vmatprep.subr.bf16.mxu1 %v3108_v1  ;;  %v3188_v0 = vld [vmem:[%s4667_s1 + $0x540] ss:$16 sps:$4 sm:$0xff]   ;;  %v3191_v1 = vld [vmem:[%s4667_s1 + $0x148] ss:$16 sps:$4 sm:$0xff]  }
  0x35   :  { %1706 = vmatprep.subr.bf16.mxu0 %v3110_v2  ;;  %v3196_v2 = vld [vmem:[%s4667_s1 + $0x564] ss:$16 sps:$4 sm:$0xff]  }
  0x37   :  { %1666 = vmatpush1.bf16.msra.mxu1 %v3112_v4  ;;  %v3199_v4 = vld [vmem:[%s4667_s1 + $0x16c] ss:$16 sps:$4 sm:$0xff]  }
  0x38   :  { %1707 = vmatpush1.bf16.msra.mxu0 %v3113_v5  ;;  %1667 = vmatprep.subr.bf16.mxu1 %v3114_v6  ;;  %v3194_v5 = vld [vmem:[%s4667_s1 + $0x560] ss:$16 sps:$4 sm:$0xff]   ;;  %v3197_v6 = vld [vmem:[%s4667_s1 + $0x168] ss:$16 sps:$4 sm:$0xff]  }
  0x39   :  { %1708 = vmatprep.subr.bf16.mxu0 %v3116_v7  ;;  %v3202_v7 = vld [vmem:[%s4667_s1 + $0x584] ss:$16 sps:$4 sm:$0xff]  }
  0x3b   :  { %1668 = vmatpush1.bf16.msra.mxu1 %v3118_v9  ;;  %v3205_v9 = vld [vmem:[%s4667_s1 + $0x18c] ss:$16 sps:$4 sm:$0xff]  }
  0x3c   :  { %1709 = vmatpush1.bf16.msra.mxu0 %v3119_v10  ;;  %1669 = vmatprep.subr.bf16.mxu1 %v3120_v11  ;;  %v3200_v10 = vld [vmem:[%s4667_s1 + $0x580] ss:$16 sps:$4 sm:$0xff]   ;;  %v3203_v11 = vld [vmem:[%s4667_s1 + $0x188] ss:$16 sps:$4 sm:$0xff]  }
  0x3d   :  { %1710 = vmatprep.subr.bf16.mxu0 %v3122_v12  ;;  %v3208_v12 = vld [vmem:[%s4667_s1 + $0x5a4] ss:$16 sps:$4 sm:$0xff]  }
  0x3f   :  { %1670 = vmatpush1.bf16.msra.mxu1 %v3124_v14  ;;  %v3211_v14 = vld [vmem:[%s4667_s1 + $0x1ac] ss:$16 sps:$4 sm:$0xff]  }
  0x40   :  { %1711 = vmatpush1.bf16.msra.mxu0 %v3125_v15  ;;  %1803 = vmatprep.subr.bf16.mxu1 %v3133_v17  ;;  %v3206_v15 = vld [vmem:[%s4667_s1 + $0x5a0] ss:$16 sps:$4 sm:$0xff]   ;;  %v3214_v17 = vld [vmem:[%s4667_s1 + $0x5c4] ss:$16 sps:$4 sm:$0xff]  }
  0x41   :  { %1721 = vmatprep.subr.bf16.mxu0 %v3130_v16  ;;  %v3209_v16 = vld [vmem:[%s4667_s1 + $0x1a8] ss:$16 sps:$4 sm:$0xff]  }
  0x42   :  { %1672 = vmatmul.mubr.bf16.vlgmr.msra.gmra.mrb[0].mxu1 %v3791_v19 }
  0x43   :  { %1713 = vmatmul.mubr.bf16.vlgmr.msra.gmra.mrb[0].mxu0 %v3793_v20  ;;  %1804 = vmatpush1.bf16.msra.mxu1 %v3131_v22  ;;  %v3212_v22 = vld [vmem:[%s4667_s1 + $0x5c0] ss:$16 sps:$4 sm:$0xff]  }
  0x44   :  { %1722 = vmatpush1.bf16.msra.mxu0 %v3128_v21  ;;  %1805 = vmatprep.subr.bf16.mxu1 %v3139_v24  ;;  %v48_v21 = vcombine.high %v3759_v8, %v3759_v8  ;;  %v3220_v24 = vld [vmem:[%s4667_s1 + $0x5e4] ss:$16 sps:$4 sm:$0xff]   ;;  %v3223_v8 = vld [vmem:[%s4667_s1 + $0x1ec] ss:$16 sps:$4 sm:$0xff]  }
  0x45   :  { %1723 = vmatprep.subr.bf16.mxu0 %v3136_v23  ;;  %1753 = vmatprep.mubr.bf16.mxu0 %v3807_v25  ;;  %v3215_v23 = vld [vmem:[%s4667_s1 + $0x1c8] ss:$16 sps:$4 sm:$0xff]  }
  0x46   :  { %1835 = vmatprep.mubr.bf16.mxu1 %v74_v61  ;;  %v3185_v61 = vld [vmem:[%s4667_s1 + $0x128] ss:$16 sps:$4 sm:$0xff]  }
  0x47   :  { %1806 = vmatpush1.bf16.msra.mxu1 %v3137_v27  ;;  %v3218_v27 = vld [vmem:[%s4667_s1 + $0x5e0] ss:$16 sps:$4 sm:$0xff]  }
  0x48   :  { %1724 = vmatpush1.bf16.msra.mxu0 %v3134_v26  ;;  %1807 = vmatprep.subr.bf16.mxu1 %v3145_v29  ;;  %v3983_v26 = vrot.slane %v48_v21, %v3704_v49  ;;  %v3226_v29 = vld [vmem:[%s4667_s1 + $0x604] ss:$16 sps:$4 sm:$0xff]   ;;  %v3229_v49 = vld [vmem:[%s4667_s1 + $0x20c] ss:$16 sps:$4 sm:$0xff]   ;;  %v3296_v21 = vld [vmem:[%s4667_s1 + $0x780] ss:$16 sps:$4 sm:$0xff]  }
  0x49   :  { %1725 = vmatprep.subr.bf16.mxu0 %v3142_v28  ;;  %v3221_v28 = vld [vmem:[%s4667_s1 + $0x1e8] ss:$16 sps:$4 sm:$0xff]  }
  0x4b   :  { %1808 = vmatpush1.bf16.msra.mxu1 %v3143_v31  ;;  %v4001_v31 = vpack.c.bf16 %v3775_v13, %v3775_v13  ;;  %v3235_v13 = vld [vmem:[%s4667_s1 + $0x22c] ss:$16 sps:$4 sm:$0xff]  }
  0x4c   :  { %1726 = vmatpush1.bf16.msra.mxu0 %v3140_v30  ;;  %1809 = vmatprep.subr.bf16.mxu1 %v3151_v33  ;;  %v64_v30 = vcombine.high %v3983_v26, %v3983_v26  ;;  %v3227_v33 = vld [vmem:[%s4667_s1 + $0x208] ss:$16 sps:$4 sm:$0xff]  }
  0x4d   :  { %1727 = vmatprep.subr.bf16.mxu0 %v3148_v32  ;;  %v3224_v32 = vld [vmem:[%s4667_s1 + $0x600] ss:$16 sps:$4 sm:$0xff]  }
  0x4f   :  { %1810 = vmatpush1.bf16.msra.mxu1 %v3149_v35  ;;  %v4015_v35 = vpack.c.bf16 %v64_v30, %v64_v30  ;;  %v3311_v30 = vld [vmem:[%s4667_s1 + $0x3c8] ss:$16 sps:$4 sm:$0xff]  }
  0x50   :  { %1728 = vmatpush1.bf16.msra.mxu0 %v3146_v34  ;;  %1811 = vmatprep.subr.bf16.mxu1 %v3157_v37  ;;  %v3232_v34 = vld [vmem:[%s4667_s1 + $0x624] ss:$16 sps:$4 sm:$0xff]   ;;  %v3233_v37 = vld [vmem:[%s4667_s1 + $0x228] ss:$16 sps:$4 sm:$0xff]  }
  0x51   :  { %1729 = vmatprep.subr.bf16.mxu0 %v3154_v36  ;;  %v3230_v36 = vld [vmem:[%s4667_s1 + $0x620] ss:$16 sps:$4 sm:$0xff]  }
  0x53   :  { %1812 = vmatpush1.bf16.msra.mxu1 %v3155_v39  ;;  %v3236_v39 = vld [vmem:[%s4667_s1 + $0x640] ss:$16 sps:$4 sm:$0xff]  }
  0x54   :  { %1730 = vmatpush1.bf16.msra.mxu0 %v3152_v38  ;;  %1813 = vmatprep.subr.bf16.mxu1 %v3163_v41  ;;  %v3238_v38 = vld [vmem:[%s4667_s1 + $0x644] ss:$16 sps:$4 sm:$0xff]  }
  0x55   :  { %1731 = vmatprep.subr.bf16.mxu0 %v3160_v40  ;;  %v3239_v40 = vld [vmem:[%s4667_s1 + $0x248] ss:$16 sps:$4 sm:$0xff]   ;;  %v3244_v41 = vld [vmem:[%s4667_s1 + $0x664] ss:$16 sps:$4 sm:$0xff]  }
  0x57   :  { %1814 = vmatpush1.bf16.msra.mxu1 %v3161_v44  ;;  %v3245_v44 = vld [vmem:[%s4667_s1 + $0x268] ss:$16 sps:$4 sm:$0xff]  }
  0x58   :  { %1732 = vmatpush1.bf16.msra.mxu0 %v3158_v42  ;;  %1815 = vmatprep.subr.bf16.mxu1 %v3169_v46  ;;  %v3242_v42 = vld [vmem:[%s4667_s1 + $0x660] ss:$16 sps:$4 sm:$0xff]   ;;  %v3253_v46 = vld [vmem:[%s4667_s1 + $0x28c] ss:$16 sps:$4 sm:$0xff]  }
  0x59   :  { %1733 = vmatprep.subr.bf16.mxu0 %v3166_v45  ;;  %v3250_v45 = vld [vmem:[%s4667_s1 + $0x684] ss:$16 sps:$4 sm:$0xff]  }
  0x5b   :  { %1816 = vmatpush1.bf16.msra.mxu1 %v3167_v48  ;;  %v3251_v48 = vld [vmem:[%s4667_s1 + $0x288] ss:$16 sps:$4 sm:$0xff]  }
  0x5c   :  { %1734 = vmatpush1.bf16.msra.mxu0 %v3164_v47  ;;  %1817 = vmatprep.subr.bf16.mxu1 %v3175_v51  ;;  %v3248_v47 = vld [vmem:[%s4667_s1 + $0x680] ss:$16 sps:$4 sm:$0xff]   ;;  %v3259_v51 = vld [vmem:[%s4667_s1 + $0x2ac] ss:$16 sps:$4 sm:$0xff]  }
  0x5d   :  { %1735 = vmatprep.subr.bf16.mxu0 %v3172_v50  ;;  %v3256_v50 = vld [vmem:[%s4667_s1 + $0x6a4] ss:$16 sps:$4 sm:$0xff]  }
  0x5f   :  { %1818 = vmatpush1.bf16.msra.mxu1 %v3173_v53  ;;  %v3257_v53 = vld [vmem:[%s4667_s1 + $0x2a8] ss:$16 sps:$4 sm:$0xff]  }
  0x60   :  { %1736 = vmatpush1.bf16.msra.mxu0 %v3170_v52  ;;  %1819 = vmatprep.subr.bf16.mxu1 %v3181_v55  ;;  %v3254_v52 = vld [vmem:[%s4667_s1 + $0x6a0] ss:$16 sps:$4 sm:$0xff]   ;;  %v3265_v55 = vld [vmem:[%s4667_s1 + $0x2cc] ss:$16 sps:$4 sm:$0xff]  }
  0x61   :  { %1737 = vmatprep.subr.bf16.mxu0 %v3178_v54  ;;  %v3262_v54 = vld [vmem:[%s4667_s1 + $0x6c4] ss:$16 sps:$4 sm:$0xff]  }
  0x63   :  { %1820 = vmatpush1.bf16.msra.mxu1 %v3179_v57  ;;  %v3263_v57 = vld [vmem:[%s4667_s1 + $0x2c8] ss:$16 sps:$4 sm:$0xff]  }
  0x64   :  { %1738 = vmatpush1.bf16.msra.mxu0 %v3176_v56  ;;  %1821 = vmatprep.subr.bf16.mxu1 %v3187_v59  ;;  %v3260_v56 = vld [vmem:[%s4667_s1 + $0x6c0] ss:$16 sps:$4 sm:$0xff]   ;;  %v3271_v59 = vld [vmem:[%s4667_s1 + $0x2ec] ss:$16 sps:$4 sm:$0xff]  }
  0x65   :  { %1739 = vmatprep.subr.bf16.mxu0 %v3184_v58  ;;  %v3268_v58 = vld [vmem:[%s4667_s1 + $0x6e4] ss:$16 sps:$4 sm:$0xff]  }
  0x67   :  { %1822 = vmatpush1.bf16.msra.mxu1 %v3185_v61  ;;  %v3269_v61 = vld [vmem:[%s4667_s1 + $0x2e8] ss:$16 sps:$4 sm:$0xff]  }
  0x68   :  { %1740 = vmatpush1.bf16.msra.mxu0 %v3182_v60  ;;  %1823 = vmatprep.subr.bf16.mxu1 %v3193_v63  ;;  %v3266_v60 = vld [vmem:[%s4667_s1 + $0x6e0] ss:$16 sps:$4 sm:$0xff]   ;;  %v3277_v63 = vld [vmem:[%s4667_s1 + $0x30c] ss:$16 sps:$4 sm:$0xff]  }
  0x69   :  { %1741 = vmatprep.subr.bf16.mxu0 %v3190_v62  ;;  %v3274_v62 = vld [vmem:[%s4667_s1 + $0x704] ss:$16 sps:$4 sm:$0xff]  }
  0x6b   :  { %1824 = vmatpush1.bf16.msra.mxu1 %v3191_v1  ;;  %v3275_v1 = vld [vmem:[%s4667_s1 + $0x308] ss:$16 sps:$4 sm:$0xff]  }
  0x6c   :  { %1742 = vmatpush1.bf16.msra.mxu0 %v3188_v0  ;;  %1825 = vmatprep.subr.bf16.mxu1 %v3199_v4  ;;  %v3272_v0 = vld [vmem:[%s4667_s1 + $0x700] ss:$16 sps:$4 sm:$0xff]   ;;  %v3283_v4 = vld [vmem:[%s4667_s1 + $0x32c] ss:$16 sps:$4 sm:$0xff]  }
  0x6d   :  { %1743 = vmatprep.subr.bf16.mxu0 %v3196_v2  ;;  %v3280_v2 = vld [vmem:[%s4667_s1 + $0x724] ss:$16 sps:$4 sm:$0xff]  }
  0x6f   :  { %1826 = vmatpush1.bf16.msra.mxu1 %v3197_v6  ;;  %v3281_v6 = vld [vmem:[%s4667_s1 + $0x328] ss:$16 sps:$4 sm:$0xff]  }
  0x70   :  { %1744 = vmatpush1.bf16.msra.mxu0 %v3194_v5  ;;  %1827 = vmatprep.subr.bf16.mxu1 %v3205_v9  ;;  %v3278_v5 = vld [vmem:[%s4667_s1 + $0x720] ss:$16 sps:$4 sm:$0xff]   ;;  %v3289_v9 = vld [vmem:[%s4667_s1 + $0x34c] ss:$16 sps:$4 sm:$0xff]  }
  0x71   :  { %1745 = vmatprep.subr.bf16.mxu0 %v3202_v7  ;;  %v3286_v7 = vld [vmem:[%s4667_s1 + $0x744] ss:$16 sps:$4 sm:$0xff]  }
  0x73   :  { %1828 = vmatpush1.bf16.msra.mxu1 %v3203_v11  ;;  %v3287_v11 = vld [vmem:[%s4667_s1 + $0x348] ss:$16 sps:$4 sm:$0xff]  }
  0x74   :  { %1746 = vmatpush1.bf16.msra.mxu0 %v3200_v10  ;;  %1829 = vmatprep.subr.bf16.mxu1 %v3211_v14  ;;  %v3284_v10 = vld [vmem:[%s4667_s1 + $0x740] ss:$16 sps:$4 sm:$0xff]   ;;  %v3295_v14 = vld [vmem:[%s4667_s1 + $0x36c] ss:$16 sps:$4 sm:$0xff]  }
  0x75   :  { %1747 = vmatprep.subr.bf16.mxu0 %v3208_v12  ;;  %v3292_v12 = vld [vmem:[%s4667_s1 + $0x764] ss:$16 sps:$4 sm:$0xff]  }
  0x77   :  { %1830 = vmatpush1.bf16.msra.mxu1 %v3209_v16  ;;  %v3293_v16 = vld [vmem:[%s4667_s1 + $0x368] ss:$16 sps:$4 sm:$0xff]  }
  0x78   :  { %1748 = vmatpush1.bf16.msra.mxu0 %v3206_v15  ;;  %1831 = vmatprep.subr.bf16.mxu1 %v3217_v18  ;;  %v3290_v15 = vld [vmem:[%s4667_s1 + $0x760] ss:$16 sps:$4 sm:$0xff]   ;;  %v3301_v18 = vld [vmem:[%s4667_s1 + $0x38c] ss:$16 sps:$4 sm:$0xff]  }
  0x79   :  { %1749 = vmatprep.subr.bf16.mxu0 %v3214_v17  ;;  %v3298_v17 = vld [vmem:[%s4667_s1 + $0x784] ss:$16 sps:$4 sm:$0xff]  }
  0x7b   :  { %1832 = vmatpush1.bf16.msra.mxu1 %v3215_v23  ;;  %v3304_v23 = vld [vmem:[%s4667_s1 + $0x7a4] ss:$16 sps:$4 sm:$0xff]  }
  0x7c   :  { %1750 = vmatpush1.bf16.msra.mxu0 %v3212_v22  ;;  %1833 = vmatprep.subr.bf16.mxu1 %v3223_v8  ;;  %v3299_v22 = vld [vmem:[%s4667_s1 + $0x388] ss:$16 sps:$4 sm:$0xff]   ;;  %v3302_v8 = vld [vmem:[%s4667_s1 + $0x7a0] ss:$16 sps:$4 sm:$0xff]  }
  0x7d   :  { %1751 = vmatprep.subr.bf16.mxu0 %v3220_v24  ;;  %v3307_v24 = vld [vmem:[%s4667_s1 + $0x3ac] ss:$16 sps:$4 sm:$0xff]  }
  0x7f   :  { %1834 = vmatpush1.bf16.msra.mxu1 %v3221_v28  ;;  %v3310_v28 = vld [vmem:[%s4667_s1 + $0x7c4] ss:$16 sps:$4 sm:$0xff]  }
  0x80   :  { %1752 = vmatpush1.bf16.msra.mxu0 %v3218_v27  ;;  %1844 = vmatprep.subr.bf16.mxu1 %v3229_v49  ;;  %v3305_v27 = vld [vmem:[%s4667_s1 + $0x3a8] ss:$16 sps:$4 sm:$0xff]   ;;  %v3308_v49 = vld [vmem:[%s4667_s1 + $0x7c0] ss:$16 sps:$4 sm:$0xff]  }
  0x81   :  { %1762 = vmatprep.subr.bf16.mxu0 %v3226_v29  ;;  %v3313_v29 = vld [vmem:[%s4667_s1 + $0x3cc] ss:$16 sps:$4 sm:$0xff]  }
  0x82   :  { %1836 = vmatmul.mubr.bf16.vlgmr.msra.gmra.mrb[4].mxu1 %v3791_v19  ;;  %v3241_v19 = vld [vmem:[%s4667_s1 + $0x24c] ss:$16 sps:$4 sm:$0xff]  }
  0x83   :  { %1754 = vmatmul.mubr.bf16.vlgmr.msra.gmra.mrb[0].mxu0 %v4001_v31  ;;  %1845 = vmatpush1.bf16.msra.mxu1 %v3227_v33  ;;  %v3319_v33 = vld [vmem:[%s4667_s1 + $0x3ec] ss:$16 sps:$4 sm:$0xff]  }
  0x84   :  { %1763 = vmatpush1.bf16.msra.mxu0 %v3224_v32  ;;  %1846 = vmatprep.subr.bf16.mxu1 %v3235_v13  ;;  %v3316_v32 = vld [vmem:[%s4667_s1 + $0x7e4] ss:$16 sps:$4 sm:$0xff]   ;;  %v3317_v13 = vld [vmem:[%s4667_s1 + $0x3e8] ss:$16 sps:$4 sm:$0xff]  }
  0x85   :  { %1764 = vmatprep.subr.bf16.mxu0 %v3232_v34  ;;  %1794 = vmatprep.mubr.bf16.mxu0 %v4015_v35  ;;  %v3314_v34 = vld [vmem:[%s4667_s1 + $0x7e0] ss:$16 sps:$4 sm:$0xff]  }
  0x86   :  { %1876 = vmatprep.mubr.bf16.mxu1 %v3741_v3  ;;  %v3247_v3 = vld [vmem:[%s4667_s1 + $0x26c] ss:$16 sps:$4 sm:$0xff]  }
  0x87   :  { %1847 = vmatpush1.bf16.msra.mxu1 %v3233_v37  ;;  %v4200_v37 = vpack.c.bf16 %v3983_v26, %v3983_v26  ;;  %v3323_v26 = vld [vmem:[%s4667_s1 + $0x428] ss:$16 sps:$4 sm:$0xff]  }
  0x88   :  { %1765 = vmatpush1.bf16.msra.mxu0 %v3230_v36  ;;  %1848 = vmatprep.subr.bf16.mxu1 %v3241_v19  ;;  %v3322_v36 = vld [vmem:[%s4667_s1 + $0x40c] ss:$16 sps:$4 sm:$0xff]  }
  0x89   :  { %1766 = vmatprep.subr.bf16.mxu0 %v3238_v38  ;;  %v3320_v38 = vld [vmem:[%s4667_s1 + $0x408] ss:$16 sps:$4 sm:$0xff]   ;;  %v3325_v19 = vld [vmem:[%s4667_s1 + $0x42c] ss:$16 sps:$4 sm:$0xff]  }
  0x8b   :  { %1849 = vmatpush1.bf16.msra.mxu1 %v3239_v40  ;;  %v3416_v40 = vld [vmem:[%s4669_s3] ss:$8 sps:$4 sm:$0xff]  }
  0x8c   :  { %1767 = vmatpush1.bf16.msra.mxu0 %v3236_v39  ;;  %1850 = vmatprep.subr.bf16.mxu1 %v3247_v3  ;;  %v3328_v39 = vld [vmem:[%s4667_s1 + $0x44c] ss:$16 sps:$4 sm:$0xff]   ;;  %v3326_v3 = vld [vmem:[%s4667_s1 + $0x448] ss:$16 sps:$4 sm:$0xff]  }
  0x8d   :  { %1768 = vmatprep.subr.bf16.mxu0 %v3244_v41  ;;  %v3421_v41 = vld [vmem:[%s4669_s3 + $0x14] ss:$8 sps:$4 sm:$0xff]  }
  0x8f   :  { %1851 = vmatpush1.bf16.msra.mxu1 %v3245_v44  ;;  %v3424_v44 = vld [vmem:[%s4669_s3 + $0x24] ss:$8 sps:$4 sm:$0xff]  }
  0x90   :  { %1769 = vmatpush1.bf16.msra.mxu0 %v3242_v42  ;;  %1852 = vmatprep.subr.bf16.mxu1 %v3253_v46  ;;  %v3419_v42 = vld [vmem:[%s4669_s3 + $0x10] ss:$8 sps:$4 sm:$0xff]   ;;  %v3334_v46 = vld [vmem:[%s4667_s1 + $0x48c] ss:$16 sps:$4 sm:$0xff]  }
  0x91   :  { %1770 = vmatprep.subr.bf16.mxu0 %v3250_v45  ;;  %v3329_v45 = vld [vmem:[%s4667_s1 + $0x468] ss:$16 sps:$4 sm:$0xff]  }
  0x93   :  { %1853 = vmatpush1.bf16.msra.mxu1 %v3251_v48  ;;  %v3427_v48 = vld [vmem:[%s4669_s3 + $0x34] ss:$8 sps:$4 sm:$0xff]  }
  0x94   :  { %1771 = vmatpush1.bf16.msra.mxu0 %v3248_v47  ;;  %1854 = vmatprep.subr.bf16.mxu1 %v3259_v51  ;;  %v3422_v47 = vld [vmem:[%s4669_s3 + $0x20] ss:$8 sps:$4 sm:$0xff]   ;;  %v3337_v51 = vld [vmem:[%s4667_s1 + $0x4ac] ss:$16 sps:$4 sm:$0xff]  }
  0x95   :  { %1772 = vmatprep.subr.bf16.mxu0 %v3256_v50  ;;  %v3332_v50 = vld [vmem:[%s4667_s1 + $0x488] ss:$16 sps:$4 sm:$0xff]  }
  0x97   :  { %1855 = vmatpush1.bf16.msra.mxu1 %v3257_v53  ;;  %v3430_v53 = vld [vmem:[%s4669_s3 + $0x44] ss:$8 sps:$4 sm:$0xff]  }
  0x98   :  { %1773 = vmatpush1.bf16.msra.mxu0 %v3254_v52  ;;  %1856 = vmatprep.subr.bf16.mxu1 %v3265_v55  ;;  %v3425_v52 = vld [vmem:[%s4669_s3 + $0x30] ss:$8 sps:$4 sm:$0xff]   ;;  %v3340_v55 = vld [vmem:[%s4667_s1 + $0x4cc] ss:$16 sps:$4 sm:$0xff]  }
  0x99   :  { %1774 = vmatprep.subr.bf16.mxu0 %v3262_v54  ;;  %v3335_v54 = vld [vmem:[%s4667_s1 + $0x4a8] ss:$16 sps:$4 sm:$0xff]  }
  0x9b   :  { %1857 = vmatpush1.bf16.msra.mxu1 %v3263_v57  ;;  %v3433_v57 = vld [vmem:[%s4669_s3 + $0x54] ss:$8 sps:$4 sm:$0xff]  }
  0x9c   :  { %1775 = vmatpush1.bf16.msra.mxu0 %v3260_v56  ;;  %1858 = vmatprep.subr.bf16.mxu1 %v3271_v59  ;;  %v3428_v56 = vld [vmem:[%s4669_s3 + $0x40] ss:$8 sps:$4 sm:$0xff]   ;;  %v3431_v59 = vld [vmem:[%s4669_s3 + $0x50] ss:$8 sps:$4 sm:$0xff]  }
  0x9d   :  { %1776 = vmatprep.subr.bf16.mxu0 %v3268_v58  ;;  %v3338_v58 = vld [vmem:[%s4667_s1 + $0x4c8] ss:$16 sps:$4 sm:$0xff]  }
  0x9f   :  { %1859 = vmatpush1.bf16.msra.mxu1 %v3269_v61  ;;  %v3436_v61 = vld [vmem:[%s4669_s3 + $0x64] ss:$8 sps:$4 sm:$0xff]  }
  0xa0   :  { %1777 = vmatpush1.bf16.msra.mxu0 %v3266_v60  ;;  %1860 = vmatprep.subr.bf16.mxu1 %v3277_v63  ;;  %v3343_v60 = vld [vmem:[%s4667_s1 + $0x4ec] ss:$16 sps:$4 sm:$0xff]   ;;  %v3434_v63 = vld [vmem:[%s4669_s3 + $0x60] ss:$8 sps:$4 sm:$0xff]  }
  0xa1   :  { %1778 = vmatprep.subr.bf16.mxu0 %v3274_v62  ;;  %v3341_v62 = vld [vmem:[%s4667_s1 + $0x4e8] ss:$16 sps:$4 sm:$0xff]  }
  0xa3   :  { %1861 = vmatpush1.bf16.msra.mxu1 %v3275_v1  ;;  %v3439_v1 = vld [vmem:[%s4669_s3 + $0x74] ss:$8 sps:$4 sm:$0xff]  }
  0xa4   :  { %1779 = vmatpush1.bf16.msra.mxu0 %v3272_v0  ;;  %1862 = vmatprep.subr.bf16.mxu1 %v3283_v4  ;;  %v3346_v0 = vld [vmem:[%s4667_s1 + $0x50c] ss:$16 sps:$4 sm:$0xff]   ;;  %v3437_v4 = vld [vmem:[%s4669_s3 + $0x70] ss:$8 sps:$4 sm:$0xff]  }
  0xa5   :  { %1780 = vmatprep.subr.bf16.mxu0 %v3280_v2  ;;  %v3344_v2 = vld [vmem:[%s4667_s1 + $0x508] ss:$16 sps:$4 sm:$0xff]  }
  0xa7   :  { %1863 = vmatpush1.bf16.msra.mxu1 %v3281_v6  ;;  %v3442_v6 = vld [vmem:[%s4669_s3 + $0x84] ss:$8 sps:$4 sm:$0xff]  }
  0xa8   :  { %1781 = vmatpush1.bf16.msra.mxu0 %v3278_v5  ;;  %1864 = vmatprep.subr.bf16.mxu1 %v3289_v9  ;;  %v3349_v5 = vld [vmem:[%s4667_s1 + $0x52c] ss:$16 sps:$4 sm:$0xff]   ;;  %v3440_v9 = vld [vmem:[%s4669_s3 + $0x80] ss:$8 sps:$4 sm:$0xff]  }
  0xa9   :  { %1782 = vmatprep.subr.bf16.mxu0 %v3286_v7  ;;  %v3347_v7 = vld [vmem:[%s4667_s1 + $0x528] ss:$16 sps:$4 sm:$0xff]  }
  0xab   :  { %1865 = vmatpush1.bf16.msra.mxu1 %v3287_v11  ;;  %v3445_v11 = vld [vmem:[%s4669_s3 + $0x94] ss:$8 sps:$4 sm:$0xff]  }
  0xac   :  { %1783 = vmatpush1.bf16.msra.mxu0 %v3284_v10  ;;  %1866 = vmatprep.subr.bf16.mxu1 %v3295_v14  ;;  %v3352_v10 = vld [vmem:[%s4667_s1 + $0x54c] ss:$16 sps:$4 sm:$0xff]   ;;  %v3443_v14 = vld [vmem:[%s4669_s3 + $0x90] ss:$8 sps:$4 sm:$0xff]  }
  0xad   :  { %1784 = vmatprep.subr.bf16.mxu0 %v3292_v12  ;;  %v3350_v12 = vld [vmem:[%s4667_s1 + $0x548] ss:$16 sps:$4 sm:$0xff]  }
  0xaf   :  { %1867 = vmatpush1.bf16.msra.mxu1 %v3293_v16  ;;  %v3448_v16 = vld [vmem:[%s4669_s3 + $0xa4] ss:$8 sps:$4 sm:$0xff]  }
  0xb0   :  { %1785 = vmatpush1.bf16.msra.mxu0 %v3290_v15  ;;  %1868 = vmatprep.subr.bf16.mxu1 %v3301_v18  ;;  %v3355_v15 = vld [vmem:[%s4667_s1 + $0x56c] ss:$16 sps:$4 sm:$0xff]   ;;  %v3446_v18 = vld [vmem:[%s4669_s3 + $0xa0] ss:$8 sps:$4 sm:$0xff]  }
  0xb1   :  { %1786 = vmatprep.subr.bf16.mxu0 %v3298_v17  ;;  %v3353_v17 = vld [vmem:[%s4667_s1 + $0x568] ss:$16 sps:$4 sm:$0xff]  }
  0xb3   :  { %1869 = vmatpush1.bf16.msra.mxu1 %v3299_v22  ;;  %v3451_v22 = vld [vmem:[%s4669_s3 + $0xb4] ss:$8 sps:$4 sm:$0xff]  }
  0xb4   :  { %1787 = vmatpush1.bf16.msra.mxu0 %v3296_v21  ;;  %1870 = vmatprep.subr.bf16.mxu1 %v3307_v24  ;;  %v3358_v21 = vld [vmem:[%s4667_s1 + $0x58c] ss:$16 sps:$4 sm:$0xff]   ;;  %v3449_v24 = vld [vmem:[%s4669_s3 + $0xb0] ss:$8 sps:$4 sm:$0xff]  }
  0xb5   :  { %1788 = vmatprep.subr.bf16.mxu0 %v3304_v23  ;;  %v3356_v23 = vld [vmem:[%s4667_s1 + $0x588] ss:$16 sps:$4 sm:$0xff]  }
  0xb7   :  { %1871 = vmatpush1.bf16.msra.mxu1 %v3305_v27  ;;  %v3454_v27 = vld [vmem:[%s4669_s3 + $0xc4] ss:$8 sps:$4 sm:$0xff]  }
  0xb8   :  { %1789 = vmatpush1.bf16.msra.mxu0 %v3302_v8  ;;  %1872 = vmatprep.subr.bf16.mxu1 %v3313_v29  ;;  %v3361_v8 = vld [vmem:[%s4667_s1 + $0x5ac] ss:$16 sps:$4 sm:$0xff]   ;;  %v3452_v29 = vld [vmem:[%s4669_s3 + $0xc0] ss:$8 sps:$4 sm:$0xff]  }
  0xb9   :  { %1790 = vmatprep.subr.bf16.mxu0 %v3310_v28  ;;  %v3359_v28 = vld [vmem:[%s4667_s1 + $0x5a8] ss:$16 sps:$4 sm:$0xff]  }
  0xbb   :  { %1873 = vmatpush1.bf16.msra.mxu1 %v3311_v30  ;;  %v3457_v30 = vld [vmem:[%s4669_s3 + $0xd4] ss:$8 sps:$4 sm:$0xff]  }
  0xbc   :  { %1791 = vmatpush1.bf16.msra.mxu0 %v3308_v49  ;;  %1874 = vmatprep.subr.bf16.mxu1 %v3319_v33  ;;  %v3364_v49 = vld [vmem:[%s4667_s1 + $0x5cc] ss:$16 sps:$4 sm:$0xff]   ;;  %v3455_v33 = vld [vmem:[%s4669_s3 + $0xd0] ss:$8 sps:$4 sm:$0xff]  }
  0xbd   :  { %1792 = vmatprep.subr.bf16.mxu0 %v3316_v32  ;;  %v3362_v32 = vld [vmem:[%s4667_s1 + $0x5c8] ss:$16 sps:$4 sm:$0xff]  }
  0xbf   :  { %1875 = vmatpush1.bf16.msra.mxu1 %v3317_v13  ;;  %v3365_v13 = vld [vmem:[%s4667_s1 + $0x5e8] ss:$16 sps:$4 sm:$0xff]  }
  0xc0   :  { %1793 = vmatpush1.bf16.msra.mxu0 %v3314_v34  ;;  %1885 = vmatprep.subr.bf16.mxu1 %v3322_v36  ;;  %v3367_v34 = vld [vmem:[%s4667_s1 + $0x5ec] ss:$16 sps:$4 sm:$0xff]  }
  0xc1   :  { %v3370_v36 = vld [vmem:[%s4667_s1 + $0x60c] ss:$16 sps:$4 sm:$0xff]  }
  0xc2   :  { %1877 = vmatmul.mubr.bf16.vlgmr.msra.gmra.mrb[4].mxu1 %v3793_v20  ;;  %v3418_v20 = vld [vmem:[%s4669_s3 + $0x4] ss:$8 sps:$4 sm:$0xff]  }
  0xc3   :  { %1795 = vmatmul.mubr.bf16.vlgmr.msra.gmra.mrb[0].mxu0 %v4200_v37  ;;  %1886 = vmatpush1.bf16.msra.mxu1 %v3320_v38  ;;  %v3368_v38 = vld [vmem:[%s4667_s1 + $0x608] ss:$16 sps:$4 sm:$0xff]  }
  0xc4   :  { %1917 = vmatprep.mubr.bf16.mxu1 %v3807_v25  ;;  %1887 = vmatprep.subr.bf16.mxu1 %v3325_v19  ;;  %v3331_v25 = vld [vmem:[%s4667_s1 + $0x46c] ss:$16 sps:$4 sm:$0xff]  }
  0xc5   :  { %2371 = vmatprep.subr.bf16.mxu0 %v3418_v20  ;;  %v3373_v19 = vld [vmem:[%s4667_s1 + $0x62c] ss:$16 sps:$4 sm:$0xff]  }
  0xc6   :  { %2372 = vmatpush1.bf16.msra.mxu0 %v3416_v40  ;;  %v3374_v40 = vld [vmem:[%s4667_s1 + $0x648] ss:$16 sps:$4 sm:$0xff]   ;;  %v3382_v20 = vld [vmem:[%s4667_s1 + $0x68c] ss:$16 sps:$4 sm:$0xff]  }
  0xc7   :  { %1888 = vmatpush1.bf16.msra.mxu1 %v3323_v26  ;;  %2373 = vmatprep.subr.bf16.mxu0 %v3421_v41  ;;  %v3371_v26 = vld [vmem:[%s4667_s1 + $0x628] ss:$16 sps:$4 sm:$0xff]  }
  0xc8   :  { %1889 = vmatprep.subr.bf16.mxu1 %v3328_v39  ;;  %v3376_v39 = vld [vmem:[%s4667_s1 + $0x64c] ss:$16 sps:$4 sm:$0xff]   ;;  %v3380_v41 = vld [vmem:[%s4667_s1 + $0x688] ss:$16 sps:$4 sm:$0xff]  }
  0xca   :  { %2374 = vmatpush1.bf16.msra.mxu0 %v3419_v42  ;;  %v3388_v42 = vld [vmem:[%s4667_s1 + $0x6cc] ss:$16 sps:$4 sm:$0xff]  }
  0xcb   :  { %1890 = vmatpush1.bf16.msra.mxu1 %v3326_v3  ;;  %2375 = vmatprep.subr.bf16.mxu0 %v3424_v44  ;;  %v3385_v3 = vld [vmem:[%s4667_s1 + $0x6ac] ss:$16 sps:$4 sm:$0xff]  }
  0xcc   :  { %1891 = vmatprep.subr.bf16.mxu1 %v3331_v25  ;;  %v3383_v25 = vld [vmem:[%s4667_s1 + $0x6a8] ss:$16 sps:$4 sm:$0xff]   ;;  %v3460_v44 = vld [vmem:[%s4669_s3 + $0xe4] ss:$8 sps:$4 sm:$0xff]  }
  0xce   :  { %2376 = vmatpush1.bf16.msra.mxu0 %v3422_v47 }
  0xcf   :  { %1892 = vmatpush1.bf16.msra.mxu1 %v3329_v45  ;;  %2377 = vmatprep.subr.bf16.mxu0 %v3427_v48 }
  0xd0   :  { %1893 = vmatprep.subr.bf16.mxu1 %v3334_v46  ;;  %v3458_v46 = vld [vmem:[%s4669_s3 + $0xe0] ss:$8 sps:$4 sm:$0xff]  }
  0xd2   :  { %2378 = vmatpush1.bf16.msra.mxu0 %v3425_v52  ;;  %v3391_v52 = vld [vmem:[%s4667_s1 + $0x6ec] ss:$16 sps:$4 sm:$0xff]  }
  0xd3   :  { %1894 = vmatpush1.bf16.msra.mxu1 %v3332_v50  ;;  %2379 = vmatprep.subr.bf16.mxu0 %v3430_v53  ;;  %v3386_v50 = vld [vmem:[%s4667_s1 + $0x6c8] ss:$16 sps:$4 sm:$0xff]   ;;  %v3463_v53 = vld [vmem:[%s4669_s3 + $0xf4] ss:$8 sps:$4 sm:$0xff]  }
  0xd4   :  { %1895 = vmatprep.subr.bf16.mxu1 %v3337_v51 }
  0xd6   :  { %2380 = vmatpush1.bf16.msra.mxu0 %v3428_v56  ;;  %v3394_v56 = vld [vmem:[%s4667_s1 + $0x70c] ss:$16 sps:$4 sm:$0xff]  }
  0xd7   :  { %1896 = vmatpush1.bf16.msra.mxu1 %v3335_v54  ;;  %2381 = vmatprep.subr.bf16.mxu0 %v3433_v57  ;;  %v3461_v54 = vld [vmem:[%s4669_s3 + $0xf0] ss:$8 sps:$4 sm:$0xff]   ;;  %v3466_v57 = vld [vmem:[%s4669_s3 + $0x104] ss:$8 sps:$4 sm:$0xff]  }
  0xd8   :  { %1897 = vmatprep.subr.bf16.mxu1 %v3340_v55  ;;  %v3389_v55 = vld [vmem:[%s4667_s1 + $0x6e8] ss:$16 sps:$4 sm:$0xff]  }
  0xda   :  { %2382 = vmatpush1.bf16.msra.mxu0 %v3431_v59  ;;  %v3397_v59 = vld [vmem:[%s4667_s1 + $0x72c] ss:$16 sps:$4 sm:$0xff]  }
  0xdb   :  { %1898 = vmatpush1.bf16.msra.mxu1 %v3338_v58  ;;  %2383 = vmatprep.subr.bf16.mxu0 %v3436_v61  ;;  %v3392_v58 = vld [vmem:[%s4667_s1 + $0x708] ss:$16 sps:$4 sm:$0xff]   ;;  %v3400_v61 = vld [vmem:[%s4667_s1 + $0x74c] ss:$16 sps:$4 sm:$0xff]  }
  0xdc   :  { %1899 = vmatprep.subr.bf16.mxu1 %v3343_v60  ;;  %v3395_v60 = vld [vmem:[%s4667_s1 + $0x728] ss:$16 sps:$4 sm:$0xff]  }
  0xde   :  { %2384 = vmatpush1.bf16.msra.mxu0 %v3434_v63  ;;  %v3403_v63 = vld [vmem:[%s4667_s1 + $0x76c] ss:$16 sps:$4 sm:$0xff]  }
  0xdf   :  { %1900 = vmatpush1.bf16.msra.mxu1 %v3341_v62  ;;  %2385 = vmatprep.subr.bf16.mxu0 %v3439_v1  ;;  %v3398_v62 = vld [vmem:[%s4667_s1 + $0x748] ss:$16 sps:$4 sm:$0xff]   ;;  %v3406_v1 = vld [vmem:[%s4667_s1 + $0x78c] ss:$16 sps:$4 sm:$0xff]  }
  0xe0   :  { %1901 = vmatprep.subr.bf16.mxu1 %v3346_v0  ;;  %v3401_v0 = vld [vmem:[%s4667_s1 + $0x768] ss:$16 sps:$4 sm:$0xff]  }
  0xe2   :  { %2386 = vmatpush1.bf16.msra.mxu0 %v3437_v4  ;;  %v3409_v4 = vld [vmem:[%s4667_s1 + $0x7ac] ss:$16 sps:$4 sm:$0xff]  }
  0xe3   :  { %1902 = vmatpush1.bf16.msra.mxu1 %v3344_v2  ;;  %2387 = vmatprep.subr.bf16.mxu0 %v3442_v6  ;;  %v3404_v2 = vld [vmem:[%s4667_s1 + $0x788] ss:$16 sps:$4 sm:$0xff]   ;;  %v3412_v6 = vld [vmem:[%s4667_s1 + $0x7cc] ss:$16 sps:$4 sm:$0xff]  }
  0xe4   :  { %1903 = vmatprep.subr.bf16.mxu1 %v3349_v5  ;;  %v3407_v5 = vld [vmem:[%s4667_s1 + $0x7a8] ss:$16 sps:$4 sm:$0xff]  }
  0xe6   :  { %2388 = vmatpush1.bf16.msra.mxu0 %v3440_v9  ;;  %v3415_v9 = vld [vmem:[%s4667_s1 + $0x7ec] ss:$16 sps:$4 sm:$0xff]  }
  0xe7   :  { %1904 = vmatpush1.bf16.msra.mxu1 %v3347_v7  ;;  %2389 = vmatprep.subr.bf16.mxu0 %v3445_v11  ;;  %v3410_v7 = vld [vmem:[%s4667_s1 + $0x7c8] ss:$16 sps:$4 sm:$0xff]   ;;  %v341_v11 = vsub.s32 0, %v3686_v43 }
  0xe8   :  { %1905 = vmatprep.subr.bf16.mxu1 %v3352_v10  ;;  %v3413_v10 = vld [vmem:[%s4667_s1 + $0x7e8] ss:$16 sps:$4 sm:$0xff]  }
  0xea   :  { %2390 = vmatpush1.bf16.msra.mxu0 %v3443_v14  ;;  %v345_v14 = vsub.s32 1, %v3686_v43 }
  0xeb   :  { %1906 = vmatpush1.bf16.msra.mxu1 %v3350_v12  ;;  %2391 = vmatprep.subr.bf16.mxu0 %v3448_v16  ;;  %v4500_v12 = vld [vmem:[%s4670_s2] sm:$0xf] }
  0xec   :  { %1907 = vmatprep.subr.bf16.mxu1 %v3355_v15  ;;  %v342_v15 = vrot.slane %v4500_v12, %v341_v11  ;;  %v346_v16 = vrot.slane %v4500_v12, %v345_v14 }
  0xee   :  { %2392 = vmatpush1.bf16.msra.mxu0 %v3446_v18 }
  0xef   :  { %1908 = vmatpush1.bf16.msra.mxu1 %v3353_v17  ;;  %2393 = vmatprep.subr.bf16.mxu0 %v3451_v22 }
  0xf0   :  { %1909 = vmatprep.subr.bf16.mxu1 %v3358_v21 }
  0xf2   :  { %2394 = vmatpush1.bf16.msra.mxu0 %v3449_v24 }
  0xf3   :  { %1910 = vmatpush1.bf16.msra.mxu1 %v3356_v23  ;;  %2395 = vmatprep.subr.bf16.mxu0 %v3454_v27 }
  0xf4   :  { %1911 = vmatprep.subr.bf16.mxu1 %v3361_v8 }
  0xf6   :  { %2396 = vmatpush1.bf16.msra.mxu0 %v3452_v29 }
  0xf7   :  { %1912 = vmatpush1.bf16.msra.mxu1 %v3359_v28  ;;  %2397 = vmatprep.subr.bf16.mxu0 %v3457_v30 }
  0xf8   :  { %1913 = vmatprep.subr.bf16.mxu1 %v3364_v49  ;;  %v3464_v49 = vld [vmem:[%s4669_s3 + $0x100] ss:$8 sps:$4 sm:$0xff]  }
  0xfa   :  { %2398 = vmatpush1.bf16.msra.mxu0 %v3455_v33  ;;  %v3467_v33 = vld [vmem:[%s4669_s3 + $0x110] ss:$8 sps:$4 sm:$0xff]  }
  0xfb   :  { %1914 = vmatpush1.bf16.msra.mxu1 %v3362_v32  ;;  %2399 = vmatprep.subr.bf16.mxu0 %v3460_v44  ;;  %v3469_v32 = vld [vmem:[%s4669_s3 + $0x114] ss:$8 sps:$4 sm:$0xff]   ;;  %v3520_v44 = vld [vmem:[%s4671_s5 + $0x60] sm:$0xff]  }
  0xfc   :  { %1915 = vmatprep.subr.bf16.mxu1 %v3367_v34  ;;  %v3472_v34 = vld [vmem:[%s4669_s3 + $0x124] ss:$8 sps:$4 sm:$0xff]  }
  0xfe   :  { %2400 = vmatpush1.bf16.msra.mxu0 %v3458_v46  ;;  %v3479_v46 = vld [vmem:[%s4669_s3 + $0x150] ss:$8 sps:$4 sm:$0xff]  }
  0xff   :  { %1916 = vmatpush1.bf16.msra.mxu1 %v3365_v13  ;;  %2401 = vmatprep.subr.bf16.mxu0 %v3463_v53  ;;  %v3512_v13 = vld [vmem:[%s4671_s5 + $0x40] sm:$0xff]   ;;  %v3485_v53 = vld [vmem:[%s4669_s3 + $0x170] ss:$8 sps:$4 sm:$0xff]  }
 0x100   :  { %1926 = vmatprep.subr.bf16.mxu1 %v3370_v36  ;;  %v3513_v36 = vld [vmem:[%s4671_s5] sm:$0xff]  }
 0x102   :  { %1918 = vmatmul.mubr.bf16.vlgmr.msra.gmra.mrb[4].mxu1 %v4001_v31  ;;  %v3379_v31 = vld [vmem:[%s4667_s1 + $0x66c] ss:$16 sps:$4 sm:$0xff]   ;;  %2402 = vmatpush1.bf16.msra.mxu0 %v3461_v54 }
 0x103   :  { %1927 = vmatpush1.bf16.msra.mxu1 %v3368_v38  ;;  %1958 = vmatprep.mubr.bf16.mxu1 %v4015_v35  ;;  %v3377_v35 = vld [vmem:[%s4667_s1 + $0x668] ss:$16 sps:$4 sm:$0xff]   ;;  %v3490_v54 = vld [vmem:[%s4669_s3 + $0x184] ss:$8 sps:$4 sm:$0xff]  }
 0x104   :  { %1928 = vmatprep.subr.bf16.mxu1 %v3373_v19  ;;  %2412 = vmatprep.subr.bf16.mxu0 %v3466_v57  ;;  %v3470_v38 = vld [vmem:[%s4669_s3 + $0x120] ss:$8 sps:$4 sm:$0xff]   ;;  %v3491_v57 = vld [vmem:[%s4669_s3 + $0x190] ss:$8 sps:$4 sm:$0xff]  }
 0x105   :  { %v3514_v19 = vld [vmem:[%s4671_s5 + $0x48] sm:$0xff]  }
 0x107   :  { %1929 = vmatpush1.bf16.msra.mxu1 %v3371_v26  ;;  %v3515_v26 = vld [vmem:[%s4671_s5 + $0x8] sm:$0xff]  }
 0x108   :  { %1930 = vmatprep.subr.bf16.mxu1 %v3376_v39  ;;  %v3516_v39 = vld [vmem:[%s4671_s5 + $0x50] sm:$0xff]  }
 0x10b   :  { %1931 = vmatpush1.bf16.msra.mxu1 %v3374_v40  ;;  %v3475_v40 = vld [vmem:[%s4669_s3 + $0x134] ss:$8 sps:$4 sm:$0xff]  }
 0x10c   :  { %1932 = vmatprep.subr.bf16.mxu1 %v3379_v31  ;;  %v3473_v31 = vld [vmem:[%s4669_s3 + $0x130] ss:$8 sps:$4 sm:$0xff]  }
 0x10f   :  { %1933 = vmatpush1.bf16.msra.mxu1 %v3377_v35  ;;  %v3517_v35 = vld [vmem:[%s4671_s5 + $0x10] sm:$0xff]  }
 0x110   :  { %1934 = vmatprep.subr.bf16.mxu1 %v3382_v20  ;;  %v3518_v20 = vld [vmem:[%s4671_s5 + $0x58] sm:$0xff]  }
 0x113   :  { %1935 = vmatpush1.bf16.msra.mxu1 %v3380_v41  ;;  %v3478_v41 = vld [vmem:[%s4669_s3 + $0x144] ss:$8 sps:$4 sm:$0xff]  }
 0x114   :  { %1936 = vmatprep.subr.bf16.mxu1 %v3385_v3  ;;  %v3476_v3 = vld [vmem:[%s4669_s3 + $0x140] ss:$8 sps:$4 sm:$0xff]  }
 0x115   :  { %v1673_v45 = vpop.f32.mrb[0].mxu1 }
 0x116   :  { %v1675_v47 = vpop.f32.mrb[1].mxu1  ;;  %v1674_v17 = vadd.f32 %v1673_v45, %v342_v15  ;;  %v3521_v45 = vld [vmem:[%s4671_s5 + $0x20] sm:$0xff]  }
 0x117   :  { %v1677_v48 = vpop.f32.mrb[2].mxu1  ;;  %1937 = vmatpush1.bf16.msra.mxu1 %v3383_v25  ;;  %v1676_v18 = vadd.f32 %v1675_v47, %v346_v16  ;;  %v3481_v25 = vld [vmem:[%s4669_s3 + $0x154] ss:$8 sps:$4 sm:$0xff]   ;;  %v3522_v47 = vld [vmem:[%s4671_s5 + $0x68] sm:$0xff]  }
 0x118   :  { %v1678_v51 = vpop.f32.mrb[3].mxu1  ;;  %1938 = vmatprep.subr.bf16.mxu1 %v3388_v42  ;;  %v3519_v42 = vld [vmem:[%s4671_s5 + $0x18] sm:$0xff]   ;;  %v3484_v48 = vld [vmem:[%s4669_s3 + $0x164] ss:$8 sps:$4 sm:$0xff]  }
 0x119   :  { %v3482_v51 = vld [vmem:[%s4669_s3 + $0x160] ss:$8 sps:$4 sm:$0xff]  }
 0x11b   :  { %1939 = vmatpush1.bf16.msra.mxu1 %v3386_v50  ;;  %v3523_v50 = vld [vmem:[%s4671_s5 + $0x28] sm:$0xff]  }
 0x11c   :  { %1940 = vmatprep.subr.bf16.mxu1 %v3391_v52  ;;  %v3487_v52 = vld [vmem:[%s4669_s3 + $0x174] ss:$8 sps:$4 sm:$0xff]  }
 0x11f   :  { %1941 = vmatpush1.bf16.msra.mxu1 %v3389_v55  ;;  %v3488_v55 = vld [vmem:[%s4669_s3 + $0x180] ss:$8 sps:$4 sm:$0xff]  }
 0x120   :  { %1942 = vmatprep.subr.bf16.mxu1 %v3394_v56  ;;  %v3493_v56 = vld [vmem:[%s4669_s3 + $0x194] ss:$8 sps:$4 sm:$0xff]  }
 0x123   :  { %1943 = vmatpush1.bf16.msra.mxu1 %v3392_v58  ;;  %v3496_v58 = vld [vmem:[%s4669_s3 + $0x1a4] ss:$8 sps:$4 sm:$0xff]  }
 0x124   :  { %1944 = vmatprep.subr.bf16.mxu1 %v3397_v59  ;;  %v3494_v59 = vld [vmem:[%s4669_s3 + $0x1a0] ss:$8 sps:$4 sm:$0xff]  }
 0x127   :  { %1945 = vmatpush1.bf16.msra.mxu1 %v3395_v60  ;;  %v3499_v60 = vld [vmem:[%s4669_s3 + $0x1b4] ss:$8 sps:$4 sm:$0xff]  }
 0x128   :  { %1946 = vmatprep.subr.bf16.mxu1 %v3400_v61  ;;  %v3497_v61 = vld [vmem:[%s4669_s3 + $0x1b0] ss:$8 sps:$4 sm:$0xff]  }
 0x12b   :  { %1947 = vmatpush1.bf16.msra.mxu1 %v3398_v62  ;;  %v3502_v62 = vld [vmem:[%s4669_s3 + $0x1c4] ss:$8 sps:$4 sm:$0xff]  }
 0x12c   :  { %1948 = vmatprep.subr.bf16.mxu1 %v3403_v63  ;;  %v3500_v63 = vld [vmem:[%s4669_s3 + $0x1c0] ss:$8 sps:$4 sm:$0xff]  }
 0x12f   :  { %1949 = vmatpush1.bf16.msra.mxu1 %v3401_v0  ;;  %v3505_v0 = vld [vmem:[%s4669_s3 + $0x1d4] ss:$8 sps:$4 sm:$0xff]  }
 0x130   :  { %1950 = vmatprep.subr.bf16.mxu1 %v3406_v1  ;;  %v3503_v1 = vld [vmem:[%s4669_s3 + $0x1d0] ss:$8 sps:$4 sm:$0xff]  }
 0x133   :  { %1951 = vmatpush1.bf16.msra.mxu1 %v3404_v2  ;;  %v3508_v2 = vld [vmem:[%s4669_s3 + $0x1e4] ss:$8 sps:$4 sm:$0xff]  }
 0x134   :  { %1952 = vmatprep.subr.bf16.mxu1 %v3409_v4  ;;  %v3506_v4 = vld [vmem:[%s4669_s3 + $0x1e0] ss:$8 sps:$4 sm:$0xff]  }
 0x137   :  { %1953 = vmatpush1.bf16.msra.mxu1 %v3407_v5  ;;  %v3511_v5 = vld [vmem:[%s4669_s3 + $0x1f4] ss:$8 sps:$4 sm:$0xff]  }
 0x138   :  { %1954 = vmatprep.subr.bf16.mxu1 %v3412_v6  ;;  %v3509_v6 = vld [vmem:[%s4669_s3 + $0x1f0] ss:$8 sps:$4 sm:$0xff]  }
 0x13b   :  { %1955 = vmatpush1.bf16.msra.mxu1 %v3410_v7  ;;  %v349_v7 = vsub.s32 2, %v3686_v43 }
 0x13c   :  { %1956 = vmatprep.subr.bf16.mxu1 %v3415_v9  ;;  %v353_v9 = vsub.s32 3, %v3686_v43 }
 0x13e   :  { %v354_v15 = vrot.slane %v4500_v12, %v353_v9 }
 0x13f   :  { %1957 = vmatpush1.bf16.msra.mxu1 %v3413_v10  ;;  %v350_v10 = vrot.slane %v4500_v12, %v349_v7  ;;  %v3525_v12 = vld [vmem:[%s4671_s5 + $0x30] sm:$0xff]  }
 0x140   :  { %2975 = vmatprep.subr.bf16.mxu1 %v3512_v13 }
 0x142   :  { %1959 = vmatmul.mubr.bf16.vlgmr.msra.gmra.mrb[4].mxu1 %v4200_v37 }
 0x143   :  { %2976 = vmatpush3.bf16.msra.mxu1 %v3513_v36 }
 0x144   :  { %2977 = vmatprep.subr.bf16.mxu1 %v3514_v19 }
 0x147   :  { %2978 = vmatpush3.bf16.msra.mxu1 %v3515_v26 }
 0x148   :  { %2979 = vmatprep.subr.bf16.mxu1 %v3516_v39 }
 0x14b   :  { %2980 = vmatpush3.bf16.msra.mxu1 %v3517_v35 }
 0x14c   :  { %2981 = vmatprep.subr.bf16.mxu1 %v3518_v20 }
 0x14f   :  { %2982 = vmatpush3.bf16.msra.mxu1 %v3519_v42 }
 0x150   :  { %2983 = vmatprep.subr.bf16.mxu1 %v3520_v44 }
 0x153   :  { %2984 = vmatpush3.bf16.msra.mxu1 %v3521_v45 }
 0x154   :  { %2985 = vmatprep.subr.bf16.mxu1 %v3522_v47 }
 0x157   :  { %2986 = vmatpush3.bf16.msra.mxu1 %v3523_v50 }
 0x196   :  { %v1796_v37 = vpop.f32.mrb[0].mxu0 }
 0x197   :  { %v2998_v21 = vadd.f32 %v1796_v37, %v1674_v17  ;;  %v1798_v22 = vpop.f32.mrb[1].mxu0 }
 0x198   :  { %v3000_v23 = vadd.f32 %v1798_v22, %v1676_v18  ;;  %v1800_v24 = vpop.f32.mrb[2].mxu0 }
 0x199   :  { %v1967_v8 = vmax.f32 %v2998_v21, 0.0  ;;  %v1801_v27 = vpop.f32.mrb[3].mxu0 }
 0x19a   :  { %v1968_v28 = vmax.f32 %v3000_v23, 0.0 }
 0x19b   :  { %v1971_v30 = vpack.c.bf16 %v1967_v8, %v1967_v8 }
 0x19c   :  { %v1972_v29 = vpack.c.bf16 %v1968_v28, %v1968_v28  ;;  %v3524_v28 = vld [vmem:[%s4671_s5 + $0x70] sm:$0xff]  }
 0x19d   :  { %2987 = vmatprep.subr.bf16.mxu1 %v3524_v28 }
 0x19e   :  { %2403 = vmatprep.mubr.bf16.mxu0 %v1972_v29  ;;  %2988 = vmatpush3.bf16.msra.mxu1 %v3525_v12  ;;  %v3526_v29 = vld [vmem:[%s4671_s5 + $0x78] sm:$0xff]  }
 0x19f   :  { %2404 = vmatmul.mubr.bf16.vlgmr.msra.gmra.mrb[4].mxu0 %v1971_v30  ;;  %2989 = vmatprep.subr.bf16.mxu1 %v3526_v29  ;;  %v2039_v30 = vld [vmem:[%s4672_s4] sm:$0x3] }
 0x1a0   :  { %2413 = vmatpush1.bf16.msra.mxu0 %v3464_v49  ;;  %v3527_v49 = vld [vmem:[%s4671_s5 + $0x38] sm:$0xff]  }
 0x1a1   :  { %2414 = vmatprep.subr.bf16.mxu0 %v3469_v32  ;;  %v2044_v32 = vrot.slane %v2039_v30, %v341_v11  ;;  %v2958_v11 = vld [vmem:[%s4673_s6] ss:$0 sm:$0xff] }
 0x1a2   :  { %2990 = vmatpush3.bf16.msra.mxu1 %v3527_v49 }
 0x1a4   :  { %2415 = vmatpush1.bf16.msra.mxu0 %v3467_v33  ;;  %v2048_v33 = vrot.slane %v2039_v30, %v345_v14 }
 0x1a5   :  { %2416 = vmatprep.subr.bf16.mxu0 %v3472_v34 }
 0x1a8   :  { %2417 = vmatpush1.bf16.msra.mxu0 %v3470_v38 }
 0x1a9   :  { %2418 = vmatprep.subr.bf16.mxu0 %v3475_v40 }
 0x1ac   :  { %2419 = vmatpush1.bf16.msra.mxu0 %v3473_v31 }
 0x1ad   :  { %2420 = vmatprep.subr.bf16.mxu0 %v3478_v41 }
 0x1b0   :  { %2421 = vmatpush1.bf16.msra.mxu0 %v3476_v3 }
 0x1b1   :  { %2422 = vmatprep.subr.bf16.mxu0 %v3481_v25 }
 0x1b4   :  { %2423 = vmatpush1.bf16.msra.mxu0 %v3479_v46 }
 0x1b5   :  { %2424 = vmatprep.subr.bf16.mxu0 %v3484_v48 }
 0x1b8   :  { %2425 = vmatpush1.bf16.msra.mxu0 %v3482_v51 }
 0x1b9   :  { %2426 = vmatprep.subr.bf16.mxu0 %v3487_v52 }
 0x1bc   :  { %2427 = vmatpush1.bf16.msra.mxu0 %v3485_v53 }
 0x1bd   :  { %2428 = vmatprep.subr.bf16.mxu0 %v3490_v54 }
 0x1c0   :  { %2429 = vmatpush1.bf16.msra.mxu0 %v3488_v55 }
 0x1c1   :  { %2430 = vmatprep.subr.bf16.mxu0 %v3493_v56 }
 0x1c4   :  { %2431 = vmatpush1.bf16.msra.mxu0 %v3491_v57 }
 0x1c5   :  { %2432 = vmatprep.subr.bf16.mxu0 %v3496_v58 }
 0x1c8   :  { %2433 = vmatpush1.bf16.msra.mxu0 %v3494_v59 }
 0x1c9   :  { %2434 = vmatprep.subr.bf16.mxu0 %v3499_v60 }
 0x1cc   :  { %2435 = vmatpush1.bf16.msra.mxu0 %v3497_v61 }
 0x1cd   :  { %2436 = vmatprep.subr.bf16.mxu0 %v3502_v62 }
 0x1d0   :  { %2437 = vmatpush1.bf16.msra.mxu0 %v3500_v63 }
 0x1d1   :  { %2438 = vmatprep.subr.bf16.mxu0 %v3505_v0 }
 0x1d4   :  { %2439 = vmatpush1.bf16.msra.mxu0 %v3503_v1 }
 0x1d5   :  { %2440 = vmatprep.subr.bf16.mxu0 %v3508_v2 }
 0x1d8   :  { %2441 = vmatpush1.bf16.msra.mxu0 %v3506_v4 }
 0x1d9   :  { %2442 = vmatprep.subr.bf16.mxu0 %v3511_v5 }
 0x1dc   :  { %2443 = vmatpush1.bf16.msra.mxu0 %v3509_v6 }
 0x215   :  { %v1960_v16 = vpop.f32.mrb[4].mxu1 }
 0x216   :  { %v3001_v17 = vadd.f32 %v1960_v16, %v350_v10  ;;  %v1962_v18 = vpop.f32.mrb[5].mxu1 }
 0x217   :  { %v3002_v37 = vadd.f32 %v1962_v18, %v354_v15  ;;  %v1964_v21 = vpop.f32.mrb[6].mxu1 }
 0x218   :  { %v1969_v22 = vmax.f32 %v3001_v17, 0.0  ;;  %v1965_v23 = vpop.f32.mrb[7].mxu1 }
 0x219   :  { %v1970_v24 = vmax.f32 %v3002_v37, 0.0 }
 0x21a   :  { %v1973_v27 = vpack.c.bf16 %v1969_v22, %v1969_v22 }
 0x21b   :  { %v1974_v8 = vpack.c.bf16 %v1970_v24, %v1970_v24 }
 0x21d   :  { %2444 = vmatprep.mubr.bf16.mxu0 %v1974_v8 }
 0x21e   :  { %2445 = vmatmul.mubr.bf16.vlgmr.msra.gmra.mrb[4].mxu0 %v1973_v27 }
 0x2f1   :  { %v2446_v34 = vpop.f32.mrb[4].mxu0 }
 0x2f2   :  { %v3003_v13 = vadd.f32 %v2446_v34, %v2044_v32  ;;  %v2448_v36 = vpop.f32.mrb[5].mxu0 }
 0x2f3   :  { %v3004_v38 = vadd.f32 %v2448_v36, %v2048_v33  ;;  %v2450_v19 = vpop.f32.mrb[6].mxu0 }
 0x2f4   :  { %v2453_v26 = vmax.f32 %v3003_v13, 0.0  ;;  %v2451_v39 = vpop.f32.mrb[7].mxu0 }
 0x2f5   :  { %v2454_v40 = vmax.f32 %v3004_v38, 0.0 }
 0x2f6   :  { %v2455_v35 = vpack.c.bf16 %v2453_v26, %v2453_v26 }
 0x2f7   :  { %v2456_v31 = vpack.c.bf16 %v2454_v40, %v2454_v40 }
 0x2f9   :  { %2624 = vmatprep.mubr.bf16.mxu1 %v2456_v31 }
 0x2fa   :  { %2625 = vmatmul.mubr.bf16.vlgmr.msra.gmra.mrb[8].mxu1 %v2455_v35 }
 0x3cd   :  { %v2991_v20 = vpop.f32.mrb[8].mxu1 }
 0x3ce   :  { %v2992_v41 = vpop.f32.mrb[9].mxu1 }
 0x3cf   :  { %v2993_v43 = vadd.f32 %v2992_v41, %v2991_v20  ;;  %v2994_v14 = vpop.f32.mrb[10].mxu1 }
 0x3d0   :  { %v2995_v3 = vpop.f32.mrb[11].mxu1 }
 0x3d1   :  { %v2627_v25 = vadd.f32 %v2993_v43, %v2958_v11 }
 0x3d3   :  { %2633 = vst.msk [vmem:[%s4674_s7] sm:$0x3] %vm2632_vm0, %v2627_v25 }

// kernel: feature_net_forward.3
= control target key start
LH: loop header
LB: loop body
LE: loop exit
PB: predicated region body
PF: predicated region fallthrough
CT: control target
= control target key end

     0   :  { %s6891_s0 = inlined_call_operand.vmem [shape: f32[2,3,512], index: 0, kind: input, shape index: {}]   ;;  %s6892_s1 = inlined_call_operand.hbm [shape: f32[1,64,3], index: 1, kind: input, shape index: {}]   ;;  %s6893_s2 = inlined_call_operand.hbm [shape: f32[64,1], index: 2, kind: input, shape index: {}]   ;;  %s6894_s3 = inlined_call_operand.hbm [shape: bf16[128,64], index: 3, kind: input, shape index: {}]   ;;  %s6895_s4 = inlined_call_operand.hbm [shape: f32[128,1], index: 4, kind: input, shape index: {}]   ;;  %s6896_s5 = inlined_call_operand.hbm [shape: bf16[1024,128], index: 5, kind: input, shape index: {}]   ;;  %s6897_s6 = inlined_call_operand.hbm [shape: f32[1024,1], index: 6, kind: input, shape index: {}]   ;;  %s6898_s7 = inlined_call_operand.vmem [shape: f32[2,2,1024,1], index: 7, kind: output, shape index: {}]  }
   0x1   :  { %6957 = sst [smem:[#allocation69_spill]] %s6892_s1 }
   0x2   :  { %6958 = sst [smem:[#allocation70_spill]] %s6893_s2 }
   0x3   :  { %6959 = sst [smem:[#allocation71_spill]] %s6895_s4 }
   0x4   :  { %12 = vsyncpa [#allocation4], 0 }
   0x5   :  { %13 = vsyncpa [#allocation6], 0 }
   0x6   :  { %14 = vsyncpa [#allocation9], 0 }
   0x7   :  { %15 = vsyncpa [#allocation12], 0  ;;  %s5215_s24 = smov 0   ;;  %s5217_s25 = smov 0  }
   0x8   :  { %s5219_s26 = smov 0   ;;  %s5221_s27 = smov 0  }
   0x9   :  { %s5223_s28 = smov 0  }
   0xa LB: > { %s4620_s29 = sadd.s32 4294967295, %s5159_s28   ;;  %p4622_p0 = scmp.ge.s32.totalorder %s5159_s28, 1  ;;  %s5159_s28 = sphi %s5223_s28, %s21_s28   ;;  %s5155_s27 = sphi %s5221_s27, %s7080_s27   ;;  %s5151_s26 = sphi %s5219_s26, %s7079_s26   ;;  %s5147_s25 = sphi %s5217_s25, %s7078_s25   ;;  %s5143_s24 = sphi %s5215_s24, %s7077_s24  }
   0xb   : > { %p229_p1 = scmp.lt.s32.totalorder %s5159_s28, 5  ;;  %p5243_p2 = scmp.eq.s32.totalorder %s4620_s29, 0 }
   0xc   : > { %s5161_s9 = smov [#allocation5]   ;;  %s5162_s11 = smov [#allocation8]  }
   0xd   : > { %s6960_s30 = scalar_select %p5243_p2, 1, 0 }
   0xe   : > { %p5247_p3 = pnand %p4622_p0, %p229_p1  ;;  %s254_s10 = sshll.u32 %s5161_s9, 4  ;;  %s255_s10 = int_to_ptr.vmem [resolvable:$true] %s254_s10 }
   0xf   : > { %s280_s12 = sshll.u32 %s5162_s11, 4  ;;  %s6963_s2 = sld [smem:[#allocation70_spill]]  ;;  %s5253_s12 = int_to_ptr.vmem [resolvable:$true] %s280_s12 }
  0x10   : > { %s6961_s8 = scalar_select %p5247_p3, 1, 0 }
  0x11   : > { %p4765_p4 = pneg %p5247_p3 }
  0x13   : > { %p5257_p5 = pnand %p5243_p2, %p4765_p4 }
  0x15   : > { %s4937_s16 = scalar_lea.hbm %s6963_s2, 1024  ;;  %p5269_p7 = pneg %p5257_p5 }
  0x16   : > { %p4938_p6 = scmp.ne.s32.totalorder %s6963_s2, %s4937_s16  ;;  %p4944_p10 = scmp.lt.u32.totalorder %s4937_s16, %s6963_s2 }
  0x18   : > { %p4940_p8 = pnand %p5269_p7, %p4938_p6 }
  0x1a   : > { %p4941_p9 = pneg %p4940_p8 }
  0x1c   : > { %p4946_p11 = pnand %p4944_p10, %p4941_p9 }
  0x1e   : > { %4949 = shalt.err (!%p4946_p11)
}
  0x1f   : > { %s4950_s22 = scalar_lea.vmem %s255_s10, 1024  ;;  %p4958_p1 = scmp.lt.s32.totalorder %s255_s10, %s255_s10 }
  0x20   : > { %p4951_p12 = scmp.ne.s32.totalorder %s255_s10, %s4950_s22  ;;  %p4959_p4 = scmp.lt.s32.totalorder %s4950_s22, %s4950_s22 }
  0x22   : > { %p4953_p13 = pnand %p4951_p12, %p5269_p7  ;;  %p4960_p2 = por %p4959_p4, %p4958_p1 }
  0x24   : > { %p4954_p0 = pneg %p4953_p13 }
  0x26   : > { %p4961_p3 = pnand %p4960_p2, %p4954_p0 }
  0x28   : > { %4964 = shalt.err (!%p4961_p3)
}
  0x29   : > { %s6902_s23 = smov 128   ;;  %s6904_s29 = smov 8  }
  0x2a   : > { %4771 = dma.hbm_to_vmem [thread:$0]  (!%p5257_p5), %s6963_s2, 1024, %s255_s10, [#allocation6], %s6902_s23, %s6902_s23, %s6904_s29  }
  0x2b   : > { %s6965_s4 = sld [smem:[#allocation71_spill]] }
  0x31   : > { %s4965_s16 = scalar_lea.hbm %s6965_s4, 2048 }
  0x32   : > { %p4966_p2 = scmp.ne.s32.totalorder %s6965_s4, %s4965_s16  ;;  %p4972_p8 = scmp.lt.u32.totalorder %s4965_s16, %s6965_s4 }
  0x34   : > { %p4968_p3 = pnand %p4966_p2, %p5269_p7 }
  0x36   : > { %p4969_p6 = pneg %p4968_p3 }
  0x38   : > { %p4974_p9 = pnand %p4972_p8, %p4969_p6 }
  0x3a   : > { %4977 = shalt.err (!%p4974_p9)
}
  0x3b   : > { %s4978_s10 = scalar_lea.vmem %s5253_s12, 2048  ;;  %p4986_p13 = scmp.lt.s32.totalorder %s5253_s12, %s5253_s12 }
  0x3c   : > { %p4979_p10 = scmp.ne.s32.totalorder %s5253_s12, %s4978_s10  ;;  %p4987_p0 = scmp.lt.s32.totalorder %s4978_s10, %s4978_s10 }
  0x3e   : > { %p4981_p11 = pnand %p4979_p10, %p5269_p7  ;;  %p4988_p1 = por %p4987_p0, %p4986_p13 }
  0x40   : > { %p4982_p12 = pneg %p4981_p11 }
  0x42   : > { %p4989_p4 = pnand %p4988_p1, %p4982_p12 }
  0x44   : > { %4992 = shalt.err (!%p4989_p4)
}
  0x45   : > { %4777 = dma.hbm_to_vmem [thread:$0]  (!%p5257_p5), %s6965_s4, 2048, %s5253_s12, [#allocation9], %s6902_s23, %s6902_s23, %s6904_s29  }
  0x46   : > { %s36_s11 = sadd.s32 1, %s5151_s26  ;;  %s40_s14 = sadd.s32 1, %s5155_s27 }
  0x47   : > { %p38_p2 = scmp.ge.s32.totalorder %s36_s11, 2  ;;  %s5165_s15 = smov [#allocation3]  }
  0x48   : > { %s241_s16 = sshll.u32 %s5165_s15, 4  ;;  %s5166_s17 = smov [#allocation7]   ;;  %s242_s16 = int_to_ptr.vmem [resolvable:$true] %s241_s16 }
  0x49   : > { %s7082_s11 = smov (%p38_p2, %s36_s11), 0  ;;  %s7084_s14 = smov (!%p38_p2, %s40_s14), %s5155_s27 }
  0x4a   : > { %6966 = sst [smem:[#allocation17_spill]] %s7082_s11  ;;  %s267_s18 = sshll.u32 %s5166_s17, 4  ;;  %s268_s18 = int_to_ptr.vmem [resolvable:$true] %s267_s18 }
  0x4b   : > { %s6967_s1 = sld [smem:[#allocation69_spill]] }
  0x51   : > { %s4993_s10 = scalar_lea.hbm %s6967_s1, 1024 }
  0x52   : > { %p4994_p6 = scmp.ne.s32.totalorder %s6967_s1, %s4993_s10  ;;  %p5000_p10 = scmp.lt.u32.totalorder %s4993_s10, %s6967_s1 }
  0x54   : > { %p4996_p8 = pnand %p4994_p6, %p5269_p7 }
  0x56   : > { %p4997_p9 = pneg %p4996_p8 }
  0x58   : > { %p5002_p11 = pnand %p5000_p10, %p4997_p9 }
  0x5a   : > { %5005 = shalt.err (!%p5002_p11)
}
  0x5b   : > { %s5006_s15 = scalar_lea.vmem %s242_s16, 1024  ;;  %p5014_p1 = scmp.lt.s32.totalorder %s242_s16, %s242_s16 }
  0x5c   : > { %p5007_p12 = scmp.ne.s32.totalorder %s242_s16, %s5006_s15  ;;  %p5015_p4 = scmp.lt.s32.totalorder %s5006_s15, %s5006_s15 }
  0x5e   : > { %p5009_p13 = pnand %p5007_p12, %p5269_p7  ;;  %p5016_p2 = por %p5015_p4, %p5014_p1 }
  0x60   : > { %p5010_p0 = pneg %p5009_p13 }
  0x62   : > { %p5017_p3 = pnand %p5016_p2, %p5010_p0 }
  0x64   : > { %5020 = shalt.err (!%p5017_p3)
}
  0x65   : > { %s6968_s17 = smov 128   ;;  %p6969_p6 = scmp.ge.s32.totalorder %s7084_s14, 2 }
  0x66   : > { %4768 = dma.hbm_to_vmem [thread:$0]  (!%p5257_p5), %s6967_s1, 1024, %s242_s16, [#allocation4], %s6968_s17, %s6968_s17, %s6904_s29  }
  0x67   : > { %s7086_s14 = smov (%p6969_p6, %s7084_s14), 0  ;;  %s5021_s22 = scalar_lea.hbm %s6894_s3, 1024 }
  0x68   : > { %6970 = sst [smem:[#allocation18_spill]] %s7086_s14  ;;  %p5022_p3 = scmp.ne.s32.totalorder %s6894_s3, %s5021_s22 }
  0x69   : > { %p5028_p10 = scmp.lt.u32.totalorder %s5021_s22, %s6894_s3 }
  0x6a   : > { %p5024_p8 = pnand %p5022_p3, %p5269_p7 }
  0x6c   : > { %p5025_p9 = pneg %p5024_p8 }
  0x6e   : > { %p5030_p11 = pnand %p5028_p10, %p5025_p9 }
  0x70   : > { %5033 = shalt.err (!%p5030_p11)
}
  0x71   : > { %s5034_s16 = scalar_lea.vmem %s268_s18, 1024  ;;  %p5042_p1 = scmp.lt.s32.totalorder %s268_s18, %s268_s18 }
  0x72   : > { %p5035_p12 = scmp.ne.s32.totalorder %s268_s18, %s5034_s16  ;;  %p5043_p4 = scmp.lt.s32.totalorder %s5034_s16, %s5034_s16 }
  0x74   : > { %p5037_p13 = pnand %p5035_p12, %p5269_p7  ;;  %p5044_p2 = por %p5043_p4, %p5042_p1 }
  0x76   : > { %p5038_p0 = pneg %p5037_p13 }
  0x78   : > { %p5045_p6 = pnand %p5044_p2, %p5038_p0 }
  0x7a   : > { %5048 = shalt.err (!%p5045_p6)
}
  0x7b   : > { %s5167_s23 = smov 64   ;;  %s5168_s20 = smov 4  }
  0x7c   : > { %4774 = dma.hbm_to_vmem [thread:$0]  (!%p5257_p5), %s6894_s3, 1024, %s268_s18, [#allocation6], %s5167_s23, %s5167_s23, %s5168_s20  }
  0x7d   : > { %s5169_s10 = smov [#allocation10]   ;;  %s5170_s9 = smov [#allocation11]  }
  0x7e   : > { %s293_s22 = sshll.u32 %s5169_s10, 4  ;;  %s306_s12 = sshll.u32 %s5170_s9, 4  ;;  %s294_s22 = int_to_ptr.vmem [resolvable:$true] %s293_s22  ;;  %s307_s12 = int_to_ptr.vmem [resolvable:$true] %s306_s12 }
  0x7f   : > { %s5049_s16 = scalar_lea.hbm %s6896_s5, 8192 }
  0x80   : > { %p5050_p3 = scmp.ne.s32.totalorder %s6896_s5, %s5049_s16  ;;  %p5056_p10 = scmp.lt.u32.totalorder %s5049_s16, %s6896_s5 }
  0x82   : > { %p5052_p8 = pnand %p5050_p3, %p5269_p7 }
  0x84   : > { %p5053_p9 = pneg %p5052_p8 }
  0x86   : > { %p5058_p11 = pnand %p5056_p10, %p5053_p9 }
  0x88   : > { %5061 = shalt.err (!%p5058_p11)
}
  0x89   : > { %s5062_s18 = scalar_lea.vmem %s294_s22, 8192  ;;  %p5070_p1 = scmp.lt.s32.totalorder %s294_s22, %s294_s22 }
  0x8a   : > { %p5063_p12 = scmp.ne.s32.totalorder %s294_s22, %s5062_s18  ;;  %p5071_p4 = scmp.lt.s32.totalorder %s5062_s18, %s5062_s18 }
  0x8c   : > { %p5065_p13 = pnand %p5063_p12, %p5269_p7  ;;  %p5072_p2 = por %p5071_p4, %p5070_p1 }
  0x8e   : > { %p5066_p0 = pneg %p5065_p13 }
  0x90   : > { %p5073_p6 = pnand %p5072_p2, %p5066_p0 }
  0x92   : > { %5076 = shalt.err (!%p5073_p6)
}
  0x93   : > { %4780 = dma.hbm_to_vmem [thread:$0]  (!%p5257_p5), %s6896_s5, 8192, %s294_s22, [#allocation9], %s5167_s23, %s5167_s23, %s5168_s20  }
  0x94   : > { %s5077_s14 = scalar_lea.hbm %s6897_s6, 16384 }
  0x95   : > { %p5078_p3 = scmp.ne.s32.totalorder %s6897_s6, %s5077_s14  ;;  %p5084_p10 = scmp.lt.u32.totalorder %s5077_s14, %s6897_s6 }
  0x97   : > { %p5080_p8 = pnand %p5078_p3, %p5269_p7 }
  0x99   : > { %p5081_p9 = pneg %p5080_p8 }
  0x9b   : > { %p5086_p11 = pnand %p5084_p10, %p5081_p9 }
  0x9d   : > { %5089 = shalt.err (!%p5086_p11)
}
  0x9e   : > { %s5090_s15 = scalar_lea.vmem %s307_s12, 16384  ;;  %p5098_p1 = scmp.lt.s32.totalorder %s307_s12, %s307_s12 }
  0x9f   : > { %p5091_p12 = scmp.ne.s32.totalorder %s307_s12, %s5090_s15  ;;  %p5099_p4 = scmp.lt.s32.totalorder %s5090_s15, %s5090_s15 }
  0xa1   : > { %p5093_p13 = pnand %p5091_p12, %p5269_p7  ;;  %p5100_p2 = por %p5099_p4, %p5098_p1 }
  0xa3   : > { %p5094_p0 = pneg %p5093_p13 }
  0xa5   : > { %p5101_p6 = pnand %p5100_p2, %p5094_p0 }
  0xa7   : > { %5104 = shalt.err (!%p5101_p6)
}
  0xa8   : > { %s6971_s23 = smov 8   ;;  %p6972_p3 = scmp.ne.s32.totalorder %s6961_s8, 0 }
  0xa9   : > { %4783 = dma.hbm_to_vmem [thread:$0]  (!%p5257_p5), %s6897_s6, 16384, %s307_s12, [#allocation12], %s6968_s17, %s6968_s17, %s6971_s23  }
  0xaa   : > { %337 = sbr.rel (%p6972_p3) target bundleno = 1371 (0x55b), region = 48 }
  0xb1   : > { %p6973_p7 = scmp.ne.s32.totalorder %s6960_s30, 0 }
  0xb3   : > { %5126 = dma.done.wait (%p6973_p7), [#allocation4], 1024  }
  0xb4   : > { %5128 = vsyncadd (%p6973_p7), [#allocation4], 4294966272 }
  0xb5   : > { %5130 = dma.done.wait (%p6973_p7), [#allocation6], 2048  }
  0xb6   : > { %5132 = vsyncadd (%p6973_p7), [#allocation6], 4294965248 }
  0xb7   : > { %5134 = dma.done.wait (%p6973_p7), [#allocation9], 10240  }
  0xb8   : > { %5136 = vsyncadd (%p6973_p7), [#allocation9], 4294957056 }
  0xb9   : > { %5138 = dma.done.wait (%p6973_p7), [#allocation12], 16384  }
  0xba   : > { %5140 = vsyncadd (%p6973_p7), [#allocation12], 4294950912  ;;  %v5171_v0 = vmov 2   ;;  %v6905_v1 = vmov 0   ;;  %v556_v2 = vld [vmem:[#allocation3 + $0x10] sm:$0xff]  ;;  %v558_v3 = vld [vmem:[#allocation3 + $0x20] sm:$0xff]  ;;  %v603_v61 = vlaneseq }
  0xbb   : > { %4854 = vset.pattern.permute.xlu0 %v5171_v0  ;;  %4850 = vset.pattern.permute.xlu1 %v6905_v1  ;;  %v557_v4 = vld [vmem:[#allocation3 + $0x18] sm:$0xff]  ;;  %v559_v5 = vld [vmem:[#allocation3 + $0x28] sm:$0xff]  ;;  %v5173_v7 = vmov 1   ;;  %v554_v8 = vld [vmem:[#allocation3] sm:$0xff]  ;;  %s4637_s30 = sshll.u32 %s5143_s24, 1  ;;  %p400_p5 = scmp.lt.s32.totalorder %s5147_s25, 1 }
  0xbc   : > { %1098 = vmatprep.mubr.bf16.mxu0 %v6905_v1  ;;  %2829 = vmatprep.mubr.bf16.mxu1 %v6905_v1  ;;  %v555_v6 = vld [vmem:[#allocation3 + $0x8] sm:$0xff]  ;;  %v561_v9 = vld [vmem:[#allocation3 + $0x38] sm:$0xff]  ;;  %v560_v10 = vld [vmem:[#allocation3 + $0x30] sm:$0xff]  ;;  %p402_p8 = scmp.lt.s32.totalorder %s4637_s30, 3  ;;  %vm1041_vm0 = vcmask 523264   ;;  %vm424_vm1 = vcmask 7168  }
  0xbd   : > { %728 = vperm.xlu0 %4854, %v556_v2   ;;  %574 = vperm.xlu1 %4850, %v556_v2   ;;  %v801_v11 = vld [vmem:[#allocation5] sm:$0xff]  ;;  %v802_v12 = vld [vmem:[#allocation5 + $0x8] sm:$0xff]  ;;  %v804_v13 = vld [vmem:[#allocation5 + $0x18] sm:$0xff]  ;;  %s7088_s25 = smov (!%p400_p5, %s5147_s25), 1  ;;  %p412_p9 = scmp.lt.s32.totalorder %s5143_s24, 1 }
  0xbe   : > { %v805_v14 = vld [vmem:[#allocation5 + $0x20] sm:$0xff]  ;;  %v808_v15 = vld [vmem:[#allocation5 + $0x38] sm:$0xff]  ;;  %v906_v16 = vld [vmem:[#allocation8 + $0x8] sm:$0xff]  ;;  %s7090_s30 = smov (!%p402_p8, %s4637_s30), 3  ;;  %s4638_s8 = sshll.u32 %s7088_s25, 2 }
  0xbf   : > { %v803_v17 = vld [vmem:[#allocation5 + $0x10] sm:$0xff]  ;;  %v908_v18 = vld [vmem:[#allocation8 + $0x18] sm:$0xff]  ;;  %v910_v19 = vld [vmem:[#allocation8 + $0x28] sm:$0xff]  ;;  %s405_s13 = sadd.s32 %s4638_s8, %s7090_s30  ;;  %s7092_s24 = smov (!%p412_p9, %s5143_s24), 1 }
  0xc0   : > { %v912_v20 = vld [vmem:[#allocation8 + $0x38] sm:$0xff]  ;;  %v914_v21 = vld [vmem:[#allocation8 + $0x48] sm:$0xff]  ;;  %v807_v26 = vld [vmem:[#allocation5 + $0x30] sm:$0xff]  ;;  %s4639_s19 = sshll.u32 %s405_s13, 2  ;;  %s4640_s18 = sshll.u32 %s7092_s24, 7 }
  0xc1   : > { %736 = vperm.xlu0 %4854, %v558_v3   ;;  %579 = vperm.xlu1 %4850, %v557_v4   ;;  %v916_v22 = vld [vmem:[#allocation8 + $0x58] sm:$0xff]  ;;  %v918_v23 = vld [vmem:[#allocation8 + $0x68] sm:$0xff]  ;;  %v905_v28 = vld [vmem:[#allocation8] sm:$0xff]  ;;  %s407_s16 = scalar_lea.vmem %s6891_s0, %s4639_s19  ;;  %s4641_s1 = sshll.u32 %s7088_s25, 8 }
  0xc2   : > { %v806_v24 = vld [vmem:[#allocation5 + $0x28] sm:$0xff]  ;;  %v920_v25 = vld [vmem:[#allocation8 + $0x78] sm:$0xff]  ;;  %v907_v30 = vld [vmem:[#allocation8 + $0x10] sm:$0xff]  ;;  %s6380_s4 = sadd.s32 %s4641_s1, %s4640_s18 }
  0xc3   : > { %v1356_v27 = vld [vmem:[#allocation11 + $0x8] sm:$0xff]  ;;  %v1358_v29 = vld [vmem:[#allocation11 + $0x18] sm:$0xff]  ;;  %v909_v32 = vld [vmem:[#allocation8 + $0x20] sm:$0xff]  ;;  %s4642_s24 = sshll.u32 %s6380_s4, 3 }
  0xc4   : > { %v1360_v31 = vld [vmem:[#allocation11 + $0x28] sm:$0xff]  ;;  %v1362_v33 = vld [vmem:[#allocation11 + $0x38] sm:$0xff]  ;;  %v911_v34 = vld [vmem:[#allocation8 + $0x30] sm:$0xff]  ;;  %s6398_s11 = scalar_lea.vmem %s6898_s7, %s4642_s24 }
  0xc5   : > { %4858 = vset.pattern.permute.xlu0 %v5173_v7  ;;  %589 = vperm.xlu1 %4850, %v559_v5   ;;  %v1364_v35 = vld [vmem:[#allocation11 + $0x48] sm:$0xff]  ;;  %v913_v36 = vld [vmem:[#allocation8 + $0x40] sm:$0xff]  ;;  %v1366_v37 = vld [vmem:[#allocation11 + $0x58] sm:$0xff] }
  0xc6   : > { %642 = vperm.xlu0 %4858, %v555_v6   ;;  %v915_v38 = vld [vmem:[#allocation8 + $0x50] sm:$0xff]  ;;  %v1368_v39 = vld [vmem:[#allocation11 + $0x68] sm:$0xff]  ;;  %v917_v40 = vld [vmem:[#allocation8 + $0x60] sm:$0xff] }
  0xc7   : > { %v1370_v41 = vld [vmem:[#allocation11 + $0x78] sm:$0xff]  ;;  %v919_v42 = vld [vmem:[#allocation8 + $0x70] sm:$0xff]  ;;  %v1372_v43 = vld [vmem:[#allocation11 + $0x88] sm:$0xff] }
  0xc8   : > { %v1355_v44 = vld [vmem:[#allocation11] sm:$0xff]  ;;  %v1374_v45 = vld [vmem:[#allocation11 + $0x98] sm:$0xff]  ;;  %v1357_v46 = vld [vmem:[#allocation11 + $0x10] sm:$0xff] }
  0xc9   : > { %4851 = vset.pattern.permute.xlu1 %v5173_v7  ;;  %v1376_v47 = vld [vmem:[#allocation11 + $0xa8] sm:$0xff]  ;;  %v1359_v48 = vld [vmem:[#allocation11 + $0x20] sm:$0xff]  ;;  %v1378_v51 = vld [vmem:[#allocation11 + $0xb8] sm:$0xff] }
  0xca   : > { %646 = vperm.xlu0 %4858, %v556_v2   ;;  %638 = vperm.xlu1 %4851, %v554_v8   ;;  %v1361_v52 = vld [vmem:[#allocation11 + $0x30] sm:$0xff]  ;;  %v1380_v55 = vld [vmem:[#allocation11 + $0xc8] sm:$0xff]  ;;  %v1363_v56 = vld [vmem:[#allocation11 + $0x40] sm:$0xff] }
  0xcb   : > { %v1382_v58 = vld [vmem:[#allocation11 + $0xd8] sm:$0xff]  ;;  %v1365_v60 = vld [vmem:[#allocation11 + $0x50] sm:$0xff]  ;;  %v1384_v62 = vld [vmem:[#allocation11 + $0xe8] sm:$0xff] }
  0xcc   : > { %v1367_v2 = vld [vmem:[#allocation11 + $0x60] sm:$0xff] }
  0xce   : > { %666 = vperm.xlu0 %4858, %v561_v9   ;;  %4852 = vset.pattern.permute.xlu1 %v5171_v0 }
  0xcf   : > { %720 = vperm.xlu1 %4852, %v554_v8  }
  0xd2   : > { %4862 = vset.pattern.permute.xlu0 %v6905_v1 }
  0xd3   : > { %564 = vperm.xlu0 %4862, %v554_v8   ;;  %724 = vperm.xlu1 %4852, %v555_v6  }
  0xd7   : > { %569 = vperm.xlu0 %4862, %v555_v6   ;;  %4853 = vset.pattern.permute.xlu1 %v5173_v7  ;;  %v1369_v6 = vld [vmem:[#allocation11 + $0x70] sm:$0xff] }
  0xd8   : > { %650 = vperm.xlu1 %4853, %v557_v4  }
  0xdb   : > { %584 = vperm.xlu0 %4862, %v558_v3  }
  0xdc   : > { %4855 = vset.pattern.permute.xlu1 %v5171_v0 }
  0xdd   : > { %732 = vperm.xlu1 %4855, %v557_v4   ;;  %v1386_v4 = vld [vmem:[#allocation11 + $0xf8] sm:$0xff] }
  0xdf   : > { %594 = vperm.xlu0 %4862, %v560_v10  }
  0xe1   : > { %4856 = vset.pattern.permute.xlu1 %v6905_v1 }
  0xe2   : > { %811 = vperm.xlu1 %4856, %v801_v11  }
  0xe3   : > { %816 = vperm.xlu0 %4862, %v802_v12   ;;  %v553_v12 = vld [vmem:[%s407_s16] sm:$0x77] }
  0xe6   : > { %4857 = vset.pattern.permute.xlu1 %v5173_v7 }
  0xe7   : > { %826 = vperm.xlu0 %4862, %v804_v13   ;;  %654 = vperm.xlu1 %4857, %v558_v3   ;;  %v604_v3 = vshrl.u32 %v603_v61, 7  ;;  %v1388_v13 = vld [vmem:[#allocation11 + $0x108] sm:$0xff] }
  0xe9   : > { %v609_v8 = vsub.s32 4, %v604_v3 }
  0xeb   : > { %831 = vperm.xlu0 %4862, %v805_v14   ;;  %658 = vperm.xlu1 %4857, %v559_v5   ;;  %v1371_v14 = vld [vmem:[#allocation11 + $0x80] sm:$0xff] }
  0xef   : > { %846 = vperm.xlu0 %4862, %v808_v15   ;;  %4859 = vset.pattern.permute.xlu1 %v5171_v0 }
  0xf0   : > { %740 = vperm.xlu1 %4859, %v559_v5  }
  0xf3   : > { %928 = vperm.xlu0 %4862, %v906_v16   ;;  %v610_v16 = vrot.slane %v553_v12, %v609_v8 }
  0xf4   : > { %4860 = vset.pattern.permute.xlu1 %v6905_v1 }
  0xf5   : > { %821 = vperm.xlu1 %4860, %v803_v17  }
  0xf7   : > { %938 = vperm.xlu0 %4862, %v908_v18  }
  0xf9   : > { %599 = vperm.xlu1 %4860, %v561_v9  }
  0xfb   : > { %948 = vperm.xlu0 %4862, %v910_v19  }
  0xfd   : > { %4861 = vset.pattern.permute.xlu1 %v5173_v7  ;;  %v605_v7 = vsub.s32 0, %v604_v3 }
  0xfe   : > { %662 = vperm.xlu1 %4861, %v560_v10  }
  0xff   : > { %958 = vperm.xlu0 %4862, %v912_v20   ;;  %v606_v15 = vrot.slane %v553_v12, %v605_v7 }
 0x102   : > { %4863 = vset.pattern.permute.xlu1 %v5171_v0 }
 0x103   : > { %968 = vperm.xlu0 %4862, %v914_v21   ;;  %744 = vperm.xlu1 %4863, %v560_v10   ;;  %v675_v10 = vsub.s32 5, %v604_v3  ;;  %v753_v21 = vsub.s32 2, %v604_v3 }
 0x105   : > { %v676_v18 = vrot.slane %v553_v12, %v675_v10 }
 0x107   : > { %978 = vperm.xlu0 %4862, %v916_v22   ;;  %748 = vperm.xlu1 %4863, %v561_v9   ;;  %v671_v9 = vsub.s32 1, %v604_v3  ;;  %v757_v22 = vsub.s32 6, %v604_v3 }
 0x109   : > { %v672_v17 = vrot.slane %v553_v12, %v671_v9 }
 0x10b   : > { %988 = vperm.xlu0 %4862, %v918_v23   ;;  %4864 = vset.pattern.permute.xlu1 %v6905_v1  ;;  %v1390_v23 = vld [vmem:[#allocation11 + $0x118] sm:$0xff] }
 0x10c   : > { %836 = vperm.xlu1 %4864, %v806_v24   ;;  %v1373_v24 = vld [vmem:[#allocation11 + $0x90] sm:$0xff] }
 0x10f   : > { %998 = vperm.xlu0 %4862, %v920_v25   ;;  %v5453_v25 = vrot.slane %v606_v15, %v605_v7 }
 0x110   : > { %841 = vperm.xlu1 %4864, %v807_v26   ;;  %v5455_v26 = vrot.slane %v610_v16, %v605_v7  ;;  %v1379_v7 = vld [vmem:[#allocation11 + $0xc0] sm:$0xff] }
 0x113   : > { %1490 = vperm.xlu0 %4862, %v1356_v27   ;;  %v5457_v27 = vrot.slane %v672_v17, %v671_v9  ;;  %v1381_v17 = vld [vmem:[#allocation11 + $0xd0] sm:$0xff] }
 0x114   : > { %923 = vperm.xlu1 %4864, %v905_v28   ;;  %v5459_v28 = vrot.slane %v676_v18, %v671_v9 }
 0x117   : > { %1500 = vperm.xlu0 %4862, %v1358_v29  }
 0x118   : > { %933 = vperm.xlu1 %4864, %v907_v30  }
 0x11b   : > { %1510 = vperm.xlu0 %4862, %v1360_v31   ;;  %v754_v31 = vrot.slane %v553_v12, %v753_v21 }
 0x11c   : > { %943 = vperm.xlu1 %4864, %v909_v32   ;;  %v758_v32 = vrot.slane %v553_v12, %v757_v22 }
 0x11f   : > { %1520 = vperm.xlu0 %4862, %v1362_v33  }
 0x120   : > { %953 = vperm.xlu1 %4864, %v911_v34  }
 0x123   : > { %1530 = vperm.xlu0 %4862, %v1364_v35   ;;  %v1392_v35 = vld [vmem:[#allocation11 + $0x128] sm:$0xff] }
 0x124   : > { %963 = vperm.xlu1 %4864, %v913_v36  }
 0x127   : > { %1540 = vperm.xlu0 %4862, %v1366_v37  }
 0x128   : > { %973 = vperm.xlu1 %4864, %v915_v38  }
 0x12b   : > { %1550 = vperm.xlu0 %4862, %v1368_v39  }
 0x12c   : > { %983 = vperm.xlu1 %4864, %v917_v40   ;;  %v1375_v40 = vld [vmem:[#allocation11 + $0xa0] sm:$0xff] }
 0x12f   : > { %1560 = vperm.xlu0 %4862, %v1370_v41  }
 0x130   : > { %993 = vperm.xlu1 %4864, %v919_v42  }
 0x133   : > { %1570 = vperm.xlu0 %4862, %v1372_v43  }
 0x134   : > { %1485 = vperm.xlu1 %4864, %v1355_v44   ;;  %v5473_v44 = vrot.slane %v754_v31, %v753_v21 }
 0x137   : > { %1580 = vperm.xlu0 %4862, %v1374_v45   ;;  %v5475_v45 = vrot.slane %v758_v32, %v753_v21 }
 0x138   : > { %1495 = vperm.xlu1 %4864, %v1357_v46  }
 0x13b   : > { %1590 = vperm.xlu0 %4862, %v1376_v47  }
 0x13c   : > { %v5432_v49 = vpop.permute.xlu1 %574  ;;  %1505 = vperm.xlu1 %4864, %v1359_v48   ;;  %v5434_v50 = vpop.permute.xlu0 %728 }
 0x13f   : > { %1600 = vperm.xlu0 %4862, %v1378_v51   ;;  %v1394_v51 = vld [vmem:[#allocation11 + $0x138] sm:$0xff] }
 0x140   : > { %v5439_v53 = vpop.permute.xlu1 %579  ;;  %1515 = vperm.xlu1 %4864, %v1361_v52   ;;  %v5441_v54 = vpop.permute.xlu0 %736 }
 0x143   : > { %1610 = vperm.xlu0 %4862, %v1380_v55  }
 0x144   : > { %v5444_v57 = vpop.permute.xlu1 %589  ;;  %1525 = vperm.xlu1 %4864, %v1363_v56   ;;  %v1377_v56 = vld [vmem:[#allocation11 + $0xb0] sm:$0xff] }
 0x145   : > { %v643_v59 = vpop.permute.xlu0 %642 }
 0x146   : > { %v689_v36 = vmul.f32 %v5457_v27, %v643_v59  ;;  %v690_v37 = vmul.f32 %v5459_v28, %v643_v59 }
 0x147   : > { %1620 = vperm.xlu0 %4862, %v1382_v58  }
 0x148   : > { %1535 = vperm.xlu1 %4864, %v1365_v60  }
 0x149   : > { %v5446_v63 = vpop.permute.xlu0 %646  ;;  %v639_v0 = vpop.permute.xlu1 %638 }
 0x14a   : > { %v687_v41 = vmul.f32 %v5457_v27, %v639_v0  ;;  %v688_v42 = vmul.f32 %v5459_v28, %v639_v0  ;;  %v691_v31 = vmul.f32 %v5457_v27, %v5446_v63  ;;  %v692_v32 = vmul.f32 %v5459_v28, %v5446_v63 }
 0x14b   : > { %1630 = vperm.xlu0 %4862, %v1384_v62   ;;  %v628_v63 = vmul.f32 %v5455_v26, %v5439_v53 }
 0x14c   : > { %1545 = vperm.xlu1 %4864, %v1367_v2   ;;  %v1396_v2 = vld [vmem:[#allocation11 + $0x148] sm:$0xff] }
 0x14d   : > { %v5451_v5 = vpop.permute.xlu0 %666 }
 0x14e   : > { %v721_v11 = vpop.permute.xlu1 %720 }
 0x14f   : > { %1640 = vperm.xlu0 %4862, %v1386_v4   ;;  %v769_v58 = vmul.f32 %v5473_v44, %v721_v11  ;;  %v770_v59 = vmul.f32 %v5475_v45, %v721_v11 }
 0x150   : > { %1555 = vperm.xlu1 %4864, %v1369_v6  }
 0x152   : > { %v565_v19 = vpop.permute.xlu0 %564  ;;  %v725_v20 = vpop.permute.xlu1 %724 }
 0x153   : > { %1650 = vperm.xlu0 %4862, %v1388_v13   ;;  %v621_v33 = vmul.f32 %v5453_v25, %v565_v19  ;;  %v622_v34 = vmul.f32 %v5455_v26, %v565_v19  ;;  %v771_v61 = vmul.f32 %v5473_v44, %v725_v20  ;;  %v772_v62 = vmul.f32 %v5475_v45, %v725_v20 }
 0x154   : > { %1565 = vperm.xlu1 %4864, %v1371_v14   ;;  %v1398_v14 = vld [vmem:[#allocation11 + $0x158] sm:$0xff] }
 0x155   : > { %v703_v46 = vadd.f32 %v687_v41, %v621_v33  ;;  %v704_v47 = vadd.f32 %v688_v42, %v622_v34  ;;  %v773_v41 = vmul.f32 %v5473_v44, %v5434_v50 }
 0x156   : > { %v570_v29 = vpop.permute.xlu0 %569 }
 0x157   : > { %1660 = vperm.xlu0 %4862, %v1390_v23   ;;  %v5461_v30 = vpop.permute.xlu1 %650  ;;  %v623_v38 = vmul.f32 %v5453_v25, %v570_v29  ;;  %v624_v39 = vmul.f32 %v5455_v26, %v570_v29  ;;  %v785_v0 = vadd.f32 %v769_v58, %v703_v46  ;;  %v786_v3 = vadd.f32 %v770_v59, %v704_v47  ;;  %v1400_v23 = vld [vmem:[#allocation11 + $0x168] sm:$0xff]  ;;  %v1387_v58 = vld [vmem:[#allocation11 + $0x100] sm:$0xff] }
 0x158   : > { %1575 = vperm.xlu1 %4864, %v1373_v24   ;;  %v1383_v24 = vld [vmem:[#allocation11 + $0xe0] sm:$0xff]  ;;  %v693_v33 = vmul.f32 %v5457_v27, %v5461_v30  ;;  %v694_v34 = vmul.f32 %v5459_v28, %v5461_v30  ;;  %v1402_v30 = vld [vmem:[#allocation11 + $0x178] sm:$0xff] }
 0x159   : > { %v705_v52 = vadd.f32 %v689_v36, %v623_v38  ;;  %v706_v55 = vadd.f32 %v690_v37, %v624_v39  ;;  %v626_v36 = vmul.f32 %v5455_v26, %v5432_v49  ;;  %v627_v37 = vmul.f32 %v5453_v25, %v5439_v53 }
 0x15a   : > { %v5471_v43 = vpop.permute.xlu0 %584 }
 0x15b   : > { %1670 = vperm.xlu0 %4862, %v1392_v35   ;;  %v787_v6 = vadd.f32 %v771_v61, %v705_v52  ;;  %v788_v8 = vadd.f32 %v772_v62, %v706_v55  ;;  %v625_v35 = vmul.f32 %v5453_v25, %v5432_v49  ;;  %v774_v49 = vmul.f32 %v5475_v45, %v5434_v50 }
 0x15c   : > { %1585 = vperm.xlu1 %4864, %v1375_v40   ;;  %v733_v48 = vpop.permute.xlu1 %732  ;;  %v1385_v40 = vld [vmem:[#allocation11 + $0xf0] sm:$0xff]  ;;  %v708_v46 = vadd.f32 %v692_v32, %v626_v36  ;;  %v709_v47 = vadd.f32 %v693_v33, %v627_v37  ;;  %v1412_v32 = vld [vmem:[#allocation11 + $0x1c8] sm:$0xff]  ;;  %v1395_v33 = vld [vmem:[#allocation11 + $0x140] sm:$0xff]  ;;  %v777_v37 = vmul.f32 %v5473_v44, %v5441_v54 }
 0x15d   : > { %v775_v38 = vmul.f32 %v5473_v44, %v733_v48  ;;  %v776_v39 = vmul.f32 %v5475_v45, %v733_v48  ;;  %v707_v42 = vadd.f32 %v691_v31, %v625_v35  ;;  %v1404_v48 = vld [vmem:[#allocation11 + $0x188] sm:$0xff] }
 0x15e   : > { %v5479_v60 = vpop.permute.xlu0 %594 }
 0x15f   : > { %1680 = vperm.xlu0 %4862, %v1394_v51   ;;  %v710_v51 = vadd.f32 %v694_v34, %v628_v63  ;;  %v791_v53 = vadd.f32 %v775_v38, %v709_v47  ;;  %v789_v62 = vadd.f32 %v773_v41, %v707_v42  ;;  %v632_v63 = vmul.f32 %v5455_v26, %v5444_v57  ;;  %v1397_v42 = vld [vmem:[#allocation11 + $0x150] sm:$0xff] }
 0x160   : > { %1595 = vperm.xlu1 %4864, %v1377_v56   ;;  %v633_v41 = vmul.f32 %v5453_v25, %v5479_v60 }
 0x161   : > { %v812_v4 = vpop.permute.xlu1 %811  ;;  %v792_v56 = vadd.f32 %v776_v39, %v710_v51 }
 0x162   : > { %v849_v9 = vadd.f32 %v812_v4, %v785_v0  ;;  %v817_v10 = vpop.permute.xlu0 %816  ;;  %v850_v12 = vadd.f32 %v812_v4, %v786_v3  ;;  %v790_v0 = vadd.f32 %v774_v49, %v708_v46  ;;  %v1406_v4 = vld [vmem:[#allocation11 + $0x198] sm:$0xff] }
 0x163   : > { %v851_v13 = vadd.f32 %v817_v10, %v787_v6  ;;  %1690 = vperm.xlu0 %4862, %v1396_v2   ;;  %v852_v11 = vadd.f32 %v817_v10, %v788_v8  ;;  %v1389_v6 = vld [vmem:[#allocation11 + $0x110] sm:$0xff] }
 0x164   : > { %1605 = vperm.xlu1 %4864, %v1379_v7   ;;  %v866_v15 = vmax.f32 %v850_v12, 0.0  ;;  %v865_v16 = vmax.f32 %v849_v9, 0.0 }
 0x165   : > { %v868_v18 = vmax.f32 %v852_v11, 0.0  ;;  %v867_v19 = vmax.f32 %v851_v13, 0.0  ;;  %v1408_v13 = vld [vmem:[#allocation11 + $0x1a8] sm:$0xff] }
 0x166   : > { %v5483_v20 = vpop.permute.xlu1 %654  ;;  %v827_v55 = vpop.permute.xlu0 %826 }
 0x167   : > { %1700 = vperm.xlu0 %4862, %v1398_v14   ;;  %v898_v21 = vpack.c.bf16 %v868_v18, %v866_v15  ;;  %v897_v22 = vpack.c.bf16 %v867_v19, %v865_v16  ;;  %v855_v59 = vadd.f32 %v827_v55, %v791_v53  ;;  %v856_v61 = vadd.f32 %v827_v55, %v792_v56  ;;  %v1391_v14 = vld [vmem:[#allocation11 + $0x120] sm:$0xff]  ;;  %v1410_v19 = vld [vmem:[#allocation11 + $0x1b8] sm:$0xff] }
 0x168   : > { %1615 = vperm.xlu1 %4864, %v1381_v17   ;;  %v630_v16 = vmul.f32 %v5455_v26, %v5471_v43  ;;  %v696_v17 = vmul.f32 %v5459_v28, %v5483_v20 }
 0x169   : > { %1066 = vmatprep.subr.bf16.mxu0 %v898_v21  ;;  %v871_v7 = vmax.f32 %v855_v59, 0.0  ;;  %v872_v8 = vmax.f32 %v856_v61, 0.0  ;;  %v1393_v21 = vld [vmem:[#allocation11 + $0x130] sm:$0xff] }
 0x16a   : > { %v5485_v29 = vpop.permute.xlu1 %658  ;;  %1067 = vmatpush1.bf16.msra.mxu0 %v897_v22  ;;  %v629_v22 = vmul.f32 %v5453_v25, %v5471_v43  ;;  %v712_v31 = vadd.f32 %v696_v17, %v630_v16  ;;  %v778_v43 = vmul.f32 %v5475_v45, %v5441_v54  ;;  %v702_v54 = vmul.f32 %v5459_v28, %v5451_v5 }
 0x16b   : > { %1710 = vperm.xlu0 %4862, %v1400_v23   ;;  %v695_v23 = vmul.f32 %v5457_v27, %v5483_v20  ;;  %v697_v35 = vmul.f32 %v5457_v27, %v5485_v29  ;;  %v631_v20 = vmul.f32 %v5453_v25, %v5444_v57  ;;  %v698_v38 = vmul.f32 %v5459_v28, %v5485_v29  ;;  %v1414_v57 = vld [vmem:[#allocation11 + $0x1d8] sm:$0xff] }
 0x16c   : > { %1625 = vperm.xlu1 %4864, %v1383_v24   ;;  %v832_v24 = vpop.permute.xlu0 %831  ;;  %v794_v49 = vadd.f32 %v778_v43, %v712_v31  ;;  %v1420_v31 = vld [vmem:[#allocation11 + $0x208] sm:$0xff] }
 0x16d   : > { %v711_v34 = vadd.f32 %v695_v23, %v629_v22  ;;  %v713_v29 = vadd.f32 %v697_v35, %v631_v20 }
 0x16f   : > { %v5509_v52 = vpop.permute.xlu1 %740  ;;  %1720 = vperm.xlu0 %4862, %v1402_v30   ;;  %v793_v46 = vadd.f32 %v777_v37, %v711_v34 }
 0x170   : > { %1635 = vperm.xlu1 %4864, %v1385_v40   ;;  %v701_v40 = vmul.f32 %v5457_v27, %v5451_v5  ;;  %v847_v47 = vpop.permute.xlu0 %846  ;;  %v779_v51 = vmul.f32 %v5473_v44, %v5509_v52  ;;  %v780_v55 = vmul.f32 %v5475_v45, %v5509_v52 }
 0x173   : > { %1730 = vperm.xlu0 %4862, %v1404_v48  }
 0x174   : > { %1645 = vperm.xlu1 %4864, %v1387_v58   ;;  %v822_v50 = vpop.permute.xlu1 %821  ;;  %v714_v58 = vadd.f32 %v698_v38, %v632_v63  ;;  %v1422_v38 = vld [vmem:[#allocation11 + $0x218] sm:$0xff] }
 0x175   : > { %v853_v2 = vadd.f32 %v822_v50, %v789_v62  ;;  %v854_v3 = vadd.f32 %v822_v50, %v790_v0  ;;  %v634_v62 = vmul.f32 %v5455_v26, %v5479_v60  ;;  %v858_v0 = vadd.f32 %v832_v24, %v794_v49  ;;  %v1426_v49 = vld [vmem:[#allocation11 + $0x238] sm:$0xff] }
 0x177   : > { %v869_v9 = vmax.f32 %v853_v2, 0.0  ;;  %v870_v10 = vmax.f32 %v854_v3, 0.0  ;;  %1740 = vperm.xlu0 %4862, %v1406_v4   ;;  %v1399_v2 = vld [vmem:[#allocation11 + $0x160] sm:$0xff]  ;;  %v795_v4 = vadd.f32 %v779_v51, %v713_v29  ;;  %v874_v60 = vmax.f32 %v858_v0, 0.0  ;;  %v1428_v29 = vld [vmem:[#allocation11 + $0x248] sm:$0xff] }
 0x178   : > { %1655 = vperm.xlu1 %4864, %v1389_v6   ;;  %v600_v12 = vpop.permute.xlu1 %599  ;;  %v796_v6 = vadd.f32 %v780_v55, %v714_v58  ;;  %v1430_v55 = vld [vmem:[#allocation11 + $0x258] sm:$0xff] }
 0x179   : > { %v900_v11 = vpack.c.bf16 %v872_v8, %v870_v10  ;;  %v899_v15 = vpack.c.bf16 %v871_v7, %v869_v9  ;;  %v635_v39 = vmul.f32 %v5453_v25, %v600_v12  ;;  %v636_v30 = vmul.f32 %v5455_v26, %v600_v12  ;;  %v5551_v12 = vpop.permute.xlu0 %928 }
 0x17a   : > { %v857_v7 = vadd.f32 %v832_v24, %v793_v46  ;;  %v4866_v46 = vld [vmem:[#allocation7 + $0x8] sm:$0xff]  }
 0x17b   : > { %1068 = vmatprep.subr.bf16.mxu0 %v900_v11  ;;  %1750 = vperm.xlu0 %4862, %v1408_v13   ;;  %v717_v59 = vadd.f32 %v701_v40, %v635_v39  ;;  %v718_v61 = vadd.f32 %v702_v54, %v636_v30  ;;  %v1405_v39 = vld [vmem:[#allocation11 + $0x190] sm:$0xff]  ;;  %v4865_v30 = vld [vmem:[#allocation7] sm:$0xff]   ;;  %v1424_v54 = vld [vmem:[#allocation11 + $0x228] sm:$0xff] }
 0x17c   : > { %1665 = vperm.xlu1 %4864, %v1391_v14   ;;  %1069 = vmatpush1.bf16.msra.mxu0 %v899_v15  ;;  %v1401_v14 = vld [vmem:[#allocation11 + $0x170] sm:$0xff] }
 0x17d   : > { %v663_v18 = vpop.permute.xlu1 %662  ;;  %v5553_v34 = vpop.permute.xlu0 %938 }
 0x17e   : > { %v699_v56 = vmul.f32 %v5457_v27, %v663_v18  ;;  %v700_v5 = vmul.f32 %v5459_v28, %v663_v18  ;;  %v1416_v27 = vld [vmem:[#allocation11 + $0x1e8] sm:$0xff] }
 0x17f   : > { %1760 = vperm.xlu0 %4862, %v1410_v19   ;;  %v873_v19 = vmax.f32 %v857_v7, 0.0  ;;  %v1440_v7 = vld [vmem:[#allocation11 + $0x2a8] sm:$0xff] }
 0x180   : > { %1675 = vperm.xlu1 %4864, %v1393_v21   ;;  %v715_v8 = vadd.f32 %v699_v56, %v633_v41  ;;  %v716_v9 = vadd.f32 %v700_v5, %v634_v62  ;;  %v1407_v41 = vld [vmem:[#allocation11 + $0x1a0] sm:$0xff]  ;;  %v4867_v56 = vld [vmem:[#allocation7 + $0x10] sm:$0xff]   ;;  %v1432_v5 = vld [vmem:[#allocation11 + $0x268] sm:$0xff] }
 0x181   : > { %v5555_v40 = vpop.permute.xlu0 %948  ;;  %v4868_v62 = vld [vmem:[#allocation7 + $0x18] sm:$0xff]  }
 0x182   : > { %v745_v36 = vpop.permute.xlu1 %744 }
 0x183   : > { %1770 = vperm.xlu0 %4862, %v1412_v32   ;;  %v781_v52 = vmul.f32 %v5473_v44, %v745_v36  ;;  %v782_v50 = vmul.f32 %v5475_v45, %v745_v36 }
 0x184   : > { %1685 = vperm.xlu1 %4864, %v1395_v33   ;;  %v1403_v33 = vld [vmem:[#allocation11 + $0x180] sm:$0xff] }
 0x185   : > { %v797_v11 = vadd.f32 %v781_v52, %v715_v8  ;;  %v1436_v52 = vld [vmem:[#allocation11 + $0x288] sm:$0xff]  ;;  %v1423_v8 = vld [vmem:[#allocation11 + $0x220] sm:$0xff] }
 0x186   : > { %v749_v53 = vpop.permute.xlu1 %748 }
 0x187   : > { %v783_v48 = vmul.f32 %v5473_v44, %v749_v53  ;;  %v784_v25 = vmul.f32 %v5475_v45, %v749_v53  ;;  %1780 = vperm.xlu0 %4862, %v1414_v57   ;;  %v1418_v44 = vld [vmem:[#allocation11 + $0x1f8] sm:$0xff]  ;;  %v798_v45 = vadd.f32 %v782_v50, %v716_v9  ;;  %v1409_v57 = vld [vmem:[#allocation11 + $0x1b0] sm:$0xff]  ;;  %v1419_v50 = vld [vmem:[#allocation11 + $0x200] sm:$0xff] }
 0x188   : > { %1695 = vperm.xlu1 %4864, %v1397_v42   ;;  %v5559_v42 = vpop.permute.xlu0 %958  ;;  %v1413_v53 = vld [vmem:[#allocation11 + $0x1d0] sm:$0xff] }
 0x189   : > { %v799_v28 = vadd.f32 %v783_v48, %v717_v59  ;;  %v800_v3 = vadd.f32 %v784_v25, %v718_v61  ;;  %v1415_v48 = vld [vmem:[#allocation11 + $0x1e0] sm:$0xff]  ;;  %v1434_v59 = vld [vmem:[#allocation11 + $0x278] sm:$0xff]  ;;  %v1417_v61 = vld [vmem:[#allocation11 + $0x1f0] sm:$0xff] }
 0x18b   : > { %v837_v10 = vpop.permute.xlu1 %836  ;;  %1790 = vperm.xlu0 %4862, %v1416_v27   ;;  %v864_v17 = vadd.f32 %v847_v47, %v800_v3  ;;  %v863_v18 = vadd.f32 %v847_v47, %v799_v28  ;;  %v1411_v47 = vld [vmem:[#allocation11 + $0x1c0] sm:$0xff]  ;;  %v1421_v28 = vld [vmem:[#allocation11 + $0x210] sm:$0xff] }
 0x18c   : > { %v859_v13 = vadd.f32 %v837_v10, %v795_v4  ;;  %v860_v26 = vadd.f32 %v837_v10, %v796_v6  ;;  %1705 = vperm.xlu1 %4864, %v1399_v2   ;;  %v5563_v51 = vpop.permute.xlu0 %968  ;;  %v1438_v2 = vld [vmem:[#allocation11 + $0x298] sm:$0xff]  ;;  %v4869_v4 = vld [vmem:[#allocation7 + $0x20] sm:$0xff]  }
 0x18d   : > { %v880_v37 = vmax.f32 %v864_v17, 0.0  ;;  %v879_v43 = vmax.f32 %v863_v18, 0.0  ;;  %v1442_v10 = vld [vmem:[#allocation11 + $0x2b8] sm:$0xff]  ;;  %v4871_v17 = vld [vmem:[#allocation7 + $0x30] sm:$0xff]  }
 0x18e   : > { %v875_v15 = vmax.f32 %v859_v13, 0.0  ;;  %v876_v16 = vmax.f32 %v860_v26, 0.0  ;;  %v1425_v13 = vld [vmem:[#allocation11 + $0x230] sm:$0xff] }
 0x18f   : > { %v842_v21 = vpop.permute.xlu1 %841  ;;  %1800 = vperm.xlu0 %4862, %v1418_v44   ;;  %v1444_v44 = vld [vmem:[#allocation11 + $0x2c8] sm:$0xff] }
 0x190   : > { %v861_v22 = vadd.f32 %v842_v21, %v797_v11  ;;  %v862_v23 = vadd.f32 %v842_v21, %v798_v45  ;;  %1715 = vperm.xlu1 %4864, %v1401_v14   ;;  %v902_v24 = vpack.c.bf16 %v876_v16, %v874_v60  ;;  %v901_v32 = vpack.c.bf16 %v875_v15, %v873_v19  ;;  %v5565_v25 = vpop.permute.xlu0 %978  ;;  %v4870_v60 = vld [vmem:[#allocation7 + $0x28] sm:$0xff]   ;;  %v1427_v11 = vld [vmem:[#allocation11 + $0x240] sm:$0xff]  ;;  %v1446_v15 = vld [vmem:[#allocation11 + $0x2d8] sm:$0xff] }
 0x191   : > { %v1429_v16 = vld [vmem:[#allocation11 + $0x250] sm:$0xff]  ;;  %v1448_v19 = vld [vmem:[#allocation11 + $0x2e8] sm:$0xff]  ;;  %v1431_v21 = vld [vmem:[#allocation11 + $0x260] sm:$0xff] }
 0x192   : > { %v877_v35 = vmax.f32 %v861_v22, 0.0  ;;  %v878_v36 = vmax.f32 %v862_v23, 0.0  ;;  %1070 = vmatprep.subr.bf16.mxu0 %v902_v24  ;;  %v1450_v23 = vld [vmem:[#allocation11 + $0x2f8] sm:$0xff]  ;;  %v1433_v24 = vld [vmem:[#allocation11 + $0x270] sm:$0xff] }
 0x193   : > { %1071 = vmatpush1.bf16.msra.mxu0 %v901_v32  ;;  %1810 = vperm.xlu0 %4862, %v1420_v31   ;;  %v5569_v58 = vpop.permute.xlu1 %923  ;;  %v4872_v32 = vld [vmem:[#allocation7 + $0x38] sm:$0xff]  }
 0x194   : > { %1725 = vperm.xlu1 %4864, %v1403_v33   ;;  %v904_v20 = vpack.c.bf16 %v880_v37, %v878_v36  ;;  %v903_v63 = vpack.c.bf16 %v879_v43, %v877_v35  ;;  %v5571_v0 = vpop.permute.xlu0 %988  ;;  %v1452_v35 = vld [vmem:[#allocation11 + $0x308] sm:$0xff]  ;;  %v1435_v36 = vld [vmem:[#allocation11 + $0x280] sm:$0xff]  ;;  %v1454_v43 = vld [vmem:[#allocation11 + $0x318] sm:$0xff] }
 0x196   : > { %1072 = vmatprep.subr.bf16.mxu0 %v904_v20  ;;  %v1437_v20 = vld [vmem:[#allocation11 + $0x290] sm:$0xff] }
 0x197   : > { %1073 = vmatpush1.bf16.msra.mxu0 %v903_v63  ;;  %1820 = vperm.xlu0 %4862, %v1422_v38   ;;  %v5573_v27 = vpop.permute.xlu1 %933  ;;  %v1456_v38 = vld [vmem:[#allocation11 + $0x328] sm:$0xff] }
 0x198   : > { %1735 = vperm.xlu1 %4864, %v1405_v39   ;;  %v5577_v3 = vpop.permute.xlu0 %998  ;;  %v1439_v39 = vld [vmem:[#allocation11 + $0x2a0] sm:$0xff] }
 0x19a   : > { %4651 = vmatmul.mubr.msk.bf16.vlgmr.msra.gmra.mrb[0].mxu0 %vm1041_vm0, %v4865_v30 }
 0x19b   : > { %1108 = vmatprep.mubr.bf16.mxu0 %v6905_v1  ;;  %1830 = vperm.xlu0 %4862, %v1424_v54   ;;  %v5579_v6 = vpop.permute.xlu1 %943 }
 0x19c   : > { %1745 = vperm.xlu1 %4864, %v1407_v41   ;;  %v5583_v9 = vpop.permute.xlu0 %1490  ;;  %v1458_v41 = vld [vmem:[#allocation11 + $0x338] sm:$0xff] }
 0x19f   : > { %1840 = vperm.xlu0 %4862, %v1426_v49   ;;  %v5585_v26 = vpop.permute.xlu1 %953  ;;  %v1441_v49 = vld [vmem:[#allocation11 + $0x2b0] sm:$0xff] }
 0x1a0   : > { %1755 = vperm.xlu1 %4864, %v1409_v57   ;;  %v5587_v45 = vpop.permute.xlu0 %1500 }
 0x1a2   : > { %4652 = vmatmul.mubr.msk.bf16.gmra.mrb[4].mxu0 %vm1041_vm0, %v4866_v46  ;;  %v1460_v46 = vld [vmem:[#allocation11 + $0x348] sm:$0xff] }
 0x1a3   : > { %1118 = vmatprep.mubr.bf16.mxu0 %v6905_v1  ;;  %1850 = vperm.xlu0 %4862, %v1428_v29   ;;  %v5591_v14 = vpop.permute.xlu1 %963  ;;  %v1443_v29 = vld [vmem:[#allocation11 + $0x2c0] sm:$0xff] }
 0x1a4   : > { %1765 = vperm.xlu1 %4864, %v1411_v47   ;;  %v5593_v18 = vpop.permute.xlu0 %1510 }
 0x1a7   : > { %1860 = vperm.xlu0 %4862, %v1430_v55   ;;  %v5595_v22 = vpop.permute.xlu1 %973  ;;  %v1462_v55 = vld [vmem:[#allocation11 + $0x358] sm:$0xff] }
 0x1a8   : > { %1775 = vperm.xlu1 %4864, %v1413_v53   ;;  %v5599_v31 = vpop.permute.xlu0 %1520  ;;  %v1445_v53 = vld [vmem:[#allocation11 + $0x2d0] sm:$0xff] }
 0x1aa   : > { %4653 = vmatmul.mubr.msk.bf16.gmra.mrb[8].mxu0 %vm1041_vm0, %v4867_v56 }
 0x1ab   : > { %1128 = vmatprep.mubr.bf16.mxu0 %v6905_v1  ;;  %1870 = vperm.xlu0 %4862, %v1432_v5   ;;  %v5601_v33 = vpop.permute.xlu1 %983 }
 0x1ac   : > { %1785 = vperm.xlu1 %4864, %v1415_v48   ;;  %v5605_v37 = vpop.permute.xlu0 %1530  ;;  %v1464_v48 = vld [vmem:[#allocation11 + $0x368] sm:$0xff] }
 0x1af   : > { %1880 = vperm.xlu0 %4862, %v1434_v59   ;;  %v5607_v63 = vpop.permute.xlu1 %993  ;;  %v1447_v59 = vld [vmem:[#allocation11 + $0x2e0] sm:$0xff] }
 0x1b0   : > { %1795 = vperm.xlu1 %4864, %v1417_v61   ;;  %v5609_v30 = vpop.permute.xlu0 %1540 }
 0x1b2   : > { %4654 = vmatmul.mubr.msk.bf16.gmra.mrb[12].mxu0 %vm1041_vm0, %v4868_v62  ;;  %v1466_v62 = vld [vmem:[#allocation11 + $0x378] sm:$0xff] }
 0x1b3   : > { %1138 = vmatprep.mubr.bf16.mxu0 %v6905_v1  ;;  %1890 = vperm.xlu0 %4862, %v1436_v52   ;;  %v5611_v54 = vpop.permute.xlu1 %1485  ;;  %v1449_v52 = vld [vmem:[#allocation11 + $0x2f0] sm:$0xff] }
 0x1b4   : > { %1805 = vperm.xlu1 %4864, %v1419_v50   ;;  %v5613_v57 = vpop.permute.xlu0 %1550 }
 0x1b7   : > { %1900 = vperm.xlu0 %4862, %v1438_v2   ;;  %v5615_v47 = vpop.permute.xlu1 %1495  ;;  %v1468_v2 = vld [vmem:[#allocation11 + $0x388] sm:$0xff] }
 0x1b8   : > { %1815 = vperm.xlu1 %4864, %v1421_v28   ;;  %v5617_v56 = vpop.permute.xlu0 %1560  ;;  %v1451_v28 = vld [vmem:[#allocation11 + $0x300] sm:$0xff] }
 0x1ba   : > { %4655 = vmatmul.mubr.msk.bf16.gmra.mrb[16].mxu0 %vm1041_vm0, %v4869_v4 }
 0x1bb   : > { %1148 = vmatprep.mubr.bf16.mxu0 %v6905_v1  ;;  %1910 = vperm.xlu0 %4862, %v1440_v7   ;;  %v5619_v5 = vpop.permute.xlu1 %1505 }
 0x1bc   : > { %1825 = vperm.xlu1 %4864, %v1423_v8   ;;  %v5621_v61 = vpop.permute.xlu0 %1570  ;;  %v1470_v8 = vld [vmem:[#allocation11 + $0x398] sm:$0xff] }
 0x1bf   : > { %1920 = vperm.xlu0 %4862, %v1442_v10   ;;  %v5623_v50 = vpop.permute.xlu1 %1515  ;;  %v1453_v10 = vld [vmem:[#allocation11 + $0x310] sm:$0xff] }
 0x1c0   : > { %1835 = vperm.xlu1 %4864, %v1425_v13   ;;  %v5625_v4 = vpop.permute.xlu0 %1580 }
 0x1c2   : > { %4656 = vmatmul.mubr.msk.bf16.gmra.mrb[20].mxu0 %vm1041_vm0, %v4870_v60  ;;  %v1472_v60 = vld [vmem:[#allocation11 + $0x3a8] sm:$0xff] }
 0x1c3   : > { %1158 = vmatprep.mubr.bf16.mxu0 %v6905_v1  ;;  %1930 = vperm.xlu0 %4862, %v1444_v44   ;;  %v5627_v7 = vpop.permute.xlu1 %1525  ;;  %v1455_v44 = vld [vmem:[#allocation11 + $0x320] sm:$0xff] }
 0x1c4   : > { %1845 = vperm.xlu1 %4864, %v1427_v11   ;;  %v5629_v13 = vpop.permute.xlu0 %1590 }
 0x1c5   : > { %6974 = vst [vmem:[#allocation19_spill] sm:$0xff] %v5629_v13 }
 0x1c7   : > { %1940 = vperm.xlu0 %4862, %v1446_v15   ;;  %v5631_v11 = vpop.permute.xlu1 %1535  ;;  %v1474_v15 = vld [vmem:[#allocation11 + $0x3b8] sm:$0xff] }
 0x1c8   : > { %1855 = vperm.xlu1 %4864, %v1429_v16   ;;  %v1457_v16 = vld [vmem:[#allocation11 + $0x330] sm:$0xff] }
 0x1ca   : > { %4657 = vmatmul.mubr.msk.bf16.gmra.mrb[24].mxu0 %vm1041_vm0, %v4871_v17  ;;  %v5633_v17 = vpop.permute.xlu0 %1600 }
 0x1cb   : > { %1168 = vmatprep.mubr.bf16.mxu0 %v6905_v1  ;;  %1950 = vperm.xlu0 %4862, %v1448_v19   ;;  %6975 = vst [vmem:[#allocation20_spill] sm:$0xff] %v5633_v17  ;;  %v5635_v19 = vpop.permute.xlu1 %1545 }
 0x1cc   : > { %1865 = vperm.xlu1 %4864, %v1431_v21   ;;  %v1476_v21 = vld [vmem:[#allocation11 + $0x3c8] sm:$0xff] }
 0x1cf   : > { %1960 = vperm.xlu0 %4862, %v1450_v23   ;;  %v1459_v23 = vld [vmem:[#allocation11 + $0x340] sm:$0xff] }
 0x1d0   : > { %1875 = vperm.xlu1 %4864, %v1433_v24   ;;  %v5637_v24 = vpop.permute.xlu0 %1610 }
 0x1d1   : > { %6976 = vst [vmem:[#allocation21_spill] sm:$0xff] %v5637_v24 }
 0x1d2   : > { %4658 = vmatmul.mubr.msk.bf16.gmra.mrb[28].mxu0 %vm1041_vm0, %v4872_v32  ;;  %v1478_v32 = vld [vmem:[#allocation11 + $0x3d8] sm:$0xff] }
 0x1d3   : > { %2539 = vmatprep.mubr.bf16.mxu0 %v6905_v1  ;;  %1970 = vperm.xlu0 %4862, %v1452_v35   ;;  %v1461_v35 = vld [vmem:[#allocation11 + $0x350] sm:$0xff] }
 0x1d4   : > { %1885 = vperm.xlu1 %4864, %v1435_v36   ;;  %v5639_v36 = vpop.permute.xlu1 %1555 }
 0x1d7   : > { %1980 = vperm.xlu0 %4862, %v1454_v43   ;;  %v1480_v43 = vld [vmem:[#allocation11 + $0x3e8] sm:$0xff] }
 0x1d8   : > { %1895 = vperm.xlu1 %4864, %v1437_v20   ;;  %v1463_v20 = vld [vmem:[#allocation11 + $0x360] sm:$0xff] }
 0x1db   : > { %1990 = vperm.xlu0 %4862, %v1456_v38   ;;  %v5641_v38 = vpop.permute.xlu0 %1620 }
 0x1dc   : > { %1905 = vperm.xlu1 %4864, %v1439_v39   ;;  %6977 = vst [vmem:[#allocation22_spill] sm:$0xff] %v5641_v38  ;;  %v5643_v39 = vpop.permute.xlu1 %1565 }
 0x1df   : > { %2000 = vperm.xlu0 %4862, %v1458_v41   ;;  %v1482_v41 = vld [vmem:[#allocation11 + $0x3f8] sm:$0xff] }
 0x1e0   : > { %1915 = vperm.xlu1 %4864, %v1441_v49   ;;  %v1465_v49 = vld [vmem:[#allocation11 + $0x370] sm:$0xff] }
 0x1e3   : > { %2010 = vperm.xlu0 %4862, %v1460_v46   ;;  %v5645_v46 = vpop.permute.xlu0 %1630 }
 0x1e4   : > { %1925 = vperm.xlu1 %4864, %v1443_v29   ;;  %6978 = vst [vmem:[#allocation23_spill] sm:$0xff] %v5645_v46  ;;  %v1467_v29 = vld [vmem:[#allocation11 + $0x380] sm:$0xff] }
 0x1e7   : > { %2020 = vperm.xlu0 %4862, %v1462_v55   ;;  %v5647_v55 = vpop.permute.xlu1 %1575 }
 0x1e8   : > { %1935 = vperm.xlu1 %4864, %v1445_v53   ;;  %v1469_v53 = vld [vmem:[#allocation11 + $0x390] sm:$0xff] }
 0x1eb   : > { %2030 = vperm.xlu0 %4862, %v1464_v48   ;;  %v5649_v48 = vpop.permute.xlu1 %1585 }
 0x1ec   : > { %1945 = vperm.xlu1 %4864, %v1447_v59   ;;  %v1471_v59 = vld [vmem:[#allocation11 + $0x3a0] sm:$0xff] }
 0x1ef   : > { %2040 = vperm.xlu0 %4862, %v1466_v62   ;;  %v1473_v62 = vld [vmem:[#allocation11 + $0x3b0] sm:$0xff] }
 0x1f0   : > { %1955 = vperm.xlu1 %4864, %v1449_v52   ;;  %v5651_v52 = vpop.permute.xlu1 %1595 }
 0x1f1   : > { %6979 = vst [vmem:[#allocation24_spill] sm:$0xff] %v5651_v52 }
 0x1f3   : > { %2050 = vperm.xlu0 %4862, %v1468_v2   ;;  %v1475_v2 = vld [vmem:[#allocation11 + $0x3c0] sm:$0xff] }
 0x1f4   : > { %1965 = vperm.xlu1 %4864, %v1451_v28   ;;  %v5653_v28 = vpop.permute.xlu1 %1605 }
 0x1f5   : > { %6980 = vst [vmem:[#allocation25_spill] sm:$0xff] %v5653_v28 }
 0x1f7   : > { %2060 = vperm.xlu0 %4862, %v1470_v8   ;;  %v1477_v8 = vld [vmem:[#allocation11 + $0x3d0] sm:$0xff] }
 0x1f8   : > { %1975 = vperm.xlu1 %4864, %v1453_v10   ;;  %v1479_v10 = vld [vmem:[#allocation11 + $0x3e0] sm:$0xff] }
 0x1fb   : > { %2070 = vperm.xlu0 %4862, %v1472_v60   ;;  %v5655_v60 = vpop.permute.xlu1 %1615 }
 0x1fc   : > { %1985 = vperm.xlu1 %4864, %v1455_v44   ;;  %6981 = vst [vmem:[#allocation26_spill] sm:$0xff] %v5655_v60  ;;  %v1481_v44 = vld [vmem:[#allocation11 + $0x3f0] sm:$0xff]  ;;  %v4927_v60 = vld [vmem:[#allocation10 + $0xd8] sm:$0xff]  }
 0x1ff   : > { %2080 = vperm.xlu0 %4862, %v1474_v15   ;;  %v5657_v15 = vpop.permute.xlu1 %1625 }
 0x200   : > { %1995 = vperm.xlu1 %4864, %v1457_v16   ;;  %6982 = vst [vmem:[#allocation27_spill] sm:$0xff] %v5657_v15 }
 0x203   : > { %2090 = vperm.xlu0 %4862, %v1476_v21  }
 0x204   : > { %2005 = vperm.xlu1 %4864, %v1459_v23  }
 0x207   : > { %2100 = vperm.xlu0 %4862, %v1478_v32  }
 0x208   : > { %2015 = vperm.xlu1 %4864, %v1461_v35  }
 0x20b   : > { %2110 = vperm.xlu0 %4862, %v1480_v43  }
 0x20c   : > { %2025 = vperm.xlu1 %4864, %v1463_v20  }
 0x20f   : > { %2120 = vperm.xlu0 %4862, %v1482_v41  }
 0x210   : > { %2035 = vperm.xlu1 %4864, %v1465_v49  }
 0x214   : > { %2045 = vperm.xlu1 %4864, %v1467_v29  }
 0x218   : > { %2055 = vperm.xlu1 %4864, %v1469_v53  }
 0x21c   : > { %2065 = vperm.xlu1 %4864, %v1471_v59  }
 0x220   : > { %2075 = vperm.xlu1 %4864, %v1473_v62  }
 0x224   : > { %2085 = vperm.xlu1 %4864, %v1475_v2  }
 0x228   : > { %2095 = vperm.xlu1 %4864, %v1477_v8  }
 0x22c   : > { %2105 = vperm.xlu1 %4864, %v1479_v10  }
 0x230   : > { %2115 = vperm.xlu1 %4864, %v1481_v44  }
 0x26d   : > { %v1100_v16 = vpop.f32.mrb[0].mxu0 }
 0x26e   : > { %v1102_v21 = vpop.f32.mrb[1].mxu0  ;;  %v1101_v23 = vadd.f32 %v1100_v16, %v5569_v58 }
 0x26f   : > { %v1103_v32 = vadd.f32 %v1102_v21, %v5569_v58  ;;  %v1104_v35 = vpop.f32.mrb[2].mxu0 }
 0x270   : > { %v1105_v43 = vadd.f32 %v1104_v35, %v5551_v12  ;;  %v1106_v20 = vpop.f32.mrb[3].mxu0  ;;  %v1179_v49 = vmax.f32 %v1101_v23, 0.0 }
 0x271   : > { %v1107_v41 = vadd.f32 %v1106_v20, %v5551_v12  ;;  %v1180_v53 = vmax.f32 %v1103_v32, 0.0 }
 0x272   : > { %v1181_v29 = vmax.f32 %v1105_v43, 0.0 }
 0x273   : > { %v1182_v59 = vmax.f32 %v1107_v41, 0.0 }
 0x274   : > { %v1339_v62 = vpack.c.bf16 %v1181_v29, %v1179_v49 }
 0x275   : > { %v1110_v2 = vpop.f32.mrb[4].mxu0  ;;  %v1340_v8 = vpack.c.bf16 %v1182_v59, %v1180_v53 }
 0x276   : > { %v1112_v10 = vpop.f32.mrb[5].mxu0  ;;  %v1111_v44 = vadd.f32 %v1110_v2, %v5573_v27 }
 0x277   : > { %v1113_v16 = vadd.f32 %v1112_v10, %v5573_v27  ;;  %v1114_v1 = vpop.f32.mrb[6].mxu0  ;;  %2507 = vmatprep.subr.bf16.mxu0 %v1340_v8  ;;  %4725 = vmatprep.subr.bf16.mxu1 %v1340_v8 }
 0x278   : > { %v1115_v58 = vadd.f32 %v1114_v1, %v5553_v34  ;;  %v1116_v21 = vpop.f32.mrb[7].mxu0  ;;  %2508 = vmatpush1.bf16.msra.mxu0 %v1339_v62  ;;  %4733 = vmatpush1.bf16.msra.mxu1 %v1339_v62  ;;  %v1183_v23 = vmax.f32 %v1111_v44, 0.0 }
 0x279   : > { %v1117_v12 = vadd.f32 %v1116_v21, %v5553_v34  ;;  %v1184_v35 = vmax.f32 %v1113_v16, 0.0 }
 0x27a   : > { %v1185_v32 = vmax.f32 %v1115_v58, 0.0 }
 0x27b   : > { %v1186_v43 = vmax.f32 %v1117_v12, 0.0 }
 0x27c   : > { %v1341_v20 = vpack.c.bf16 %v1185_v32, %v1183_v23 }
 0x27d   : > { %v1120_v41 = vpop.f32.mrb[8].mxu0  ;;  %v1342_v49 = vpack.c.bf16 %v1186_v43, %v1184_v35 }
 0x27e   : > { %v1122_v29 = vpop.f32.mrb[9].mxu0  ;;  %v1121_v27 = vadd.f32 %v1120_v41, %v5579_v6 }
 0x27f   : > { %v1123_v53 = vadd.f32 %v1122_v29, %v5579_v6  ;;  %v1124_v59 = vpop.f32.mrb[10].mxu0  ;;  %2509 = vmatprep.subr.bf16.mxu0 %v1342_v49  ;;  %4726 = vmatprep.subr.bf16.mxu1 %v1342_v49 }
 0x280   : > { %v1125_v1 = vadd.f32 %v1124_v59, %v5555_v40  ;;  %v1126_v62 = vpop.f32.mrb[11].mxu0  ;;  %2510 = vmatpush1.bf16.msra.mxu0 %v1341_v20  ;;  %4734 = vmatpush1.bf16.msra.mxu1 %v1341_v20  ;;  %v1187_v2 = vmax.f32 %v1121_v27, 0.0 }
 0x281   : > { %v1127_v34 = vadd.f32 %v1126_v62, %v5555_v40  ;;  %v1188_v10 = vmax.f32 %v1123_v53, 0.0 }
 0x282   : > { %v1189_v8 = vmax.f32 %v1125_v1, 0.0 }
 0x283   : > { %v1190_v44 = vmax.f32 %v1127_v34, 0.0 }
 0x284   : > { %v1343_v16 = vpack.c.bf16 %v1189_v8, %v1187_v2 }
 0x285   : > { %v1130_v58 = vpop.f32.mrb[12].mxu0  ;;  %v1344_v21 = vpack.c.bf16 %v1190_v44, %v1188_v10 }
 0x286   : > { %v1132_v12 = vpop.f32.mrb[13].mxu0  ;;  %v1131_v6 = vadd.f32 %v1130_v58, %v5585_v26 }
 0x287   : > { %v1133_v23 = vadd.f32 %v1132_v12, %v5585_v26  ;;  %v1134_v32 = vpop.f32.mrb[14].mxu0  ;;  %2511 = vmatprep.subr.bf16.mxu0 %v1344_v21  ;;  %4727 = vmatprep.subr.bf16.mxu1 %v1344_v21 }
 0x288   : > { %v1135_v35 = vadd.f32 %v1134_v32, %v5559_v42  ;;  %v1136_v43 = vpop.f32.mrb[15].mxu0  ;;  %2512 = vmatpush1.bf16.msra.mxu0 %v1343_v16  ;;  %4735 = vmatpush1.bf16.msra.mxu1 %v1343_v16  ;;  %v1191_v20 = vmax.f32 %v1131_v6, 0.0 }
 0x289   : > { %v1137_v40 = vadd.f32 %v1136_v43, %v5559_v42  ;;  %v1192_v49 = vmax.f32 %v1133_v23, 0.0 }
 0x28a   : > { %v1193_v41 = vmax.f32 %v1135_v35, 0.0 }
 0x28b   : > { %v1194_v29 = vmax.f32 %v1137_v40, 0.0 }
 0x28c   : > { %v1345_v27 = vpack.c.bf16 %v1193_v41, %v1191_v20 }
 0x28d   : > { %v1140_v53 = vpop.f32.mrb[16].mxu0  ;;  %v1346_v59 = vpack.c.bf16 %v1194_v29, %v1192_v49 }
 0x28e   : > { %v1142_v1 = vpop.f32.mrb[17].mxu0  ;;  %v1141_v26 = vadd.f32 %v1140_v53, %v5591_v14 }
 0x28f   : > { %v1143_v62 = vadd.f32 %v1142_v1, %v5591_v14  ;;  %v1144_v34 = vpop.f32.mrb[18].mxu0  ;;  %2513 = vmatprep.subr.bf16.mxu0 %v1346_v59  ;;  %4728 = vmatprep.subr.bf16.mxu1 %v1346_v59 }
 0x290   : > { %v1145_v2 = vadd.f32 %v1144_v34, %v5563_v51  ;;  %v1146_v8 = vpop.f32.mrb[19].mxu0  ;;  %2514 = vmatpush1.bf16.msra.mxu0 %v1345_v27  ;;  %4736 = vmatpush1.bf16.msra.mxu1 %v1345_v27  ;;  %v1195_v10 = vmax.f32 %v1141_v26, 0.0 }
 0x291   : > { %v1147_v42 = vadd.f32 %v1146_v8, %v5563_v51  ;;  %v1196_v16 = vmax.f32 %v1143_v62, 0.0 }
 0x292   : > { %v1197_v44 = vmax.f32 %v1145_v2, 0.0 }
 0x293   : > { %v1198_v58 = vmax.f32 %v1147_v42, 0.0 }
 0x294   : > { %v1347_v21 = vpack.c.bf16 %v1197_v44, %v1195_v10 }
 0x295   : > { %v1150_v12 = vpop.f32.mrb[20].mxu0  ;;  %v1348_v6 = vpack.c.bf16 %v1198_v58, %v1196_v16 }
 0x296   : > { %v1151_v23 = vadd.f32 %v1150_v12, %v5595_v22  ;;  %v1152_v14 = vpop.f32.mrb[21].mxu0 }
 0x297   : > { %v1153_v32 = vadd.f32 %v1152_v14, %v5595_v22  ;;  %v1154_v35 = vpop.f32.mrb[22].mxu0  ;;  %2515 = vmatprep.subr.bf16.mxu0 %v1348_v6  ;;  %4729 = vmatprep.subr.bf16.mxu1 %v1348_v6 }
 0x298   : > { %v1155_v43 = vadd.f32 %v1154_v35, %v5565_v25  ;;  %v1156_v40 = vpop.f32.mrb[23].mxu0  ;;  %2516 = vmatpush1.bf16.msra.mxu0 %v1347_v21  ;;  %4737 = vmatpush1.bf16.msra.mxu1 %v1347_v21  ;;  %v1199_v20 = vmax.f32 %v1151_v23, 0.0 }
 0x299   : > { %v1157_v51 = vadd.f32 %v1156_v40, %v5565_v25  ;;  %v1200_v49 = vmax.f32 %v1153_v32, 0.0 }
 0x29a   : > { %v1201_v41 = vmax.f32 %v1155_v43, 0.0 }
 0x29b   : > { %v1202_v29 = vmax.f32 %v1157_v51, 0.0 }
 0x29c   : > { %v1349_v27 = vpack.c.bf16 %v1201_v41, %v1199_v20 }
 0x29d   : > { %v1350_v53 = vpack.c.bf16 %v1202_v29, %v1200_v49  ;;  %v1160_v59 = vpop.f32.mrb[24].mxu0  ;;  %v4873_v49 = vld [vmem:[#allocation10] sm:$0xff]   ;;  %v6983_v29 = vmov 0  }
 0x29e   : > { %v1161_v1 = vadd.f32 %v1160_v59, %v5601_v33  ;;  %v1162_v22 = vpop.f32.mrb[25].mxu0  ;;  %v4878_v59 = vld [vmem:[#allocation10 + $0xf8] sm:$0xff]  }
 0x29f   : > { %v1163_v26 = vadd.f32 %v1162_v22, %v5601_v33  ;;  %v1164_v62 = vpop.f32.mrb[26].mxu0  ;;  %2517 = vmatprep.subr.bf16.mxu0 %v1350_v53  ;;  %4730 = vmatprep.subr.bf16.mxu1 %v1350_v53  ;;  %v4877_v53 = vld [vmem:[#allocation10 + $0x10] sm:$0xff]   ;;  %v4880_v22 = vld [vmem:[#allocation10 + $0x100] sm:$0xff]  }
 0x2a0   : > { %v1165_v34 = vadd.f32 %v1164_v62, %v5571_v0  ;;  %v1166_v25 = vpop.f32.mrb[27].mxu0  ;;  %2518 = vmatpush1.bf16.msra.mxu0 %v1349_v27  ;;  %4738 = vmatpush1.bf16.msra.mxu1 %v1349_v27  ;;  %v1203_v8 = vmax.f32 %v1161_v1, 0.0  ;;  %v4875_v27 = vld [vmem:[#allocation10 + $0x8] sm:$0xff]   ;;  %v4879_v1 = vld [vmem:[#allocation10 + $0x18] sm:$0xff]  }
 0x2a1   : > { %v1167_v2 = vadd.f32 %v1166_v25, %v5571_v0  ;;  %v1204_v10 = vmax.f32 %v1163_v26, 0.0  ;;  %v4881_v26 = vld [vmem:[#allocation10 + $0x20] sm:$0xff]   ;;  %v4882_v62 = vld [vmem:[#allocation10 + $0x108] sm:$0xff]   ;;  %v5701_v25 = vpop.permute.xlu1 %1635 }
 0x2a2   : > { %v1205_v42 = vmax.f32 %v1165_v34, 0.0  ;;  %v5699_v34 = vpop.permute.xlu0 %1640  ;;  %6985 = vst [vmem:[#allocation29_spill] sm:$0xff] %v5701_v25 }
 0x2a3   : > { %v1206_v44 = vmax.f32 %v1167_v2, 0.0  ;;  %6984 = vst [vmem:[#allocation28_spill] sm:$0xff] %v5699_v34 }
 0x2a4   : > { %v1351_v16 = vpack.c.bf16 %v1205_v42, %v1203_v8  ;;  %v4883_v42 = vld [vmem:[#allocation10 + $0x28] sm:$0xff]  }
 0x2a5   : > { %v1352_v58 = vpack.c.bf16 %v1206_v44, %v1204_v10  ;;  %v1170_v21 = vpop.f32.mrb[28].mxu0  ;;  %v5707_v8 = vpop.permute.xlu1 %1645  ;;  %v4884_v10 = vld [vmem:[#allocation10 + $0x110] sm:$0xff]  }
 0x2a6   : > { %v1171_v12 = vadd.f32 %v1170_v21, %v5607_v63  ;;  %v1172_v33 = vpop.f32.mrb[29].mxu0  ;;  %v5705_v2 = vpop.permute.xlu0 %1650  ;;  %6987 = vst [vmem:[#allocation31_spill] sm:$0xff] %v5707_v8  ;;  %v4886_v21 = vld [vmem:[#allocation10 + $0x118] sm:$0xff]  }
 0x2a7   : > { %v1173_v6 = vadd.f32 %v1172_v33, %v5607_v63  ;;  %v1174_v23 = vpop.f32.mrb[30].mxu0  ;;  %2519 = vmatprep.subr.bf16.mxu0 %v1352_v58  ;;  %4731 = vmatprep.subr.bf16.mxu1 %v1352_v58  ;;  %v4874_v63 = vld [vmem:[#allocation10 + $0xe8] sm:$0xff]   ;;  %6986 = vst [vmem:[#allocation30_spill] sm:$0xff] %v5705_v2  ;;  %v4885_v58 = vld [vmem:[#allocation10 + $0x30] sm:$0xff]  }
 0x2a8   : > { %v1175_v14 = vadd.f32 %v1174_v23, %v5577_v3  ;;  %v1176_v32 = vpop.f32.mrb[31].mxu0  ;;  %2520 = vmatpush1.bf16.msra.mxu0 %v1351_v16  ;;  %4739 = vmatpush1.bf16.msra.mxu1 %v1351_v16  ;;  %v1207_v35 = vmax.f32 %v1171_v12, 0.0  ;;  %v4888_v23 = vld [vmem:[#allocation10 + $0x120] sm:$0xff]   ;;  %v4922_v2 = vld [vmem:[#allocation10 + $0x1a8] sm:$0xff]  }
 0x2a9   : > { %v1177_v0 = vadd.f32 %v1176_v32, %v5577_v3  ;;  %v1208_v40 = vmax.f32 %v1173_v6, 0.0  ;;  %v4876_v3 = vld [vmem:[#allocation10 + $0xf0] sm:$0xff]   ;;  %v5713_v16 = vpop.permute.xlu1 %1655  ;;  %v4887_v6 = vld [vmem:[#allocation10 + $0x38] sm:$0xff]  }
 0x2aa   : > { %v1209_v43 = vmax.f32 %v1175_v14, 0.0  ;;  %v5711_v44 = vpop.permute.xlu0 %1660  ;;  %6989 = vst [vmem:[#allocation33_spill] sm:$0xff] %v5713_v16 }
 0x2ab   : > { %v1210_v51 = vmax.f32 %v1177_v0, 0.0  ;;  %6988 = vst [vmem:[#allocation32_spill] sm:$0xff] %v5711_v44  ;;  %v4920_v44 = vld [vmem:[#allocation10 + $0x1a0] sm:$0xff]  }
 0x2ac   : > { %v1353_v20 = vpack.c.bf16 %v1209_v43, %v1207_v35  ;;  %v4889_v43 = vld [vmem:[#allocation10 + $0x40] sm:$0xff]  }
 0x2ad   : > { %v1354_v41 = vpack.c.bf16 %v1210_v51, %v1208_v40  ;;  %v5717_v33 = vpop.permute.xlu1 %1665  ;;  %v4890_v40 = vld [vmem:[#allocation10 + $0x128] sm:$0xff]  }
 0x2ae   : > { %v5715_v12 = vpop.permute.xlu0 %1670  ;;  %6991 = vst [vmem:[#allocation35_spill] sm:$0xff] %v5717_v33 }
 0x2af   : > { %2521 = vmatprep.subr.bf16.mxu0 %v1354_v41  ;;  %4732 = vmatprep.subr.bf16.mxu1 %v1354_v41  ;;  %6990 = vst [vmem:[#allocation34_spill] sm:$0xff] %v5715_v12  ;;  %v4891_v41 = vld [vmem:[#allocation10 + $0x48] sm:$0xff]  }
 0x2b0   : > { %2522 = vmatpush1.bf16.msra.mxu0 %v1353_v20  ;;  %4740 = vmatpush1.bf16.msra.mxu1 %v1353_v20 }
 0x2b1   : > { %v5723_v32 = vpop.permute.xlu1 %1675 }
 0x2b2   : > { %v5721_v14 = vpop.permute.xlu0 %1680  ;;  %6993 = vst [vmem:[#allocation37_spill] sm:$0xff] %v5723_v32 }
 0x2b3   : > { %2540 = vmatmul.mubr.bf16.vlgmr.msra.gmra.mrb[32].mxu0 %v4873_v49  ;;  %2830 = vmatmul.mubr.bf16.vlgmr.msra.gmra.mrb[0].mxu1 %v4874_v63  ;;  %6992 = vst [vmem:[#allocation36_spill] sm:$0xff] %v5721_v14  ;;  %v4892_v49 = vld [vmem:[#allocation10 + $0x130] sm:$0xff]  }
 0x2b4   : > { %2549 = vmatprep.mubr.bf16.mxu0 %v6983_v29  ;;  %2839 = vmatprep.mubr.bf16.mxu1 %v6983_v29 }
 0x2b5   : > { %v5729_v35 = vpop.permute.xlu1 %1685 }
 0x2b6   : > { %v5727_v0 = vpop.permute.xlu0 %1690  ;;  %6995 = vst [vmem:[#allocation39_spill] sm:$0xff] %v5729_v35 }
 0x2b7   : > { %6994 = vst [vmem:[#allocation38_spill] sm:$0xff] %v5727_v0  ;;  %v4916_v0 = vld [vmem:[#allocation10 + $0x190] sm:$0xff]  }
 0x2b9   : > { %v5735_v20 = vpop.permute.xlu1 %1695 }
 0x2ba   : > { %v5733_v51 = vpop.permute.xlu0 %1700  ;;  %6997 = vst [vmem:[#allocation41_spill] sm:$0xff] %v5735_v20 }
 0x2bb   : > { %2550 = vmatmul.mubr.bf16.gmra.mrb[36].mxu0 %v4875_v27  ;;  %2840 = vmatmul.mubr.bf16.gmra.mrb[4].mxu1 %v4876_v3  ;;  %6996 = vst [vmem:[#allocation40_spill] sm:$0xff] %v5733_v51  ;;  %v4893_v3 = vld [vmem:[#allocation10 + $0x50] sm:$0xff]   ;;  %v4914_v51 = vld [vmem:[#allocation10 + $0x188] sm:$0xff]  }
 0x2bc   : > { %2559 = vmatprep.mubr.bf16.mxu0 %v6983_v29  ;;  %2849 = vmatprep.mubr.bf16.mxu1 %v6983_v29 }
 0x2bd   : > { %v5739_v27 = vpop.permute.xlu1 %1705 }
 0x2be   : > { %v5737_v63 = vpop.permute.xlu0 %1710  ;;  %6999 = vst [vmem:[#allocation43_spill] sm:$0xff] %v5739_v27 }
 0x2bf   : > { %6998 = vst [vmem:[#allocation42_spill] sm:$0xff] %v5737_v63 }
 0x2c3   : > { %2560 = vmatmul.mubr.bf16.gmra.mrb[40].mxu0 %v4877_v53  ;;  %2850 = vmatmul.mubr.bf16.gmra.mrb[8].mxu1 %v4878_v59  ;;  %v4894_v53 = vld [vmem:[#allocation10 + $0x138] sm:$0xff]   ;;  %v5743_v59 = vpop.permute.xlu0 %1720 }
 0x2c4   : > { %2569 = vmatprep.mubr.bf16.mxu0 %v6983_v29  ;;  %2859 = vmatprep.mubr.bf16.mxu1 %v6983_v29  ;;  %7000 = vst [vmem:[#allocation44_spill] sm:$0xff] %v5743_v59 }
 0x2cb   : > { %2570 = vmatmul.mubr.bf16.gmra.mrb[44].mxu0 %v4879_v1  ;;  %2860 = vmatmul.mubr.bf16.gmra.mrb[12].mxu1 %v4880_v22  ;;  %v5745_v1 = vpop.permute.xlu1 %1715  ;;  %v5749_v22 = vpop.permute.xlu0 %1730 }
 0x2cc   : > { %2579 = vmatprep.mubr.bf16.mxu0 %v6983_v29  ;;  %2869 = vmatprep.mubr.bf16.mxu1 %v6983_v29  ;;  %7001 = vst [vmem:[#allocation45_spill] sm:$0xff] %v5745_v1  ;;  %7002 = vst [vmem:[#allocation46_spill] sm:$0xff] %v5749_v22  ;;  %v4910_v22 = vld [vmem:[#allocation10 + $0x178] sm:$0xff]  }
 0x2d3   : > { %2580 = vmatmul.mubr.bf16.gmra.mrb[48].mxu0 %v4881_v26  ;;  %2870 = vmatmul.mubr.bf16.gmra.mrb[16].mxu1 %v4882_v62  ;;  %v5751_v26 = vpop.permute.xlu1 %1725  ;;  %v4895_v62 = vld [vmem:[#allocation10 + $0x58] sm:$0xff]  }
 0x2d4   : > { %2589 = vmatprep.mubr.bf16.mxu0 %v6983_v29  ;;  %2879 = vmatprep.mubr.bf16.mxu1 %v6983_v29  ;;  %7003 = vst [vmem:[#allocation47_spill] sm:$0xff] %v5751_v26 }
 0x2db   : > { %2590 = vmatmul.mubr.bf16.gmra.mrb[52].mxu0 %v4883_v42  ;;  %2880 = vmatmul.mubr.bf16.gmra.mrb[20].mxu1 %v4884_v10  ;;  %v4896_v42 = vld [vmem:[#allocation10 + $0x140] sm:$0xff]   ;;  %v5755_v10 = vpop.permute.xlu0 %1740 }
 0x2dc   : > { %2599 = vmatprep.mubr.bf16.mxu0 %v6983_v29  ;;  %2889 = vmatprep.mubr.bf16.mxu1 %v6983_v29  ;;  %7004 = vst [vmem:[#allocation48_spill] sm:$0xff] %v5755_v10  ;;  %v4908_v10 = vld [vmem:[#allocation10 + $0x170] sm:$0xff]  }
 0x2e3   : > { %2600 = vmatmul.mubr.bf16.gmra.mrb[56].mxu0 %v4885_v58  ;;  %2890 = vmatmul.mubr.bf16.gmra.mrb[24].mxu1 %v4886_v21  ;;  %v5757_v58 = vpop.permute.xlu1 %1735  ;;  %v4897_v21 = vld [vmem:[#allocation10 + $0x60] sm:$0xff]  }
 0x2e4   : > { %2609 = vmatprep.mubr.bf16.mxu0 %v6983_v29  ;;  %2899 = vmatprep.mubr.bf16.mxu1 %v6983_v29  ;;  %7005 = vst [vmem:[#allocation49_spill] sm:$0xff] %v5757_v58 }
 0x2eb   : > { %2610 = vmatmul.mubr.bf16.gmra.mrb[60].mxu0 %v4887_v6  ;;  %2900 = vmatmul.mubr.bf16.gmra.mrb[28].mxu1 %v4888_v23  ;;  %v4898_v6 = vld [vmem:[#allocation10 + $0x148] sm:$0xff]   ;;  %v5759_v23 = vpop.permute.xlu0 %1750 }
 0x2ec   : > { %2619 = vmatprep.mubr.bf16.mxu0 %v6983_v29  ;;  %2909 = vmatprep.mubr.bf16.mxu1 %v6983_v29  ;;  %7006 = vst [vmem:[#allocation50_spill] sm:$0xff] %v5759_v23 }
 0x2f3   : > { %2620 = vmatmul.mubr.bf16.gmra.mrb[64].mxu0 %v4889_v43  ;;  %2910 = vmatmul.mubr.bf16.gmra.mrb[32].mxu1 %v4890_v40  ;;  %v5761_v43 = vpop.permute.xlu1 %1745  ;;  %v4899_v40 = vld [vmem:[#allocation10 + $0x68] sm:$0xff]  }
 0x2f4   : > { %2629 = vmatprep.mubr.bf16.mxu0 %v6983_v29  ;;  %2919 = vmatprep.mubr.bf16.mxu1 %v6983_v29  ;;  %7007 = vst [vmem:[#allocation51_spill] sm:$0xff] %v5761_v43 }
 0x2fb   : > { %2630 = vmatmul.mubr.bf16.gmra.mrb[68].mxu0 %v4891_v41  ;;  %2920 = vmatmul.mubr.bf16.gmra.mrb[36].mxu1 %v4892_v49  ;;  %v4900_v41 = vld [vmem:[#allocation10 + $0x150] sm:$0xff]   ;;  %v5765_v49 = vpop.permute.xlu0 %1760 }
 0x2fc   : > { %2639 = vmatprep.mubr.bf16.mxu0 %v6983_v29  ;;  %2929 = vmatprep.mubr.bf16.mxu1 %v6983_v29  ;;  %7008 = vst [vmem:[#allocation52_spill] sm:$0xff] %v5765_v49  ;;  %v4904_v49 = vld [vmem:[#allocation10 + $0x160] sm:$0xff]  }
 0x303   : > { %2640 = vmatmul.mubr.bf16.gmra.mrb[72].mxu0 %v4893_v3  ;;  %2930 = vmatmul.mubr.bf16.gmra.mrb[40].mxu1 %v4894_v53  ;;  %v5767_v3 = vpop.permute.xlu1 %1755  ;;  %v5771_v53 = vpop.permute.xlu0 %1770 }
 0x304   : > { %2649 = vmatprep.mubr.bf16.mxu0 %v6983_v29  ;;  %2939 = vmatprep.mubr.bf16.mxu1 %v6983_v29  ;;  %7009 = vst [vmem:[#allocation53_spill] sm:$0xff] %v5767_v3  ;;  %7010 = vst [vmem:[#allocation54_spill] sm:$0xff] %v5771_v53 }
 0x30b   : > { %2650 = vmatmul.mubr.bf16.gmra.mrb[76].mxu0 %v4895_v62  ;;  %2940 = vmatmul.mubr.bf16.gmra.mrb[44].mxu1 %v4896_v42  ;;  %v5773_v62 = vpop.permute.xlu1 %1765  ;;  %v4901_v42 = vld [vmem:[#allocation10 + $0x70] sm:$0xff]  }
 0x30c   : > { %2659 = vmatprep.mubr.bf16.mxu0 %v6983_v29  ;;  %2949 = vmatprep.mubr.bf16.mxu1 %v6983_v29  ;;  %7011 = vst [vmem:[#allocation55_spill] sm:$0xff] %v5773_v62 }
 0x313   : > { %2660 = vmatmul.mubr.bf16.gmra.mrb[80].mxu0 %v4897_v21  ;;  %2950 = vmatmul.mubr.bf16.gmra.mrb[48].mxu1 %v4898_v6  ;;  %v4902_v21 = vld [vmem:[#allocation10 + $0x158] sm:$0xff]   ;;  %v5777_v6 = vpop.permute.xlu0 %1780 }
 0x314   : > { %2669 = vmatprep.mubr.bf16.mxu0 %v6983_v29  ;;  %2959 = vmatprep.mubr.bf16.mxu1 %v6983_v29 }
 0x317   : > { %v5781_v3 = vpop.permute.xlu0 %1790 }
 0x31b   : > { %2670 = vmatmul.mubr.bf16.gmra.mrb[84].mxu0 %v4899_v40  ;;  %2960 = vmatmul.mubr.bf16.gmra.mrb[52].mxu1 %v4900_v41  ;;  %v5779_v40 = vpop.permute.xlu1 %1775  ;;  %v4903_v41 = vld [vmem:[#allocation10 + $0x78] sm:$0xff]   ;;  %v5787_v53 = vpop.permute.xlu0 %1800 }
 0x31c   : > { %2679 = vmatprep.mubr.bf16.mxu0 %v6983_v29  ;;  %2969 = vmatprep.mubr.bf16.mxu1 %v6983_v29 }
 0x31f   : > { %v5783_v23 = vpop.permute.xlu1 %1785  ;;  %v5793_v43 = vpop.permute.xlu0 %1810 }
 0x323   : > { %2680 = vmatmul.mubr.bf16.gmra.mrb[88].mxu0 %v4901_v42  ;;  %2970 = vmatmul.mubr.bf16.gmra.mrb[56].mxu1 %v4902_v21  ;;  %v4905_v42 = vld [vmem:[#allocation10 + $0x80] sm:$0xff]   ;;  %v4906_v21 = vld [vmem:[#allocation10 + $0x168] sm:$0xff]   ;;  %v5789_v62 = vpop.permute.xlu1 %1795  ;;  %v5799_v58 = vpop.permute.xlu0 %1820 }
 0x324   : > { %2689 = vmatprep.mubr.bf16.mxu0 %v6983_v29  ;;  %2979 = vmatprep.mubr.bf16.mxu1 %v6983_v29 }
 0x327   : > { %v5803_v26 = vpop.permute.xlu0 %1830 }
 0x32b   : > { %2690 = vmatmul.mubr.bf16.gmra.mrb[92].mxu0 %v4903_v41  ;;  %2980 = vmatmul.mubr.bf16.gmra.mrb[60].mxu1 %v4904_v49  ;;  %v5795_v41 = vpop.permute.xlu1 %1805  ;;  %v4907_v49 = vld [vmem:[#allocation10 + $0x88] sm:$0xff]   ;;  %v5809_v1 = vpop.permute.xlu0 %1840 }
 0x32c   : > { %2699 = vmatprep.mubr.bf16.mxu0 %v6983_v29  ;;  %2989 = vmatprep.mubr.bf16.mxu1 %v6983_v29 }
 0x32f   : > { %v5815_v27 = vpop.permute.xlu0 %1850 }
 0x333   : > { %2700 = vmatmul.mubr.bf16.gmra.mrb[96].mxu0 %v4905_v42  ;;  %2990 = vmatmul.mubr.bf16.gmra.mrb[64].mxu1 %v4906_v21  ;;  %v5801_v42 = vpop.permute.xlu1 %1815  ;;  %v4909_v21 = vld [vmem:[#allocation10 + $0x90] sm:$0xff]   ;;  %v5821_v20 = vpop.permute.xlu0 %1860 }
 0x334   : > { %2709 = vmatprep.mubr.bf16.mxu0 %v6983_v29  ;;  %2999 = vmatprep.mubr.bf16.mxu1 %v6983_v29 }
 0x337   : > { %v5805_v59 = vpop.permute.xlu1 %1825  ;;  %v5825_v35 = vpop.permute.xlu0 %1870 }
 0x33b   : > { %2710 = vmatmul.mubr.bf16.gmra.mrb[100].mxu0 %v4907_v49  ;;  %3000 = vmatmul.mubr.bf16.gmra.mrb[68].mxu1 %v4908_v10  ;;  %v4911_v10 = vld [vmem:[#allocation10 + $0x98] sm:$0xff]   ;;  %v4912_v49 = vld [vmem:[#allocation10 + $0x180] sm:$0xff]   ;;  %v5811_v63 = vpop.permute.xlu1 %1835  ;;  %v5831_v32 = vpop.permute.xlu0 %1880 }
 0x33c   : > { %2719 = vmatprep.mubr.bf16.mxu0 %v6983_v29  ;;  %3009 = vmatprep.mubr.bf16.mxu1 %v6983_v29  ;;  %7012 = vst [vmem:[#allocation56_spill] sm:$0xff] %v5831_v32 }
 0x33f   : > { %v5837_v33 = vpop.permute.xlu0 %1890 }
 0x340   : > { %7013 = vst [vmem:[#allocation57_spill] sm:$0xff] %v5837_v33 }
 0x343   : > { %2720 = vmatmul.mubr.bf16.gmra.mrb[104].mxu0 %v4909_v21  ;;  %3010 = vmatmul.mubr.bf16.gmra.mrb[72].mxu1 %v4910_v22  ;;  %v5817_v21 = vpop.permute.xlu1 %1845  ;;  %v4913_v22 = vld [vmem:[#allocation10 + $0xa0] sm:$0xff]   ;;  %v5843_v16 = vpop.permute.xlu0 %1900 }
 0x344   : > { %2729 = vmatprep.mubr.bf16.mxu0 %v6983_v29  ;;  %3019 = vmatprep.mubr.bf16.mxu1 %v6983_v29  ;;  %7015 = vst [vmem:[#allocation59_spill] sm:$0xff] %v5843_v16  ;;  %v4928_v16 = vld [vmem:[#allocation10 + $0x1c0] sm:$0xff]  }
 0x347   : > { %v5847_v8 = vpop.permute.xlu0 %1910 }
 0x348   : > { %7017 = vst [vmem:[#allocation61_spill] sm:$0xff] %v5847_v8  ;;  %v4926_v8 = vld [vmem:[#allocation10 + $0x1b8] sm:$0xff]  }
 0x34b   : > { %2730 = vmatmul.mubr.bf16.gmra.mrb[108].mxu0 %v4911_v10  ;;  %3020 = vmatmul.mubr.bf16.gmra.mrb[76].mxu1 %v4912_v49  ;;  %v5823_v10 = vpop.permute.xlu1 %1855  ;;  %v4915_v49 = vld [vmem:[#allocation10 + $0xa8] sm:$0xff]   ;;  %v5853_v25 = vpop.permute.xlu0 %1920 }
 0x34c   : > { %2739 = vmatprep.mubr.bf16.mxu0 %v6983_v29  ;;  %3029 = vmatprep.mubr.bf16.mxu1 %v6983_v29  ;;  %7019 = vst [vmem:[#allocation63_spill] sm:$0xff] %v5853_v25 }
 0x34f   : > { %v5827_v14 = vpop.permute.xlu1 %1865  ;;  %v5859_v15 = vpop.permute.xlu0 %1930 }
 0x350   : > { %7021 = vst [vmem:[#allocation65_spill] sm:$0xff] %v5859_v15 }
 0x353   : > { %2740 = vmatmul.mubr.bf16.gmra.mrb[112].mxu0 %v4913_v22  ;;  %3030 = vmatmul.mubr.bf16.gmra.mrb[80].mxu1 %v4914_v51  ;;  %v4917_v51 = vld [vmem:[#allocation10 + $0xb0] sm:$0xff]   ;;  %v4918_v22 = vld [vmem:[#allocation10 + $0x198] sm:$0xff]   ;;  %v5833_v12 = vpop.permute.xlu1 %1875  ;;  %v5865_v25 = vpop.permute.xlu0 %1940 }
 0x354   : > { %2749 = vmatprep.mubr.bf16.mxu0 %v6983_v29  ;;  %3039 = vmatprep.mubr.bf16.mxu1 %v6983_v29  ;;  %7023 = vst [vmem:[#allocation67_spill] sm:$0xff] %v5865_v25 }
 0x35b   : > { %2750 = vmatmul.mubr.bf16.gmra.mrb[116].mxu0 %v4915_v49  ;;  %3040 = vmatmul.mubr.bf16.gmra.mrb[84].mxu1 %v4916_v0  ;;  %v5839_v49 = vpop.permute.xlu1 %1885  ;;  %v4919_v0 = vld [vmem:[#allocation10 + $0xb8] sm:$0xff]  }
 0x35c   : > { %2759 = vmatprep.mubr.bf16.mxu0 %v6983_v29  ;;  %3049 = vmatprep.mubr.bf16.mxu1 %v6983_v29  ;;  %7014 = vst [vmem:[#allocation58_spill] sm:$0xff] %v5839_v49 }
 0x363   : > { %2760 = vmatmul.mubr.bf16.gmra.mrb[120].mxu0 %v4917_v51  ;;  %3050 = vmatmul.mubr.bf16.gmra.mrb[88].mxu1 %v4918_v22  ;;  %v5845_v51 = vpop.permute.xlu1 %1895  ;;  %v4921_v22 = vld [vmem:[#allocation10 + $0xc0] sm:$0xff]  }
 0x364   : > { %2769 = vmatprep.mubr.bf16.mxu0 %v6983_v29  ;;  %3059 = vmatprep.mubr.bf16.mxu1 %v6983_v29  ;;  %7016 = vst [vmem:[#allocation60_spill] sm:$0xff] %v5845_v51 }
 0x367   : > { %v5849_v34 = vpop.permute.xlu1 %1905 }
 0x368   : > { %7018 = vst [vmem:[#allocation62_spill] sm:$0xff] %v5849_v34 }
 0x36b   : > { %2770 = vmatmul.mubr.bf16.gmra.mrb[124].mxu0 %v4919_v0  ;;  %3060 = vmatmul.mubr.bf16.gmra.mrb[92].mxu1 %v4920_v44  ;;  %v4923_v44 = vld [vmem:[#allocation10 + $0xc8] sm:$0xff]   ;;  %v4924_v0 = vld [vmem:[#allocation10 + $0x1b0] sm:$0xff]   ;;  %v5855_v46 = vpop.permute.xlu1 %1915 }
 0x36c   : > { %2779 = vmatprep.mubr.bf16.mxu0 %v6983_v29  ;;  %3069 = vmatprep.mubr.bf16.mxu1 %v6983_v29  ;;  %7020 = vst [vmem:[#allocation64_spill] sm:$0xff] %v5855_v46 }
 0x373   : > { %2780 = vmatmul.mubr.bf16.gmra.mrb[128].mxu0 %v4921_v22  ;;  %3070 = vmatmul.mubr.bf16.gmra.mrb[96].mxu1 %v4922_v2  ;;  %v5861_v22 = vpop.permute.xlu1 %1925  ;;  %v4925_v2 = vld [vmem:[#allocation10 + $0xd0] sm:$0xff]  }
 0x374   : > { %2789 = vmatprep.mubr.bf16.mxu0 %v6983_v29  ;;  %3079 = vmatprep.mubr.bf16.mxu1 %v6983_v29  ;;  %7022 = vst [vmem:[#allocation66_spill] sm:$0xff] %v5861_v22 }
 0x37b   : > { %2790 = vmatmul.mubr.bf16.gmra.mrb[132].mxu0 %v4923_v44  ;;  %3080 = vmatmul.mubr.bf16.gmra.mrb[100].mxu1 %v4924_v0  ;;  %v5867_v44 = vpop.permute.xlu1 %1935 }
 0x37c   : > { %2799 = vmatprep.mubr.bf16.mxu0 %v6983_v29  ;;  %3089 = vmatprep.mubr.bf16.mxu1 %v6983_v29  ;;  %7024 = vst [vmem:[#allocation68_spill] sm:$0xff] %v5867_v44 }
 0x383   : > { %2800 = vmatmul.mubr.bf16.gmra.mrb[136].mxu0 %v4925_v2  ;;  %3090 = vmatmul.mubr.bf16.gmra.mrb[104].mxu1 %v4926_v8 }
 0x384   : > { %2809 = vmatprep.mubr.bf16.mxu0 %v6983_v29  ;;  %3099 = vmatprep.mubr.bf16.mxu1 %v6983_v29 }
 0x386   : > { %v2541_v0 = vpop.f32.mrb[32].mxu0  ;;  %v2831_v46 = vpop.f32.mrb[0].mxu1 }
 0x387   : > { %v2542_v38 = vadd.f32 %v2541_v0, %v5611_v54  ;;  %v2832_v15 = vadd.f32 %v2831_v46, %v5779_v40  ;;  %v2543_v34 = vpop.f32.mrb[33].mxu0  ;;  %v2833_v22 = vpop.f32.mrb[1].mxu1 }
 0x388   : > { %v2544_v8 = vadd.f32 %v2543_v34, %v5611_v54  ;;  %v2834_v2 = vadd.f32 %v2833_v22, %v5779_v40  ;;  %v2545_v24 = vpop.f32.mrb[34].mxu0  ;;  %v2835_v51 = vpop.f32.mrb[2].mxu1 }
 0x389   : > { %v3180_v28 = vmax.f32 %v2542_v38, 0.0  ;;  %v3296_v25 = vmax.f32 %v2832_v15, 0.0  ;;  %v2546_v44 = vadd.f32 %v2545_v24, %v5583_v9  ;;  %v2836_v33 = vadd.f32 %v2835_v51, %v5777_v6  ;;  %v2547_v17 = vpop.f32.mrb[35].mxu0  ;;  %v2837_v0 = vpop.f32.mrb[3].mxu1 }
 0x38a   : > { %v3181_v49 = vmax.f32 %v2544_v8, 0.0  ;;  %v3297_v46 = vmax.f32 %v2834_v2, 0.0  ;;  %v2548_v52 = vadd.f32 %v2547_v17, %v5583_v9  ;;  %v2838_v32 = vadd.f32 %v2837_v0, %v5777_v6  ;;  %v5879_v24 = vpop.permute.xlu0 %1950  ;;  %v5881_v51 = vpop.permute.xlu1 %1945 }
 0x38b   : > { %v3182_v13 = vmax.f32 %v2546_v44, 0.0  ;;  %v3298_v54 = vmax.f32 %v2836_v33, 0.0  ;;  %2810 = vmatmul.mubr.bf16.gmra.mrb[140].mxu0 %v4927_v60  ;;  %3100 = vmatmul.mubr.bf16.gmra.mrb[108].mxu1 %v4928_v16  ;;  %v4929_v16 = vld [vmem:[#allocation10 + $0xe0] sm:$0xff]   ;;  %v4930_v33 = vld [vmem:[#allocation10 + $0x1c8] sm:$0xff]  }
 0x38c   : > { %v3564_v34 = vmax.f32 %v3180_v28, %v3181_v49  ;;  %v3738_v40 = vmax.f32 %v3296_v25, %v3297_v46  ;;  %v3183_v38 = vmax.f32 %v2548_v52, 0.0  ;;  %v3299_v15 = vmax.f32 %v2838_v32, 0.0  ;;  %2819 = vmatprep.mubr.bf16.mxu0 %v6983_v29  ;;  %3109 = vmatprep.mubr.bf16.mxu1 %v6983_v29 }
 0x38e   : > { %v3567_v22 = vmax.f32 %v3182_v13, %v3183_v38  ;;  %v3741_v9 = vmax.f32 %v3298_v54, %v3299_v15  ;;  %v2841_v17 = vpop.f32.mrb[4].mxu1  ;;  %3739 = vmax.xlane.f32.xlu0 %v3738_v40  ;;  %v2551_v6 = vpop.f32.mrb[36].mxu0  ;;  %3565 = vmax.xlane.f32.xlu1 %v3564_v34 }
 0x38f   : > { %v2842_v60 = vadd.f32 %v2841_v17, %v5783_v23  ;;  %v2552_v28 = vadd.f32 %v2551_v6, %v5615_v47  ;;  %v2553_v52 = vpop.f32.mrb[37].mxu0  ;;  %v2843_v25 = vpop.f32.mrb[5].mxu1 }
 0x390   : > { %v2554_v32 = vadd.f32 %v2553_v52, %v5615_v47  ;;  %v2844_v49 = vadd.f32 %v2843_v25, %v5783_v23  ;;  %v2555_v44 = vpop.f32.mrb[38].mxu0  ;;  %v2845_v8 = vpop.f32.mrb[6].mxu1 }
 0x391   : > { %v3300_v13 = vmax.f32 %v2842_v60, 0.0  ;;  %v3184_v2 = vmax.f32 %v2552_v28, 0.0  ;;  %v2556_v0 = vadd.f32 %v2555_v44, %v5587_v45  ;;  %v2846_v46 = vadd.f32 %v2845_v8, %v5781_v3  ;;  %v2557_v54 = vpop.f32.mrb[39].mxu0  ;;  %v2847_v34 = vpop.f32.mrb[7].mxu1 }
 0x392   : > { %v3185_v40 = vmax.f32 %v2554_v32, 0.0  ;;  %v3301_v38 = vmax.f32 %v2844_v49, 0.0  ;;  %v2558_v15 = vadd.f32 %v2557_v54, %v5587_v45  ;;  %v2848_v17 = vadd.f32 %v2847_v34, %v5781_v3  ;;  %3568 = vmax.xlane.f32.xlu0 %v3567_v22  ;;  %3742 = vmax.xlane.f32.xlu1 %v3741_v9  ;;  %v5894_v25 = vpop.permute.xlu0 %1960  ;;  %v5896_v32 = vpop.permute.xlu1 %1955 }
 0x393   : > { %v3186_v47 = vmax.f32 %v2556_v0, 0.0  ;;  %v3302_v23 = vmax.f32 %v2846_v46, 0.0  ;;  %2820 = vmatmul.mubr.bf16.gmra.mrb[144].mxu0 %v4929_v16  ;;  %3110 = vmatmul.mubr.bf16.gmra.mrb[112].mxu1 %v4930_v33  ;;  %v5174_v16 = vmov -inf  }
 0x394   : > { %v3570_v6 = vmax.f32 %v3184_v2, %v3185_v40  ;;  %v5891_v60 = vmax.f32 %v3300_v13, %v3301_v38  ;;  %v3187_v28 = vmax.f32 %v2558_v15, 0.0  ;;  %v3303_v52 = vmax.f32 %v2848_v17, 0.0  ;;  %3119 = vmatprep.mubr.bf16.mxu1 %v6983_v29  ;;  %483 = vst.msk [vmem:[#allocation2 + $0x1d0] sm:$0xff] %vm424_vm1, %v5174_v16  ;;  %425 = vst.msk [vmem:[#allocation2] sm:$0xff] %vm424_vm1, %v5174_v16  ;;  %v4931_v13 = vld [vmem:[#allocation10 + $0x1d0] sm:$0xff]  }
 0x395   : > { %426 = vst.msk [vmem:[#allocation2 + $0x8] sm:$0xff] %vm424_vm1, %v5174_v16  ;;  %427 = vst.msk [vmem:[#allocation2 + $0x10] sm:$0xff] %vm424_vm1, %v5174_v16 }
 0x396   : > { %v5898_v45 = vmax.f32 %v3186_v47, %v3187_v28  ;;  %v5900_v3 = vmax.f32 %v3302_v23, %v3303_v52  ;;  %v5902_v22 = vpop.f32.mrb[40].mxu0  ;;  %v5904_v9 = vpop.f32.mrb[8].mxu1  ;;  %3571 = vmax.xlane.f32.xlu0 %v3570_v6  ;;  %428 = vst.msk [vmem:[#allocation2 + $0x18] sm:$0xff] %vm424_vm1, %v5174_v16  ;;  %429 = vst.msk [vmem:[#allocation2 + $0x20] sm:$0xff] %vm424_vm1, %v5174_v16 }
 0x397   : > { %430 = vst.msk [vmem:[#allocation2 + $0x28] sm:$0xff] %vm424_vm1, %v5174_v16  ;;  %431 = vst.msk [vmem:[#allocation2 + $0x30] sm:$0xff] %vm424_vm1, %v5174_v16  ;;  %v2562_v33 = vadd.f32 %v5902_v22, %v5619_v5  ;;  %v2852_v49 = vadd.f32 %v5904_v9, %v5789_v62  ;;  %v2563_v44 = vpop.f32.mrb[41].mxu0  ;;  %v2853_v8 = vpop.f32.mrb[9].mxu1 }
 0x398   : > { %432 = vst.msk [vmem:[#allocation2 + $0x38] sm:$0xff] %vm424_vm1, %v5174_v16  ;;  %433 = vst.msk [vmem:[#allocation2 + $0x40] sm:$0xff] %vm424_vm1, %v5174_v16  ;;  %v2564_v2 = vadd.f32 %v2563_v44, %v5619_v5  ;;  %v2854_v0 = vadd.f32 %v2853_v8, %v5789_v62  ;;  %v2565_v46 = vpop.f32.mrb[42].mxu0  ;;  %v2855_v54 = vpop.f32.mrb[10].mxu1  ;;  %3574 = vmax.xlane.f32.xlu1 %v5898_v45 }
 0x399   : > { %434 = vst.msk [vmem:[#allocation2 + $0x48] sm:$0xff] %vm424_vm1, %v5174_v16  ;;  %435 = vst.msk [vmem:[#allocation2 + $0x50] sm:$0xff] %vm424_vm1, %v5174_v16  ;;  %v3188_v34 = vmax.f32 %v2562_v33, 0.0  ;;  %v3304_v40 = vmax.f32 %v2852_v49, 0.0  ;;  %v2566_v38 = vadd.f32 %v2565_v46, %v5593_v18  ;;  %v2856_v15 = vadd.f32 %v2855_v54, %v5787_v53  ;;  %v2567_v17 = vpop.f32.mrb[43].mxu0  ;;  %v2857_v47 = vpop.f32.mrb[11].mxu1 }
 0x39a   : > { %436 = vst.msk [vmem:[#allocation2 + $0x58] sm:$0xff] %vm424_vm1, %v5174_v16  ;;  %437 = vst.msk [vmem:[#allocation2 + $0x60] sm:$0xff] %vm424_vm1, %v5174_v16  ;;  %v3189_v23 = vmax.f32 %v2564_v2, 0.0  ;;  %v3305_v6 = vmax.f32 %v2854_v0, 0.0  ;;  %v2568_v28 = vadd.f32 %v2567_v17, %v5593_v18  ;;  %v2858_v5 = vadd.f32 %v2857_v47, %v5787_v53  ;;  %3745 = vmax.xlane.f32.xlu0 %v5891_v60  ;;  %v6176_v33 = vpop.permute.xlu0 %1970  ;;  %v6178_v49 = vpop.permute.xlu1 %1965  ;;  %v4932_v46 = vld [vmem:[#allocation10 + $0x1d8] sm:$0xff]  }
 0x39b   : > { %438 = vst.msk [vmem:[#allocation2 + $0x68] sm:$0xff] %vm424_vm1, %v5174_v16  ;;  %439 = vst.msk [vmem:[#allocation2 + $0x70] sm:$0xff] %vm424_vm1, %v5174_v16  ;;  %v3190_v62 = vmax.f32 %v2566_v38, 0.0  ;;  %v3306_v52 = vmax.f32 %v2856_v15, 0.0  ;;  %3120 = vmatmul.mubr.bf16.gmra.mrb[116].mxu1 %v4931_v13 }
 0x39c   : > { %440 = vst.msk [vmem:[#allocation2 + $0x78] sm:$0xff] %vm424_vm1, %v5174_v16  ;;  %441 = vst.msk [vmem:[#allocation2 + $0x80] sm:$0xff] %vm424_vm1, %v5174_v16  ;;  %v3576_v45 = vmax.f32 %v3188_v34, %v3189_v23  ;;  %v3750_v22 = vmax.f32 %v3304_v40, %v3305_v6  ;;  %v3191_v9 = vmax.f32 %v2568_v28, 0.0  ;;  %3748 = vmax.xlane.f32.xlu1 %v5900_v3  ;;  %3129 = vmatprep.mubr.bf16.mxu1 %v6983_v29 }
 0x39d   : > { %442 = vst.msk [vmem:[#allocation2 + $0x88] sm:$0xff] %vm424_vm1, %v5174_v16  ;;  %443 = vst.msk [vmem:[#allocation2 + $0x90] sm:$0xff] %vm424_vm1, %v5174_v16 }
 0x39e   : > { %444 = vst.msk [vmem:[#allocation2 + $0x98] sm:$0xff] %vm424_vm1, %v5174_v16  ;;  %445 = vst.msk [vmem:[#allocation2 + $0xa0] sm:$0xff] %vm424_vm1, %v5174_v16  ;;  %v3579_v18 = vmax.f32 %v3190_v62, %v3191_v9  ;;  %v2571_v53 = vpop.f32.mrb[44].mxu0  ;;  %v2861_v8 = vpop.f32.mrb[12].mxu1  ;;  %3577 = vmax.xlane.f32.xlu0 %v3576_v45 }
 0x39f   : > { %446 = vst.msk [vmem:[#allocation2 + $0xa8] sm:$0xff] %vm424_vm1, %v5174_v16  ;;  %447 = vst.msk [vmem:[#allocation2 + $0xb0] sm:$0xff] %vm424_vm1, %v5174_v16  ;;  %v2572_v60 = vadd.f32 %v2571_v53, %v5623_v50  ;;  %v2862_v13 = vadd.f32 %v2861_v8, %v5795_v41  ;;  %v2573_v2 = vpop.f32.mrb[45].mxu0  ;;  %v2863_v0 = vpop.f32.mrb[13].mxu1 }
 0x3a0   : > { %448 = vst.msk [vmem:[#allocation2 + $0xb8] sm:$0xff] %vm424_vm1, %v5174_v16  ;;  %449 = vst.msk [vmem:[#allocation2 + $0xc0] sm:$0xff] %vm424_vm1, %v5174_v16  ;;  %v2574_v3 = vadd.f32 %v2573_v2, %v5623_v50  ;;  %v2864_v54 = vadd.f32 %v2863_v0, %v5795_v41  ;;  %v2575_v34 = vpop.f32.mrb[46].mxu0  ;;  %v2865_v40 = vpop.f32.mrb[14].mxu1  ;;  %3580 = vmax.xlane.f32.xlu1 %v3579_v18 }
 0x3a1   : > { %450 = vst.msk [vmem:[#allocation2 + $0xc8] sm:$0xff] %vm424_vm1, %v5174_v16  ;;  %451 = vst.msk [vmem:[#allocation2 + $0xd0] sm:$0xff] %vm424_vm1, %v5174_v16  ;;  %v3192_v38 = vmax.f32 %v2572_v60, 0.0  ;;  %v3308_v15 = vmax.f32 %v2862_v13, 0.0  ;;  %v2576_v17 = vadd.f32 %v2575_v34, %v5599_v31  ;;  %v2866_v47 = vadd.f32 %v2865_v40, %v5793_v43  ;;  %v2577_v23 = vpop.f32.mrb[47].mxu0  ;;  %v2867_v6 = vpop.f32.mrb[15].mxu1 }
 0x3a2   : > { %452 = vst.msk [vmem:[#allocation2 + $0xd8] sm:$0xff] %vm424_vm1, %v5174_v16  ;;  %453 = vst.msk [vmem:[#allocation2 + $0xe0] sm:$0xff] %vm424_vm1, %v5174_v16  ;;  %v3193_v28 = vmax.f32 %v2574_v3, 0.0  ;;  %v2578_v62 = vadd.f32 %v2577_v23, %v5599_v31  ;;  %3751 = vmax.xlane.f32.xlu0 %v3750_v22  ;;  %v6189_v53 = vpop.permute.xlu0 %1980  ;;  %v6191_v8 = vpop.permute.xlu1 %1975  ;;  %v4933_v3 = vld [vmem:[#allocation10 + $0x1e0] sm:$0xff]  }
 0x3a3   : > { %454 = vst.msk [vmem:[#allocation2 + $0xe8] sm:$0xff] %vm424_vm1, %v5174_v16  ;;  %455 = vst.msk [vmem:[#allocation2 + $0xf0] sm:$0xff] %vm424_vm1, %v5174_v16  ;;  %v3194_v50 = vmax.f32 %v2576_v17, 0.0  ;;  %v3310_v41 = vmax.f32 %v2866_v47, 0.0  ;;  %3130 = vmatmul.mubr.bf16.gmra.mrb[120].mxu1 %v4932_v46 }
 0x3a4   : > { %456 = vst.msk [vmem:[#allocation2 + $0xf8] sm:$0xff] %vm424_vm1, %v5174_v16  ;;  %457 = vst.msk [vmem:[#allocation2 + $0x100] sm:$0xff] %vm424_vm1, %v5174_v16  ;;  %v3582_v45 = vmax.f32 %v3192_v38, %v3193_v28  ;;  %3139 = vmatprep.mubr.bf16.mxu1 %v6983_v29 }
 0x3a5   : > { %458 = vst.msk [vmem:[#allocation2 + $0x108] sm:$0xff] %vm424_vm1, %v5174_v16  ;;  %459 = vst.msk [vmem:[#allocation2 + $0x110] sm:$0xff] %vm424_vm1, %v5174_v16 }
 0x3a6   : > { %460 = vst.msk [vmem:[#allocation2 + $0x118] sm:$0xff] %vm424_vm1, %v5174_v16  ;;  %461 = vst.msk [vmem:[#allocation2 + $0x120] sm:$0xff] %vm424_vm1, %v5174_v16  ;;  %v2581_v31 = vpop.f32.mrb[48].mxu0  ;;  %v2871_v2 = vpop.f32.mrb[16].mxu1  ;;  %3583 = vmax.xlane.f32.xlu0 %v3582_v45 }
 0x3a7   : > { %462 = vst.msk [vmem:[#allocation2 + $0x128] sm:$0xff] %vm424_vm1, %v5174_v16  ;;  %463 = vst.msk [vmem:[#allocation2 + $0x130] sm:$0xff] %vm424_vm1, %v5174_v16  ;;  %v2872_v22 = vadd.f32 %v2871_v2, %v5801_v42  ;;  %v2583_v0 = vpop.f32.mrb[49].mxu0  ;;  %v2873_v46 = vpop.f32.mrb[17].mxu1 }
 0x3a8   : > { %464 = vst.msk [vmem:[#allocation2 + $0x138] sm:$0xff] %vm424_vm1, %v5174_v16  ;;  %465 = vst.msk [vmem:[#allocation2 + $0x140] sm:$0xff] %vm424_vm1, %v5174_v16  ;;  %v2585_v34 = vpop.f32.mrb[50].mxu0  ;;  %v2875_v40 = vpop.f32.mrb[18].mxu1 }
 0x3a9   : > { %466 = vst.msk [vmem:[#allocation2 + $0x148] sm:$0xff] %vm424_vm1, %v5174_v16  ;;  %467 = vst.msk [vmem:[#allocation2 + $0x150] sm:$0xff] %vm424_vm1, %v5174_v16  ;;  %v2586_v17 = vadd.f32 %v2585_v34, %v5605_v37  ;;  %v2876_v47 = vadd.f32 %v2875_v40, %v5799_v58  ;;  %v2587_v23 = vpop.f32.mrb[51].mxu0 }
 0x3aa   : > { %468 = vst.msk [vmem:[#allocation2 + $0x158] sm:$0xff] %vm424_vm1, %v5174_v16  ;;  %469 = vst.msk [vmem:[#allocation2 + $0x160] sm:$0xff] %vm424_vm1, %v5174_v16 }
 0x3ab   : > { %470 = vst.msk [vmem:[#allocation2 + $0x168] sm:$0xff] %vm424_vm1, %v5174_v16  ;;  %471 = vst.msk [vmem:[#allocation2 + $0x170] sm:$0xff] %vm424_vm1, %v5174_v16  ;;  %3140 = vmatmul.mubr.bf16.gmra.mrb[124].mxu1 %v4933_v3 }
 0x3ac   : > { %472 = vst.msk [vmem:[#allocation2 + $0x178] sm:$0xff] %vm424_vm1, %v5174_v16  ;;  %473 = vst.msk [vmem:[#allocation2 + $0x180] sm:$0xff] %vm424_vm1, %v5174_v16  ;;  %3149 = vmatprep.mubr.bf16.mxu1 %v6983_v29 }
 0x3ad   : > { %474 = vst.msk [vmem:[#allocation2 + $0x188] sm:$0xff] %vm424_vm1, %v5174_v16  ;;  %475 = vst.msk [vmem:[#allocation2 + $0x190] sm:$0xff] %vm424_vm1, %v5174_v16 }
 0x3ae   : > { %476 = vst.msk [vmem:[#allocation2 + $0x198] sm:$0xff] %vm424_vm1, %v5174_v16  ;;  %477 = vst.msk [vmem:[#allocation2 + $0x1a0] sm:$0xff] %vm424_vm1, %v5174_v16 }
 0x3af   : > { %478 = vst.msk [vmem:[#allocation2 + $0x1a8] sm:$0xff] %vm424_vm1, %v5174_v16  ;;  %479 = vst.msk [vmem:[#allocation2 + $0x1b0] sm:$0xff] %vm424_vm1, %v5174_v16 }
 0x3b0   : > { %480 = vst.msk [vmem:[#allocation2 + $0x1b8] sm:$0xff] %vm424_vm1, %v5174_v16  ;;  %481 = vst.msk [vmem:[#allocation2 + $0x1c0] sm:$0xff] %vm424_vm1, %v5174_v16 }
 0x3b1   : > { %482 = vst.msk [vmem:[#allocation2 + $0x1c8] sm:$0xff] %vm424_vm1, %v5174_v16  ;;  %484 = vst.msk [vmem:[#allocation2 + $0x1d8] sm:$0xff] %vm424_vm1, %v5174_v16 }
 0x3b2   : > { %485 = vst.msk [vmem:[#allocation2 + $0x1e0] sm:$0xff] %vm424_vm1, %v5174_v16  ;;  %486 = vst.msk [vmem:[#allocation2 + $0x1e8] sm:$0xff] %vm424_vm1, %v5174_v16 }
 0x3b3   : > { %487 = vst.msk [vmem:[#allocation2 + $0x1f0] sm:$0xff] %vm424_vm1, %v5174_v16  ;;  %488 = vst.msk [vmem:[#allocation2 + $0x1f8] sm:$0xff] %vm424_vm1, %v5174_v16 }
 0x3b4   : > { %489 = vst.msk [vmem:[#allocation2 + $0x200] sm:$0xff] %vm424_vm1, %v5174_v16  ;;  %490 = vst.msk [vmem:[#allocation2 + $0x208] sm:$0xff] %vm424_vm1, %v5174_v16 }
 0x3b5   : > { %491 = vst.msk [vmem:[#allocation2 + $0x210] sm:$0xff] %vm424_vm1, %v5174_v16  ;;  %492 = vst.msk [vmem:[#allocation2 + $0x218] sm:$0xff] %vm424_vm1, %v5174_v16 }
 0x3b6   : > { %493 = vst.msk [vmem:[#allocation2 + $0x220] sm:$0xff] %vm424_vm1, %v5174_v16  ;;  %494 = vst.msk [vmem:[#allocation2 + $0x228] sm:$0xff] %vm424_vm1, %v5174_v16 }
 0x3b7   : > { %495 = vst.msk [vmem:[#allocation2 + $0x230] sm:$0xff] %vm424_vm1, %v5174_v16  ;;  %496 = vst.msk [vmem:[#allocation2 + $0x238] sm:$0xff] %vm424_vm1, %v5174_v16 }
 0x3b8   : > { %497 = vst.msk [vmem:[#allocation2 + $0x240] sm:$0xff] %vm424_vm1, %v5174_v16  ;;  %498 = vst.msk [vmem:[#allocation2 + $0x248] sm:$0xff] %vm424_vm1, %v5174_v16 }
 0x3b9   : > { %499 = vst.msk [vmem:[#allocation2 + $0x250] sm:$0xff] %vm424_vm1, %v5174_v16  ;;  %500 = vst.msk [vmem:[#allocation2 + $0x258] sm:$0xff] %vm424_vm1, %v5174_v16 }
 0x3ba   : > { %501 = vst.msk [vmem:[#allocation2 + $0x260] sm:$0xff] %vm424_vm1, %v5174_v16  ;;  %502 = vst.msk [vmem:[#allocation2 + $0x268] sm:$0xff] %vm424_vm1, %v5174_v16 }
 0x3bb   : > { %503 = vst.msk [vmem:[#allocation2 + $0x270] sm:$0xff] %vm424_vm1, %v5174_v16  ;;  %504 = vst.msk [vmem:[#allocation2 + $0x278] sm:$0xff] %vm424_vm1, %v5174_v16 }
 0x3bc   : > { %505 = vst.msk [vmem:[#allocation2 + $0x280] sm:$0xff] %vm424_vm1, %v5174_v16  ;;  %506 = vst.msk [vmem:[#allocation2 + $0x288] sm:$0xff] %vm424_vm1, %v5174_v16 }
 0x3bd   : > { %507 = vst.msk [vmem:[#allocation2 + $0x290] sm:$0xff] %vm424_vm1, %v5174_v16  ;;  %508 = vst.msk [vmem:[#allocation2 + $0x298] sm:$0xff] %vm424_vm1, %v5174_v16 }
 0x3be   : > { %509 = vst.msk [vmem:[#allocation2 + $0x2a0] sm:$0xff] %vm424_vm1, %v5174_v16  ;;  %510 = vst.msk [vmem:[#allocation2 + $0x2a8] sm:$0xff] %vm424_vm1, %v5174_v16 }
 0x3bf   : > { %511 = vst.msk [vmem:[#allocation2 + $0x2b0] sm:$0xff] %vm424_vm1, %v5174_v16  ;;  %512 = vst.msk [vmem:[#allocation2 + $0x2b8] sm:$0xff] %vm424_vm1, %v5174_v16 }
 0x3c0   : > { %513 = vst.msk [vmem:[#allocation2 + $0x2c0] sm:$0xff] %vm424_vm1, %v5174_v16  ;;  %514 = vst.msk [vmem:[#allocation2 + $0x2c8] sm:$0xff] %vm424_vm1, %v5174_v16 }
 0x3c1   : > { %515 = vst.msk [vmem:[#allocation2 + $0x2d0] sm:$0xff] %vm424_vm1, %v5174_v16  ;;  %516 = vst.msk [vmem:[#allocation2 + $0x2d8] sm:$0xff] %vm424_vm1, %v5174_v16 }
 0x3c2   : > { %517 = vst.msk [vmem:[#allocation2 + $0x2e0] sm:$0xff] %vm424_vm1, %v5174_v16  ;;  %518 = vst.msk [vmem:[#allocation2 + $0x2e8] sm:$0xff] %vm424_vm1, %v5174_v16 }
 0x3c3   : > { %519 = vst.msk [vmem:[#allocation2 + $0x2f0] sm:$0xff] %vm424_vm1, %v5174_v16  ;;  %520 = vst.msk [vmem:[#allocation2 + $0x2f8] sm:$0xff] %vm424_vm1, %v5174_v16 }
 0x3c4   : > { %521 = vst.msk [vmem:[#allocation2 + $0x300] sm:$0xff] %vm424_vm1, %v5174_v16  ;;  %522 = vst.msk [vmem:[#allocation2 + $0x308] sm:$0xff] %vm424_vm1, %v5174_v16 }
 0x3c5   : > { %523 = vst.msk [vmem:[#allocation2 + $0x310] sm:$0xff] %vm424_vm1, %v5174_v16  ;;  %524 = vst.msk [vmem:[#allocation2 + $0x318] sm:$0xff] %vm424_vm1, %v5174_v16 }
 0x3c6   : > { %525 = vst.msk [vmem:[#allocation2 + $0x320] sm:$0xff] %vm424_vm1, %v5174_v16  ;;  %526 = vst.msk [vmem:[#allocation2 + $0x328] sm:$0xff] %vm424_vm1, %v5174_v16 }
 0x3c7   : > { %527 = vst.msk [vmem:[#allocation2 + $0x330] sm:$0xff] %vm424_vm1, %v5174_v16  ;;  %528 = vst.msk [vmem:[#allocation2 + $0x338] sm:$0xff] %vm424_vm1, %v5174_v16 }
 0x3c8   : > { %529 = vst.msk [vmem:[#allocation2 + $0x340] sm:$0xff] %vm424_vm1, %v5174_v16  ;;  %530 = vst.msk [vmem:[#allocation2 + $0x348] sm:$0xff] %vm424_vm1, %v5174_v16 }
 0x3c9   : > { %531 = vst.msk [vmem:[#allocation2 + $0x350] sm:$0xff] %vm424_vm1, %v5174_v16  ;;  %532 = vst.msk [vmem:[#allocation2 + $0x358] sm:$0xff] %vm424_vm1, %v5174_v16 }
 0x3ca   : > { %533 = vst.msk [vmem:[#allocation2 + $0x360] sm:$0xff] %vm424_vm1, %v5174_v16  ;;  %534 = vst.msk [vmem:[#allocation2 + $0x368] sm:$0xff] %vm424_vm1, %v5174_v16 }
 0x3cb   : > { %535 = vst.msk [vmem:[#allocation2 + $0x370] sm:$0xff] %vm424_vm1, %v5174_v16  ;;  %536 = vst.msk [vmem:[#allocation2 + $0x378] sm:$0xff] %vm424_vm1, %v5174_v16 }
 0x3cc   : > { %537 = vst.msk [vmem:[#allocation2 + $0x380] sm:$0xff] %vm424_vm1, %v5174_v16  ;;  %538 = vst.msk [vmem:[#allocation2 + $0x388] sm:$0xff] %vm424_vm1, %v5174_v16 }
 0x3cd   : > { %539 = vst.msk [vmem:[#allocation2 + $0x390] sm:$0xff] %vm424_vm1, %v5174_v16  ;;  %540 = vst.msk [vmem:[#allocation2 + $0x398] sm:$0xff] %vm424_vm1, %v5174_v16 }
 0x3ce   : > { %541 = vst.msk [vmem:[#allocation2 + $0x3a0] sm:$0xff] %vm424_vm1, %v5174_v16  ;;  %542 = vst.msk [vmem:[#allocation2 + $0x3a8] sm:$0xff] %vm424_vm1, %v5174_v16 }
 0x3cf   : > { %543 = vst.msk [vmem:[#allocation2 + $0x3b0] sm:$0xff] %vm424_vm1, %v5174_v16  ;;  %544 = vst.msk [vmem:[#allocation2 + $0x3b8] sm:$0xff] %vm424_vm1, %v5174_v16 }
 0x3d0   : > { %545 = vst.msk [vmem:[#allocation2 + $0x3c0] sm:$0xff] %vm424_vm1, %v5174_v16  ;;  %546 = vst.msk [vmem:[#allocation2 + $0x3c8] sm:$0xff] %vm424_vm1, %v5174_v16 }
 0x3d1   : > { %547 = vst.msk [vmem:[#allocation2 + $0x3d0] sm:$0xff] %vm424_vm1, %v5174_v16  ;;  %548 = vst.msk [vmem:[#allocation2 + $0x3d8] sm:$0xff] %vm424_vm1, %v5174_v16 }
 0x3d2   : > { %549 = vst.msk [vmem:[#allocation2 + $0x3e0] sm:$0xff] %vm424_vm1, %v5174_v16  ;;  %550 = vst.msk [vmem:[#allocation2 + $0x3e8] sm:$0xff] %vm424_vm1, %v5174_v16 }
 0x3d3   : > { %551 = vst.msk [vmem:[#allocation2 + $0x3f0] sm:$0xff] %vm424_vm1, %v5174_v16  ;;  %552 = vst.msk [vmem:[#allocation2 + $0x3f8] sm:$0xff] %vm424_vm1, %v5174_v16  ;;  %v3307_v16 = vmax.f32 %v2858_v5, 0.0  ;;  %v3309_v5 = vmax.f32 %v2864_v54, 0.0  ;;  %v2874_v54 = vadd.f32 %v2873_v46, %v5801_v42  ;;  %v3314_v42 = vmax.f32 %v2876_v47, 0.0  ;;  %v4934_v46 = vld [vmem:[#allocation10 + $0x1e8] sm:$0xff]  }
 0x3d4   : > { %3150 = vmatmul.mubr.bf16.gmra.mrb[128].mxu1 %v4934_v46 }
 0x3d5   : > { %v3753_v44 = vmax.f32 %v3306_v52, %v3307_v16  ;;  %v2868_v52 = vadd.f32 %v2867_v6, %v5793_v43  ;;  %v3756_v9 = vmax.f32 %v3308_v15, %v3309_v5  ;;  %v3195_v16 = vmax.f32 %v2578_v62, 0.0  ;;  %v2877_v6 = vpop.f32.mrb[19].mxu1  ;;  %3159 = vmatprep.mubr.bf16.mxu1 %v6983_v29 }
 0x3d6   : > { %v2582_v43 = vadd.f32 %v2581_v31, %v5627_v7  ;;  %v3312_v15 = vmax.f32 %v2872_v22, 0.0  ;;  %v3313_v5 = vmax.f32 %v2874_v54, 0.0  ;;  %v2588_v62 = vadd.f32 %v2587_v23, %v5605_v37  ;;  %v2591_v37 = vpop.f32.mrb[52].mxu0 }
 0x3d7   : > { %v3311_v18 = vmax.f32 %v2868_v52, 0.0  ;;  %3754 = vmax.xlane.f32.xlu1 %v3753_v44  ;;  %v3585_v60 = vmax.f32 %v3194_v50, %v3195_v16  ;;  %v2584_v44 = vadd.f32 %v2583_v0, %v5627_v7  ;;  %v2878_v52 = vadd.f32 %v2877_v6, %v5799_v58  ;;  %3757 = vmax.xlane.f32.xlu0 %v3756_v9  ;;  %v2593_v22 = vpop.f32.mrb[53].mxu0 }
 0x3d8   : > { %v3196_v38 = vmax.f32 %v2582_v43, 0.0  ;;  %v3198_v7 = vmax.f32 %v2586_v17, 0.0  ;;  %v3199_v45 = vmax.f32 %v2588_v62, 0.0  ;;  %v2881_v43 = vpop.f32.mrb[20].mxu1  ;;  %v2592_v58 = vadd.f32 %v2591_v37, %v5631_v11 }
 0x3d9   : > { %v3759_v13 = vmax.f32 %v3310_v41, %v3311_v18  ;;  %v3197_v28 = vmax.f32 %v2584_v44, 0.0  ;;  %v3762_v41 = vmax.f32 %v3312_v15, %v3313_v5  ;;  %v3315_v16 = vmax.f32 %v2878_v52, 0.0  ;;  %v6202_v18 = vpop.permute.xlu0 %1990  ;;  %v2883_v0 = vpop.f32.mrb[21].mxu1 }
 0x3da   : > { %v3591_v31 = vmax.f32 %v3198_v7, %v3199_v45  ;;  %v2882_v9 = vadd.f32 %v2881_v43, %v5805_v59  ;;  %v2884_v3 = vadd.f32 %v2883_v0, %v5805_v59  ;;  %v2595_v44 = vpop.f32.mrb[54].mxu0  ;;  %v2885_v54 = vpop.f32.mrb[22].mxu1  ;;  %v3200_v34 = vmax.f32 %v2592_v58, 0.0 }
 0x3db   : > { %3586 = vmax.xlane.f32.xlu1 %v3585_v60  ;;  %v3588_v50 = vmax.f32 %v3196_v38, %v3197_v28  ;;  %v6204_v60 = vpop.permute.xlu1 %1985  ;;  %v3765_v2 = vmax.f32 %v3314_v42, %v3315_v16  ;;  %v2596_v38 = vadd.f32 %v2595_v44, %v5609_v30  ;;  %v2886_v15 = vadd.f32 %v2885_v54, %v5803_v26  ;;  %v2597_v17 = vpop.f32.mrb[55].mxu0 }
 0x3dc   : > { %v3316_v40 = vmax.f32 %v2882_v9, 0.0  ;;  %v2887_v47 = vpop.f32.mrb[23].mxu1  ;;  %v3317_v6 = vmax.f32 %v2884_v3, 0.0  ;;  %v2598_v28 = vadd.f32 %v2597_v17, %v5609_v30  ;;  %v2601_v30 = vpop.f32.mrb[56].mxu0  ;;  %v4935_v9 = vld [vmem:[#allocation10 + $0x1f0] sm:$0xff]  }
 0x3dd   : > { %3589 = vmax.xlane.f32.xlu0 %v3588_v50  ;;  %v2888_v5 = vadd.f32 %v2887_v47, %v5803_v26  ;;  %v3318_v59 = vmax.f32 %v2886_v15, 0.0  ;;  %v6215_v50 = vpop.permute.xlu0 %2000  ;;  %v2891_v37 = vpop.f32.mrb[24].mxu1  ;;  %v2602_v26 = vadd.f32 %v2601_v30, %v5635_v19  ;;  %3160 = vmatmul.mubr.bf16.gmra.mrb[132].mxu1 %v4935_v9 }
 0x3de   : > { %v3768_v52 = vmax.f32 %v3316_v40, %v3317_v6  ;;  %v3203_v7 = vmax.f32 %v2598_v28, 0.0  ;;  %v2603_v43 = vpop.f32.mrb[57].mxu0  ;;  %v2893_v58 = vpop.f32.mrb[25].mxu1  ;;  %3169 = vmatprep.mubr.bf16.mxu1 %v6983_v29 }
 0x3df   : > { %3760 = vmax.xlane.f32.xlu1 %v3759_v13  ;;  %v2594_v13 = vadd.f32 %v2593_v22, %v5631_v11  ;;  %v3202_v11 = vmax.f32 %v2596_v38, 0.0  ;;  %v3319_v42 = vmax.f32 %v2888_v5, 0.0  ;;  %v6217_v45 = vpop.permute.xlu1 %1995  ;;  %v2894_v22 = vadd.f32 %v2893_v58, %v5811_v63  ;;  %v2605_v0 = vpop.f32.mrb[58].mxu0 }
 0x3e0   : > { %v2895_v46 = vpop.f32.mrb[26].mxu1  ;;  %v2606_v44 = vadd.f32 %v2605_v0, %v5613_v57 }
 0x3e1   : > { %v3201_v23 = vmax.f32 %v2594_v13, 0.0  ;;  %3763 = vmax.xlane.f32.xlu0 %v3762_v41  ;;  %v3597_v16 = vmax.f32 %v3202_v11, %v3203_v7  ;;  %v2892_v41 = vadd.f32 %v2891_v37, %v5811_v63  ;;  %v3204_v13 = vmax.f32 %v2602_v26, 0.0  ;;  %v2897_v40 = vpop.f32.mrb[27].mxu1  ;;  %v6228_v11 = vpop.permute.xlu0 %2010  ;;  %v4936_v37 = vld [vmem:[#allocation10 + $0x1f8] sm:$0xff]  }
 0x3e2   : > { %v2896_v54 = vadd.f32 %v2895_v46, %v5809_v1  ;;  %v3321_v15 = vmax.f32 %v2894_v22, 0.0  ;;  %v2898_v47 = vadd.f32 %v2897_v40, %v5809_v1 }
 0x3e3   : > { %3592 = vmax.xlane.f32.xlu1 %v3591_v31  ;;  %v3594_v62 = vmax.f32 %v3200_v34, %v3201_v23  ;;  %v3771_v31 = vmax.f32 %v3318_v59, %v3319_v42  ;;  %v3320_v3 = vmax.f32 %v2892_v41, 0.0  ;;  %v2607_v34 = vpop.f32.mrb[59].mxu0  ;;  %v6230_v59 = vpop.permute.xlu1 %2005 }
 0x3e4   : > { %v2608_v17 = vadd.f32 %v2607_v34, %v5613_v57  ;;  %v3322_v63 = vmax.f32 %v2896_v54, 0.0  ;;  %v3323_v5 = vmax.f32 %v2898_v47, 0.0  ;;  %v2611_v57 = vpop.f32.mrb[60].mxu0  ;;  %v2901_v42 = vpop.f32.mrb[28].mxu1 }
 0x3e5   : > { %3595 = vmax.xlane.f32.xlu0 %v3594_v62  ;;  %v3774_v6 = vmax.f32 %v3320_v3, %v3321_v15  ;;  %v2612_v1 = vadd.f32 %v2611_v57, %v5639_v36  ;;  %v2903_v30 = vpop.f32.mrb[29].mxu1  ;;  %3170 = vmatmul.mubr.bf16.gmra.mrb[136].mxu1 %v4936_v37  ;;  %v6240_v15 = vpop.permute.xlu0 %2020 }
 0x3e6   : > { %v3207_v28 = vmax.f32 %v2608_v17, 0.0  ;;  %v3777_v7 = vmax.f32 %v3322_v63, %v3323_v5  ;;  %v2904_v29 = vadd.f32 %v2903_v30, %v5817_v21  ;;  %v2905_v41 = vpop.f32.mrb[30].mxu1 }
 0x3e7   : > { %3766 = vmax.xlane.f32.xlu1 %v3765_v2  ;;  %v2604_v2 = vadd.f32 %v2603_v43, %v5635_v19  ;;  %v3206_v19 = vmax.f32 %v2606_v44, 0.0  ;;  %v3208_v43 = vmax.f32 %v2612_v1, 0.0  ;;  %v2907_v0 = vpop.f32.mrb[31].mxu1  ;;  %v6242_v17 = vpop.permute.xlu1 %2015 }
 0x3e8   : > { %v2908_v44 = vadd.f32 %v2907_v0, %v5815_v27 }
 0x3e9   : > { %v3205_v38 = vmax.f32 %v2604_v2, 0.0  ;;  %3769 = vmax.xlane.f32.xlu0 %v3768_v52  ;;  %v3603_v62 = vmax.f32 %v3206_v19, %v3207_v28  ;;  %v2902_v52 = vadd.f32 %v2901_v42, %v5817_v21  ;;  %v2906_v2 = vadd.f32 %v2905_v41, %v5815_v27 }
 0x3eb   : > { %3598 = vmax.xlane.f32.xlu1 %v3597_v16  ;;  %v3600_v23 = vmax.f32 %v3204_v13, %v3205_v38  ;;  %v2613_v16 = vpop.f32.mrb[61].mxu0  ;;  %v3324_v58 = vmax.f32 %v2902_v52, 0.0  ;;  %v3325_v13 = vmax.f32 %v2904_v29, 0.0  ;;  %v3326_v21 = vmax.f32 %v2906_v2, 0.0  ;;  %v6254_v0 = vpop.permute.xlu1 %2025 }
 0x3ec   : > { %v2615_v26 = vpop.f32.mrb[62].mxu0  ;;  %v3327_v38 = vmax.f32 %v2908_v44, 0.0 }
 0x3ed   : > { %3601 = vmax.xlane.f32.xlu0 %v3600_v23  ;;  %v2616_v9 = vadd.f32 %v2615_v26, %v5617_v56  ;;  %v2617_v22 = vpop.f32.mrb[63].mxu0  ;;  %v3780_v34 = vmax.f32 %v3324_v58, %v3325_v13  ;;  %v2911_v23 = vpop.f32.mrb[32].mxu1 }
 0x3ee   : > { %v2618_v3 = vadd.f32 %v2617_v22, %v5617_v56  ;;  %v3783_v19 = vmax.f32 %v3326_v21, %v3327_v38  ;;  %v2621_v63 = vpop.f32.mrb[64].mxu0  ;;  %v2912_v27 = vadd.f32 %v2911_v23, %v5823_v10  ;;  %v2913_v28 = vpop.f32.mrb[33].mxu1 }
 0x3ef   : > { %3772 = vmax.xlane.f32.xlu1 %v3771_v31  ;;  %v2614_v31 = vadd.f32 %v2613_v16, %v5639_v36  ;;  %v3210_v36 = vmax.f32 %v2616_v9, 0.0  ;;  %v2622_v56 = vadd.f32 %v2621_v63, %v5643_v39  ;;  %v2915_v57 = vpop.f32.mrb[34].mxu1  ;;  %v6252_v22 = vpop.permute.xlu0 %2030 }
 0x3f0   : > { %v3211_v40 = vmax.f32 %v2618_v3, 0.0  ;;  %v3328_v1 = vmax.f32 %v2912_v27, 0.0  ;;  %v2916_v16 = vadd.f32 %v2915_v57, %v5821_v20  ;;  %v2917_v37 = vpop.f32.mrb[35].mxu1 }
 0x3f1   : > { %v3209_v46 = vmax.f32 %v2614_v31, 0.0  ;;  %3775 = vmax.xlane.f32.xlu0 %v3774_v6  ;;  %v2623_v6 = vpop.f32.mrb[65].mxu0  ;;  %v3212_v42 = vmax.f32 %v2622_v56, 0.0  ;;  %v2918_v41 = vadd.f32 %v2917_v37, %v5821_v20  ;;  %v2921_v44 = vpop.f32.mrb[36].mxu1 }
 0x3f2   : > { %v3609_v47 = vmax.f32 %v3210_v36, %v3211_v40  ;;  %v2624_v5 = vadd.f32 %v2623_v6, %v5643_v39  ;;  %v2922_v20 = vadd.f32 %v2921_v44, %v5827_v14  ;;  %v2923_v21 = vpop.f32.mrb[37].mxu1 }
 0x3f3   : > { %3604 = vmax.xlane.f32.xlu1 %v3603_v62  ;;  %v3606_v54 = vmax.f32 %v3208_v43, %v3209_v46  ;;  %v2914_v62 = vadd.f32 %v2913_v28, %v5823_v10  ;;  %v3330_v10 = vmax.f32 %v2916_v16, 0.0  ;;  %v3331_v2 = vmax.f32 %v2918_v41, 0.0  ;;  %v2925_v38 = vpop.f32.mrb[38].mxu1  ;;  %v6266_v16 = vpop.permute.xlu1 %2035 }
 0x3f4   : > { %v3213_v31 = vmax.f32 %v2624_v5, 0.0  ;;  %v2926_v23 = vadd.f32 %v2925_v38, %v5825_v35  ;;  %v2927_v27 = vpop.f32.mrb[39].mxu1 }
 0x3f5   : > { %3607 = vmax.xlane.f32.xlu0 %v3606_v54  ;;  %v3329_v29 = vmax.f32 %v2914_v62, 0.0  ;;  %v3789_v13 = vmax.f32 %v3330_v10, %v3331_v2  ;;  %v2928_v62 = vadd.f32 %v2927_v27, %v5825_v35 }
 0x3f6   : > { %v3612_v43 = vmax.f32 %v3212_v42, %v3213_v31 }
 0x3f7   : > { %3778 = vmax.xlane.f32.xlu1 %v3777_v7  ;;  %v2625_v7 = vpop.f32.mrb[66].mxu0  ;;  %v3786_v58 = vmax.f32 %v3328_v1, %v3329_v29  ;;  %v3335_v1 = vmax.f32 %v2928_v62, 0.0  ;;  %v2931_v29 = vpop.f32.mrb[40].mxu1 }
 0x3f8   : > { %v2626_v52 = vadd.f32 %v2625_v7, %v5621_v61  ;;  %v2627_v30 = vpop.f32.mrb[67].mxu0  ;;  %v2932_v35 = vadd.f32 %v2931_v29, %v5833_v12  ;;  %v2933_v41 = vpop.f32.mrb[41].mxu1 }
 0x3f9   : > { %v2628_v26 = vadd.f32 %v2627_v30, %v5621_v61  ;;  %3781 = vmax.xlane.f32.xlu0 %v3780_v34  ;;  %v2631_v3 = vpop.f32.mrb[68].mxu0  ;;  %v2924_v34 = vadd.f32 %v2923_v21, %v5827_v14  ;;  %v3334_v14 = vmax.f32 %v2926_v23, 0.0  ;;  %v2934_v10 = vadd.f32 %v2933_v41, %v5833_v12  ;;  %v6278_v23 = vpop.permute.xlu1 %2045 }
 0x3fa   : > { %v3214_v39 = vmax.f32 %v2626_v52, 0.0  ;;  %v2632_v61 = vadd.f32 %v2631_v3, %v5647_v55  ;;  %v2633_v36 = vpop.f32.mrb[69].mxu0  ;;  %v6264_v52 = vpop.permute.xlu0 %2040  ;;  %v3336_v2 = vmax.f32 %v2932_v35, 0.0  ;;  %v7026_v3 = vld [vmem:[#allocation56_spill] sm:$0xff] }
 0x3fb   : > { %3610 = vmax.xlane.f32.xlu1 %v3609_v47  ;;  %v3215_v9 = vmax.f32 %v2628_v26, 0.0  ;;  %v2634_v54 = vadd.f32 %v2633_v36, %v5647_v55  ;;  %v2635_v40 = vpop.f32.mrb[70].mxu0  ;;  %v3333_v28 = vmax.f32 %v2924_v34, 0.0  ;;  %v3795_v37 = vmax.f32 %v3334_v14, %v3335_v1 }
 0x3fc   : > { %v3216_v47 = vmax.f32 %v2632_v61, 0.0  ;;  %v2636_v63 = vadd.f32 %v2635_v40, %v5625_v4  ;;  %v2637_v56 = vpop.f32.mrb[71].mxu0  ;;  %v3337_v21 = vmax.f32 %v2934_v10, 0.0 }
 0x3fd   : > { %v3615_v46 = vmax.f32 %v3214_v39, %v3215_v9  ;;  %3613 = vmax.xlane.f32.xlu0 %v3612_v43  ;;  %v3217_v6 = vmax.f32 %v2634_v54, 0.0  ;;  %v2638_v5 = vadd.f32 %v2637_v56, %v5625_v4  ;;  %v2641_v31 = vpop.f32.mrb[72].mxu0 }
 0x3fe   : > { %v3218_v55 = vmax.f32 %v2636_v63, 0.0  ;;  %v2642_v4 = vadd.f32 %v2641_v31, %v5649_v48  ;;  %v2643_v26 = vpop.f32.mrb[73].mxu0  ;;  %v3798_v38 = vmax.f32 %v3336_v2, %v3337_v21  ;;  %v6276_v63 = vpop.permute.xlu0 %2050 }
 0x3ff   : > { %3784 = vmax.xlane.f32.xlu1 %v3783_v19  ;;  %v3332_v19 = vmax.f32 %v2922_v20, 0.0  ;;  %v3618_v7 = vmax.f32 %v3216_v47, %v3217_v6  ;;  %v3219_v42 = vmax.f32 %v2638_v5, 0.0  ;;  %v2644_v39 = vadd.f32 %v2643_v26, %v5649_v48  ;;  %v2645_v43 = vpop.f32.mrb[74].mxu0  ;;  %v7027_v5 = vld [vmem:[#allocation24_spill] sm:$0xff]  ;;  %v7030_v26 = vld [vmem:[#allocation57_spill] sm:$0xff]  ;;  %v6290_v21 = vpop.permute.xlu1 %2055 }
 0x400   : > { %v3220_v9 = vmax.f32 %v2642_v4, 0.0  ;;  %v2647_v61 = vpop.f32.mrb[75].mxu0  ;;  %v7029_v4 = vld [vmem:[#allocation20_spill] sm:$0xff] }
 0x401   : > { %3787 = vmax.xlane.f32.xlu0 %v3786_v58  ;;  %v3792_v57 = vmax.f32 %v3332_v19, %v3333_v28  ;;  %v3621_v30 = vmax.f32 %v3218_v55, %v3219_v42  ;;  %v2935_v58 = vpop.f32.mrb[42].mxu1  ;;  %v3221_v36 = vmax.f32 %v2644_v39, 0.0  ;;  %v2651_v6 = vpop.f32.mrb[76].mxu0  ;;  %v7028_v55 = vld [vmem:[#allocation58_spill] sm:$0xff] }
 0x402   : > { %v2936_v44 = vadd.f32 %v2935_v58, %v7026_v3  ;;  %v2937_v20 = vpop.f32.mrb[43].mxu1  ;;  %v2652_v62 = vadd.f32 %v2651_v6, %v7027_v5 }
 0x403   : > { %3616 = vmax.xlane.f32.xlu1 %v3615_v46  ;;  %v7025_v46 = vld [vmem:[#allocation19_spill] sm:$0xff]  ;;  %v2938_v34 = vadd.f32 %v2937_v20, %v7026_v3  ;;  %v3624_v40 = vmax.f32 %v3220_v9, %v3221_v36  ;;  %v2941_v28 = vpop.f32.mrb[44].mxu1  ;;  %v6288_v36 = vpop.permute.xlu0 %2060 }
 0x404   : > { %v2648_v54 = vadd.f32 %v2647_v61, %v7025_v46  ;;  %v3338_v12 = vmax.f32 %v2936_v44, 0.0  ;;  %v2942_v14 = vadd.f32 %v2941_v28, %v7028_v55  ;;  %v3224_v31 = vmax.f32 %v2652_v62, 0.0 }
 0x405   : > { %3619 = vmax.xlane.f32.xlu0 %v3618_v7  ;;  %v3339_v19 = vmax.f32 %v2938_v34, 0.0  ;;  %v2653_v7 = vpop.f32.mrb[77].mxu0 }
 0x406   : > { %v3223_v47 = vmax.f32 %v2648_v54, 0.0  ;;  %v2654_v42 = vadd.f32 %v2653_v7, %v7027_v5  ;;  %v3340_v29 = vmax.f32 %v2942_v14, 0.0  ;;  %v7033_v7 = vld [vmem:[#allocation21_spill] sm:$0xff] }
 0x407   : > { %3790 = vmax.xlane.f32.xlu1 %v3789_v13  ;;  %v2646_v13 = vadd.f32 %v2645_v43, %v7025_v46  ;;  %v3801_v27 = vmax.f32 %v3338_v12, %v3339_v19  ;;  %v7032_v19 = vld [vmem:[#allocation60_spill] sm:$0xff] }
 0x408   : > { %v3225_v43 = vmax.f32 %v2654_v42, 0.0  ;;  %v7034_v42 = vld [vmem:[#allocation59_spill] sm:$0xff] }
 0x409   : > { %3793 = vmax.xlane.f32.xlu0 %v3792_v57  ;;  %v3222_v48 = vmax.f32 %v2646_v13, 0.0  ;;  %v2943_v57 = vpop.f32.mrb[45].mxu1 }
 0x40a   : > { %v2944_v1 = vadd.f32 %v2943_v57, %v7028_v55  ;;  %v3630_v3 = vmax.f32 %v3224_v31, %v3225_v43 }
 0x40b   : > { %3622 = vmax.xlane.f32.xlu1 %v3621_v30  ;;  %v3627_v56 = vmax.f32 %v3222_v48, %v3223_v47  ;;  %v2655_v30 = vpop.f32.mrb[78].mxu0 }
 0x40c   : > { %v2656_v35 = vadd.f32 %v2655_v30, %v7029_v4  ;;  %v2657_v39 = vpop.f32.mrb[79].mxu0  ;;  %v3341_v58 = vmax.f32 %v2944_v1, 0.0 }
 0x40d   : > { %3625 = vmax.xlane.f32.xlu0 %v3624_v40  ;;  %v2658_v9 = vadd.f32 %v2657_v39, %v7029_v4  ;;  %v2661_v48 = vpop.f32.mrb[80].mxu0  ;;  %v7031_v40 = vld [vmem:[#allocation25_spill] sm:$0xff] }
 0x40e   : > { %v3226_v46 = vmax.f32 %v2656_v35, 0.0  ;;  %v3804_v44 = vmax.f32 %v3340_v29, %v3341_v58  ;;  %v2662_v47 = vadd.f32 %v2661_v48, %v7031_v40  ;;  %v7036_v48 = vld [vmem:[#allocation62_spill] sm:$0xff] }
 0x40f   : > { %3796 = vmax.xlane.f32.xlu1 %v3795_v37  ;;  %v2945_v37 = vpop.f32.mrb[46].mxu1  ;;  %v3227_v61 = vmax.f32 %v2658_v9, 0.0  ;;  %v6300_v9 = vpop.permute.xlu0 %2070 }
 0x410   : > { %v2946_v41 = vadd.f32 %v2945_v37, %v7030_v26  ;;  %v2947_v10 = vpop.f32.mrb[47].mxu1  ;;  %v3228_v55 = vmax.f32 %v2662_v47, 0.0 }
 0x411   : > { %v2948_v2 = vadd.f32 %v2947_v10, %v7030_v26  ;;  %3799 = vmax.xlane.f32.xlu0 %v3798_v38  ;;  %v3633_v54 = vmax.f32 %v3226_v46, %v3227_v61  ;;  %v2951_v12 = vpop.f32.mrb[48].mxu1 }
 0x412   : > { %v3342_v13 = vmax.f32 %v2946_v41, 0.0  ;;  %v2952_v38 = vadd.f32 %v2951_v12, %v7032_v19  ;;  %v2953_v6 = vpop.f32.mrb[49].mxu1 }
 0x413   : > { %3628 = vmax.xlane.f32.xlu1 %v3627_v56  ;;  %v3343_v20 = vmax.f32 %v2948_v2, 0.0  ;;  %v2663_v56 = vpop.f32.mrb[81].mxu0  ;;  %v2954_v5 = vadd.f32 %v2953_v6, %v7032_v19  ;;  %v2955_v62 = vpop.f32.mrb[50].mxu1 }
 0x414   : > { %v2664_v28 = vadd.f32 %v2663_v56, %v7031_v40  ;;  %v3344_v14 = vmax.f32 %v2952_v38, 0.0  ;;  %v2956_v1 = vadd.f32 %v2955_v62, %v7034_v42  ;;  %v2957_v37 = vpop.f32.mrb[51].mxu1  ;;  %v6302_v2 = vpop.permute.xlu1 %2065 }
 0x415   : > { %v3807_v34 = vmax.f32 %v3342_v13, %v3343_v20  ;;  %3631 = vmax.xlane.f32.xlu0 %v3630_v3  ;;  %v3345_v29 = vmax.f32 %v2954_v5, 0.0  ;;  %v2958_v35 = vadd.f32 %v2957_v37, %v7034_v42  ;;  %v2961_v61 = vpop.f32.mrb[52].mxu1  ;;  %v7035_v20 = vld [vmem:[#allocation26_spill] sm:$0xff] }
 0x416   : > { %v3229_v31 = vmax.f32 %v2664_v28, 0.0  ;;  %v3346_v41 = vmax.f32 %v2956_v1, 0.0  ;;  %v2963_v40 = vpop.f32.mrb[53].mxu1  ;;  %v7037_v28 = vld [vmem:[#allocation22_spill] sm:$0xff] }
 0x417   : > { %3802 = vmax.xlane.f32.xlu1 %v3801_v27  ;;  %v2665_v27 = vpop.f32.mrb[82].mxu0  ;;  %v3810_v10 = vmax.f32 %v3344_v14, %v3345_v29  ;;  %v3347_v58 = vmax.f32 %v2958_v35, 0.0  ;;  %v2964_v19 = vadd.f32 %v2963_v40, %v7036_v48  ;;  %v2965_v38 = vpop.f32.mrb[54].mxu1 }
 0x418   : > { %v2666_v57 = vadd.f32 %v2665_v27, %v7033_v7  ;;  %v2667_v30 = vpop.f32.mrb[83].mxu0  ;;  %v3636_v39 = vmax.f32 %v3228_v55, %v3229_v31  ;;  %v7038_v27 = vld [vmem:[#allocation61_spill] sm:$0xff]  ;;  %v2967_v14 = vpop.f32.mrb[55].mxu1 }
 0x419   : > { %v2668_v4 = vadd.f32 %v2667_v30, %v7033_v7  ;;  %3805 = vmax.xlane.f32.xlu0 %v3804_v44  ;;  %v3813_v13 = vmax.f32 %v3346_v41, %v3347_v58  ;;  %v2671_v3 = vpop.f32.mrb[84].mxu0  ;;  %v2962_v44 = vadd.f32 %v2961_v61, %v7036_v48  ;;  %v2966_v62 = vadd.f32 %v2965_v38, %v7038_v27  ;;  %v6314_v41 = vpop.permute.xlu1 %2075 }
 0x41a   : > { %v3230_v26 = vmax.f32 %v2666_v57, 0.0  ;;  %v2673_v12 = vpop.f32.mrb[85].mxu0  ;;  %v3349_v57 = vmax.f32 %v2964_v19, 0.0  ;;  %v2968_v1 = vadd.f32 %v2967_v14, %v7038_v27 }
 0x41b   : > { %3634 = vmax.xlane.f32.xlu1 %v3633_v54  ;;  %v3231_v43 = vmax.f32 %v2668_v4, 0.0  ;;  %v2672_v54 = vadd.f32 %v2671_v3, %v7035_v20  ;;  %v2674_v47 = vadd.f32 %v2673_v12, %v7035_v20  ;;  %v3348_v6 = vmax.f32 %v2962_v44, 0.0  ;;  %v7039_v3 = vld [vmem:[#allocation27_spill] sm:$0xff]  ;;  %v7040_v20 = vld [vmem:[#allocation64_spill] sm:$0xff] }
 0x41c   : > { %v3350_v37 = vmax.f32 %v2966_v62, 0.0  ;;  %v3351_v35 = vmax.f32 %v2968_v1, 0.0 }
 0x41d   : > { %v3639_v46 = vmax.f32 %v3230_v26, %v3231_v43  ;;  %3637 = vmax.xlane.f32.xlu0 %v3636_v39  ;;  %v3232_v56 = vmax.f32 %v2672_v54, 0.0  ;;  %v3233_v7 = vmax.f32 %v2674_v47, 0.0  ;;  %v3816_v29 = vmax.f32 %v3348_v6, %v3349_v57  ;;  %v6312_v26 = vpop.permute.xlu0 %2080 }
 0x41e   : > { %v3819_v43 = vmax.f32 %v3350_v37, %v3351_v35 }
 0x41f   : > { %3808 = vmax.xlane.f32.xlu1 %v3807_v34  ;;  %v2675_v34 = vpop.f32.mrb[86].mxu0  ;;  %v3642_v31 = vmax.f32 %v3232_v56, %v3233_v7  ;;  %v7042_v56 = vld [vmem:[#allocation63_spill] sm:$0xff] }
 0x420   : > { %v2676_v5 = vadd.f32 %v2675_v34, %v7037_v28  ;;  %v2677_v55 = vpop.f32.mrb[87].mxu0  ;;  %v7041_v34 = vld [vmem:[#allocation23_spill] sm:$0xff] }
 0x421   : > { %v2678_v42 = vadd.f32 %v2677_v55, %v7037_v28  ;;  %3811 = vmax.xlane.f32.xlu0 %v3810_v10  ;;  %v2681_v58 = vpop.f32.mrb[88].mxu0 }
 0x422   : > { %v3234_v30 = vmax.f32 %v2676_v5, 0.0  ;;  %v2682_v61 = vadd.f32 %v2681_v58, %v7039_v3  ;;  %v2683_v54 = vpop.f32.mrb[89].mxu0 }
 0x423   : > { %3640 = vmax.xlane.f32.xlu1 %v3639_v46  ;;  %v3235_v4 = vmax.f32 %v2678_v42, 0.0  ;;  %v2971_v46 = vpop.f32.mrb[56].mxu1  ;;  %v2684_v44 = vadd.f32 %v2683_v54, %v7039_v3  ;;  %v7043_v3 = vld [vmem:[#allocation29_spill] sm:$0xff] }
 0x424   : > { %v2972_v10 = vadd.f32 %v2971_v46, %v7040_v20  ;;  %v2973_v48 = vpop.f32.mrb[57].mxu1  ;;  %v3236_v47 = vmax.f32 %v2682_v61, 0.0 }
 0x425   : > { %v3645_v39 = vmax.f32 %v3234_v30, %v3235_v4  ;;  %3643 = vmax.xlane.f32.xlu0 %v3642_v31  ;;  %v2974_v12 = vadd.f32 %v2973_v48, %v7040_v20  ;;  %v2975_v40 = vpop.f32.mrb[58].mxu1  ;;  %v3237_v27 = vmax.f32 %v2684_v44, 0.0  ;;  %v6324_v31 = vpop.permute.xlu0 %2090  ;;  %v7044_v20 = vld [vmem:[#allocation66_spill] sm:$0xff] }
 0x426   : > { %v3352_v19 = vmax.f32 %v2972_v10, 0.0  ;;  %v2976_v6 = vadd.f32 %v2975_v40, %v7042_v56  ;;  %v2977_v5 = vpop.f32.mrb[59].mxu1  ;;  %v6326_v4 = vpop.permute.xlu1 %2085 }
 0x427   : > { %3814 = vmax.xlane.f32.xlu1 %v3813_v13  ;;  %v2685_v13 = vpop.f32.mrb[90].mxu0  ;;  %v3353_v62 = vmax.f32 %v2974_v12, 0.0  ;;  %v2978_v14 = vadd.f32 %v2977_v5, %v7042_v56  ;;  %v3648_v42 = vmax.f32 %v3236_v47, %v3237_v27  ;;  %v2981_v46 = vpop.f32.mrb[60].mxu1  ;;  %v7045_v47 = vld [vmem:[#allocation28_spill] sm:$0xff] }
 0x428   : > { %v2686_v38 = vadd.f32 %v2685_v13, %v7041_v34  ;;  %v2687_v28 = vpop.f32.mrb[91].mxu0  ;;  %v3354_v57 = vmax.f32 %v2976_v6, 0.0  ;;  %v2983_v54 = vpop.f32.mrb[61].mxu1 }
 0x429   : > { %v2688_v55 = vadd.f32 %v2687_v28, %v7041_v34  ;;  %3817 = vmax.xlane.f32.xlu0 %v3816_v29  ;;  %v3822_v1 = vmax.f32 %v3352_v19, %v3353_v62  ;;  %v3355_v37 = vmax.f32 %v2978_v14, 0.0  ;;  %v2691_v58 = vpop.f32.mrb[92].mxu0  ;;  %v2982_v29 = vadd.f32 %v2981_v46, %v7044_v20  ;;  %v2985_v12 = vpop.f32.mrb[62].mxu1  ;;  %v7046_v34 = vld [vmem:[#allocation65_spill] sm:$0xff] }
 0x42a   : > { %v3238_v7 = vmax.f32 %v2686_v38, 0.0  ;;  %v2692_v61 = vadd.f32 %v2691_v58, %v7043_v3  ;;  %v2693_v10 = vpop.f32.mrb[93].mxu0  ;;  %v2984_v44 = vadd.f32 %v2983_v54, %v7044_v20  ;;  %v2986_v38 = vadd.f32 %v2985_v12, %v7046_v34  ;;  %v2987_v6 = vpop.f32.mrb[63].mxu1  ;;  %v7047_v20 = vld [vmem:[#allocation31_spill] sm:$0xff] }
 0x42b   : > { %3646 = vmax.xlane.f32.xlu1 %v3645_v39  ;;  %v3239_v30 = vmax.f32 %v2688_v55, 0.0  ;;  %v3825_v39 = vmax.f32 %v3354_v57, %v3355_v37  ;;  %v2694_v48 = vadd.f32 %v2693_v10, %v7043_v3  ;;  %v3356_v40 = vmax.f32 %v2982_v29, 0.0  ;;  %v6336_v37 = vpop.permute.xlu0 %2100  ;;  %v7048_v10 = vld [vmem:[#allocation68_spill] sm:$0xff] }
 0x42c   : > { %v3240_v13 = vmax.f32 %v2692_v61, 0.0  ;;  %v3357_v5 = vmax.f32 %v2984_v44, 0.0  ;;  %v2988_v62 = vadd.f32 %v2987_v6, %v7046_v34  ;;  %v3358_v14 = vmax.f32 %v2986_v38, 0.0  ;;  %v2991_v61 = vpop.f32.mrb[64].mxu1  ;;  %v7050_v34 = vld [vmem:[#allocation67_spill] sm:$0xff] }
 0x42d   : > { %v3651_v35 = vmax.f32 %v3238_v7, %v3239_v30  ;;  %3649 = vmax.xlane.f32.xlu0 %v3648_v42  ;;  %v3241_v28 = vmax.f32 %v2694_v48, 0.0  ;;  %v2993_v48 = vpop.f32.mrb[65].mxu1 }
 0x42e   : > { %v3828_v57 = vmax.f32 %v3356_v40, %v3357_v5  ;;  %v3359_v30 = vmax.f32 %v2988_v62, 0.0  ;;  %v2995_v12 = vpop.f32.mrb[66].mxu1 }
 0x42f   : > { %3820 = vmax.xlane.f32.xlu1 %v3819_v43  ;;  %v2695_v43 = vpop.f32.mrb[94].mxu0  ;;  %v3654_v7 = vmax.f32 %v3240_v13, %v3241_v28  ;;  %v2996_v38 = vadd.f32 %v2995_v12, %v7050_v34  ;;  %v2997_v6 = vpop.f32.mrb[67].mxu1 }
 0x430   : > { %v2696_v19 = vadd.f32 %v2695_v43, %v7045_v47  ;;  %v2697_v56 = vpop.f32.mrb[95].mxu0  ;;  %v3831_v46 = vmax.f32 %v3358_v14, %v3359_v30  ;;  %v2994_v43 = vadd.f32 %v2993_v48, %v7048_v10  ;;  %v2998_v62 = vadd.f32 %v2997_v6, %v7050_v34 }
 0x431   : > { %v2698_v27 = vadd.f32 %v2697_v56, %v7045_v47  ;;  %3823 = vmax.xlane.f32.xlu0 %v3822_v1  ;;  %v2701_v3 = vpop.f32.mrb[96].mxu0  ;;  %v2992_v1 = vadd.f32 %v2991_v61, %v7048_v10  ;;  %v7049_v47 = vld [vmem:[#allocation30_spill] sm:$0xff]  ;;  %v3362_v14 = vmax.f32 %v2996_v38, 0.0 }
 0x432   : > { %v3242_v55 = vmax.f32 %v2696_v19, 0.0  ;;  %v2702_v29 = vadd.f32 %v2701_v3, %v7047_v20  ;;  %v2703_v54 = vpop.f32.mrb[97].mxu0  ;;  %v3361_v5 = vmax.f32 %v2994_v43, 0.0  ;;  %v6348_v3 = vpop.permute.xlu0 %2110 }
 0x433   : > { %3652 = vmax.xlane.f32.xlu1 %v3651_v35  ;;  %v3243_v42 = vmax.f32 %v2698_v27, 0.0  ;;  %v6338_v35 = vpop.permute.xlu1 %2095  ;;  %v2704_v44 = vadd.f32 %v2703_v54, %v7047_v20  ;;  %v3360_v40 = vmax.f32 %v2992_v1, 0.0  ;;  %v3001_v1 = vpop.f32.mrb[68].mxu1  ;;  %v7051_v54 = vld [vmem:[#allocation33_spill] sm:$0xff] }
 0x434   : > { %v3244_v13 = vmax.f32 %v2702_v29, 0.0  ;;  %v3003_v43 = vpop.f32.mrb[69].mxu1 }
 0x435   : > { %v3657_v58 = vmax.f32 %v3242_v55, %v3243_v42  ;;  %3655 = vmax.xlane.f32.xlu0 %v3654_v7  ;;  %v3245_v28 = vmax.f32 %v2704_v44, 0.0  ;;  %v3834_v42 = vmax.f32 %v3360_v40, %v3361_v5  ;;  %v3004_v12 = vadd.f32 %v3003_v43, %v5881_v51 }
 0x437   : > { %3826 = vmax.xlane.f32.xlu1 %v3825_v39  ;;  %v2705_v39 = vpop.f32.mrb[98].mxu0  ;;  %v3660_v7 = vmax.f32 %v3244_v13, %v3245_v28  ;;  %v6350_v61 = vpop.permute.xlu1 %2105  ;;  %v3365_v5 = vmax.f32 %v3004_v12, 0.0 }
 0x438   : > { %v2706_v19 = vadd.f32 %v2705_v39, %v7049_v47  ;;  %v2707_v56 = vpop.f32.mrb[99].mxu0  ;;  %v3005_v13 = vpop.f32.mrb[70].mxu1 }
 0x439   : > { %v2708_v27 = vadd.f32 %v2707_v56, %v7049_v47  ;;  %3829 = vmax.xlane.f32.xlu0 %v3828_v57  ;;  %v2711_v10 = vpop.f32.mrb[100].mxu0  ;;  %v3002_v57 = vadd.f32 %v3001_v1, %v5881_v51  ;;  %v3006_v38 = vadd.f32 %v3005_v13, %v5879_v24  ;;  %v3007_v6 = vpop.f32.mrb[71].mxu1 }
 0x43a   : > { %v3246_v55 = vmax.f32 %v2706_v19, 0.0  ;;  %v2712_v48 = vadd.f32 %v2711_v10, %v7051_v54  ;;  %v2713_v44 = vpop.f32.mrb[101].mxu0  ;;  %v7052_v19 = vld [vmem:[#allocation32_spill] sm:$0xff] }
 0x43b   : > { %3658 = vmax.xlane.f32.xlu1 %v3657_v58  ;;  %v3247_v30 = vmax.f32 %v2708_v27, 0.0  ;;  %v3363_v58 = vmax.f32 %v2998_v62, 0.0  ;;  %v2714_v39 = vadd.f32 %v2713_v44, %v7051_v54  ;;  %v3364_v47 = vmax.f32 %v3002_v57, 0.0  ;;  %v6363_v10 = vpop.permute.xlu1 %2115  ;;  %v3011_v57 = vpop.f32.mrb[72].mxu1 }
 0x43c   : > { %v3248_v40 = vmax.f32 %v2712_v48, 0.0  ;;  %v3008_v62 = vadd.f32 %v3007_v6, %v5879_v24  ;;  %v7053_v24 = vld [vmem:[#allocation35_spill] sm:$0xff]  ;;  %v3012_v44 = vadd.f32 %v3011_v57, %v5896_v32 }
 0x43d   : > { %v3663_v20 = vmax.f32 %v3246_v55, %v3247_v30  ;;  %v3837_v29 = vmax.f32 %v3362_v14, %v3363_v58  ;;  %3661 = vmax.xlane.f32.xlu0 %v3660_v7  ;;  %v3249_v28 = vmax.f32 %v2714_v39, 0.0  ;;  %v3366_v55 = vmax.f32 %v3006_v38, 0.0  ;;  %v3013_v39 = vpop.f32.mrb[73].mxu1 }
 0x43e   : > { %v3840_v7 = vmax.f32 %v3364_v47, %v3365_v5  ;;  %v3367_v58 = vmax.f32 %v3008_v62, 0.0  ;;  %v3014_v12 = vadd.f32 %v3013_v39, %v5896_v32  ;;  %v3015_v13 = vpop.f32.mrb[74].mxu1  ;;  %v3368_v47 = vmax.f32 %v3012_v44, 0.0  ;;  %v3494_v32 = vld [vmem:[#allocation2 + $0x1d0] sm:$0xff] }
 0x43f   : > { %3832 = vmax.xlane.f32.xlu1 %v3831_v46  ;;  %v2715_v46 = vpop.f32.mrb[102].mxu0  ;;  %v3666_v14 = vmax.f32 %v3248_v40, %v3249_v28  ;;  %v3016_v38 = vadd.f32 %v3015_v13, %v5894_v25  ;;  %v3017_v6 = vpop.f32.mrb[75].mxu1 }
 0x440   : > { %v2716_v34 = vadd.f32 %v2715_v46, %v7052_v19  ;;  %v2717_v56 = vpop.f32.mrb[103].mxu0  ;;  %v3843_v54 = vmax.f32 %v3366_v55, %v3367_v58  ;;  %v3369_v5 = vmax.f32 %v3014_v12, 0.0  ;;  %v3018_v62 = vadd.f32 %v3017_v6, %v5894_v25  ;;  %v3566_v58 = vpop.xlane.xlu1 %3565  ;;  %v3495_v12 = vld [vmem:[#allocation2 + $0x1d8] sm:$0xff] }
 0x441   : > { %v2718_v27 = vadd.f32 %v2717_v56, %v7052_v19  ;;  %3835 = vmax.xlane.f32.xlu0 %v3834_v42  ;;  %v2721_v48 = vpop.f32.mrb[104].mxu0  ;;  %v7054_v19 = vld [vmem:[#allocation34_spill] sm:$0xff] }
 0x442   : > { %v3250_v51 = vmax.f32 %v2716_v34, 0.0  ;;  %v2722_v42 = vadd.f32 %v2721_v48, %v7053_v24  ;;  %v2723_v43 = vpop.f32.mrb[105].mxu0  ;;  %v3846_v48 = vmax.f32 %v3368_v47, %v3369_v5 }
 0x443   : > { %3664 = vmax.xlane.f32.xlu1 %v3663_v20  ;;  %v3251_v30 = vmax.f32 %v2718_v27, 0.0  ;;  %v6361_v20 = vpop.permute.xlu0 %2120  ;;  %v2725_v46 = vpop.f32.mrb[106].mxu0 }
 0x444   : > { %v3252_v40 = vmax.f32 %v2722_v42, 0.0  ;;  %v2726_v34 = vadd.f32 %v2725_v46, %v7054_v19  ;;  %v2727_v56 = vpop.f32.mrb[107].mxu0  ;;  %v7055_v46 = vld [vmem:[#allocation37_spill] sm:$0xff] }
 0x445   : > { %v3669_v1 = vmax.f32 %v3250_v51, %v3251_v30  ;;  %3667 = vmax.xlane.f32.xlu0 %v3666_v14  ;;  %v2728_v27 = vadd.f32 %v2727_v56, %v7054_v19  ;;  %v3436_v51 = vld [vmem:[#allocation2] sm:$0xff]  ;;  %v3370_v14 = vmax.f32 %v3016_v38, 0.0  ;;  %v2731_v25 = vpop.f32.mrb[108].mxu0  ;;  %v3743_v56 = vpop.xlane.xlu1 %3742 }
 0x446   : > { %v3254_v55 = vmax.f32 %v2726_v34, 0.0  ;;  %v3948_v44 = vmax.f32 %v3436_v51, %v3566_v58  ;;  %v2732_v13 = vadd.f32 %v2731_v25, %v7055_v46 }
 0x447   : > { %3838 = vmax.xlane.f32.xlu1 %v3837_v29  ;;  %v2724_v29 = vadd.f32 %v2723_v43, %v7053_v24  ;;  %v3740_v30 = vpop.xlane.xlu0 %3739  ;;  %v3255_v57 = vmax.f32 %v2728_v27, 0.0  ;;  %v3371_v24 = vmax.f32 %v3018_v62, 0.0  ;;  %v4007_v27 = vmax.f32 %v3495_v12, %v3743_v56 }
 0x448   : > { %v4006_v42 = vmax.f32 %v3494_v32, %v3740_v30  ;;  %4077 = vst.msk [vmem:[#allocation2] sm:$0xff] %vm424_vm1, %v3948_v44  ;;  %v3256_v6 = vmax.f32 %v2732_v13, 0.0  ;;  %v3439_v44 = vld [vmem:[#allocation2 + $0x18] sm:$0xff] }
 0x449   : > { %v3253_v28 = vmax.f32 %v2724_v29, 0.0  ;;  %3841 = vmax.xlane.f32.xlu0 %v3840_v7  ;;  %v3675_v43 = vmax.f32 %v3254_v55, %v3255_v57  ;;  %v3849_v39 = vmax.f32 %v3370_v14, %v3371_v24  ;;  %v3021_v7 = vpop.f32.mrb[76].mxu1  ;;  %v3437_v29 = vld [vmem:[#allocation2 + $0x8] sm:$0xff]  ;;  %4136 = vst.msk [vmem:[#allocation2 + $0x1d8] sm:$0xff] %vm424_vm1, %v4007_v27 }
 0x44a   : > { %4135 = vst.msk [vmem:[#allocation2 + $0x1d0] sm:$0xff] %vm424_vm1, %v4006_v42  ;;  %v3023_v47 = vpop.f32.mrb[77].mxu1  ;;  %v7056_v14 = vld [vmem:[#allocation36_spill] sm:$0xff] }
 0x44b   : > { %3670 = vmax.xlane.f32.xlu1 %v3669_v1  ;;  %v3672_v1 = vmax.f32 %v3252_v40, %v3253_v28  ;;  %v2733_v40 = vpop.f32.mrb[109].mxu0  ;;  %v3024_v34 = vadd.f32 %v3023_v47, %v6178_v49  ;;  %v3569_v38 = vpop.xlane.xlu0 %3568 }
 0x44c   : > { %v2734_v19 = vadd.f32 %v2733_v40, %v7055_v46  ;;  %v3949_v5 = vmax.f32 %v3437_v29, %v3569_v38  ;;  %v2735_v62 = vpop.f32.mrb[110].mxu0  ;;  %v3025_v32 = vpop.f32.mrb[78].mxu1  ;;  %v3496_v38 = vld [vmem:[#allocation2 + $0x1e0] sm:$0xff] }
 0x44d   : > { %3673 = vmax.xlane.f32.xlu0 %v3672_v1  ;;  %v3373_v55 = vmax.f32 %v3024_v34, 0.0  ;;  %v2736_v30 = vadd.f32 %v2735_v62, %v7056_v14  ;;  %v3026_v58 = vadd.f32 %v3025_v32, %v6176_v33  ;;  %v2737_v1 = vpop.f32.mrb[111].mxu0  ;;  %v3027_v57 = vpop.f32.mrb[79].mxu1 }
 0x44e   : > { %v3257_v51 = vmax.f32 %v2734_v19, 0.0  ;;  %4078 = vst.msk [vmem:[#allocation2 + $0x8] sm:$0xff] %vm424_vm1, %v3949_v5  ;;  %v2738_v24 = vadd.f32 %v2737_v1, %v7056_v14  ;;  %v3028_v42 = vadd.f32 %v3027_v57, %v6176_v33  ;;  %v2741_v19 = vpop.f32.mrb[112].mxu0  ;;  %v3031_v34 = vpop.f32.mrb[80].mxu1 }
 0x44f   : > { %3844 = vmax.xlane.f32.xlu1 %v3843_v54  ;;  %v3022_v54 = vadd.f32 %v3021_v7, %v6178_v49  ;;  %v3438_v49 = vld [vmem:[#allocation2 + $0x10] sm:$0xff]  ;;  %v3258_v7 = vmax.f32 %v2736_v30, 0.0  ;;  %v3572_v29 = vpop.xlane.xlu0 %3571  ;;  %v4208_v33 = vld [vmem:[#allocation2] sm:$0xff]  ;;  %v3032_v5 = vadd.f32 %v3031_v34, %v6191_v8  ;;  %v2743_v27 = vpop.f32.mrb[113].mxu0  ;;  %v3497_v30 = vld [vmem:[#allocation2 + $0x1e8] sm:$0xff] }
 0x450   : > { %v3259_v12 = vmax.f32 %v2738_v24, 0.0  ;;  %v3375_v46 = vmax.f32 %v3028_v42, 0.0  ;;  %v3950_v13 = vmax.f32 %v3438_v49, %v3572_v29  ;;  %4336 = vst.msk [vmem:[%s6398_s11] sm:$0xff] %vm424_vm1, %v4208_v33  ;;  %v3033_v62 = vpop.f32.mrb[81].mxu1  ;;  %v2745_v14 = vpop.f32.mrb[114].mxu0  ;;  %v7058_v49 = vld [vmem:[#allocation38_spill] sm:$0xff] }
 0x451   : > { %v3372_v28 = vmax.f32 %v3022_v54, 0.0  ;;  %3847 = vmax.xlane.f32.xlu0 %v3846_v48  ;;  %v3374_v48 = vmax.f32 %v3026_v58, 0.0  ;;  %v3575_v54 = vpop.xlane.xlu1 %3574  ;;  %v4266_v40 = vld [vmem:[#allocation2 + $0x1d0] sm:$0xff]  ;;  %v3376_v1 = vmax.f32 %v3032_v5, 0.0  ;;  %v2746_v24 = vadd.f32 %v2745_v14, %v7058_v49  ;;  %v3035_v42 = vpop.f32.mrb[82].mxu1 }
 0x452   : > { %v3951_v47 = vmax.f32 %v3439_v44, %v3575_v54  ;;  %4394 = vst.msk [vmem:[%s6398_s11 + $0x1d0] sm:$0xff] %vm424_vm1, %v4266_v40  ;;  %v3681_v56 = vmax.f32 %v3258_v7, %v3259_v12  ;;  %4079 = vst.msk [vmem:[#allocation2 + $0x10] sm:$0xff] %vm424_vm1, %v3950_v13  ;;  %v2747_v44 = vpop.f32.mrb[115].mxu0  ;;  %v4267_v7 = vld [vmem:[#allocation2 + $0x1d8] sm:$0xff]  ;;  %v3036_v12 = vadd.f32 %v3035_v42, %v6189_v53  ;;  %v3440_v54 = vld [vmem:[#allocation2 + $0x20] sm:$0xff] }
 0x453   : > { %3676 = vmax.xlane.f32.xlu1 %v3675_v43  ;;  %v3678_v43 = vmax.f32 %v3256_v6, %v3257_v51  ;;  %v3852_v25 = vmax.f32 %v3372_v28, %v3373_v55  ;;  %v3855_v6 = vmax.f32 %v3374_v48, %v3375_v46  ;;  %v3034_v51 = vadd.f32 %v3033_v62, %v6191_v8  ;;  %v3746_v55 = vpop.xlane.xlu0 %3745  ;;  %v3037_v46 = vpop.f32.mrb[83].mxu1 }
 0x454   : > { %4080 = vst.msk [vmem:[#allocation2 + $0x18] sm:$0xff] %vm424_vm1, %v3951_v47  ;;  %v4008_v57 = vmax.f32 %v3496_v38, %v3746_v55  ;;  %v2748_v8 = vadd.f32 %v2747_v44, %v7058_v49  ;;  %4395 = vst.msk [vmem:[%s6398_s11 + $0x1d8] sm:$0xff] %vm424_vm1, %v4267_v7  ;;  %v3262_v40 = vmax.f32 %v2746_v24, 0.0  ;;  %v3038_v33 = vadd.f32 %v3037_v46, %v6189_v53  ;;  %v3498_v53 = vld [vmem:[#allocation2 + $0x1f0] sm:$0xff] }
 0x455   : > { %3679 = vmax.xlane.f32.xlu0 %v3678_v43  ;;  %v4209_v43 = vld [vmem:[#allocation2 + $0x8] sm:$0xff]  ;;  %v3377_v29 = vmax.f32 %v3034_v51, 0.0  ;;  %v3749_v13 = vpop.xlane.xlu1 %3748  ;;  %v3378_v38 = vmax.f32 %v3036_v12, 0.0  ;;  %v2751_v51 = vpop.f32.mrb[116].mxu0 }
 0x456   : > { %4337 = vst.msk [vmem:[%s6398_s11 + $0x8] sm:$0xff] %vm424_vm1, %v4209_v43  ;;  %4137 = vst.msk [vmem:[#allocation2 + $0x1e0] sm:$0xff] %vm424_vm1, %v4008_v57  ;;  %v4009_v47 = vmax.f32 %v3497_v30, %v3749_v13  ;;  %v3379_v5 = vmax.f32 %v3038_v33, 0.0  ;;  %v3041_v57 = vpop.f32.mrb[84].mxu1  ;;  %v2753_v49 = vpop.f32.mrb[117].mxu0 }
 0x457   : > { %3850 = vmax.xlane.f32.xlu1 %v3849_v39  ;;  %v7057_v39 = vld [vmem:[#allocation39_spill] sm:$0xff]  ;;  %v3858_v34 = vmax.f32 %v3376_v1, %v3377_v29  ;;  %v3043_v42 = vpop.f32.mrb[85].mxu1  ;;  %v2755_v29 = vpop.f32.mrb[118].mxu0 }
 0x458   : > { %v2742_v28 = vadd.f32 %v2741_v19, %v7057_v39  ;;  %v2744_v32 = vadd.f32 %v2743_v27, %v7057_v39  ;;  %v3578_v39 = vpop.xlane.xlu0 %3577  ;;  %4138 = vst.msk [vmem:[#allocation2 + $0x1e8] sm:$0xff] %vm424_vm1, %v4009_v47  ;;  %v3861_v14 = vmax.f32 %v3378_v38, %v3379_v5  ;;  %v3044_v7 = vadd.f32 %v3043_v42, %v6204_v60  ;;  %v3045_v12 = vpop.f32.mrb[86].mxu1 }
 0x459   : > { %3853 = vmax.xlane.f32.xlu0 %v3852_v25  ;;  %v3952_v25 = vmax.f32 %v3440_v54, %v3578_v39  ;;  %v4210_v27 = vld [vmem:[#allocation2 + $0x10] sm:$0xff]  ;;  %v3046_v47 = vadd.f32 %v3045_v12, %v6202_v18  ;;  %v3047_v38 = vpop.f32.mrb[87].mxu1 }
 0x45a   : > { %v3260_v58 = vmax.f32 %v2742_v28, 0.0  ;;  %v3261_v48 = vmax.f32 %v2744_v32, 0.0  ;;  %v3441_v28 = vld [vmem:[#allocation2 + $0x28] sm:$0xff]  ;;  %v3581_v32 = vpop.xlane.xlu1 %3580  ;;  %4338 = vst.msk [vmem:[%s6398_s11 + $0x10] sm:$0xff] %vm424_vm1, %v4210_v27 }
 0x45b   : > { %3682 = vmax.xlane.f32.xlu1 %v3681_v56  ;;  %v3263_v56 = vmax.f32 %v2748_v8, 0.0  ;;  %v4211_v55 = vld [vmem:[#allocation2 + $0x18] sm:$0xff]  ;;  %4081 = vst.msk [vmem:[#allocation2 + $0x20] sm:$0xff] %vm424_vm1, %v3952_v25  ;;  %v3953_v30 = vmax.f32 %v3441_v28, %v3581_v32  ;;  %v3048_v28 = vadd.f32 %v3047_v38, %v6202_v18  ;;  %v3382_v32 = vmax.f32 %v3046_v47, 0.0 }
 0x45c   : > { %v3684_v19 = vmax.f32 %v3260_v58, %v3261_v48  ;;  %v7059_v58 = vld [vmem:[#allocation41_spill] sm:$0xff]  ;;  %4339 = vst.msk [vmem:[%s6398_s11 + $0x18] sm:$0xff] %vm424_vm1, %v4211_v55  ;;  %v3752_v44 = vpop.xlane.xlu0 %3751  ;;  %v3499_v8 = vld [vmem:[#allocation2 + $0x1f8] sm:$0xff] }
 0x45d   : > { %v3687_v62 = vmax.f32 %v3262_v40, %v3263_v56  ;;  %v2752_v1 = vadd.f32 %v2751_v51, %v7059_v58  ;;  %v2754_v24 = vadd.f32 %v2753_v49, %v7059_v58  ;;  %4082 = vst.msk [vmem:[#allocation2 + $0x28] sm:$0xff] %vm424_vm1, %v3953_v30  ;;  %v4010_v48 = vmax.f32 %v3498_v53, %v3752_v44  ;;  %v4268_v46 = vld [vmem:[#allocation2 + $0x1e0] sm:$0xff]  ;;  %v7060_v40 = vld [vmem:[#allocation40_spill] sm:$0xff]  ;;  %v3442_v56 = vld [vmem:[#allocation2 + $0x30] sm:$0xff]  ;;  %v3051_v49 = vpop.f32.mrb[88].mxu1 }
 0x45e   : > { %3685 = vmax.xlane.f32.xlu0 %v3684_v19  ;;  %v2756_v33 = vadd.f32 %v2755_v29, %v7060_v40  ;;  %v2757_v19 = vpop.f32.mrb[119].mxu0  ;;  %4396 = vst.msk [vmem:[%s6398_s11 + $0x1e0] sm:$0xff] %vm424_vm1, %v4268_v46  ;;  %v3383_v30 = vmax.f32 %v3048_v28, 0.0  ;;  %v3053_v46 = vpop.f32.mrb[89].mxu1  ;;  %v7062_v28 = vld [vmem:[#allocation42_spill] sm:$0xff] }
 0x45f   : > { %3856 = vmax.xlane.f32.xlu1 %v3855_v6  ;;  %v3042_v6 = vadd.f32 %v3041_v57, %v6204_v60  ;;  %v3264_v43 = vmax.f32 %v2752_v1, 0.0  ;;  %v3265_v54 = vmax.f32 %v2754_v24, 0.0  ;;  %v3381_v60 = vmax.f32 %v3044_v7, 0.0  ;;  %4139 = vst.msk [vmem:[#allocation2 + $0x1f0] sm:$0xff] %vm424_vm1, %v4010_v48  ;;  %v4269_v25 = vld [vmem:[#allocation2 + $0x1e8] sm:$0xff]  ;;  %v3443_v1 = vld [vmem:[#allocation2 + $0x38] sm:$0xff] }
 0x460   : > { %v2758_v39 = vadd.f32 %v2757_v19, %v7060_v40  ;;  %v3584_v53 = vpop.xlane.xlu0 %3583  ;;  %4397 = vst.msk [vmem:[%s6398_s11 + $0x1e8] sm:$0xff] %vm424_vm1, %v4269_v25  ;;  %v2761_v18 = vpop.f32.mrb[120].mxu0  ;;  %v3867_v42 = vmax.f32 %v3382_v32, %v3383_v30  ;;  %v3444_v32 = vld [vmem:[#allocation2 + $0x40] sm:$0xff] }
 0x461   : > { %v3380_v13 = vmax.f32 %v3042_v6, 0.0  ;;  %v3690_v27 = vmax.f32 %v3264_v43, %v3265_v54  ;;  %v3954_v58 = vmax.f32 %v3442_v56, %v3584_v53  ;;  %v3500_v6 = vld [vmem:[#allocation2 + $0x200] sm:$0xff]  ;;  %v2763_v48 = vpop.f32.mrb[121].mxu0  ;;  %v3055_v38 = vpop.f32.mrb[90].mxu1  ;;  %v3501_v56 = vld [vmem:[#allocation2 + $0x208] sm:$0xff] }
 0x462   : > { %3859 = vmax.xlane.f32.xlu0 %v3858_v34  ;;  %v3267_v55 = vmax.f32 %v2758_v39, 0.0  ;;  %v4212_v57 = vld [vmem:[#allocation2 + $0x20] sm:$0xff]  ;;  %v2765_v19 = vpop.f32.mrb[122].mxu0  ;;  %v3056_v25 = vadd.f32 %v3055_v38, %v6215_v50 }
 0x463   : > { %3688 = vmax.xlane.f32.xlu1 %v3687_v62  ;;  %v3266_v62 = vmax.f32 %v2756_v33, 0.0  ;;  %v3864_v34 = vmax.f32 %v3380_v13, %v3381_v60  ;;  %4340 = vst.msk [vmem:[%s6398_s11 + $0x20] sm:$0xff] %vm424_vm1, %v4212_v57  ;;  %4083 = vst.msk [vmem:[#allocation2 + $0x30] sm:$0xff] %vm424_vm1, %v3954_v58  ;;  %v7061_v43 = vld [vmem:[#allocation43_spill] sm:$0xff]  ;;  %v3054_v33 = vadd.f32 %v3053_v46, %v6217_v45  ;;  %v7063_v46 = vld [vmem:[#allocation45_spill] sm:$0xff] }
 0x464   : > { %v3755_v5 = vpop.xlane.xlu1 %3754  ;;  %v2762_v7 = vadd.f32 %v2761_v18, %v7061_v43  ;;  %v4213_v29 = vld [vmem:[#allocation2 + $0x28] sm:$0xff]  ;;  %v3758_v13 = vpop.xlane.xlu0 %3757 }
 0x465   : > { %v4011_v51 = vmax.f32 %v3499_v8, %v3755_v5  ;;  %v3693_v24 = vmax.f32 %v3266_v62, %v3267_v55  ;;  %v2764_v8 = vadd.f32 %v2763_v48, %v7061_v43  ;;  %4341 = vst.msk [vmem:[%s6398_s11 + $0x28] sm:$0xff] %vm424_vm1, %v4213_v29  ;;  %v4012_v47 = vmax.f32 %v3500_v6, %v3758_v13  ;;  %v3057_v62 = vpop.f32.mrb[91].mxu1  ;;  %v3445_v43 = vld [vmem:[#allocation2 + $0x48] sm:$0xff]  ;;  %v3502_v48 = vld [vmem:[#allocation2 + $0x210] sm:$0xff] }
 0x466   : > { %3691 = vmax.xlane.f32.xlu0 %v3690_v27  ;;  %v3268_v54 = vmax.f32 %v2762_v7, 0.0  ;;  %v4270_v60 = vld [vmem:[#allocation2 + $0x1f0] sm:$0xff]  ;;  %v2766_v5 = vadd.f32 %v2765_v19, %v7062_v28  ;;  %v2767_v27 = vpop.f32.mrb[123].mxu0  ;;  %v3058_v53 = vadd.f32 %v3057_v62, %v6215_v50 }
 0x467   : > { %3862 = vmax.xlane.f32.xlu1 %v3861_v14  ;;  %4140 = vst.msk [vmem:[#allocation2 + $0x1f8] sm:$0xff] %vm424_vm1, %v4011_v51  ;;  %v3052_v14 = vadd.f32 %v3051_v49, %v6217_v45  ;;  %v3269_v39 = vmax.f32 %v2764_v8, 0.0  ;;  %4398 = vst.msk [vmem:[%s6398_s11 + $0x1f0] sm:$0xff] %vm424_vm1, %v4270_v60  ;;  %v3385_v45 = vmax.f32 %v3054_v33, 0.0  ;;  %v2768_v51 = vadd.f32 %v2767_v27, %v7062_v28  ;;  %v2771_v50 = vpop.f32.mrb[124].mxu0  ;;  %v3503_v27 = vld [vmem:[#allocation2 + $0x218] sm:$0xff] }
 0x468   : > { %v3587_v44 = vpop.xlane.xlu1 %3586  ;;  %4141 = vst.msk [vmem:[#allocation2 + $0x200] sm:$0xff] %vm424_vm1, %v4012_v47  ;;  %v3270_v58 = vmax.f32 %v2766_v5, 0.0  ;;  %v2772_v13 = vadd.f32 %v2771_v50, %v7063_v46 }
 0x469   : > { %v3955_v12 = vmax.f32 %v3443_v1, %v3587_v44  ;;  %v3384_v40 = vmax.f32 %v3052_v14, 0.0  ;;  %v3696_v30 = vmax.f32 %v3268_v54, %v3269_v39  ;;  %v3386_v1 = vmax.f32 %v3056_v25, 0.0  ;;  %v3061_v14 = vpop.f32.mrb[92].mxu1  ;;  %v2773_v54 = vpop.f32.mrb[125].mxu0 }
 0x46a   : > { %3865 = vmax.xlane.f32.xlu0 %v3864_v34  ;;  %v3590_v18 = vpop.xlane.xlu0 %3589  ;;  %v3271_v6 = vmax.f32 %v2768_v51, 0.0  ;;  %v4214_v7 = vld [vmem:[#allocation2 + $0x30] sm:$0xff]  ;;  %v2774_v33 = vadd.f32 %v2773_v54, %v7063_v46  ;;  %v3063_v47 = vpop.f32.mrb[93].mxu1 }
 0x46b   : > { %3694 = vmax.xlane.f32.xlu1 %v3693_v24  ;;  %4084 = vst.msk [vmem:[#allocation2 + $0x38] sm:$0xff] %vm424_vm1, %v3955_v12  ;;  %v3870_v34 = vmax.f32 %v3384_v40, %v3385_v45  ;;  %v3387_v24 = vmax.f32 %v3058_v53, 0.0  ;;  %v3956_v44 = vmax.f32 %v3444_v32, %v3590_v18  ;;  %4342 = vst.msk [vmem:[%s6398_s11 + $0x30] sm:$0xff] %vm424_vm1, %v4214_v7  ;;  %v2775_v5 = vpop.f32.mrb[126].mxu0  ;;  %v3065_v25 = vpop.f32.mrb[94].mxu1  ;;  %v7064_v45 = vld [vmem:[#allocation44_spill] sm:$0xff] }
 0x46c   : > { %v3761_v55 = vpop.xlane.xlu1 %3760  ;;  %v3699_v29 = vmax.f32 %v3270_v58, %v3271_v6  ;;  %v3064_v39 = vadd.f32 %v3063_v47, %v6230_v59  ;;  %v3273_v32 = vmax.f32 %v2774_v33, 0.0  ;;  %v2776_v51 = vadd.f32 %v2775_v5, %v7064_v45  ;;  %v7065_v33 = vld [vmem:[#allocation47_spill] sm:$0xff] }
 0x46d   : > { %v4013_v57 = vmax.f32 %v3501_v56, %v3761_v55  ;;  %v3873_v12 = vmax.f32 %v3386_v1, %v3387_v24  ;;  %4085 = vst.msk [vmem:[#allocation2 + $0x40] sm:$0xff] %vm424_vm1, %v3956_v44  ;;  %v3272_v56 = vmax.f32 %v2772_v13, 0.0  ;;  %v3066_v53 = vadd.f32 %v3065_v25, %v6228_v11  ;;  %v2777_v55 = vpop.f32.mrb[127].mxu0  ;;  %v3504_v13 = vld [vmem:[#allocation2 + $0x220] sm:$0xff] }
 0x46e   : > { %v4271_v49 = vld [vmem:[#allocation2 + $0x1f8] sm:$0xff]  ;;  %3697 = vmax.xlane.f32.xlu0 %v3696_v30  ;;  %v3764_v19 = vpop.xlane.xlu0 %3763  ;;  %v3067_v30 = vpop.f32.mrb[95].mxu1  ;;  %v3389_v58 = vmax.f32 %v3064_v39, 0.0  ;;  %v2778_v1 = vadd.f32 %v2777_v55, %v7064_v45  ;;  %v3274_v6 = vmax.f32 %v2776_v51, 0.0  ;;  %v3505_v51 = vld [vmem:[#allocation2 + $0x228] sm:$0xff] }
 0x46f   : > { %3868 = vmax.xlane.f32.xlu1 %v3867_v42  ;;  %4399 = vst.msk [vmem:[%s6398_s11 + $0x1f8] sm:$0xff] %vm424_vm1, %v4271_v49  ;;  %4142 = vst.msk [vmem:[#allocation2 + $0x208] sm:$0xff] %vm424_vm1, %v4013_v57  ;;  %v3062_v42 = vadd.f32 %v3061_v14, %v6230_v59  ;;  %v4014_v28 = vmax.f32 %v3502_v48, %v3764_v19  ;;  %v4272_v62 = vld [vmem:[#allocation2 + $0x200] sm:$0xff]  ;;  %v3446_v59 = vld [vmem:[#allocation2 + $0x50] sm:$0xff]  ;;  %v3068_v57 = vadd.f32 %v3067_v30, %v6228_v11  ;;  %v2781_v11 = vpop.f32.mrb[128].mxu0  ;;  %v3071_v46 = vpop.f32.mrb[96].mxu1 }
 0x470   : > { %v3593_v8 = vpop.xlane.xlu1 %3592  ;;  %4400 = vst.msk [vmem:[%s6398_s11 + $0x200] sm:$0xff] %vm424_vm1, %v4272_v62  ;;  %v3702_v49 = vmax.f32 %v3272_v56, %v3273_v32  ;;  %v3390_v24 = vmax.f32 %v3066_v53, 0.0  ;;  %v3275_v50 = vmax.f32 %v2778_v1, 0.0  ;;  %v2782_v47 = vadd.f32 %v2781_v11, %v7065_v33  ;;  %v2783_v19 = vpop.f32.mrb[129].mxu0  ;;  %v7066_v30 = vld [vmem:[#allocation46_spill] sm:$0xff] }
 0x471   : > { %v3957_v40 = vmax.f32 %v3445_v43, %v3593_v8  ;;  %v3388_v60 = vmax.f32 %v3062_v42, 0.0  ;;  %4143 = vst.msk [vmem:[#allocation2 + $0x210] sm:$0xff] %vm424_vm1, %v4014_v28  ;;  %v3391_v14 = vmax.f32 %v3068_v57, 0.0  ;;  %v2784_v56 = vadd.f32 %v2783_v19, %v7065_v33  ;;  %v2785_v32 = vpop.f32.mrb[130].mxu0  ;;  %v7067_v19 = vld [vmem:[#allocation49_spill] sm:$0xff] }
 0x472   : > { %v4215_v38 = vld [vmem:[#allocation2 + $0x38] sm:$0xff]  ;;  %3871 = vmax.xlane.f32.xlu0 %v3870_v34  ;;  %v3596_v43 = vpop.xlane.xlu0 %3595  ;;  %v3705_v42 = vmax.f32 %v3274_v6, %v3275_v50  ;;  %v3276_v5 = vmax.f32 %v2782_v47, 0.0  ;;  %v2787_v1 = vpop.f32.mrb[131].mxu0 }
 0x473   : > { %3700 = vmax.xlane.f32.xlu1 %v3699_v29  ;;  %4343 = vst.msk [vmem:[%s6398_s11 + $0x38] sm:$0xff] %vm424_vm1, %v4215_v38  ;;  %4086 = vst.msk [vmem:[#allocation2 + $0x48] sm:$0xff] %vm424_vm1, %v3957_v40  ;;  %v3876_v34 = vmax.f32 %v3388_v60, %v3389_v58  ;;  %v3958_v48 = vmax.f32 %v3446_v59, %v3596_v43  ;;  %v3447_v29 = vld [vmem:[#allocation2 + $0x58] sm:$0xff]  ;;  %v3879_v54 = vmax.f32 %v3390_v24, %v3391_v14  ;;  %v3073_v60 = vpop.f32.mrb[97].mxu1 }
 0x474   : > { %v3767_v18 = vpop.xlane.xlu1 %3766  ;;  %v4216_v8 = vld [vmem:[#allocation2 + $0x40] sm:$0xff]  ;;  %v3075_v45 = vpop.f32.mrb[98].mxu1  ;;  %v3277_v55 = vmax.f32 %v2784_v56, 0.0  ;;  %v2786_v59 = vadd.f32 %v2785_v32, %v7066_v30 }
 0x475   : > { %v4015_v44 = vmax.f32 %v3503_v27, %v3767_v18  ;;  %4344 = vst.msk [vmem:[%s6398_s11 + $0x40] sm:$0xff] %vm424_vm1, %v4216_v8  ;;  %4087 = vst.msk [vmem:[#allocation2 + $0x50] sm:$0xff] %vm424_vm1, %v3958_v48  ;;  %v3074_v27 = vadd.f32 %v3073_v60, %v6242_v17  ;;  %v3076_v58 = vadd.f32 %v3075_v45, %v6240_v15  ;;  %v3077_v57 = vpop.f32.mrb[99].mxu1 }
 0x476   : > { %v4273_v7 = vld [vmem:[#allocation2 + $0x208] sm:$0xff]  ;;  %3703 = vmax.xlane.f32.xlu0 %v3702_v49  ;;  %v3770_v39 = vpop.xlane.xlu0 %3769  ;;  %v2788_v49 = vadd.f32 %v2787_v1, %v7066_v30  ;;  %v3078_v6 = vadd.f32 %v3077_v57, %v6240_v15  ;;  %v3278_v43 = vmax.f32 %v2786_v59, 0.0  ;;  %v2791_v15 = vpop.f32.mrb[132].mxu0 }
 0x477   : > { %3874 = vmax.xlane.f32.xlu1 %v3873_v12  ;;  %4401 = vst.msk [vmem:[%s6398_s11 + $0x208] sm:$0xff] %vm424_vm1, %v4273_v7  ;;  %4144 = vst.msk [vmem:[#allocation2 + $0x218] sm:$0xff] %vm424_vm1, %v4015_v44  ;;  %v3072_v12 = vadd.f32 %v3071_v46, %v6242_v17  ;;  %v4016_v62 = vmax.f32 %v3504_v13, %v3770_v39  ;;  %v3448_v17 = vld [vmem:[#allocation2 + $0x60] sm:$0xff]  ;;  %v3393_v18 = vmax.f32 %v3074_v27, 0.0  ;;  %v3394_v7 = vmax.f32 %v3076_v58, 0.0  ;;  %v3449_v46 = vld [vmem:[#allocation2 + $0x68] sm:$0xff] }
 0x478   : > { %v3599_v40 = vpop.xlane.xlu1 %3598  ;;  %v4274_v53 = vld [vmem:[#allocation2 + $0x210] sm:$0xff]  ;;  %v3708_v44 = vmax.f32 %v3276_v5, %v3277_v55  ;;  %v3395_v8 = vmax.f32 %v3078_v6, 0.0  ;;  %v2793_v56 = vpop.f32.mrb[133].mxu0  ;;  %v3507_v55 = vld [vmem:[#allocation2 + $0x238] sm:$0xff]  ;;  %v7068_v58 = vld [vmem:[#allocation48_spill] sm:$0xff] }
 0x479   : > { %v3959_v38 = vmax.f32 %v3447_v29, %v3599_v40  ;;  %v3392_v25 = vmax.f32 %v3072_v12, 0.0  ;;  %4402 = vst.msk [vmem:[%s6398_s11 + $0x210] sm:$0xff] %vm424_vm1, %v4274_v53  ;;  %4145 = vst.msk [vmem:[#allocation2 + $0x220] sm:$0xff] %vm424_vm1, %v4016_v62  ;;  %v3279_v29 = vmax.f32 %v2788_v49, 0.0  ;;  %v3506_v40 = vld [vmem:[#allocation2 + $0x230] sm:$0xff]  ;;  %v2794_v39 = vadd.f32 %v2793_v56, %v7067_v19 }
 0x47a   : > { %v4217_v28 = vld [vmem:[#allocation2 + $0x48] sm:$0xff]  ;;  %3877 = vmax.xlane.f32.xlu0 %v3876_v34  ;;  %v3602_v14 = vpop.xlane.xlu0 %3601  ;;  %v3885_v47 = vmax.f32 %v3394_v7, %v3395_v8 }
 0x47b   : > { %3706 = vmax.xlane.f32.xlu1 %v3705_v42  ;;  %4345 = vst.msk [vmem:[%s6398_s11 + $0x48] sm:$0xff] %vm424_vm1, %v4217_v28  ;;  %4088 = vst.msk [vmem:[#allocation2 + $0x58] sm:$0xff] %vm424_vm1, %v3959_v38  ;;  %v3882_v34 = vmax.f32 %v3392_v25, %v3393_v18  ;;  %v3960_v11 = vmax.f32 %v3448_v17, %v3602_v14  ;;  %v3081_v42 = vpop.f32.mrb[100].mxu1  ;;  %v3711_v33 = vmax.f32 %v3278_v43, %v3279_v29 }
 0x47c   : > { %v3773_v24 = vpop.xlane.xlu1 %3772  ;;  %v4218_v13 = vld [vmem:[#allocation2 + $0x50] sm:$0xff]  ;;  %v2792_v38 = vadd.f32 %v2791_v15, %v7067_v19  ;;  %v3083_v28 = vpop.f32.mrb[101].mxu1  ;;  %v3281_v59 = vmax.f32 %v2794_v39, 0.0 }
 0x47d   : > { %v4017_v50 = vmax.f32 %v3505_v51, %v3773_v24  ;;  %4346 = vst.msk [vmem:[%s6398_s11 + $0x50] sm:$0xff] %vm424_vm1, %v4218_v13  ;;  %4089 = vst.msk [vmem:[#allocation2 + $0x60] sm:$0xff] %vm424_vm1, %v3960_v11  ;;  %v3084_v32 = vadd.f32 %v3083_v28, %v6254_v0  ;;  %v2795_v51 = vpop.f32.mrb[134].mxu0  ;;  %v3085_v53 = vpop.f32.mrb[102].mxu1  ;;  %v3451_v13 = vld [vmem:[#allocation2 + $0x78] sm:$0xff] }
 0x47e   : > { %v4275_v48 = vld [vmem:[#allocation2 + $0x218] sm:$0xff]  ;;  %3709 = vmax.xlane.f32.xlu0 %v3708_v44  ;;  %v3776_v5 = vpop.xlane.xlu0 %3775  ;;  %v3280_v27 = vmax.f32 %v2792_v38, 0.0  ;;  %v2796_v1 = vadd.f32 %v2795_v51, %v7068_v58  ;;  %v3086_v57 = vadd.f32 %v3085_v53, %v6252_v22  ;;  %v2797_v17 = vpop.f32.mrb[135].mxu0  ;;  %v7069_v38 = vld [vmem:[#allocation51_spill] sm:$0xff] }
 0x47f   : > { %3880 = vmax.xlane.f32.xlu1 %v3879_v54  ;;  %4403 = vst.msk [vmem:[%s6398_s11 + $0x218] sm:$0xff] %vm424_vm1, %v4275_v48  ;;  %4146 = vst.msk [vmem:[#allocation2 + $0x228] sm:$0xff] %vm424_vm1, %v4017_v50  ;;  %v3082_v54 = vadd.f32 %v3081_v42, %v6254_v0  ;;  %v4018_v45 = vmax.f32 %v3506_v40, %v3776_v5  ;;  %v3087_v18 = vpop.f32.mrb[103].mxu1  ;;  %v3450_v0 = vld [vmem:[#allocation2 + $0x70] sm:$0xff]  ;;  %v3397_v49 = vmax.f32 %v3084_v32, 0.0  ;;  %v3508_v40 = vld [vmem:[#allocation2 + $0x240] sm:$0xff] }
 0x480   : > { %v3605_v12 = vpop.xlane.xlu1 %3604  ;;  %v4276_v30 = vld [vmem:[#allocation2 + $0x220] sm:$0xff]  ;;  %v2798_v6 = vadd.f32 %v2797_v17, %v7068_v58  ;;  %v3088_v24 = vadd.f32 %v3087_v18, %v6252_v22  ;;  %v3714_v43 = vmax.f32 %v3280_v27, %v3281_v59  ;;  %v3282_v7 = vmax.f32 %v2796_v1, 0.0  ;;  %v2801_v22 = vpop.f32.mrb[136].mxu0  ;;  %v7070_v58 = vld [vmem:[#allocation50_spill] sm:$0xff] }
 0x481   : > { %v3961_v60 = vmax.f32 %v3449_v46, %v3605_v12  ;;  %v3396_v62 = vmax.f32 %v3082_v54, 0.0  ;;  %4404 = vst.msk [vmem:[%s6398_s11 + $0x220] sm:$0xff] %vm424_vm1, %v4276_v30  ;;  %4147 = vst.msk [vmem:[#allocation2 + $0x230] sm:$0xff] %vm424_vm1, %v4018_v45  ;;  %v3398_v50 = vmax.f32 %v3086_v57, 0.0  ;;  %v3091_v42 = vpop.f32.mrb[104].mxu1  ;;  %v2802_v54 = vadd.f32 %v2801_v22, %v7069_v38  ;;  %v2803_v56 = vpop.f32.mrb[137].mxu0 }
 0x482   : > { %v4219_v25 = vld [vmem:[#allocation2 + $0x58] sm:$0xff]  ;;  %3883 = vmax.xlane.f32.xlu0 %v3882_v34  ;;  %v3608_v48 = vpop.xlane.xlu0 %3607  ;;  %v3283_v8 = vmax.f32 %v2798_v6, 0.0  ;;  %v3399_v11 = vmax.f32 %v3088_v24, 0.0  ;;  %v2804_v39 = vadd.f32 %v2803_v56, %v7069_v38  ;;  %v3093_v28 = vpop.f32.mrb[105].mxu1  ;;  %v3510_v22 = vld [vmem:[#allocation2 + $0x250] sm:$0xff] }
 0x483   : > { %3712 = vmax.xlane.f32.xlu1 %v3711_v33  ;;  %4347 = vst.msk [vmem:[%s6398_s11 + $0x58] sm:$0xff] %vm424_vm1, %v4219_v25  ;;  %4090 = vst.msk [vmem:[#allocation2 + $0x68] sm:$0xff] %vm424_vm1, %v3961_v60  ;;  %v3888_v34 = vmax.f32 %v3396_v62, %v3397_v49  ;;  %v3962_v46 = vmax.f32 %v3450_v0, %v3608_v48  ;;  %v3284_v27 = vmax.f32 %v2802_v54, 0.0  ;;  %v2805_v51 = vpop.f32.mrb[138].mxu0  ;;  %v3095_v53 = vpop.f32.mrb[106].mxu1 }
 0x484   : > { %v3779_v44 = vpop.xlane.xlu1 %3778  ;;  %v4220_v15 = vld [vmem:[#allocation2 + $0x60] sm:$0xff]  ;;  %v3717_v33 = vmax.f32 %v3282_v7, %v3283_v8  ;;  %v3891_v12 = vmax.f32 %v3398_v50, %v3399_v11  ;;  %v3094_v32 = vadd.f32 %v3093_v28, %v6266_v16  ;;  %v3285_v59 = vmax.f32 %v2804_v39, 0.0  ;;  %v2807_v17 = vpop.f32.mrb[139].mxu0 }
 0x485   : > { %v4019_v14 = vmax.f32 %v3507_v55, %v3779_v44  ;;  %4348 = vst.msk [vmem:[%s6398_s11 + $0x60] sm:$0xff] %vm424_vm1, %v4220_v15  ;;  %4091 = vst.msk [vmem:[#allocation2 + $0x70] sm:$0xff] %vm424_vm1, %v3962_v46  ;;  %v3509_v55 = vld [vmem:[#allocation2 + $0x248] sm:$0xff]  ;;  %v2806_v1 = vadd.f32 %v2805_v51, %v7070_v58  ;;  %v3096_v57 = vadd.f32 %v3095_v53, %v6264_v52  ;;  %v3097_v18 = vpop.f32.mrb[107].mxu1  ;;  %v3511_v51 = vld [vmem:[#allocation2 + $0x258] sm:$0xff] }
 0x486   : > { %v4277_v29 = vld [vmem:[#allocation2 + $0x228] sm:$0xff]  ;;  %3715 = vmax.xlane.f32.xlu0 %v3714_v43  ;;  %v3782_v5 = vpop.xlane.xlu0 %3781  ;;  %v3401_v0 = vmax.f32 %v3094_v32, 0.0  ;;  %v2808_v49 = vadd.f32 %v2807_v17, %v7070_v58  ;;  %v3098_v6 = vadd.f32 %v3097_v18, %v6264_v52  ;;  %v3720_v44 = vmax.f32 %v3284_v27, %v3285_v59  ;;  %v2811_v52 = vpop.f32.mrb[140].mxu0 }
 0x487   : > { %3886 = vmax.xlane.f32.xlu1 %v3885_v47  ;;  %4405 = vst.msk [vmem:[%s6398_s11 + $0x228] sm:$0xff] %vm424_vm1, %v4277_v29  ;;  %4148 = vst.msk [vmem:[#allocation2 + $0x238] sm:$0xff] %vm424_vm1, %v4019_v14  ;;  %v3092_v47 = vadd.f32 %v3091_v42, %v6266_v16  ;;  %v4020_v45 = vmax.f32 %v3508_v40, %v3782_v5  ;;  %v3452_v16 = vld [vmem:[#allocation2 + $0x80] sm:$0xff]  ;;  %v3286_v43 = vmax.f32 %v2806_v1, 0.0  ;;  %v3402_v7 = vmax.f32 %v3096_v57, 0.0  ;;  %v3453_v46 = vld [vmem:[#allocation2 + $0x88] sm:$0xff] }
 0x488   : > { %v3611_v19 = vpop.xlane.xlu1 %3610  ;;  %v4278_v30 = vld [vmem:[#allocation2 + $0x230] sm:$0xff]  ;;  %v3403_v8 = vmax.f32 %v3098_v6, 0.0  ;;  %v3101_v15 = vpop.f32.mrb[108].mxu1 }
 0x489   : > { %v3963_v60 = vmax.f32 %v3451_v13, %v3611_v19  ;;  %v3400_v62 = vmax.f32 %v3092_v47, 0.0  ;;  %4406 = vst.msk [vmem:[%s6398_s11 + $0x230] sm:$0xff] %vm424_vm1, %v4278_v30  ;;  %4149 = vst.msk [vmem:[#allocation2 + $0x240] sm:$0xff] %vm424_vm1, %v4020_v45  ;;  %v7071_v19 = vld [vmem:[#allocation53_spill] sm:$0xff]  ;;  %v2813_v54 = vpop.f32.mrb[141].mxu0  ;;  %v7072_v30 = vld [vmem:[#allocation52_spill] sm:$0xff] }
 0x48a   : > { %v4221_v25 = vld [vmem:[#allocation2 + $0x68] sm:$0xff]  ;;  %3889 = vmax.xlane.f32.xlu0 %v3888_v34  ;;  %v3614_v14 = vpop.xlane.xlu0 %3613  ;;  %v3287_v34 = vmax.f32 %v2808_v49, 0.0  ;;  %v3897_v40 = vmax.f32 %v3402_v7, %v3403_v8  ;;  %v2812_v38 = vadd.f32 %v2811_v52, %v7071_v19  ;;  %v2814_v56 = vadd.f32 %v2813_v54, %v7071_v19  ;;  %v2815_v32 = vpop.f32.mrb[142].mxu0 }
 0x48b   : > { %3718 = vmax.xlane.f32.xlu1 %v3717_v33  ;;  %4349 = vst.msk [vmem:[%s6398_s11 + $0x68] sm:$0xff] %vm424_vm1, %v4221_v25  ;;  %4092 = vst.msk [vmem:[#allocation2 + $0x78] sm:$0xff] %vm424_vm1, %v3963_v60  ;;  %v3894_v29 = vmax.f32 %v3400_v62, %v3401_v0  ;;  %v3964_v11 = vmax.f32 %v3452_v16, %v3614_v14  ;;  %v3103_v60 = vpop.f32.mrb[109].mxu1  ;;  %v2816_v59 = vadd.f32 %v2815_v32, %v7072_v30  ;;  %v2817_v1 = vpop.f32.mrb[143].mxu0 }
 0x48c   : > { %v3785_v24 = vpop.xlane.xlu1 %3784  ;;  %v4222_v13 = vld [vmem:[#allocation2 + $0x70] sm:$0xff]  ;;  %v3723_v42 = vmax.f32 %v3286_v43, %v3287_v34  ;;  %v3288_v5 = vmax.f32 %v2812_v38, 0.0  ;;  %v3104_v27 = vadd.f32 %v3103_v60, %v6278_v23  ;;  %v3105_v45 = vpop.f32.mrb[110].mxu1  ;;  %v2818_v18 = vadd.f32 %v2817_v1, %v7072_v30  ;;  %v3455_v34 = vld [vmem:[#allocation2 + $0x98] sm:$0xff] }
 0x48d   : > { %v4021_v50 = vmax.f32 %v3509_v55, %v3785_v24  ;;  %4350 = vst.msk [vmem:[%s6398_s11 + $0x70] sm:$0xff] %vm424_vm1, %v4222_v13  ;;  %4093 = vst.msk [vmem:[#allocation2 + $0x80] sm:$0xff] %vm424_vm1, %v3964_v11  ;;  %v3289_v55 = vmax.f32 %v2814_v56, 0.0  ;;  %v3106_v58 = vadd.f32 %v3105_v45, %v6276_v63  ;;  %v3107_v57 = vpop.f32.mrb[111].mxu1  ;;  %v3290_v6 = vmax.f32 %v2816_v59, 0.0  ;;  %v7074_v45 = vld [vmem:[#allocation54_spill] sm:$0xff] }
 0x48e   : > { %v4279_v48 = vld [vmem:[#allocation2 + $0x238] sm:$0xff]  ;;  %3721 = vmax.xlane.f32.xlu0 %v3720_v44  ;;  %v3788_v39 = vpop.xlane.xlu0 %3787  ;;  %v3405_v17 = vmax.f32 %v3104_v27, 0.0  ;;  %v3108_v16 = vadd.f32 %v3107_v57, %v6276_v63  ;;  %v3291_v14 = vmax.f32 %v2818_v18, 0.0  ;;  %v2821_v63 = vpop.f32.mrb[144].mxu0  ;;  %v3513_v27 = vld [vmem:[#allocation2 + $0x268] sm:$0xff] }
 0x48f   : > { %3892 = vmax.xlane.f32.xlu1 %v3891_v12  ;;  %4407 = vst.msk [vmem:[%s6398_s11 + $0x238] sm:$0xff] %vm424_vm1, %v4279_v48  ;;  %4150 = vst.msk [vmem:[#allocation2 + $0x248] sm:$0xff] %vm424_vm1, %v4021_v50  ;;  %v3102_v12 = vadd.f32 %v3101_v15, %v6278_v23  ;;  %v4022_v62 = vmax.f32 %v3510_v22, %v3788_v39  ;;  %v3454_v23 = vld [vmem:[#allocation2 + $0x90] sm:$0xff]  ;;  %v3726_v49 = vmax.f32 %v3288_v5, %v3289_v55  ;;  %v3111_v11 = vpop.f32.mrb[112].mxu1  ;;  %v7073_v22 = vld [vmem:[#allocation55_spill] sm:$0xff] }
 0x490   : > { %v3617_v33 = vpop.xlane.xlu1 %3616  ;;  %v4280_v53 = vld [vmem:[#allocation2 + $0x240] sm:$0xff]  ;;  %v3406_v24 = vmax.f32 %v3106_v58, 0.0  ;;  %v3407_v48 = vmax.f32 %v3108_v16, 0.0  ;;  %v3729_v13 = vmax.f32 %v3290_v6, %v3291_v14  ;;  %v3514_v14 = vld [vmem:[#allocation2 + $0x270] sm:$0xff] }
 0x491   : > { %v3965_v47 = vmax.f32 %v3453_v46, %v3617_v33  ;;  %v3404_v25 = vmax.f32 %v3102_v12, 0.0  ;;  %4408 = vst.msk [vmem:[%s6398_s11 + $0x240] sm:$0xff] %vm424_vm1, %v4280_v53  ;;  %4151 = vst.msk [vmem:[#allocation2 + $0x250] sm:$0xff] %vm424_vm1, %v4022_v62  ;;  %v3512_v46 = vld [vmem:[#allocation2 + $0x260] sm:$0xff]  ;;  %v2823_v33 = vpop.f32.mrb[145].mxu0  ;;  %v3113_v12 = vpop.f32.mrb[113].mxu1 }
 0x492   : > { %v4223_v28 = vld [vmem:[#allocation2 + $0x78] sm:$0xff]  ;;  %3895 = vmax.xlane.f32.xlu0 %v3894_v29  ;;  %v3620_v43 = vpop.xlane.xlu0 %3619  ;;  %v3903_v52 = vmax.f32 %v3406_v24, %v3407_v48  ;;  %v2824_v38 = vadd.f32 %v2823_v33, %v7073_v22  ;;  %v3114_v39 = vadd.f32 %v3113_v12, %v6290_v21  ;;  %v2825_v5 = vpop.f32.mrb[146].mxu0 }
 0x493   : > { %3724 = vmax.xlane.f32.xlu1 %v3723_v42  ;;  %4351 = vst.msk [vmem:[%s6398_s11 + $0x78] sm:$0xff] %vm424_vm1, %v4223_v28  ;;  %4094 = vst.msk [vmem:[#allocation2 + $0x88] sm:$0xff] %vm424_vm1, %v3965_v47  ;;  %v3900_v50 = vmax.f32 %v3404_v25, %v3405_v17  ;;  %v3966_v29 = vmax.f32 %v3454_v23, %v3620_v43  ;;  %v2822_v42 = vadd.f32 %v2821_v63, %v7073_v22  ;;  %v3115_v25 = vpop.f32.mrb[114].mxu1  ;;  %v2827_v55 = vpop.f32.mrb[147].mxu0 }
 0x494   : > { %v3791_v0 = vpop.xlane.xlu1 %3790  ;;  %v4224_v8 = vld [vmem:[#allocation2 + $0x80] sm:$0xff]  ;;  %v3293_v32 = vmax.f32 %v2824_v38, 0.0  ;;  %v3116_v53 = vadd.f32 %v3115_v25, %v6288_v36  ;;  %v3117_v30 = vpop.f32.mrb[115].mxu1  ;;  %v3409_v59 = vmax.f32 %v3114_v39, 0.0  ;;  %v2828_v58 = vadd.f32 %v2827_v55, %v7074_v45 }
 0x495   : > { %v4023_v44 = vmax.f32 %v3511_v51, %v3791_v0  ;;  %4352 = vst.msk [vmem:[%s6398_s11 + $0x80] sm:$0xff] %vm424_vm1, %v4224_v8  ;;  %4095 = vst.msk [vmem:[#allocation2 + $0x90] sm:$0xff] %vm424_vm1, %v3966_v29  ;;  %v3292_v56 = vmax.f32 %v2822_v42, 0.0  ;;  %v2826_v51 = vadd.f32 %v2825_v5, %v7074_v45  ;;  %v3118_v1 = vadd.f32 %v3117_v30, %v6288_v36  ;;  %v3121_v36 = vpop.f32.mrb[116].mxu1 }
 0x496   : > { %v4281_v7 = vld [vmem:[#allocation2 + $0x248] sm:$0xff]  ;;  %3727 = vmax.xlane.f32.xlu0 %v3726_v49  ;;  %v3794_v54 = vpop.xlane.xlu0 %3793  ;;  %v3410_v18 = vmax.f32 %v3116_v53, 0.0  ;;  %v3295_v24 = vmax.f32 %v2828_v58, 0.0  ;;  %v3122_v8 = vadd.f32 %v3121_v36, %v6302_v2  ;;  %v3123_v63 = vpop.f32.mrb[117].mxu1 }
 0x497   : > { %3898 = vmax.xlane.f32.xlu1 %v3897_v40  ;;  %4409 = vst.msk [vmem:[%s6398_s11 + $0x248] sm:$0xff] %vm424_vm1, %v4281_v7  ;;  %4152 = vst.msk [vmem:[#allocation2 + $0x258] sm:$0xff] %vm424_vm1, %v4023_v44  ;;  %v3112_v40 = vadd.f32 %v3111_v11, %v6290_v21  ;;  %v4024_v28 = vmax.f32 %v3512_v46, %v3794_v54  ;;  %v3456_v21 = vld [vmem:[#allocation2 + $0xa0] sm:$0xff]  ;;  %v3732_v23 = vmax.f32 %v3292_v56, %v3293_v32  ;;  %v3457_v7 = vld [vmem:[#allocation2 + $0xa8] sm:$0xff] }
 0x498   : > { %v3623_v15 = vpop.xlane.xlu1 %3622  ;;  %v4282_v62 = vld [vmem:[#allocation2 + $0x250] sm:$0xff]  ;;  %v3294_v17 = vmax.f32 %v2826_v51, 0.0  ;;  %v3411_v44 = vmax.f32 %v3118_v1, 0.0  ;;  %v3124_v46 = vadd.f32 %v3123_v63, %v6302_v2  ;;  %v3412_v22 = vmax.f32 %v3122_v8, 0.0  ;;  %v3516_v51 = vld [vmem:[#allocation2 + $0x280] sm:$0xff] }
 0x499   : > { %v3967_v19 = vmax.f32 %v3455_v34, %v3623_v15  ;;  %v3408_v60 = vmax.f32 %v3112_v40, 0.0  ;;  %4410 = vst.msk [vmem:[%s6398_s11 + $0x250] sm:$0xff] %vm424_vm1, %v4282_v62  ;;  %4153 = vst.msk [vmem:[#allocation2 + $0x260] sm:$0xff] %vm424_vm1, %v4024_v28  ;;  %v3458_v54 = vld [vmem:[#allocation2 + $0xb0] sm:$0xff]  ;;  %v3459_v62 = vld [vmem:[#allocation2 + $0xb8] sm:$0xff] }
 0x49a   : > { %v4225_v47 = vld [vmem:[#allocation2 + $0x88] sm:$0xff]  ;;  %3901 = vmax.xlane.f32.xlu0 %v3900_v50  ;;  %v3626_v0 = vpop.xlane.xlu0 %3625  ;;  %v3735_v48 = vmax.f32 %v3294_v17, %v3295_v24  ;;  %v3909_v29 = vmax.f32 %v3410_v18, %v3411_v44  ;;  %v3413_v12 = vmax.f32 %v3124_v46, 0.0  ;;  %v3460_v24 = vld [vmem:[#allocation2 + $0xc0] sm:$0xff] }
 0x49b   : > { %3730 = vmax.xlane.f32.xlu1 %v3729_v13  ;;  %4353 = vst.msk [vmem:[%s6398_s11 + $0x88] sm:$0xff] %vm424_vm1, %v4225_v47  ;;  %4096 = vst.msk [vmem:[#allocation2 + $0x98] sm:$0xff] %vm424_vm1, %v3967_v19  ;;  %v3906_v6 = vmax.f32 %v3408_v60, %v3409_v59  ;;  %v3968_v43 = vmax.f32 %v3456_v21, %v3626_v0  ;;  %v3515_v19 = vld [vmem:[#allocation2 + $0x278] sm:$0xff]  ;;  %v3517_v0 = vld [vmem:[#allocation2 + $0x288] sm:$0xff] }
 0x49c   : > { %v3797_v57 = vpop.xlane.xlu1 %3796  ;;  %v4226_v50 = vld [vmem:[#allocation2 + $0x90] sm:$0xff]  ;;  %v3912_v60 = vmax.f32 %v3412_v22, %v3413_v12 }
 0x49d   : > { %v4025_v16 = vmax.f32 %v3513_v27, %v3797_v57  ;;  %4354 = vst.msk [vmem:[%s6398_s11 + $0x90] sm:$0xff] %vm424_vm1, %v4226_v50  ;;  %4097 = vst.msk [vmem:[#allocation2 + $0xa0] sm:$0xff] %vm424_vm1, %v3968_v43 }
 0x49e   : > { %v4283_v49 = vld [vmem:[#allocation2 + $0x258] sm:$0xff]  ;;  %3733 = vmax.xlane.f32.xlu0 %v3732_v23  ;;  %v3800_v13 = vpop.xlane.xlu0 %3799 }
 0x49f   : > { %3904 = vmax.xlane.f32.xlu1 %v3903_v52  ;;  %4411 = vst.msk [vmem:[%s6398_s11 + $0x258] sm:$0xff] %vm424_vm1, %v4283_v49  ;;  %4154 = vst.msk [vmem:[#allocation2 + $0x268] sm:$0xff] %vm424_vm1, %v4025_v16  ;;  %v3125_v52 = vpop.f32.mrb[118].mxu1  ;;  %v4026_v42 = vmax.f32 %v3514_v14, %v3800_v13 }
 0x4a0   : > { %v3629_v34 = vpop.xlane.xlu1 %3628  ;;  %v3126_v40 = vadd.f32 %v3125_v52, %v6300_v9  ;;  %v3127_v33 = vpop.f32.mrb[119].mxu1  ;;  %v4284_v38 = vld [vmem:[#allocation2 + $0x260] sm:$0xff] }
 0x4a1   : > { %v3969_v11 = vmax.f32 %v3457_v7, %v3629_v34  ;;  %v3128_v2 = vadd.f32 %v3127_v33, %v6300_v9  ;;  %4412 = vst.msk [vmem:[%s6398_s11 + $0x260] sm:$0xff] %vm424_vm1, %v4284_v38  ;;  %4155 = vst.msk [vmem:[#allocation2 + $0x270] sm:$0xff] %vm424_vm1, %v4026_v42  ;;  %v3131_v45 = vpop.f32.mrb[120].mxu1  ;;  %v3461_v34 = vld [vmem:[#allocation2 + $0xc8] sm:$0xff] }
 0x4a2   : > { %v4227_v15 = vld [vmem:[#allocation2 + $0x98] sm:$0xff]  ;;  %3907 = vmax.xlane.f32.xlu0 %v3906_v6  ;;  %v3414_v47 = vmax.f32 %v3126_v40, 0.0  ;;  %v3632_v5 = vpop.xlane.xlu0 %3631  ;;  %v3132_v55 = vadd.f32 %v3131_v45, %v6314_v41  ;;  %v3133_v30 = vpop.f32.mrb[121].mxu1 }
 0x4a3   : > { %3736 = vmax.xlane.f32.xlu1 %v3735_v48  ;;  %4355 = vst.msk [vmem:[%s6398_s11 + $0x98] sm:$0xff] %vm424_vm1, %v4227_v15  ;;  %4098 = vst.msk [vmem:[#allocation2 + $0xa8] sm:$0xff] %vm424_vm1, %v3969_v11  ;;  %v3415_v39 = vmax.f32 %v3128_v2, 0.0  ;;  %v3970_v27 = vmax.f32 %v3458_v54, %v3632_v5  ;;  %v3134_v59 = vadd.f32 %v3133_v30, %v6314_v41  ;;  %v3135_v1 = vpop.f32.mrb[122].mxu1  ;;  %v3518_v11 = vld [vmem:[#allocation2 + $0x290] sm:$0xff]  ;;  %v3519_v54 = vld [vmem:[#allocation2 + $0x298] sm:$0xff] }
 0x4a4   : > { %v3803_v56 = vpop.xlane.xlu1 %3802  ;;  %v4228_v9 = vld [vmem:[#allocation2 + $0xa0] sm:$0xff]  ;;  %v3416_v23 = vmax.f32 %v3132_v55, 0.0  ;;  %v3136_v18 = vadd.f32 %v3135_v1, %v6312_v26  ;;  %v3137_v16 = vpop.f32.mrb[123].mxu1  ;;  %v3463_v45 = vld [vmem:[#allocation2 + $0xd8] sm:$0xff] }
 0x4a5   : > { %v4027_v28 = vmax.f32 %v3515_v19, %v3803_v56  ;;  %v3915_v32 = vmax.f32 %v3414_v47, %v3415_v39  ;;  %4356 = vst.msk [vmem:[%s6398_s11 + $0xa0] sm:$0xff] %vm424_vm1, %v4228_v9  ;;  %4099 = vst.msk [vmem:[#allocation2 + $0xb0] sm:$0xff] %vm424_vm1, %v3970_v27  ;;  %v3417_v6 = vmax.f32 %v3134_v59, 0.0  ;;  %v3138_v41 = vadd.f32 %v3137_v16, %v6312_v26  ;;  %v3141_v26 = vpop.f32.mrb[124].mxu1  ;;  %v3520_v55 = vld [vmem:[#allocation2 + $0x2a0] sm:$0xff] }
 0x4a6   : > { %v4285_v25 = vld [vmem:[#allocation2 + $0x268] sm:$0xff]  ;;  %3913 = vmax.xlane.f32.xlu0 %v3912_v60  ;;  %v3806_v58 = vpop.xlane.xlu0 %3805  ;;  %v3418_v44 = vmax.f32 %v3136_v18, 0.0  ;;  %v3142_v13 = vadd.f32 %v3141_v26, %v6326_v4  ;;  %v3143_v52 = vpop.f32.mrb[125].mxu1  ;;  %v3462_v60 = vld [vmem:[#allocation2 + $0xd0] sm:$0xff] }
 0x4a7   : > { %3910 = vmax.xlane.f32.xlu1 %v3909_v29  ;;  %4413 = vst.msk [vmem:[%s6398_s11 + $0x268] sm:$0xff] %vm424_vm1, %v4285_v25  ;;  %4156 = vst.msk [vmem:[#allocation2 + $0x278] sm:$0xff] %vm424_vm1, %v4027_v28  ;;  %v4028_v17 = vmax.f32 %v3516_v51, %v3806_v58  ;;  %v3918_v7 = vmax.f32 %v3416_v23, %v3417_v6  ;;  %v3419_v50 = vmax.f32 %v3138_v41, 0.0  ;;  %v3145_v40 = vpop.f32.mrb[126].mxu1  ;;  %v3521_v6 = vld [vmem:[#allocation2 + $0x2a8] sm:$0xff] }
 0x4a8   : > { %v3635_v53 = vpop.xlane.xlu1 %3634  ;;  %v4286_v49 = vld [vmem:[#allocation2 + $0x270] sm:$0xff]  ;;  %v3144_v22 = vadd.f32 %v3143_v52, %v6326_v4  ;;  %v3420_v19 = vmax.f32 %v3142_v13, 0.0  ;;  %v3146_v12 = vadd.f32 %v3145_v40, %v6324_v31  ;;  %v3147_v2 = vpop.f32.mrb[127].mxu1 }
 0x4a9   : > { %v3971_v21 = vmax.f32 %v3459_v62, %v3635_v53  ;;  %4414 = vst.msk [vmem:[%s6398_s11 + $0x270] sm:$0xff] %vm424_vm1, %v4286_v49  ;;  %4157 = vst.msk [vmem:[#allocation2 + $0x280] sm:$0xff] %vm424_vm1, %v4028_v17  ;;  %v3921_v63 = vmax.f32 %v3418_v44, %v3419_v50  ;;  %v3148_v4 = vadd.f32 %v3147_v2, %v6324_v31  ;;  %v3151_v31 = vpop.f32.mrb[128].mxu1  ;;  %v3464_v44 = vld [vmem:[#allocation2 + $0xe0] sm:$0xff] }
 0x4aa   : > { %v4229_v57 = vld [vmem:[#allocation2 + $0xa8] sm:$0xff]  ;;  %v3638_v14 = vpop.xlane.xlu0 %3637  ;;  %3919 = vmax.xlane.f32.xlu0 %v3918_v7  ;;  %v3421_v56 = vmax.f32 %v3144_v22, 0.0  ;;  %v3422_v39 = vmax.f32 %v3146_v12, 0.0  ;;  %v3153_v59 = vpop.f32.mrb[129].mxu1 }
 0x4ab   : > { %3916 = vmax.xlane.f32.xlu1 %v3915_v32  ;;  %4357 = vst.msk [vmem:[%s6398_s11 + $0xa8] sm:$0xff] %vm424_vm1, %v4229_v57  ;;  %4100 = vst.msk [vmem:[#allocation2 + $0xb8] sm:$0xff] %vm424_vm1, %v3971_v21  ;;  %v3972_v29 = vmax.f32 %v3460_v24, %v3638_v14  ;;  %v3423_v25 = vmax.f32 %v3148_v4, 0.0  ;;  %v3152_v21 = vadd.f32 %v3151_v31, %v6338_v35  ;;  %v3155_v23 = vpop.f32.mrb[130].mxu1  ;;  %v3466_v4 = vld [vmem:[#allocation2 + $0xf0] sm:$0xff] }
 0x4ac   : > { %v3809_v43 = vpop.xlane.xlu1 %3808  ;;  %v4230_v8 = vld [vmem:[#allocation2 + $0xb0] sm:$0xff]  ;;  %v3924_v5 = vmax.f32 %v3420_v19, %v3421_v56  ;;  %v3154_v1 = vadd.f32 %v3153_v59, %v6338_v35  ;;  %v3157_v49 = vpop.f32.mrb[131].mxu1 }
 0x4ad   : > { %v4029_v36 = vmax.f32 %v3517_v0, %v3809_v43  ;;  %4358 = vst.msk [vmem:[%s6398_s11 + $0xb0] sm:$0xff] %vm424_vm1, %v4230_v8  ;;  %4101 = vst.msk [vmem:[#allocation2 + $0xc0] sm:$0xff] %vm424_vm1, %v3972_v29  ;;  %v3927_v53 = vmax.f32 %v3422_v39, %v3423_v25  ;;  %v3424_v18 = vmax.f32 %v3152_v21, 0.0  ;;  %v3156_v0 = vadd.f32 %v3155_v23, %v6336_v37  ;;  %v3465_v8 = vld [vmem:[#allocation2 + $0xe8] sm:$0xff] }
 0x4ae   : > { %v4287_v48 = vld [vmem:[#allocation2 + $0x278] sm:$0xff]  ;;  %v3812_v42 = vpop.xlane.xlu0 %3811  ;;  %3925 = vmax.xlane.f32.xlu0 %v3924_v5  ;;  %v3425_v24 = vmax.f32 %v3154_v1, 0.0  ;;  %v3158_v35 = vadd.f32 %v3157_v49, %v6336_v37 }
 0x4af   : > { %4415 = vst.msk [vmem:[%s6398_s11 + $0x278] sm:$0xff] %vm424_vm1, %v4287_v48  ;;  %4158 = vst.msk [vmem:[#allocation2 + $0x288] sm:$0xff] %vm424_vm1, %v4029_v36  ;;  %3922 = vmax.xlane.f32.xlu1 %v3921_v63  ;;  %v4030_v38 = vmax.f32 %v3518_v11, %v3812_v42  ;;  %v3426_v43 = vmax.f32 %v3156_v0, 0.0  ;;  %v3522_v11 = vld [vmem:[#allocation2 + $0x2b0] sm:$0xff]  ;;  %v3525_v0 = vld [vmem:[#allocation2 + $0x2c8] sm:$0xff] }
 0x4b0   : > { %v3641_v46 = vpop.xlane.xlu1 %3640  ;;  %v4288_v47 = vld [vmem:[#allocation2 + $0x280] sm:$0xff]  ;;  %v3930_v50 = vmax.f32 %v3424_v18, %v3425_v24  ;;  %v3427_v36 = vmax.f32 %v3158_v35, 0.0  ;;  %v3161_v37 = vpop.f32.mrb[132].mxu1 }
 0x4b1   : > { %v3973_v15 = vmax.f32 %v3461_v34, %v3641_v46  ;;  %4416 = vst.msk [vmem:[%s6398_s11 + $0x280] sm:$0xff] %vm424_vm1, %v4288_v47  ;;  %4159 = vst.msk [vmem:[#allocation2 + $0x290] sm:$0xff] %vm424_vm1, %v4030_v38  ;;  %v3162_v13 = vadd.f32 %v3161_v37, %v6350_v61  ;;  %v3163_v52 = vpop.f32.mrb[133].mxu1 }
 0x4b2   : > { %v4231_v33 = vld [vmem:[#allocation2 + $0xb8] sm:$0xff]  ;;  %v3644_v62 = vpop.xlane.xlu0 %3643  ;;  %v3933_v26 = vmax.f32 %v3426_v43, %v3427_v36  ;;  %3931 = vmax.xlane.f32.xlu0 %v3930_v50  ;;  %v3164_v22 = vadd.f32 %v3163_v52, %v6350_v61  ;;  %v3165_v40 = vpop.f32.mrb[134].mxu1  ;;  %v3470_v52 = vld [vmem:[#allocation2 + $0x110] sm:$0xff] }
 0x4b3   : > { %4359 = vst.msk [vmem:[%s6398_s11 + $0xb8] sm:$0xff] %vm424_vm1, %v4231_v33  ;;  %4102 = vst.msk [vmem:[#allocation2 + $0xc8] sm:$0xff] %vm424_vm1, %v3973_v15  ;;  %v3974_v32 = vmax.f32 %v3462_v60, %v3644_v62  ;;  %3928 = vmax.xlane.f32.xlu1 %v3927_v53  ;;  %v3428_v19 = vmax.f32 %v3162_v13, 0.0  ;;  %v3166_v12 = vadd.f32 %v3165_v40, %v6348_v3  ;;  %v3167_v2 = vpop.f32.mrb[135].mxu1  ;;  %v3524_v53 = vld [vmem:[#allocation2 + $0x2c0] sm:$0xff] }
 0x4b4   : > { %v3815_v28 = vpop.xlane.xlu1 %3814  ;;  %v4232_v51 = vld [vmem:[#allocation2 + $0xc0] sm:$0xff]  ;;  %v3429_v56 = vmax.f32 %v3164_v22, 0.0  ;;  %v3168_v61 = vadd.f32 %v3167_v2, %v6348_v3 }
 0x4b5   : > { %v4031_v27 = vmax.f32 %v3519_v54, %v3815_v28  ;;  %4360 = vst.msk [vmem:[%s6398_s11 + $0xc0] sm:$0xff] %vm424_vm1, %v4232_v51  ;;  %4103 = vst.msk [vmem:[#allocation2 + $0xd0] sm:$0xff] %vm424_vm1, %v3974_v32  ;;  %v3523_v54 = vld [vmem:[#allocation2 + $0x2b8] sm:$0xff]  ;;  %v3430_v60 = vmax.f32 %v3166_v12, 0.0  ;;  %v3528_v12 = vld [vmem:[#allocation2 + $0x2e0] sm:$0xff] }
 0x4b6   : > { %v4289_v9 = vld [vmem:[#allocation2 + $0x288] sm:$0xff]  ;;  %v3818_v57 = vpop.xlane.xlu0 %3817  ;;  %v3936_v28 = vmax.f32 %v3428_v19, %v3429_v56  ;;  %v3431_v5 = vmax.f32 %v3168_v61, 0.0  ;;  %v3467_v32 = vld [vmem:[#allocation2 + $0xf8] sm:$0xff] }
 0x4b7   : > { %4417 = vst.msk [vmem:[%s6398_s11 + $0x288] sm:$0xff] %vm424_vm1, %v4289_v9  ;;  %4160 = vst.msk [vmem:[#allocation2 + $0x298] sm:$0xff] %vm424_vm1, %v4031_v27  ;;  %v4032_v16 = vmax.f32 %v3520_v55, %v3818_v57  ;;  %3934 = vmax.xlane.f32.xlu1 %v3933_v26  ;;  %v3471_v19 = vld [vmem:[#allocation2 + $0x118] sm:$0xff] }
 0x4b8   : > { %v3647_v30 = vpop.xlane.xlu1 %3646  ;;  %v4290_v41 = vld [vmem:[#allocation2 + $0x290] sm:$0xff]  ;;  %v3939_v51 = vmax.f32 %v3430_v60, %v3431_v5  ;;  %v3171_v3 = vpop.f32.mrb[136].mxu1  ;;  %3937 = vmax.xlane.f32.xlu0 %v3936_v28 }
 0x4b9   : > { %v3975_v58 = vmax.f32 %v3463_v45, %v3647_v30  ;;  %4418 = vst.msk [vmem:[%s6398_s11 + $0x290] sm:$0xff] %vm424_vm1, %v4290_v41  ;;  %4161 = vst.msk [vmem:[#allocation2 + $0x2a0] sm:$0xff] %vm424_vm1, %v4032_v16  ;;  %v3172_v55 = vadd.f32 %v3171_v3, %v6363_v10  ;;  %v3173_v30 = vpop.f32.mrb[137].mxu1  ;;  %v3468_v41 = vld [vmem:[#allocation2 + $0x100] sm:$0xff] }
 0x4ba   : > { %v4233_v17 = vld [vmem:[#allocation2 + $0xc8] sm:$0xff]  ;;  %v3650_v48 = vpop.xlane.xlu0 %3649  ;;  %v3174_v59 = vadd.f32 %v3173_v30, %v6363_v10  ;;  %v3175_v1 = vpop.f32.mrb[138].mxu1  ;;  %v3531_v30 = vld [vmem:[#allocation2 + $0x2f8] sm:$0xff] }
 0x4bb   : > { %4361 = vst.msk [vmem:[%s6398_s11 + $0xc8] sm:$0xff] %vm424_vm1, %v4233_v17  ;;  %4104 = vst.msk [vmem:[#allocation2 + $0xd8] sm:$0xff] %vm424_vm1, %v3975_v58  ;;  %v3976_v34 = vmax.f32 %v3464_v44, %v3650_v48  ;;  %3940 = vmax.xlane.f32.xlu1 %v3939_v51  ;;  %v3432_v23 = vmax.f32 %v3172_v55, 0.0  ;;  %v3176_v18 = vadd.f32 %v3175_v1, %v6361_v20  ;;  %v3177_v16 = vpop.f32.mrb[139].mxu1  ;;  %v3469_v48 = vld [vmem:[#allocation2 + $0x108] sm:$0xff] }
 0x4bc   : > { %v3821_v7 = vpop.xlane.xlu1 %3820  ;;  %v4234_v63 = vld [vmem:[#allocation2 + $0xd0] sm:$0xff]  ;;  %v3178_v10 = vadd.f32 %v3177_v16, %v6361_v20 }
 0x4bd   : > { %v4033_v14 = vmax.f32 %v3521_v6, %v3821_v7  ;;  %4362 = vst.msk [vmem:[%s6398_s11 + $0xd0] sm:$0xff] %vm424_vm1, %v4234_v63  ;;  %4105 = vst.msk [vmem:[#allocation2 + $0xe0] sm:$0xff] %vm424_vm1, %v3976_v34  ;;  %v3433_v6 = vmax.f32 %v3174_v59, 0.0  ;;  %v3434_v24 = vmax.f32 %v3176_v18, 0.0  ;;  %v3526_v34 = vld [vmem:[#allocation2 + $0x2d0] sm:$0xff]  ;;  %v3475_v18 = vld [vmem:[#allocation2 + $0x138] sm:$0xff] }
 0x4be   : > { %v4291_v29 = vld [vmem:[#allocation2 + $0x298] sm:$0xff]  ;;  %v3824_v42 = vpop.xlane.xlu0 %3823  ;;  %v3435_v43 = vmax.f32 %v3178_v10, 0.0  ;;  %v3474_v59 = vld [vmem:[#allocation2 + $0x130] sm:$0xff] }
 0x4bf   : > { %4419 = vst.msk [vmem:[%s6398_s11 + $0x298] sm:$0xff] %vm424_vm1, %v4291_v29  ;;  %4162 = vst.msk [vmem:[#allocation2 + $0x2a8] sm:$0xff] %vm424_vm1, %v4033_v14  ;;  %v4034_v38 = vmax.f32 %v3522_v11, %v3824_v42  ;;  %v3942_v44 = vmax.f32 %v3432_v23, %v3433_v6 }
 0x4c0   : > { %v3653_v46 = vpop.xlane.xlu1 %3652  ;;  %v4292_v47 = vld [vmem:[#allocation2 + $0x2a0] sm:$0xff]  ;;  %v3945_v20 = vmax.f32 %v3434_v24, %v3435_v43 }
 0x4c1   : > { %v3977_v15 = vmax.f32 %v3465_v8, %v3653_v46  ;;  %4420 = vst.msk [vmem:[%s6398_s11 + $0x2a0] sm:$0xff] %vm424_vm1, %v4292_v47  ;;  %4163 = vst.msk [vmem:[#allocation2 + $0x2b0] sm:$0xff] %vm424_vm1, %v4034_v38  ;;  %3943 = vmax.xlane.f32.xlu0 %v3942_v44  ;;  %v3527_v46 = vld [vmem:[#allocation2 + $0x2d8] sm:$0xff]  ;;  %v3476_v43 = vld [vmem:[#allocation2 + $0x140] sm:$0xff] }
 0x4c2   : > { %v4235_v33 = vld [vmem:[#allocation2 + $0xd8] sm:$0xff]  ;;  %v3656_v27 = vpop.xlane.xlu0 %3655  ;;  %3946 = vmax.xlane.f32.xlu1 %v3945_v20 }
 0x4c3   : > { %4363 = vst.msk [vmem:[%s6398_s11 + $0xd8] sm:$0xff] %vm424_vm1, %v4235_v33  ;;  %4106 = vst.msk [vmem:[#allocation2 + $0xe8] sm:$0xff] %vm424_vm1, %v3977_v15  ;;  %v3978_v9 = vmax.f32 %v3466_v4, %v3656_v27  ;;  %v3529_v4 = vld [vmem:[#allocation2 + $0x2e8] sm:$0xff] }
 0x4c4   : > { %v3827_v39 = vpop.xlane.xlu1 %3826  ;;  %v4236_v45 = vld [vmem:[#allocation2 + $0xe0] sm:$0xff] }
 0x4c5   : > { %v4035_v25 = vmax.f32 %v3523_v54, %v3827_v39  ;;  %4364 = vst.msk [vmem:[%s6398_s11 + $0xe0] sm:$0xff] %vm424_vm1, %v4236_v45  ;;  %4107 = vst.msk [vmem:[#allocation2 + $0xf0] sm:$0xff] %vm424_vm1, %v3978_v9  ;;  %v3472_v39 = vld [vmem:[#allocation2 + $0x120] sm:$0xff]  ;;  %v3473_v9 = vld [vmem:[#allocation2 + $0x128] sm:$0xff] }
 0x4c6   : > { %v4293_v62 = vld [vmem:[#allocation2 + $0x2a8] sm:$0xff]  ;;  %v3830_v58 = vpop.xlane.xlu0 %3829  ;;  %v3530_v45 = vld [vmem:[#allocation2 + $0x2f0] sm:$0xff] }
 0x4c7   : > { %4421 = vst.msk [vmem:[%s6398_s11 + $0x2a8] sm:$0xff] %vm424_vm1, %v4293_v62  ;;  %4164 = vst.msk [vmem:[#allocation2 + $0x2b8] sm:$0xff] %vm424_vm1, %v4035_v25  ;;  %v4036_v17 = vmax.f32 %v3524_v53, %v3830_v58 }
 0x4c8   : > { %v3659_v31 = vpop.xlane.xlu1 %3658  ;;  %v4294_v49 = vld [vmem:[#allocation2 + $0x2b0] sm:$0xff] }
 0x4c9   : > { %v3979_v21 = vmax.f32 %v3467_v32, %v3659_v31  ;;  %4422 = vst.msk [vmem:[%s6398_s11 + $0x2b0] sm:$0xff] %vm424_vm1, %v4294_v49  ;;  %4165 = vst.msk [vmem:[#allocation2 + $0x2c0] sm:$0xff] %vm424_vm1, %v4036_v17 }
 0x4ca   : > { %v4237_v57 = vld [vmem:[#allocation2 + $0xe8] sm:$0xff]  ;;  %v3662_v50 = vpop.xlane.xlu0 %3661 }
 0x4cb   : > { %4365 = vst.msk [vmem:[%s6398_s11 + $0xe8] sm:$0xff] %vm424_vm1, %v4237_v57  ;;  %4108 = vst.msk [vmem:[#allocation2 + $0xf8] sm:$0xff] %vm424_vm1, %v3979_v21  ;;  %v3980_v14 = vmax.f32 %v3468_v41, %v3662_v50 }
 0x4cc   : > { %v3833_v35 = vpop.xlane.xlu1 %3832  ;;  %v4238_v29 = vld [vmem:[#allocation2 + $0xf0] sm:$0xff] }
 0x4cd   : > { %v4037_v7 = vmax.f32 %v3525_v0, %v3833_v35  ;;  %4366 = vst.msk [vmem:[%s6398_s11 + $0xf0] sm:$0xff] %vm424_vm1, %v4238_v29  ;;  %4109 = vst.msk [vmem:[#allocation2 + $0x100] sm:$0xff] %vm424_vm1, %v3980_v14  ;;  %v3532_v0 = vld [vmem:[#allocation2 + $0x300] sm:$0xff]  ;;  %v3533_v35 = vld [vmem:[#allocation2 + $0x308] sm:$0xff] }
 0x4ce   : > { %v4295_v36 = vld [vmem:[#allocation2 + $0x2b8] sm:$0xff]  ;;  %v3836_v26 = vpop.xlane.xlu0 %3835  ;;  %v3477_v29 = vld [vmem:[#allocation2 + $0x148] sm:$0xff] }
 0x4cf   : > { %4423 = vst.msk [vmem:[%s6398_s11 + $0x2b8] sm:$0xff] %vm424_vm1, %v4295_v36  ;;  %4166 = vst.msk [vmem:[#allocation2 + $0x2c8] sm:$0xff] %vm424_vm1, %v4037_v7  ;;  %v4038_v11 = vmax.f32 %v3526_v34, %v3836_v26  ;;  %v3534_v34 = vld [vmem:[#allocation2 + $0x310] sm:$0xff] }
 0x4d0   : > { %v3665_v8 = vpop.xlane.xlu1 %3664  ;;  %v4296_v13 = vld [vmem:[#allocation2 + $0x2c0] sm:$0xff] }
 0x4d1   : > { %v3981_v63 = vmax.f32 %v3469_v48, %v3665_v8  ;;  %4424 = vst.msk [vmem:[%s6398_s11 + $0x2c0] sm:$0xff] %vm424_vm1, %v4296_v13  ;;  %4167 = vst.msk [vmem:[#allocation2 + $0x2d0] sm:$0xff] %vm424_vm1, %v4038_v11 }
 0x4d2   : > { %v4239_v37 = vld [vmem:[#allocation2 + $0xf8] sm:$0xff]  ;;  %v3668_v42 = vpop.xlane.xlu0 %3667 }
 0x4d3   : > { %4367 = vst.msk [vmem:[%s6398_s11 + $0xf8] sm:$0xff] %vm424_vm1, %v4239_v37  ;;  %4110 = vst.msk [vmem:[#allocation2 + $0x108] sm:$0xff] %vm424_vm1, %v3981_v63  ;;  %v3982_v33 = vmax.f32 %v3470_v52, %v3668_v42  ;;  %v3478_v52 = vld [vmem:[#allocation2 + $0x150] sm:$0xff] }
 0x4d4   : > { %v3839_v15 = vpop.xlane.xlu1 %3838  ;;  %v4240_v38 = vld [vmem:[#allocation2 + $0x100] sm:$0xff] }
 0x4d5   : > { %v4039_v22 = vmax.f32 %v3527_v46, %v3839_v15  ;;  %4368 = vst.msk [vmem:[%s6398_s11 + $0x100] sm:$0xff] %vm424_vm1, %v4240_v38  ;;  %4111 = vst.msk [vmem:[#allocation2 + $0x110] sm:$0xff] %vm424_vm1, %v3982_v33  ;;  %v3535_v46 = vld [vmem:[#allocation2 + $0x318] sm:$0xff] }
 0x4d6   : > { %v4297_v40 = vld [vmem:[#allocation2 + $0x2c8] sm:$0xff]  ;;  %v3842_v47 = vpop.xlane.xlu0 %3841 }
 0x4d7   : > { %4425 = vst.msk [vmem:[%s6398_s11 + $0x2c8] sm:$0xff] %vm424_vm1, %v4297_v40  ;;  %4168 = vst.msk [vmem:[#allocation2 + $0x2d8] sm:$0xff] %vm424_vm1, %v4039_v22  ;;  %v4040_v61 = vmax.f32 %v3528_v12, %v3842_v47  ;;  %v3536_v12 = vld [vmem:[#allocation2 + $0x320] sm:$0xff] }
 0x4d8   : > { %v3671_v2 = vpop.xlane.xlu1 %3670  ;;  %v4298_v60 = vld [vmem:[#allocation2 + $0x2d0] sm:$0xff] }
 0x4d9   : > { %v3983_v54 = vmax.f32 %v3471_v19, %v3671_v2  ;;  %4426 = vst.msk [vmem:[%s6398_s11 + $0x2d0] sm:$0xff] %vm424_vm1, %v4298_v60  ;;  %4169 = vst.msk [vmem:[#allocation2 + $0x2e0] sm:$0xff] %vm424_vm1, %v4040_v61  ;;  %v3479_v19 = vld [vmem:[#allocation2 + $0x158] sm:$0xff] }
 0x4da   : > { %v4241_v56 = vld [vmem:[#allocation2 + $0x108] sm:$0xff]  ;;  %v3674_v25 = vpop.xlane.xlu0 %3673 }
 0x4db   : > { %4369 = vst.msk [vmem:[%s6398_s11 + $0x108] sm:$0xff] %vm424_vm1, %v4241_v56  ;;  %4112 = vst.msk [vmem:[#allocation2 + $0x118] sm:$0xff] %vm424_vm1, %v3983_v54  ;;  %v3984_v62 = vmax.f32 %v3472_v39, %v3674_v25  ;;  %v3480_v39 = vld [vmem:[#allocation2 + $0x160] sm:$0xff] }
 0x4dc   : > { %v3845_v28 = vpop.xlane.xlu1 %3844  ;;  %v4242_v32 = vld [vmem:[#allocation2 + $0x110] sm:$0xff] }
 0x4dd   : > { %v4041_v5 = vmax.f32 %v3529_v4, %v3845_v28  ;;  %4370 = vst.msk [vmem:[%s6398_s11 + $0x110] sm:$0xff] %vm424_vm1, %v4242_v32  ;;  %4113 = vst.msk [vmem:[#allocation2 + $0x120] sm:$0xff] %vm424_vm1, %v3984_v62  ;;  %v3537_v4 = vld [vmem:[#allocation2 + $0x328] sm:$0xff] }
 0x4de   : > { %v4299_v27 = vld [vmem:[#allocation2 + $0x2d8] sm:$0xff]  ;;  %v3848_v53 = vpop.xlane.xlu0 %3847 }
 0x4df   : > { %4427 = vst.msk [vmem:[%s6398_s11 + $0x2d8] sm:$0xff] %vm424_vm1, %v4299_v27  ;;  %4170 = vst.msk [vmem:[#allocation2 + $0x2e8] sm:$0xff] %vm424_vm1, %v4041_v5  ;;  %v4042_v55 = vmax.f32 %v3530_v45, %v3848_v53  ;;  %v3538_v45 = vld [vmem:[#allocation2 + $0x330] sm:$0xff] }
 0x4e0   : > { %v3677_v51 = vpop.xlane.xlu1 %3676  ;;  %v4300_v21 = vld [vmem:[#allocation2 + $0x2e0] sm:$0xff] }
 0x4e1   : > { %v3985_v3 = vmax.f32 %v3473_v9, %v3677_v51  ;;  %4428 = vst.msk [vmem:[%s6398_s11 + $0x2e0] sm:$0xff] %vm424_vm1, %v4300_v21  ;;  %4171 = vst.msk [vmem:[#allocation2 + $0x2f0] sm:$0xff] %vm424_vm1, %v4042_v55  ;;  %v3481_v9 = vld [vmem:[#allocation2 + $0x168] sm:$0xff] }
 0x4e2   : > { %v4243_v31 = vld [vmem:[#allocation2 + $0x118] sm:$0xff]  ;;  %v3680_v57 = vpop.xlane.xlu0 %3679 }
 0x4e3   : > { %4371 = vst.msk [vmem:[%s6398_s11 + $0x118] sm:$0xff] %vm424_vm1, %v4243_v31  ;;  %4114 = vst.msk [vmem:[#allocation2 + $0x128] sm:$0xff] %vm424_vm1, %v3985_v3  ;;  %v3986_v17 = vmax.f32 %v3474_v59, %v3680_v57  ;;  %v3482_v59 = vld [vmem:[#allocation2 + $0x170] sm:$0xff] }
 0x4e4   : > { %v3851_v58 = vpop.xlane.xlu1 %3850  ;;  %v4244_v16 = vld [vmem:[#allocation2 + $0x120] sm:$0xff] }
 0x4e5   : > { %v4043_v1 = vmax.f32 %v3531_v30, %v3851_v58  ;;  %4372 = vst.msk [vmem:[%s6398_s11 + $0x120] sm:$0xff] %vm424_vm1, %v4244_v16  ;;  %4115 = vst.msk [vmem:[#allocation2 + $0x130] sm:$0xff] %vm424_vm1, %v3986_v17  ;;  %v3539_v30 = vld [vmem:[#allocation2 + $0x338] sm:$0xff] }
 0x4e6   : > { %v4301_v23 = vld [vmem:[#allocation2 + $0x2e8] sm:$0xff]  ;;  %v3854_v10 = vpop.xlane.xlu0 %3853 }
 0x4e7   : > { %4429 = vst.msk [vmem:[%s6398_s11 + $0x2e8] sm:$0xff] %vm424_vm1, %v4301_v23  ;;  %4172 = vst.msk [vmem:[#allocation2 + $0x2f8] sm:$0xff] %vm424_vm1, %v4043_v1  ;;  %v4044_v24 = vmax.f32 %v3532_v0, %v3854_v10  ;;  %v3540_v0 = vld [vmem:[#allocation2 + $0x340] sm:$0xff] }
 0x4e8   : > { %v3683_v49 = vpop.xlane.xlu1 %3682  ;;  %v4302_v44 = vld [vmem:[#allocation2 + $0x2f0] sm:$0xff] }
 0x4e9   : > { %v3987_v6 = vmax.f32 %v3475_v18, %v3683_v49  ;;  %4430 = vst.msk [vmem:[%s6398_s11 + $0x2f0] sm:$0xff] %vm424_vm1, %v4302_v44  ;;  %4173 = vst.msk [vmem:[#allocation2 + $0x300] sm:$0xff] %vm424_vm1, %v4044_v24  ;;  %v3483_v18 = vld [vmem:[#allocation2 + $0x178] sm:$0xff] }
 0x4ea   : > { %v4245_v41 = vld [vmem:[#allocation2 + $0x128] sm:$0xff] }
 0x4eb   : > { %4373 = vst.msk [vmem:[%s6398_s11 + $0x128] sm:$0xff] %vm424_vm1, %v4245_v41  ;;  %4116 = vst.msk [vmem:[#allocation2 + $0x138] sm:$0xff] %vm424_vm1, %v3987_v6  ;;  %v3686_v36 = vpop.xlane.xlu0 %3685 }
 0x4ec   : > { %v3857_v7 = vpop.xlane.xlu1 %3856  ;;  %v3988_v48 = vmax.f32 %v3476_v43, %v3686_v36  ;;  %v4246_v20 = vld [vmem:[#allocation2 + $0x130] sm:$0xff]  ;;  %v3484_v43 = vld [vmem:[#allocation2 + $0x180] sm:$0xff] }
 0x4ed   : > { %v4045_v50 = vmax.f32 %v3533_v35, %v3857_v7  ;;  %4374 = vst.msk [vmem:[%s6398_s11 + $0x130] sm:$0xff] %vm424_vm1, %v4246_v20  ;;  %v3541_v35 = vld [vmem:[#allocation2 + $0x348] sm:$0xff] }
 0x4ee   : > { %v4303_v14 = vld [vmem:[#allocation2 + $0x2f8] sm:$0xff]  ;;  %4117 = vst.msk [vmem:[#allocation2 + $0x140] sm:$0xff] %vm424_vm1, %v3988_v48 }
 0x4ef   : > { %4431 = vst.msk [vmem:[%s6398_s11 + $0x2f8] sm:$0xff] %vm424_vm1, %v4303_v14  ;;  %4174 = vst.msk [vmem:[#allocation2 + $0x308] sm:$0xff] %vm424_vm1, %v4045_v50  ;;  %v3860_v26 = vpop.xlane.xlu0 %3859 }
 0x4f0   : > { %v3689_v8 = vpop.xlane.xlu1 %3688  ;;  %v4046_v11 = vmax.f32 %v3534_v34, %v3860_v26  ;;  %v4304_v13 = vld [vmem:[#allocation2 + $0x300] sm:$0xff]  ;;  %v3542_v34 = vld [vmem:[#allocation2 + $0x350] sm:$0xff] }
 0x4f1   : > { %v3989_v63 = vmax.f32 %v3477_v29, %v3689_v8  ;;  %4432 = vst.msk [vmem:[%s6398_s11 + $0x300] sm:$0xff] %vm424_vm1, %v4304_v13  ;;  %v3485_v29 = vld [vmem:[#allocation2 + $0x188] sm:$0xff] }
 0x4f2   : > { %v4247_v37 = vld [vmem:[#allocation2 + $0x138] sm:$0xff]  ;;  %4175 = vst.msk [vmem:[#allocation2 + $0x310] sm:$0xff] %vm424_vm1, %v4046_v11 }
 0x4f3   : > { %4375 = vst.msk [vmem:[%s6398_s11 + $0x138] sm:$0xff] %vm424_vm1, %v4247_v37  ;;  %4118 = vst.msk [vmem:[#allocation2 + $0x148] sm:$0xff] %vm424_vm1, %v3989_v63  ;;  %v3692_v42 = vpop.xlane.xlu0 %3691 }
 0x4f4   : > { %v3863_v15 = vpop.xlane.xlu1 %3862  ;;  %v3990_v33 = vmax.f32 %v3478_v52, %v3692_v42  ;;  %v3486_v52 = vld [vmem:[#allocation2 + $0x190] sm:$0xff] }
 0x4f5   : > { %v4047_v22 = vmax.f32 %v3535_v46, %v3863_v15  ;;  %v4248_v38 = vld [vmem:[#allocation2 + $0x140] sm:$0xff]  ;;  %v3543_v46 = vld [vmem:[#allocation2 + $0x358] sm:$0xff] }
 0x4f6   : > { %v4305_v40 = vld [vmem:[#allocation2 + $0x308] sm:$0xff]  ;;  %4376 = vst.msk [vmem:[%s6398_s11 + $0x140] sm:$0xff] %vm424_vm1, %v4248_v38  ;;  %4119 = vst.msk [vmem:[#allocation2 + $0x150] sm:$0xff] %vm424_vm1, %v3990_v33 }
 0x4f7   : > { %4433 = vst.msk [vmem:[%s6398_s11 + $0x308] sm:$0xff] %vm424_vm1, %v4305_v40  ;;  %4176 = vst.msk [vmem:[#allocation2 + $0x318] sm:$0xff] %vm424_vm1, %v4047_v22  ;;  %v3866_v47 = vpop.xlane.xlu0 %3865 }
 0x4f8   : > { %v3695_v2 = vpop.xlane.xlu1 %3694  ;;  %v4048_v61 = vmax.f32 %v3536_v12, %v3866_v47  ;;  %v3544_v12 = vld [vmem:[#allocation2 + $0x360] sm:$0xff] }
 0x4f9   : > { %v3991_v54 = vmax.f32 %v3479_v19, %v3695_v2  ;;  %v4306_v60 = vld [vmem:[#allocation2 + $0x310] sm:$0xff]  ;;  %v3487_v19 = vld [vmem:[#allocation2 + $0x198] sm:$0xff] }
 0x4fa   : > { %v4249_v56 = vld [vmem:[#allocation2 + $0x148] sm:$0xff]  ;;  %4434 = vst.msk [vmem:[%s6398_s11 + $0x310] sm:$0xff] %vm424_vm1, %v4306_v60  ;;  %4177 = vst.msk [vmem:[#allocation2 + $0x320] sm:$0xff] %vm424_vm1, %v4048_v61 }
 0x4fb   : > { %4377 = vst.msk [vmem:[%s6398_s11 + $0x148] sm:$0xff] %vm424_vm1, %v4249_v56  ;;  %4120 = vst.msk [vmem:[#allocation2 + $0x158] sm:$0xff] %vm424_vm1, %v3991_v54  ;;  %v3698_v25 = vpop.xlane.xlu0 %3697 }
 0x4fc   : > { %v3869_v28 = vpop.xlane.xlu1 %3868  ;;  %v3992_v62 = vmax.f32 %v3480_v39, %v3698_v25  ;;  %v3488_v39 = vld [vmem:[#allocation2 + $0x1a0] sm:$0xff] }
 0x4fd   : > { %v4049_v5 = vmax.f32 %v3537_v4, %v3869_v28  ;;  %v4250_v32 = vld [vmem:[#allocation2 + $0x150] sm:$0xff]  ;;  %v3545_v4 = vld [vmem:[#allocation2 + $0x368] sm:$0xff] }
 0x4fe   : > { %v4307_v27 = vld [vmem:[#allocation2 + $0x318] sm:$0xff]  ;;  %4378 = vst.msk [vmem:[%s6398_s11 + $0x150] sm:$0xff] %vm424_vm1, %v4250_v32  ;;  %4121 = vst.msk [vmem:[#allocation2 + $0x160] sm:$0xff] %vm424_vm1, %v3992_v62 }
 0x4ff   : > { %4435 = vst.msk [vmem:[%s6398_s11 + $0x318] sm:$0xff] %vm424_vm1, %v4307_v27  ;;  %4178 = vst.msk [vmem:[#allocation2 + $0x328] sm:$0xff] %vm424_vm1, %v4049_v5  ;;  %v3872_v53 = vpop.xlane.xlu0 %3871 }
 0x500   : > { %v3701_v51 = vpop.xlane.xlu1 %3700  ;;  %v4050_v55 = vmax.f32 %v3538_v45, %v3872_v53  ;;  %v3546_v45 = vld [vmem:[#allocation2 + $0x370] sm:$0xff] }
 0x501   : > { %v3993_v3 = vmax.f32 %v3481_v9, %v3701_v51  ;;  %v4308_v21 = vld [vmem:[#allocation2 + $0x320] sm:$0xff]  ;;  %v3489_v9 = vld [vmem:[#allocation2 + $0x1a8] sm:$0xff] }
 0x502   : > { %v4251_v31 = vld [vmem:[#allocation2 + $0x158] sm:$0xff]  ;;  %4436 = vst.msk [vmem:[%s6398_s11 + $0x320] sm:$0xff] %vm424_vm1, %v4308_v21  ;;  %4179 = vst.msk [vmem:[#allocation2 + $0x330] sm:$0xff] %vm424_vm1, %v4050_v55 }
 0x503   : > { %4379 = vst.msk [vmem:[%s6398_s11 + $0x158] sm:$0xff] %vm424_vm1, %v4251_v31  ;;  %4122 = vst.msk [vmem:[#allocation2 + $0x168] sm:$0xff] %vm424_vm1, %v3993_v3  ;;  %v3704_v57 = vpop.xlane.xlu0 %3703 }
 0x504   : > { %v3875_v58 = vpop.xlane.xlu1 %3874  ;;  %v3994_v17 = vmax.f32 %v3482_v59, %v3704_v57  ;;  %v3490_v59 = vld [vmem:[#allocation2 + $0x1b0] sm:$0xff] }
 0x505   : > { %v4051_v1 = vmax.f32 %v3539_v30, %v3875_v58  ;;  %v4252_v16 = vld [vmem:[#allocation2 + $0x160] sm:$0xff]  ;;  %v3547_v30 = vld [vmem:[#allocation2 + $0x378] sm:$0xff] }
 0x506   : > { %v4309_v23 = vld [vmem:[#allocation2 + $0x328] sm:$0xff]  ;;  %4380 = vst.msk [vmem:[%s6398_s11 + $0x160] sm:$0xff] %vm424_vm1, %v4252_v16  ;;  %4123 = vst.msk [vmem:[#allocation2 + $0x170] sm:$0xff] %vm424_vm1, %v3994_v17 }
 0x507   : > { %4437 = vst.msk [vmem:[%s6398_s11 + $0x328] sm:$0xff] %vm424_vm1, %v4309_v23  ;;  %4180 = vst.msk [vmem:[#allocation2 + $0x338] sm:$0xff] %vm424_vm1, %v4051_v1  ;;  %v3878_v10 = vpop.xlane.xlu0 %3877 }
 0x508   : > { %v3707_v49 = vpop.xlane.xlu1 %3706  ;;  %v4052_v24 = vmax.f32 %v3540_v0, %v3878_v10  ;;  %v3548_v0 = vld [vmem:[#allocation2 + $0x380] sm:$0xff] }
 0x509   : > { %v3995_v6 = vmax.f32 %v3483_v18, %v3707_v49  ;;  %v4310_v44 = vld [vmem:[#allocation2 + $0x330] sm:$0xff]  ;;  %v3491_v18 = vld [vmem:[#allocation2 + $0x1b8] sm:$0xff] }
 0x50a   : > { %v4253_v41 = vld [vmem:[#allocation2 + $0x168] sm:$0xff]  ;;  %4438 = vst.msk [vmem:[%s6398_s11 + $0x330] sm:$0xff] %vm424_vm1, %v4310_v44  ;;  %4181 = vst.msk [vmem:[#allocation2 + $0x340] sm:$0xff] %vm424_vm1, %v4052_v24 }
 0x50b   : > { %4381 = vst.msk [vmem:[%s6398_s11 + $0x168] sm:$0xff] %vm424_vm1, %v4253_v41  ;;  %4124 = vst.msk [vmem:[#allocation2 + $0x178] sm:$0xff] %vm424_vm1, %v3995_v6  ;;  %v3710_v36 = vpop.xlane.xlu0 %3709 }
 0x50c   : > { %v3881_v7 = vpop.xlane.xlu1 %3880  ;;  %v3996_v48 = vmax.f32 %v3484_v43, %v3710_v36  ;;  %v3492_v43 = vld [vmem:[#allocation2 + $0x1c0] sm:$0xff] }
 0x50d   : > { %v4053_v50 = vmax.f32 %v3541_v35, %v3881_v7  ;;  %v4254_v20 = vld [vmem:[#allocation2 + $0x170] sm:$0xff]  ;;  %v3549_v35 = vld [vmem:[#allocation2 + $0x388] sm:$0xff] }
 0x50e   : > { %v4311_v14 = vld [vmem:[#allocation2 + $0x338] sm:$0xff]  ;;  %4382 = vst.msk [vmem:[%s6398_s11 + $0x170] sm:$0xff] %vm424_vm1, %v4254_v20  ;;  %4125 = vst.msk [vmem:[#allocation2 + $0x180] sm:$0xff] %vm424_vm1, %v3996_v48 }
 0x50f   : > { %4439 = vst.msk [vmem:[%s6398_s11 + $0x338] sm:$0xff] %vm424_vm1, %v4311_v14  ;;  %4182 = vst.msk [vmem:[#allocation2 + $0x348] sm:$0xff] %vm424_vm1, %v4053_v50  ;;  %v3884_v26 = vpop.xlane.xlu0 %3883 }
 0x510   : > { %v3713_v8 = vpop.xlane.xlu1 %3712  ;;  %v4054_v11 = vmax.f32 %v3542_v34, %v3884_v26  ;;  %v3550_v34 = vld [vmem:[#allocation2 + $0x390] sm:$0xff] }
 0x511   : > { %v3997_v63 = vmax.f32 %v3485_v29, %v3713_v8  ;;  %v4312_v13 = vld [vmem:[#allocation2 + $0x340] sm:$0xff]  ;;  %v3493_v29 = vld [vmem:[#allocation2 + $0x1c8] sm:$0xff] }
 0x512   : > { %v4255_v37 = vld [vmem:[#allocation2 + $0x178] sm:$0xff]  ;;  %4440 = vst.msk [vmem:[%s6398_s11 + $0x340] sm:$0xff] %vm424_vm1, %v4312_v13  ;;  %4183 = vst.msk [vmem:[#allocation2 + $0x350] sm:$0xff] %vm424_vm1, %v4054_v11 }
 0x513   : > { %4383 = vst.msk [vmem:[%s6398_s11 + $0x178] sm:$0xff] %vm424_vm1, %v4255_v37  ;;  %4126 = vst.msk [vmem:[#allocation2 + $0x188] sm:$0xff] %vm424_vm1, %v3997_v63  ;;  %v3716_v42 = vpop.xlane.xlu0 %3715 }
 0x514   : > { %v3887_v15 = vpop.xlane.xlu1 %3886  ;;  %v3998_v33 = vmax.f32 %v3486_v52, %v3716_v42  ;;  %v3552_v52 = vld [vmem:[#allocation2 + $0x3a0] sm:$0xff] }
 0x515   : > { %v4055_v22 = vmax.f32 %v3543_v46, %v3887_v15  ;;  %v4256_v38 = vld [vmem:[#allocation2 + $0x180] sm:$0xff]  ;;  %v3551_v46 = vld [vmem:[#allocation2 + $0x398] sm:$0xff] }
 0x516   : > { %v4313_v40 = vld [vmem:[#allocation2 + $0x348] sm:$0xff]  ;;  %4384 = vst.msk [vmem:[%s6398_s11 + $0x180] sm:$0xff] %vm424_vm1, %v4256_v38  ;;  %4127 = vst.msk [vmem:[#allocation2 + $0x190] sm:$0xff] %vm424_vm1, %v3998_v33 }
 0x517   : > { %4441 = vst.msk [vmem:[%s6398_s11 + $0x348] sm:$0xff] %vm424_vm1, %v4313_v40  ;;  %4184 = vst.msk [vmem:[#allocation2 + $0x358] sm:$0xff] %vm424_vm1, %v4055_v22  ;;  %v3890_v47 = vpop.xlane.xlu0 %3889 }
 0x518   : > { %v3719_v2 = vpop.xlane.xlu1 %3718  ;;  %v4056_v61 = vmax.f32 %v3544_v12, %v3890_v47  ;;  %v3554_v47 = vld [vmem:[#allocation2 + $0x3b0] sm:$0xff] }
 0x519   : > { %v3999_v54 = vmax.f32 %v3487_v19, %v3719_v2  ;;  %v4314_v60 = vld [vmem:[#allocation2 + $0x350] sm:$0xff]  ;;  %v3553_v19 = vld [vmem:[#allocation2 + $0x3a8] sm:$0xff] }
 0x51a   : > { %v4257_v56 = vld [vmem:[#allocation2 + $0x188] sm:$0xff]  ;;  %4442 = vst.msk [vmem:[%s6398_s11 + $0x350] sm:$0xff] %vm424_vm1, %v4314_v60  ;;  %4185 = vst.msk [vmem:[#allocation2 + $0x360] sm:$0xff] %vm424_vm1, %v4056_v61 }
 0x51b   : > { %4385 = vst.msk [vmem:[%s6398_s11 + $0x188] sm:$0xff] %vm424_vm1, %v4257_v56  ;;  %4128 = vst.msk [vmem:[#allocation2 + $0x198] sm:$0xff] %vm424_vm1, %v3999_v54  ;;  %v3722_v25 = vpop.xlane.xlu0 %3721 }
 0x51c   : > { %v3893_v28 = vpop.xlane.xlu1 %3892  ;;  %v4000_v62 = vmax.f32 %v3488_v39, %v3722_v25 }
 0x51d   : > { %v4057_v5 = vmax.f32 %v3545_v4, %v3893_v28  ;;  %v4258_v32 = vld [vmem:[#allocation2 + $0x190] sm:$0xff]  ;;  %v3555_v4 = vld [vmem:[#allocation2 + $0x3b8] sm:$0xff] }
 0x51e   : > { %v4315_v27 = vld [vmem:[#allocation2 + $0x358] sm:$0xff]  ;;  %4386 = vst.msk [vmem:[%s6398_s11 + $0x190] sm:$0xff] %vm424_vm1, %v4258_v32  ;;  %4129 = vst.msk [vmem:[#allocation2 + $0x1a0] sm:$0xff] %vm424_vm1, %v4000_v62  ;;  %v3556_v62 = vld [vmem:[#allocation2 + $0x3c0] sm:$0xff] }
 0x51f   : > { %4443 = vst.msk [vmem:[%s6398_s11 + $0x358] sm:$0xff] %vm424_vm1, %v4315_v27  ;;  %4186 = vst.msk [vmem:[#allocation2 + $0x368] sm:$0xff] %vm424_vm1, %v4057_v5  ;;  %v3896_v53 = vpop.xlane.xlu0 %3895  ;;  %v3557_v32 = vld [vmem:[#allocation2 + $0x3c8] sm:$0xff] }
 0x520   : > { %v3725_v51 = vpop.xlane.xlu1 %3724  ;;  %v4058_v55 = vmax.f32 %v3546_v45, %v3896_v53 }
 0x521   : > { %v4001_v3 = vmax.f32 %v3489_v9, %v3725_v51  ;;  %v4316_v21 = vld [vmem:[#allocation2 + $0x360] sm:$0xff] }
 0x522   : > { %v4259_v31 = vld [vmem:[#allocation2 + $0x198] sm:$0xff]  ;;  %4444 = vst.msk [vmem:[%s6398_s11 + $0x360] sm:$0xff] %vm424_vm1, %v4316_v21  ;;  %4187 = vst.msk [vmem:[#allocation2 + $0x370] sm:$0xff] %vm424_vm1, %v4058_v55  ;;  %v3558_v55 = vld [vmem:[#allocation2 + $0x3d0] sm:$0xff] }
 0x523   : > { %4387 = vst.msk [vmem:[%s6398_s11 + $0x198] sm:$0xff] %vm424_vm1, %v4259_v31  ;;  %4130 = vst.msk [vmem:[#allocation2 + $0x1a8] sm:$0xff] %vm424_vm1, %v4001_v3  ;;  %v3728_v57 = vpop.xlane.xlu0 %3727  ;;  %v3559_v21 = vld [vmem:[#allocation2 + $0x3d8] sm:$0xff] }
 0x524   : > { %v3899_v58 = vpop.xlane.xlu1 %3898  ;;  %v4002_v17 = vmax.f32 %v3490_v59, %v3728_v57 }
 0x525   : > { %v4059_v1 = vmax.f32 %v3547_v30, %v3899_v58  ;;  %v4260_v16 = vld [vmem:[#allocation2 + $0x1a0] sm:$0xff] }
 0x526   : > { %v4317_v23 = vld [vmem:[#allocation2 + $0x368] sm:$0xff]  ;;  %4388 = vst.msk [vmem:[%s6398_s11 + $0x1a0] sm:$0xff] %vm424_vm1, %v4260_v16  ;;  %4131 = vst.msk [vmem:[#allocation2 + $0x1b0] sm:$0xff] %vm424_vm1, %v4002_v17  ;;  %v3560_v17 = vld [vmem:[#allocation2 + $0x3e0] sm:$0xff] }
 0x527   : > { %4445 = vst.msk [vmem:[%s6398_s11 + $0x368] sm:$0xff] %vm424_vm1, %v4317_v23  ;;  %4188 = vst.msk [vmem:[#allocation2 + $0x378] sm:$0xff] %vm424_vm1, %v4059_v1  ;;  %v3902_v10 = vpop.xlane.xlu0 %3901  ;;  %v3561_v16 = vld [vmem:[#allocation2 + $0x3e8] sm:$0xff] }
 0x528   : > { %v3731_v49 = vpop.xlane.xlu1 %3730  ;;  %v4060_v24 = vmax.f32 %v3548_v0, %v3902_v10 }
 0x529   : > { %v4003_v6 = vmax.f32 %v3491_v18, %v3731_v49  ;;  %v4318_v44 = vld [vmem:[#allocation2 + $0x370] sm:$0xff] }
 0x52a   : > { %v4261_v41 = vld [vmem:[#allocation2 + $0x1a8] sm:$0xff]  ;;  %4446 = vst.msk [vmem:[%s6398_s11 + $0x370] sm:$0xff] %vm424_vm1, %v4318_v44  ;;  %4189 = vst.msk [vmem:[#allocation2 + $0x380] sm:$0xff] %vm424_vm1, %v4060_v24  ;;  %v3562_v24 = vld [vmem:[#allocation2 + $0x3f0] sm:$0xff] }
 0x52b   : > { %4389 = vst.msk [vmem:[%s6398_s11 + $0x1a8] sm:$0xff] %vm424_vm1, %v4261_v41  ;;  %4132 = vst.msk [vmem:[#allocation2 + $0x1b8] sm:$0xff] %vm424_vm1, %v4003_v6  ;;  %v3734_v36 = vpop.xlane.xlu0 %3733  ;;  %v3563_v44 = vld [vmem:[#allocation2 + $0x3f8] sm:$0xff] }
 0x52c   : > { %v3905_v7 = vpop.xlane.xlu1 %3904  ;;  %v4004_v48 = vmax.f32 %v3492_v43, %v3734_v36 }
 0x52d   : > { %v4061_v50 = vmax.f32 %v3549_v35, %v3905_v7  ;;  %v4262_v20 = vld [vmem:[#allocation2 + $0x1b0] sm:$0xff] }
 0x52e   : > { %v4319_v14 = vld [vmem:[#allocation2 + $0x378] sm:$0xff]  ;;  %4390 = vst.msk [vmem:[%s6398_s11 + $0x1b0] sm:$0xff] %vm424_vm1, %v4262_v20  ;;  %4133 = vst.msk [vmem:[#allocation2 + $0x1c0] sm:$0xff] %vm424_vm1, %v4004_v48 }
 0x52f   : > { %4447 = vst.msk [vmem:[%s6398_s11 + $0x378] sm:$0xff] %vm424_vm1, %v4319_v14  ;;  %4190 = vst.msk [vmem:[#allocation2 + $0x388] sm:$0xff] %vm424_vm1, %v4061_v50  ;;  %v3908_v26 = vpop.xlane.xlu0 %3907 }
 0x530   : > { %v3737_v8 = vpop.xlane.xlu1 %3736  ;;  %v4062_v11 = vmax.f32 %v3550_v34, %v3908_v26 }
 0x531   : > { %v4005_v63 = vmax.f32 %v3493_v29, %v3737_v8  ;;  %v4320_v13 = vld [vmem:[#allocation2 + $0x380] sm:$0xff] }
 0x532   : > { %v4263_v37 = vld [vmem:[#allocation2 + $0x1b8] sm:$0xff]  ;;  %4448 = vst.msk [vmem:[%s6398_s11 + $0x380] sm:$0xff] %vm424_vm1, %v4320_v13  ;;  %4191 = vst.msk [vmem:[#allocation2 + $0x390] sm:$0xff] %vm424_vm1, %v4062_v11 }
 0x533   : > { %4391 = vst.msk [vmem:[%s6398_s11 + $0x1b8] sm:$0xff] %vm424_vm1, %v4263_v37  ;;  %4134 = vst.msk [vmem:[#allocation2 + $0x1c8] sm:$0xff] %vm424_vm1, %v4005_v63  ;;  %v3914_v42 = vpop.xlane.xlu0 %3913 }
 0x534   : > { %v3911_v15 = vpop.xlane.xlu1 %3910  ;;  %v4064_v33 = vmax.f32 %v3552_v52, %v3914_v42 }
 0x535   : > { %v4063_v22 = vmax.f32 %v3551_v46, %v3911_v15  ;;  %v4264_v38 = vld [vmem:[#allocation2 + $0x1c0] sm:$0xff] }
 0x536   : > { %v4321_v40 = vld [vmem:[#allocation2 + $0x388] sm:$0xff]  ;;  %4392 = vst.msk [vmem:[%s6398_s11 + $0x1c0] sm:$0xff] %vm424_vm1, %v4264_v38  ;;  %4193 = vst.msk [vmem:[#allocation2 + $0x3a0] sm:$0xff] %vm424_vm1, %v4064_v33 }
 0x537   : > { %4449 = vst.msk [vmem:[%s6398_s11 + $0x388] sm:$0xff] %vm424_vm1, %v4321_v40  ;;  %4192 = vst.msk [vmem:[#allocation2 + $0x398] sm:$0xff] %vm424_vm1, %v4063_v22  ;;  %v3920_v61 = vpop.xlane.xlu0 %3919 }
 0x538   : > { %v3917_v12 = vpop.xlane.xlu1 %3916  ;;  %v4066_v60 = vmax.f32 %v3554_v47, %v3920_v61 }
 0x539   : > { %v4065_v2 = vmax.f32 %v3553_v19, %v3917_v12  ;;  %v4322_v56 = vld [vmem:[#allocation2 + $0x390] sm:$0xff] }
 0x53a   : > { %v4265_v54 = vld [vmem:[#allocation2 + $0x1c8] sm:$0xff]  ;;  %4450 = vst.msk [vmem:[%s6398_s11 + $0x390] sm:$0xff] %vm424_vm1, %v4322_v56  ;;  %4195 = vst.msk [vmem:[#allocation2 + $0x3b0] sm:$0xff] %vm424_vm1, %v4066_v60 }
 0x53b   : > { %4393 = vst.msk [vmem:[%s6398_s11 + $0x1c8] sm:$0xff] %vm424_vm1, %v4265_v54  ;;  %4194 = vst.msk [vmem:[#allocation2 + $0x3a8] sm:$0xff] %vm424_vm1, %v4065_v2  ;;  %v3926_v9 = vpop.xlane.xlu0 %3925 }
 0x53c   : > { %v3923_v28 = vpop.xlane.xlu1 %3922  ;;  %v4068_v45 = vmax.f32 %v3556_v62, %v3926_v9 }
 0x53d   : > { %v4324_v5 = vld [vmem:[#allocation2 + $0x3a0] sm:$0xff]  ;;  %v4067_v25 = vmax.f32 %v3555_v4, %v3923_v28 }
 0x53e   : > { %v4323_v39 = vld [vmem:[#allocation2 + $0x398] sm:$0xff]  ;;  %4452 = vst.msk [vmem:[%s6398_s11 + $0x3a0] sm:$0xff] %vm424_vm1, %v4324_v5  ;;  %4197 = vst.msk [vmem:[#allocation2 + $0x3c0] sm:$0xff] %vm424_vm1, %v4068_v45 }
 0x53f   : > { %4451 = vst.msk [vmem:[%s6398_s11 + $0x398] sm:$0xff] %vm424_vm1, %v4323_v39  ;;  %4196 = vst.msk [vmem:[#allocation2 + $0x3b8] sm:$0xff] %vm424_vm1, %v4067_v25  ;;  %v3932_v30 = vpop.xlane.xlu0 %3931 }
 0x540   : > { %v3929_v3 = vpop.xlane.xlu1 %3928  ;;  %v4070_v59 = vmax.f32 %v3558_v55, %v3932_v30 }
 0x541   : > { %v4326_v51 = vld [vmem:[#allocation2 + $0x3b0] sm:$0xff]  ;;  %v4069_v53 = vmax.f32 %v3557_v32, %v3929_v3 }
 0x542   : > { %v4325_v27 = vld [vmem:[#allocation2 + $0x3a8] sm:$0xff]  ;;  %4454 = vst.msk [vmem:[%s6398_s11 + $0x3b0] sm:$0xff] %vm424_vm1, %v4326_v51  ;;  %4199 = vst.msk [vmem:[#allocation2 + $0x3d0] sm:$0xff] %vm424_vm1, %v4070_v59 }
 0x543   : > { %4453 = vst.msk [vmem:[%s6398_s11 + $0x3a8] sm:$0xff] %vm424_vm1, %v4325_v27  ;;  %4198 = vst.msk [vmem:[#allocation2 + $0x3c8] sm:$0xff] %vm424_vm1, %v4069_v53 }
 0x544   : > { %v3935_v1 = vpop.xlane.xlu1 %3934 }
 0x545   : > { %v4328_v58 = vld [vmem:[#allocation2 + $0x3c0] sm:$0xff]  ;;  %v4071_v57 = vmax.f32 %v3559_v21, %v3935_v1  ;;  %v3938_v18 = vpop.xlane.xlu0 %3937 }
 0x546   : > { %v4327_v31 = vld [vmem:[#allocation2 + $0x3b8] sm:$0xff]  ;;  %4456 = vst.msk [vmem:[%s6398_s11 + $0x3c0] sm:$0xff] %vm424_vm1, %v4328_v58  ;;  %v4072_v0 = vmax.f32 %v3560_v17, %v3938_v18 }
 0x547   : > { %4455 = vst.msk [vmem:[%s6398_s11 + $0x3b8] sm:$0xff] %vm424_vm1, %v4327_v31  ;;  %4200 = vst.msk [vmem:[#allocation2 + $0x3d8] sm:$0xff] %vm424_vm1, %v4071_v57 }
 0x548   : > { %v3941_v6 = vpop.xlane.xlu1 %3940  ;;  %4201 = vst.msk [vmem:[#allocation2 + $0x3e0] sm:$0xff] %vm424_vm1, %v4072_v0 }
 0x549   : > { %v4330_v49 = vld [vmem:[#allocation2 + $0x3d0] sm:$0xff]  ;;  %v4073_v10 = vmax.f32 %v3561_v16, %v3941_v6 }
 0x54a   : > { %v4329_v23 = vld [vmem:[#allocation2 + $0x3c8] sm:$0xff]  ;;  %4458 = vst.msk [vmem:[%s6398_s11 + $0x3d0] sm:$0xff] %vm424_vm1, %v4330_v49 }
 0x54b   : > { %4457 = vst.msk [vmem:[%s6398_s11 + $0x3c8] sm:$0xff] %vm424_vm1, %v4329_v23  ;;  %4202 = vst.msk [vmem:[#allocation2 + $0x3e8] sm:$0xff] %vm424_vm1, %v4073_v10 }
 0x54e   : > { %v4331_v41 = vld [vmem:[#allocation2 + $0x3d8] sm:$0xff]  ;;  %v3944_v35 = vpop.xlane.xlu0 %3943 }
 0x54f   : > { %4459 = vst.msk [vmem:[%s6398_s11 + $0x3d8] sm:$0xff] %vm424_vm1, %v4331_v41  ;;  %v4074_v43 = vmax.f32 %v3562_v24, %v3944_v35  ;;  %v4332_v7 = vld [vmem:[#allocation2 + $0x3e0] sm:$0xff]  ;;  %v3947_v50 = vpop.xlane.xlu1 %3946 }
 0x550   : > { %4460 = vst.msk [vmem:[%s6398_s11 + $0x3e0] sm:$0xff] %vm424_vm1, %v4332_v7  ;;  %v4075_v36 = vmax.f32 %v3563_v44, %v3947_v50 }
 0x551   : > { %4203 = vst.msk [vmem:[#allocation2 + $0x3f0] sm:$0xff] %vm424_vm1, %v4074_v43 }
 0x552   : > { %v4333_v14 = vld [vmem:[#allocation2 + $0x3e8] sm:$0xff]  ;;  %4204 = vst.msk [vmem:[#allocation2 + $0x3f8] sm:$0xff] %vm424_vm1, %v4075_v36 }
 0x553   : > { %4461 = vst.msk [vmem:[%s6398_s11 + $0x3e8] sm:$0xff] %vm424_vm1, %v4333_v14 }
 0x558   : > { %v4334_v48 = vld [vmem:[#allocation2 + $0x3f0] sm:$0xff] }
 0x559   : > { %4462 = vst.msk [vmem:[%s6398_s11 + $0x3f0] sm:$0xff] %vm424_vm1, %v4334_v48  ;;  %v4335_v29 = vld [vmem:[#allocation2 + $0x3f8] sm:$0xff] }
 0x55a   : > { %4463 = vst.msk [vmem:[%s6398_s11 + $0x3f8] sm:$0xff] %vm424_vm1, %v4335_v29 }
 0x55b PF: > { %s21_s28 = sadd.s32 1, %s5159_s28   ;;  %s7075_s14 = sld [smem:[#allocation17_spill]] }
 0x55c   : > { %p18_p10 = scmp.ge.s32.totalorder %s21_s28, 6   ;;  %s7076_s2 = sld [smem:[#allocation18_spill]] }
 0x55d   : > { %s7077_s24 = smov %s5151_s26  ;;  %s7078_s25 = smov %s5155_s27 }
 0x55e   :  { %20 = sbr.rel (!%p18_p10) target bundleno = 10 (0xa), region = 111 }
 0x561   : > { %s7079_s26 = smov %s7075_s14 }
 0x562   : > { %s7080_s27 = smov %s7076_s2 }
 0x565   :  { %4493 = vsyncpa [#allocation4], 1 }
 0x566   :  { %4495 = vsyncpa [#allocation4 + $0x1], 1 }
 0x567   :  { %4496 = vsyncpa [#allocation6], 1 }
 0x568   :  { %4497 = vsyncpa [#allocation9], 1 }
 0x569   :  { %4498 = vsyncpa [#allocation12], 1 }

// kernel: feature_net_forward.5
= control target key start
LH: loop header
LB: loop body
LE: loop exit
PB: predicated region body
PF: predicated region fallthrough
CT: control target
= control target key end

     0   :  { %s4830_s24 = smov 0   ;;  %s4832_s25 = smov 0   ;;  %s7009_s0 = inlined_call_operand.vmem [shape: f32[2,3,512], index: 0, kind: input, shape index: {}]   ;;  %s7010_s1 = inlined_call_operand.vmem [shape: f32[2,64,3], index: 1, kind: input, shape index: {}]   ;;  %s7011_s2 = inlined_call_operand.vmem [shape: f32[64,1], index: 2, kind: input, shape index: {}]   ;;  %s7012_s3 = inlined_call_operand.vmem [shape: bf16[128,64], index: 3, kind: input, shape index: {}]   ;;  %s7013_s4 = inlined_call_operand.vmem [shape: f32[128,1], index: 4, kind: input, shape index: {}]   ;;  %s7014_s5 = inlined_call_operand.vmem [shape: bf16[1024,128], index: 5, kind: input, shape index: {}]   ;;  %s7015_s6 = inlined_call_operand.vmem [shape: f32[1024,1], index: 6, kind: input, shape index: {}]   ;;  %s7016_s7 = inlined_call_operand.vmem [shape: f32[2,2,1024,1], index: 7, kind: output, shape index: {}]  }
   0x1   :  { %s4834_s26 = smov 0   ;;  %s4836_s27 = smov 0  }
   0x2   :  { %s4838_s28 = smov 0  }
   0x3 LB: > { %s32_s29 = sadd.s32 1, %s4776_s26  ;;  %s36_s30 = sadd.s32 1, %s4780_s27  ;;  %s4784_s28 = sphi %s4838_s28, %s17_s28   ;;  %s4780_s27 = sphi %s4836_s27, %s7173_s27   ;;  %s4776_s26 = sphi %s4834_s26, %s7172_s26   ;;  %s4772_s25 = sphi %s4832_s25, %s7171_s25   ;;  %s4768_s24 = sphi %s4830_s24, %s7170_s24  }
   0x4   : > { %p34_p0 = scmp.ge.s32.totalorder %s32_s29, 2  ;;  %p4507_p1 = scmp.ge.s32.totalorder %s4784_s28, 1 }
   0x5   : > { %p279_p2 = scmp.lt.s32.totalorder %s4784_s28, 5 }
   0x6   : > { %s7175_s29 = smov (%p34_p0, %s32_s29), 0  ;;  %s7177_s30 = smov (!%p34_p0, %s36_s30), %s4780_s27 }
   0x7   : > { %p280_p3 = pnand %p4507_p1, %p279_p2  ;;  %p38_p4 = scmp.ge.s32.totalorder %s7177_s30, 2 }
   0x9   : > { %s7179_s30 = smov (%p38_p4, %s7177_s30), 0  ;;  %283 = sbr.rel (%p280_p3) target bundleno = 1215 (0x4bf), region = 48 }
  0x10   : > { %p327_p5 = scmp.lt.s32.totalorder %s4772_s25, 1  ;;  %v4786_v0 = vmov 2   ;;  %v7017_v1 = vmov 0   ;;  %v4788_v7 = vmov 1   ;;  %v733_v11 = vld [vmem:[%s7011_s2] sm:$0xff]  ;;  %v734_v12 = vld [vmem:[%s7011_s2 + $0x8] sm:$0xff]  ;;  %v535_v61 = vlaneseq }
  0x11   : > { %4663 = vset.pattern.permute.xlu0 %v4786_v0  ;;  %4659 = vset.pattern.permute.xlu1 %v7017_v1  ;;  %v736_v13 = vld [vmem:[%s7011_s2 + $0x18] sm:$0xff]  ;;  %v737_v14 = vld [vmem:[%s7011_s2 + $0x20] sm:$0xff]  ;;  %v838_v16 = vld [vmem:[%s7013_s4 + $0x8] sm:$0xff]  ;;  %vm973_vm0 = vcmask 523264   ;;  %vm356_vm1 = vcmask 7168   ;;  %p344_p7 = scmp.lt.s32.totalorder %s4768_s24, 1 }
  0x12   : > { %s7181_s25 = smov (!%p327_p5, %s4772_s25), 1  ;;  %1030 = vmatprep.mubr.bf16.mxu0 %v7017_v1  ;;  %2761 = vmatprep.mubr.bf16.mxu1 %v7017_v1  ;;  %v740_v15 = vld [vmem:[%s7011_s2 + $0x38] sm:$0xff]  ;;  %v735_v17 = vld [vmem:[%s7011_s2 + $0x10] sm:$0xff]  ;;  %v842_v19 = vld [vmem:[%s7013_s4 + $0x28] sm:$0xff] }
  0x13   : > { %s4598_s8 = sshll.u32 %s7181_s25, 6  ;;  %v840_v18 = vld [vmem:[%s7013_s4 + $0x18] sm:$0xff]  ;;  %v846_v21 = vld [vmem:[%s7013_s4 + $0x48] sm:$0xff]  ;;  %v739_v26 = vld [vmem:[%s7011_s2 + $0x30] sm:$0xff]  ;;  %s4509_s17 = sshll.u32 %s7181_s25, 2 }
  0x14   : > { %s341_s11 = scalar_lea.vmem %s7010_s1, %s4598_s8  ;;  %v844_v20 = vld [vmem:[%s7013_s4 + $0x38] sm:$0xff]  ;;  %v850_v23 = vld [vmem:[%s7013_s4 + $0x68] sm:$0xff]  ;;  %v837_v28 = vld [vmem:[%s7013_s4] sm:$0xff]  ;;  %s4508_s8 = sshll.u32 %s4768_s24, 1 }
  0x15   : > { %v488_v2 = vld [vmem:[%s341_s11 + $0x10] sm:$0xff]  ;;  %v490_v3 = vld [vmem:[%s341_s11 + $0x20] sm:$0xff]  ;;  %v489_v4 = vld [vmem:[%s341_s11 + $0x18] sm:$0xff]  ;;  %p329_p6 = scmp.lt.s32.totalorder %s4508_s8, 3  ;;  %s7185_s24 = smov (!%p344_p7, %s4768_s24), 1 }
  0x16   : > { %660 = vperm.xlu0 %4663, %v488_v2   ;;  %506 = vperm.xlu1 %4659, %v488_v2   ;;  %v491_v5 = vld [vmem:[%s341_s11 + $0x28] sm:$0xff]  ;;  %v486_v8 = vld [vmem:[%s341_s11] sm:$0xff]  ;;  %v493_v9 = vld [vmem:[%s341_s11 + $0x38] sm:$0xff]  ;;  %s4513_s19 = sshll.u32 %s7185_s24, 7  ;;  %s4514_s20 = sshll.u32 %s7181_s25, 8 }
  0x17   : > { %v487_v6 = vld [vmem:[%s341_s11 + $0x8] sm:$0xff]  ;;  %v492_v10 = vld [vmem:[%s341_s11 + $0x30] sm:$0xff]  ;;  %v848_v22 = vld [vmem:[%s7013_s4 + $0x58] sm:$0xff]  ;;  %s7183_s8 = smov (!%p329_p6, %s4508_s8), 3  ;;  %s6498_s21 = sadd.s32 %s4514_s20, %s4513_s19 }
  0x18   : > { %v738_v24 = vld [vmem:[%s7011_s2 + $0x28] sm:$0xff]  ;;  %v852_v25 = vld [vmem:[%s7013_s4 + $0x78] sm:$0xff]  ;;  %v839_v30 = vld [vmem:[%s7013_s4 + $0x10] sm:$0xff]  ;;  %s332_s22 = sadd.s32 %s4509_s17, %s7183_s8  ;;  %s4515_s24 = sshll.u32 %s6498_s21, 3 }
  0x19   : > { %v1288_v27 = vld [vmem:[%s7015_s6 + $0x8] sm:$0xff]  ;;  %v1290_v29 = vld [vmem:[%s7015_s6 + $0x18] sm:$0xff]  ;;  %v841_v32 = vld [vmem:[%s7013_s4 + $0x20] sm:$0xff]  ;;  %s4510_s10 = sshll.u32 %s332_s22, 2  ;;  %s6516_s23 = scalar_lea.vmem %s7016_s7, %s4515_s24 }
  0x1a   : > { %668 = vperm.xlu0 %4663, %v490_v3   ;;  %511 = vperm.xlu1 %4659, %v489_v4   ;;  %v1292_v31 = vld [vmem:[%s7015_s6 + $0x28] sm:$0xff]  ;;  %v1294_v33 = vld [vmem:[%s7015_s6 + $0x38] sm:$0xff]  ;;  %v843_v34 = vld [vmem:[%s7013_s4 + $0x30] sm:$0xff]  ;;  %s334_s8 = scalar_lea.vmem %s7009_s0, %s4510_s10 }
  0x1b   : > { %v1296_v35 = vld [vmem:[%s7015_s6 + $0x48] sm:$0xff]  ;;  %v845_v36 = vld [vmem:[%s7013_s4 + $0x40] sm:$0xff]  ;;  %v1298_v37 = vld [vmem:[%s7015_s6 + $0x58] sm:$0xff] }
  0x1c   : > { %v847_v38 = vld [vmem:[%s7013_s4 + $0x50] sm:$0xff]  ;;  %v1300_v39 = vld [vmem:[%s7015_s6 + $0x68] sm:$0xff]  ;;  %v849_v40 = vld [vmem:[%s7013_s4 + $0x60] sm:$0xff] }
  0x1d   : > { %v1302_v41 = vld [vmem:[%s7015_s6 + $0x78] sm:$0xff]  ;;  %v851_v42 = vld [vmem:[%s7013_s4 + $0x70] sm:$0xff]  ;;  %v1304_v43 = vld [vmem:[%s7015_s6 + $0x88] sm:$0xff] }
  0x1e   : > { %4667 = vset.pattern.permute.xlu0 %v4788_v7  ;;  %521 = vperm.xlu1 %4659, %v491_v5   ;;  %v1287_v44 = vld [vmem:[%s7015_s6] sm:$0xff]  ;;  %v1306_v45 = vld [vmem:[%s7015_s6 + $0x98] sm:$0xff]  ;;  %v1289_v46 = vld [vmem:[%s7015_s6 + $0x10] sm:$0xff] }
  0x1f   : > { %574 = vperm.xlu0 %4667, %v487_v6   ;;  %v1308_v47 = vld [vmem:[%s7015_s6 + $0xa8] sm:$0xff]  ;;  %v1291_v48 = vld [vmem:[%s7015_s6 + $0x20] sm:$0xff]  ;;  %v1310_v51 = vld [vmem:[%s7015_s6 + $0xb8] sm:$0xff] }
  0x20   : > { %v1293_v52 = vld [vmem:[%s7015_s6 + $0x30] sm:$0xff]  ;;  %v1312_v55 = vld [vmem:[%s7015_s6 + $0xc8] sm:$0xff]  ;;  %v1295_v56 = vld [vmem:[%s7015_s6 + $0x40] sm:$0xff] }
  0x21   : > { %v1314_v58 = vld [vmem:[%s7015_s6 + $0xd8] sm:$0xff]  ;;  %v1297_v60 = vld [vmem:[%s7015_s6 + $0x50] sm:$0xff]  ;;  %v1316_v62 = vld [vmem:[%s7015_s6 + $0xe8] sm:$0xff] }
  0x22   : > { %4660 = vset.pattern.permute.xlu1 %v4788_v7 }
  0x23   : > { %578 = vperm.xlu0 %4667, %v488_v2   ;;  %570 = vperm.xlu1 %4660, %v486_v8   ;;  %v1299_v2 = vld [vmem:[%s7015_s6 + $0x60] sm:$0xff] }
  0x27   : > { %598 = vperm.xlu0 %4667, %v493_v9   ;;  %4661 = vset.pattern.permute.xlu1 %v4786_v0 }
  0x28   : > { %652 = vperm.xlu1 %4661, %v486_v8  }
  0x2b   : > { %4671 = vset.pattern.permute.xlu0 %v7017_v1 }
  0x2c   : > { %496 = vperm.xlu0 %4671, %v486_v8   ;;  %656 = vperm.xlu1 %4661, %v487_v6  }
  0x30   : > { %501 = vperm.xlu0 %4671, %v487_v6   ;;  %4662 = vset.pattern.permute.xlu1 %v4788_v7  ;;  %v1301_v6 = vld [vmem:[%s7015_s6 + $0x70] sm:$0xff] }
  0x31   : > { %582 = vperm.xlu1 %4662, %v489_v4  }
  0x34   : > { %516 = vperm.xlu0 %4671, %v490_v3  }
  0x35   : > { %4664 = vset.pattern.permute.xlu1 %v4786_v0 }
  0x36   : > { %664 = vperm.xlu1 %4664, %v489_v4   ;;  %v1318_v4 = vld [vmem:[%s7015_s6 + $0xf8] sm:$0xff] }
  0x38   : > { %526 = vperm.xlu0 %4671, %v492_v10  }
  0x3a   : > { %4665 = vset.pattern.permute.xlu1 %v7017_v1 }
  0x3b   : > { %743 = vperm.xlu1 %4665, %v733_v11  }
  0x3c   : > { %748 = vperm.xlu0 %4671, %v734_v12   ;;  %v485_v12 = vld [vmem:[%s334_s8] sm:$0x77] }
  0x3f   : > { %4666 = vset.pattern.permute.xlu1 %v4788_v7 }
  0x40   : > { %758 = vperm.xlu0 %4671, %v736_v13   ;;  %586 = vperm.xlu1 %4666, %v490_v3   ;;  %v536_v3 = vshrl.u32 %v535_v61, 7  ;;  %v1320_v13 = vld [vmem:[%s7015_s6 + $0x108] sm:$0xff] }
  0x42   : > { %v541_v8 = vsub.s32 4, %v536_v3 }
  0x44   : > { %763 = vperm.xlu0 %4671, %v737_v14   ;;  %590 = vperm.xlu1 %4666, %v491_v5   ;;  %v1303_v14 = vld [vmem:[%s7015_s6 + $0x80] sm:$0xff] }
  0x48   : > { %778 = vperm.xlu0 %4671, %v740_v15   ;;  %4668 = vset.pattern.permute.xlu1 %v4786_v0 }
  0x49   : > { %672 = vperm.xlu1 %4668, %v491_v5  }
  0x4c   : > { %860 = vperm.xlu0 %4671, %v838_v16   ;;  %v542_v16 = vrot.slane %v485_v12, %v541_v8 }
  0x4d   : > { %4669 = vset.pattern.permute.xlu1 %v7017_v1 }
  0x4e   : > { %753 = vperm.xlu1 %4669, %v735_v17  }
  0x50   : > { %870 = vperm.xlu0 %4671, %v840_v18  }
  0x52   : > { %531 = vperm.xlu1 %4669, %v493_v9  }
  0x54   : > { %880 = vperm.xlu0 %4671, %v842_v19  }
  0x56   : > { %4670 = vset.pattern.permute.xlu1 %v4788_v7  ;;  %v537_v7 = vsub.s32 0, %v536_v3 }
  0x57   : > { %594 = vperm.xlu1 %4670, %v492_v10  }
  0x58   : > { %890 = vperm.xlu0 %4671, %v844_v20   ;;  %v538_v15 = vrot.slane %v485_v12, %v537_v7 }
  0x5b   : > { %4672 = vset.pattern.permute.xlu1 %v4786_v0 }
  0x5c   : > { %900 = vperm.xlu0 %4671, %v846_v21   ;;  %676 = vperm.xlu1 %4672, %v492_v10   ;;  %v607_v10 = vsub.s32 5, %v536_v3  ;;  %v685_v21 = vsub.s32 2, %v536_v3 }
  0x5e   : > { %v608_v18 = vrot.slane %v485_v12, %v607_v10 }
  0x60   : > { %910 = vperm.xlu0 %4671, %v848_v22   ;;  %680 = vperm.xlu1 %4672, %v493_v9   ;;  %v603_v9 = vsub.s32 1, %v536_v3  ;;  %v689_v22 = vsub.s32 6, %v536_v3 }
  0x62   : > { %v604_v17 = vrot.slane %v485_v12, %v603_v9 }
  0x64   : > { %920 = vperm.xlu0 %4671, %v850_v23   ;;  %4673 = vset.pattern.permute.xlu1 %v7017_v1  ;;  %v1322_v23 = vld [vmem:[%s7015_s6 + $0x118] sm:$0xff] }
  0x65   : > { %768 = vperm.xlu1 %4673, %v738_v24   ;;  %v1305_v24 = vld [vmem:[%s7015_s6 + $0x90] sm:$0xff] }
  0x68   : > { %930 = vperm.xlu0 %4671, %v852_v25   ;;  %v5055_v25 = vrot.slane %v538_v15, %v537_v7 }
  0x69   : > { %773 = vperm.xlu1 %4673, %v739_v26   ;;  %v5057_v26 = vrot.slane %v542_v16, %v537_v7  ;;  %v1311_v7 = vld [vmem:[%s7015_s6 + $0xc0] sm:$0xff] }
  0x6c   : > { %1422 = vperm.xlu0 %4671, %v1288_v27   ;;  %v5059_v27 = vrot.slane %v604_v17, %v603_v9  ;;  %v1313_v17 = vld [vmem:[%s7015_s6 + $0xd0] sm:$0xff] }
  0x6d   : > { %855 = vperm.xlu1 %4673, %v837_v28   ;;  %v5061_v28 = vrot.slane %v608_v18, %v603_v9 }
  0x70   : > { %1432 = vperm.xlu0 %4671, %v1290_v29  }
  0x71   : > { %865 = vperm.xlu1 %4673, %v839_v30  }
  0x74   : > { %1442 = vperm.xlu0 %4671, %v1292_v31   ;;  %v686_v31 = vrot.slane %v485_v12, %v685_v21 }
  0x75   : > { %875 = vperm.xlu1 %4673, %v841_v32   ;;  %v690_v32 = vrot.slane %v485_v12, %v689_v22 }
  0x78   : > { %1452 = vperm.xlu0 %4671, %v1294_v33  }
  0x79   : > { %885 = vperm.xlu1 %4673, %v843_v34  }
  0x7c   : > { %1462 = vperm.xlu0 %4671, %v1296_v35   ;;  %v1324_v35 = vld [vmem:[%s7015_s6 + $0x128] sm:$0xff] }
  0x7d   : > { %895 = vperm.xlu1 %4673, %v845_v36  }
  0x80   : > { %1472 = vperm.xlu0 %4671, %v1298_v37  }
  0x81   : > { %905 = vperm.xlu1 %4673, %v847_v38  }
  0x84   : > { %1482 = vperm.xlu0 %4671, %v1300_v39  }
  0x85   : > { %915 = vperm.xlu1 %4673, %v849_v40   ;;  %v1307_v40 = vld [vmem:[%s7015_s6 + $0xa0] sm:$0xff] }
  0x88   : > { %1492 = vperm.xlu0 %4671, %v1302_v41  }
  0x89   : > { %925 = vperm.xlu1 %4673, %v851_v42  }
  0x8c   : > { %1502 = vperm.xlu0 %4671, %v1304_v43  }
  0x8d   : > { %1417 = vperm.xlu1 %4673, %v1287_v44   ;;  %v5081_v44 = vrot.slane %v686_v31, %v685_v21 }
  0x90   : > { %1512 = vperm.xlu0 %4671, %v1306_v45   ;;  %v5083_v45 = vrot.slane %v690_v32, %v685_v21 }
  0x91   : > { %1427 = vperm.xlu1 %4673, %v1289_v46  }
  0x94   : > { %1522 = vperm.xlu0 %4671, %v1308_v47  }
  0x95   : > { %v4995_v49 = vpop.permute.xlu1 %506  ;;  %1437 = vperm.xlu1 %4673, %v1291_v48   ;;  %v4997_v50 = vpop.permute.xlu0 %660 }
  0x98   : > { %1532 = vperm.xlu0 %4671, %v1310_v51   ;;  %v1326_v51 = vld [vmem:[%s7015_s6 + $0x138] sm:$0xff] }
  0x99   : > { %v5005_v53 = vpop.permute.xlu1 %511  ;;  %1447 = vperm.xlu1 %4673, %v1293_v52   ;;  %v5007_v54 = vpop.permute.xlu0 %668 }
  0x9c   : > { %1542 = vperm.xlu0 %4671, %v1312_v55  }
  0x9d   : > { %v5016_v57 = vpop.permute.xlu1 %521  ;;  %1457 = vperm.xlu1 %4673, %v1295_v56   ;;  %v1309_v56 = vld [vmem:[%s7015_s6 + $0xb0] sm:$0xff] }
  0x9e   : > { %v575_v59 = vpop.permute.xlu0 %574 }
  0x9f   : > { %v621_v36 = vmul.f32 %v5059_v27, %v575_v59  ;;  %v622_v37 = vmul.f32 %v5061_v28, %v575_v59 }
  0xa0   : > { %1552 = vperm.xlu0 %4671, %v1314_v58  }
  0xa1   : > { %1467 = vperm.xlu1 %4673, %v1297_v60  }
  0xa2   : > { %v5027_v63 = vpop.permute.xlu0 %578  ;;  %v571_v0 = vpop.permute.xlu1 %570 }
  0xa3   : > { %v619_v41 = vmul.f32 %v5059_v27, %v571_v0  ;;  %v620_v42 = vmul.f32 %v5061_v28, %v571_v0  ;;  %v623_v31 = vmul.f32 %v5059_v27, %v5027_v63  ;;  %v624_v32 = vmul.f32 %v5061_v28, %v5027_v63 }
  0xa4   : > { %1562 = vperm.xlu0 %4671, %v1316_v62   ;;  %v560_v63 = vmul.f32 %v5057_v26, %v5005_v53 }
  0xa5   : > { %1477 = vperm.xlu1 %4673, %v1299_v2   ;;  %v1328_v2 = vld [vmem:[%s7015_s6 + $0x148] sm:$0xff] }
  0xa6   : > { %v5038_v5 = vpop.permute.xlu0 %598 }
  0xa7   : > { %v653_v11 = vpop.permute.xlu1 %652 }
  0xa8   : > { %1572 = vperm.xlu0 %4671, %v1318_v4   ;;  %v701_v58 = vmul.f32 %v5081_v44, %v653_v11  ;;  %v702_v59 = vmul.f32 %v5083_v45, %v653_v11 }
  0xa9   : > { %1487 = vperm.xlu1 %4673, %v1301_v6  }
  0xab   : > { %v497_v19 = vpop.permute.xlu0 %496  ;;  %v657_v20 = vpop.permute.xlu1 %656 }
  0xac   : > { %1582 = vperm.xlu0 %4671, %v1320_v13   ;;  %v553_v33 = vmul.f32 %v5055_v25, %v497_v19  ;;  %v554_v34 = vmul.f32 %v5057_v26, %v497_v19  ;;  %v703_v61 = vmul.f32 %v5081_v44, %v657_v20  ;;  %v704_v62 = vmul.f32 %v5083_v45, %v657_v20 }
  0xad   : > { %1497 = vperm.xlu1 %4673, %v1303_v14   ;;  %v1330_v14 = vld [vmem:[%s7015_s6 + $0x158] sm:$0xff] }
  0xae   : > { %v635_v46 = vadd.f32 %v619_v41, %v553_v33  ;;  %v636_v47 = vadd.f32 %v620_v42, %v554_v34  ;;  %v706_v41 = vmul.f32 %v5083_v45, %v4997_v50 }
  0xaf   : > { %v502_v29 = vpop.permute.xlu0 %501 }
  0xb0   : > { %1592 = vperm.xlu0 %4671, %v1322_v23   ;;  %v5063_v30 = vpop.permute.xlu1 %582  ;;  %v555_v38 = vmul.f32 %v5055_v25, %v502_v29  ;;  %v556_v39 = vmul.f32 %v5057_v26, %v502_v29  ;;  %v717_v0 = vadd.f32 %v701_v58, %v635_v46  ;;  %v718_v3 = vadd.f32 %v702_v59, %v636_v47  ;;  %v1332_v23 = vld [vmem:[%s7015_s6 + $0x168] sm:$0xff]  ;;  %v1319_v58 = vld [vmem:[%s7015_s6 + $0x100] sm:$0xff] }
  0xb1   : > { %1507 = vperm.xlu1 %4673, %v1305_v24   ;;  %v1315_v24 = vld [vmem:[%s7015_s6 + $0xe0] sm:$0xff]  ;;  %v625_v33 = vmul.f32 %v5059_v27, %v5063_v30  ;;  %v626_v34 = vmul.f32 %v5061_v28, %v5063_v30  ;;  %v1334_v30 = vld [vmem:[%s7015_s6 + $0x178] sm:$0xff] }
  0xb2   : > { %v637_v52 = vadd.f32 %v621_v36, %v555_v38  ;;  %v638_v55 = vadd.f32 %v622_v37, %v556_v39  ;;  %v558_v36 = vmul.f32 %v5057_v26, %v4995_v49  ;;  %v559_v37 = vmul.f32 %v5055_v25, %v5005_v53 }
  0xb3   : > { %v5079_v43 = vpop.permute.xlu0 %516  ;;  %v642_v47 = vadd.f32 %v626_v34, %v560_v63  ;;  %v564_v63 = vmul.f32 %v5057_v26, %v5016_v57 }
  0xb4   : > { %1602 = vperm.xlu0 %4671, %v1324_v35   ;;  %v719_v6 = vadd.f32 %v703_v61, %v637_v52  ;;  %v720_v8 = vadd.f32 %v704_v62, %v638_v55  ;;  %v557_v35 = vmul.f32 %v5055_v25, %v4995_v49  ;;  %v1317_v49 = vld [vmem:[%s7015_s6 + $0xf0] sm:$0xff]  ;;  %v640_v53 = vadd.f32 %v624_v32, %v558_v36  ;;  %v1344_v32 = vld [vmem:[%s7015_s6 + $0x1c8] sm:$0xff] }
  0xb5   : > { %1517 = vperm.xlu1 %4673, %v1307_v40   ;;  %v665_v48 = vpop.permute.xlu1 %664  ;;  %v705_v40 = vmul.f32 %v5081_v44, %v4997_v50  ;;  %v641_v46 = vadd.f32 %v625_v33, %v559_v37  ;;  %v1327_v33 = vld [vmem:[%s7015_s6 + $0x140] sm:$0xff]  ;;  %v710_v36 = vmul.f32 %v5083_v45, %v5007_v54  ;;  %v563_v37 = vmul.f32 %v5055_v25, %v5016_v57  ;;  %v1346_v57 = vld [vmem:[%s7015_s6 + $0x1d8] sm:$0xff] }
  0xb6   : > { %v707_v38 = vmul.f32 %v5081_v44, %v665_v48  ;;  %v708_v39 = vmul.f32 %v5083_v45, %v665_v48  ;;  %v639_v42 = vadd.f32 %v623_v31, %v557_v35  ;;  %v722_v62 = vadd.f32 %v706_v41, %v640_v53 }
  0xb7   : > { %v5093_v60 = vpop.permute.xlu0 %526 }
  0xb8   : > { %1612 = vperm.xlu0 %4671, %v1326_v51   ;;  %v723_v52 = vadd.f32 %v707_v38, %v641_v46  ;;  %v724_v55 = vadd.f32 %v708_v39, %v642_v47  ;;  %v721_v61 = vadd.f32 %v705_v40, %v639_v42  ;;  %v565_v40 = vmul.f32 %v5055_v25, %v5093_v60 }
  0xb9   : > { %1527 = vperm.xlu1 %4673, %v1309_v56   ;;  %v1336_v56 = vld [vmem:[%s7015_s6 + $0x188] sm:$0xff] }
  0xba   : > { %v744_v4 = vpop.permute.xlu1 %743 }
  0xbb   : > { %v781_v9 = vadd.f32 %v744_v4, %v717_v0  ;;  %v749_v10 = vpop.permute.xlu0 %748  ;;  %v782_v11 = vadd.f32 %v744_v4, %v718_v3  ;;  %v1338_v4 = vld [vmem:[%s7015_s6 + $0x198] sm:$0xff] }
  0xbc   : > { %v783_v12 = vadd.f32 %v749_v10, %v719_v6  ;;  %1622 = vperm.xlu0 %4671, %v1328_v2   ;;  %v784_v13 = vadd.f32 %v749_v10, %v720_v8  ;;  %v1321_v6 = vld [vmem:[%s7015_s6 + $0x110] sm:$0xff] }
  0xbd   : > { %1537 = vperm.xlu1 %4673, %v1311_v7   ;;  %v798_v15 = vmax.f32 %v782_v11, 0.0  ;;  %v797_v16 = vmax.f32 %v781_v9, 0.0 }
  0xbe   : > { %v800_v18 = vmax.f32 %v784_v13, 0.0  ;;  %v799_v19 = vmax.f32 %v783_v12, 0.0  ;;  %v1340_v12 = vld [vmem:[%s7015_s6 + $0x1a8] sm:$0xff] }
  0xbf   : > { %v5109_v20 = vpop.permute.xlu1 %586  ;;  %v759_v48 = vpop.permute.xlu0 %758 }
  0xc0   : > { %1632 = vperm.xlu0 %4671, %v1330_v14   ;;  %v830_v21 = vpack.c.bf16 %v800_v18, %v798_v15  ;;  %v829_v22 = vpack.c.bf16 %v799_v19, %v797_v16  ;;  %v787_v50 = vadd.f32 %v759_v48, %v723_v52  ;;  %v788_v59 = vadd.f32 %v759_v48, %v724_v55  ;;  %v1323_v14 = vld [vmem:[%s7015_s6 + $0x120] sm:$0xff]  ;;  %v1342_v19 = vld [vmem:[%s7015_s6 + $0x1b8] sm:$0xff] }
  0xc1   : > { %1547 = vperm.xlu1 %4673, %v1313_v17   ;;  %v562_v16 = vmul.f32 %v5057_v26, %v5079_v43  ;;  %v628_v17 = vmul.f32 %v5061_v28, %v5109_v20 }
  0xc2   : > { %998 = vmatprep.subr.bf16.mxu0 %v830_v21  ;;  %v803_v7 = vmax.f32 %v787_v50, 0.0  ;;  %v804_v8 = vmax.f32 %v788_v59, 0.0  ;;  %v1325_v21 = vld [vmem:[%s7015_s6 + $0x130] sm:$0xff] }
  0xc3   : > { %v5117_v29 = vpop.permute.xlu1 %590  ;;  %999 = vmatpush1.bf16.msra.mxu0 %v829_v22  ;;  %v561_v22 = vmul.f32 %v5055_v25, %v5079_v43  ;;  %v644_v31 = vadd.f32 %v628_v17, %v562_v16 }
  0xc4   : > { %1642 = vperm.xlu0 %4671, %v1332_v23   ;;  %v627_v23 = vmul.f32 %v5059_v27, %v5109_v20  ;;  %v629_v35 = vmul.f32 %v5059_v27, %v5117_v29  ;;  %v709_v20 = vmul.f32 %v5081_v44, %v5007_v54  ;;  %v630_v38 = vmul.f32 %v5061_v28, %v5117_v29  ;;  %v1329_v29 = vld [vmem:[%s7015_s6 + $0x150] sm:$0xff] }
  0xc5   : > { %1557 = vperm.xlu1 %4673, %v1315_v24   ;;  %v764_v24 = vpop.permute.xlu0 %763  ;;  %v634_v54 = vmul.f32 %v5061_v28, %v5038_v5  ;;  %v726_v41 = vadd.f32 %v710_v36, %v644_v31  ;;  %v1352_v31 = vld [vmem:[%s7015_s6 + $0x208] sm:$0xff] }
  0xc6   : > { %v643_v34 = vadd.f32 %v627_v23, %v561_v22  ;;  %v645_v53 = vadd.f32 %v629_v35, %v563_v37 }
  0xc8   : > { %v5147_v51 = vpop.permute.xlu1 %672  ;;  %1652 = vperm.xlu0 %4671, %v1334_v30   ;;  %v725_v42 = vadd.f32 %v709_v20, %v643_v34 }
  0xc9   : > { %1567 = vperm.xlu1 %4673, %v1317_v49   ;;  %v633_v49 = vmul.f32 %v5059_v27, %v5038_v5  ;;  %v779_v46 = vpop.permute.xlu0 %778  ;;  %v711_v47 = vmul.f32 %v5081_v44, %v5147_v51  ;;  %v712_v5 = vmul.f32 %v5083_v45, %v5147_v51 }
  0xcc   : > { %1662 = vperm.xlu0 %4671, %v1336_v56  }
  0xcd   : > { %1577 = vperm.xlu1 %4673, %v1319_v58   ;;  %v754_v0 = vpop.permute.xlu1 %753  ;;  %v646_v58 = vadd.f32 %v630_v38, %v564_v63  ;;  %v1354_v38 = vld [vmem:[%s7015_s6 + $0x218] sm:$0xff] }
  0xce   : > { %v785_v2 = vadd.f32 %v754_v0, %v721_v61  ;;  %v786_v3 = vadd.f32 %v754_v0, %v722_v62  ;;  %v566_v61 = vmul.f32 %v5057_v26, %v5093_v60  ;;  %v790_v62 = vadd.f32 %v764_v24, %v726_v41  ;;  %v1358_v41 = vld [vmem:[%s7015_s6 + $0x238] sm:$0xff] }
  0xd0   : > { %v801_v9 = vmax.f32 %v785_v2, 0.0  ;;  %v802_v10 = vmax.f32 %v786_v3, 0.0  ;;  %1672 = vperm.xlu0 %4671, %v1338_v4   ;;  %v727_v4 = vadd.f32 %v711_v47, %v645_v53  ;;  %v1360_v53 = vld [vmem:[%s7015_s6 + $0x248] sm:$0xff] }
  0xd1   : > { %1587 = vperm.xlu1 %4673, %v1321_v6   ;;  %v532_v11 = vpop.permute.xlu1 %531  ;;  %v728_v6 = vadd.f32 %v712_v5, %v646_v58  ;;  %v1362_v5 = vld [vmem:[%s7015_s6 + $0x258] sm:$0xff] }
  0xd2   : > { %v832_v13 = vpack.c.bf16 %v804_v8, %v802_v10  ;;  %v831_v15 = vpack.c.bf16 %v803_v7, %v801_v9  ;;  %v567_v39 = vmul.f32 %v5055_v25, %v532_v11  ;;  %v568_v30 = vmul.f32 %v5057_v26, %v532_v11  ;;  %v5231_v9 = vpop.permute.xlu0 %860  ;;  %v1350_v11 = vld [vmem:[%s7015_s6 + $0x1f8] sm:$0xff] }
  0xd3   : > { %v789_v7 = vadd.f32 %v764_v24, %v725_v42  ;;  %v806_v10 = vmax.f32 %v790_v62, 0.0  ;;  %v4675_v42 = vld [vmem:[%s7012_s3 + $0x8] sm:$0xff]  }
  0xd4   : > { %1000 = vmatprep.subr.bf16.mxu0 %v832_v13  ;;  %1682 = vperm.xlu0 %4671, %v1340_v12   ;;  %v649_v50 = vadd.f32 %v633_v49, %v567_v39  ;;  %v650_v59 = vadd.f32 %v634_v54, %v568_v30  ;;  %v1337_v39 = vld [vmem:[%s7015_s6 + $0x190] sm:$0xff]  ;;  %v4674_v30 = vld [vmem:[%s7012_s3] sm:$0xff]   ;;  %v1356_v54 = vld [vmem:[%s7015_s6 + $0x228] sm:$0xff] }
  0xd5   : > { %1597 = vperm.xlu1 %4673, %v1323_v14   ;;  %1001 = vmatpush1.bf16.msra.mxu0 %v831_v15  ;;  %v1333_v14 = vld [vmem:[%s7015_s6 + $0x170] sm:$0xff] }
  0xd6   : > { %v595_v18 = vpop.permute.xlu1 %594  ;;  %v5245_v34 = vpop.permute.xlu0 %870 }
  0xd7   : > { %v631_v25 = vmul.f32 %v5059_v27, %v595_v18  ;;  %v632_v52 = vmul.f32 %v5061_v28, %v595_v18  ;;  %v1348_v27 = vld [vmem:[%s7015_s6 + $0x1e8] sm:$0xff]  ;;  %v1331_v28 = vld [vmem:[%s7015_s6 + $0x160] sm:$0xff] }
  0xd8   : > { %1692 = vperm.xlu0 %4671, %v1342_v19   ;;  %v805_v19 = vmax.f32 %v789_v7, 0.0  ;;  %v1372_v7 = vld [vmem:[%s7015_s6 + $0x2a8] sm:$0xff] }
  0xd9   : > { %1607 = vperm.xlu1 %4673, %v1325_v21   ;;  %v647_v8 = vadd.f32 %v631_v25, %v565_v40  ;;  %v648_v26 = vadd.f32 %v632_v52, %v566_v61  ;;  %v1339_v40 = vld [vmem:[%s7015_s6 + $0x1a0] sm:$0xff]  ;;  %v4676_v25 = vld [vmem:[%s7012_s3 + $0x10] sm:$0xff]   ;;  %v1364_v52 = vld [vmem:[%s7015_s6 + $0x268] sm:$0xff] }
  0xda   : > { %v5256_v49 = vpop.permute.xlu0 %880  ;;  %v4677_v61 = vld [vmem:[%s7012_s3 + $0x18] sm:$0xff]  }
  0xdb   : > { %v677_v43 = vpop.permute.xlu1 %676 }
  0xdc   : > { %1702 = vperm.xlu0 %4671, %v1344_v32   ;;  %v713_v51 = vmul.f32 %v5081_v44, %v677_v43  ;;  %v714_v0 = vmul.f32 %v5083_v45, %v677_v43 }
  0xdd   : > { %1617 = vperm.xlu1 %4673, %v1327_v33   ;;  %v1335_v33 = vld [vmem:[%s7015_s6 + $0x180] sm:$0xff] }
  0xde   : > { %v729_v12 = vadd.f32 %v713_v51, %v647_v8  ;;  %v730_v13 = vadd.f32 %v714_v0, %v648_v26  ;;  %v1368_v51 = vld [vmem:[%s7015_s6 + $0x288] sm:$0xff]  ;;  %v1351_v0 = vld [vmem:[%s7015_s6 + $0x200] sm:$0xff] }
  0xdf   : > { %v681_v48 = vpop.permute.xlu1 %680  ;;  %v1355_v8 = vld [vmem:[%s7015_s6 + $0x220] sm:$0xff] }
  0xe0   : > { %v715_v55 = vmul.f32 %v5081_v44, %v681_v48  ;;  %v716_v56 = vmul.f32 %v5083_v45, %v681_v48  ;;  %1712 = vperm.xlu0 %4671, %v1346_v57   ;;  %v1341_v57 = vld [vmem:[%s7015_s6 + $0x1b0] sm:$0xff] }
  0xe1   : > { %1627 = vperm.xlu1 %4673, %v1329_v29   ;;  %v5272_v29 = vpop.permute.xlu0 %890  ;;  %v1345_v48 = vld [vmem:[%s7015_s6 + $0x1d0] sm:$0xff] }
  0xe2   : > { %v731_v2 = vadd.f32 %v715_v55, %v649_v50  ;;  %v732_v3 = vadd.f32 %v716_v56, %v650_v59  ;;  %v1347_v55 = vld [vmem:[%s7015_s6 + $0x1e0] sm:$0xff]  ;;  %v1366_v50 = vld [vmem:[%s7015_s6 + $0x278] sm:$0xff]  ;;  %v1349_v59 = vld [vmem:[%s7015_s6 + $0x1f0] sm:$0xff] }
  0xe4   : > { %v769_v60 = vpop.permute.xlu1 %768  ;;  %1722 = vperm.xlu0 %4671, %v1348_v27   ;;  %v796_v17 = vadd.f32 %v779_v46, %v732_v3  ;;  %v795_v18 = vadd.f32 %v779_v46, %v731_v2  ;;  %v1343_v46 = vld [vmem:[%s7015_s6 + $0x1c0] sm:$0xff]  ;;  %v1353_v2 = vld [vmem:[%s7015_s6 + $0x210] sm:$0xff] }
  0xe5   : > { %v791_v44 = vadd.f32 %v769_v60, %v727_v4  ;;  %v792_v45 = vadd.f32 %v769_v60, %v728_v6  ;;  %1637 = vperm.xlu1 %4673, %v1331_v28   ;;  %v5285_v47 = vpop.permute.xlu0 %900  ;;  %v1370_v28 = vld [vmem:[%s7015_s6 + $0x298] sm:$0xff]  ;;  %v4678_v4 = vld [vmem:[%s7012_s3 + $0x20] sm:$0xff]  }
  0xe6   : > { %v812_v20 = vmax.f32 %v796_v17, 0.0  ;;  %v811_v36 = vmax.f32 %v795_v18, 0.0  ;;  %v1374_v60 = vld [vmem:[%s7015_s6 + $0x2b8] sm:$0xff]  ;;  %v4680_v17 = vld [vmem:[%s7012_s3 + $0x30] sm:$0xff]  }
  0xe7   : > { %v807_v15 = vmax.f32 %v791_v44, 0.0  ;;  %v808_v16 = vmax.f32 %v792_v45, 0.0  ;;  %v1357_v44 = vld [vmem:[%s7015_s6 + $0x230] sm:$0xff] }
  0xe8   : > { %v774_v21 = vpop.permute.xlu1 %773  ;;  %1732 = vperm.xlu0 %4671, %v1350_v11   ;;  %v1376_v11 = vld [vmem:[%s7015_s6 + $0x2c8] sm:$0xff] }
  0xe9   : > { %v793_v22 = vadd.f32 %v774_v21, %v729_v12  ;;  %v794_v23 = vadd.f32 %v774_v21, %v730_v13  ;;  %1647 = vperm.xlu1 %4673, %v1333_v14   ;;  %v834_v24 = vpack.c.bf16 %v808_v16, %v806_v10  ;;  %v833_v32 = vpack.c.bf16 %v807_v15, %v805_v19  ;;  %v5302_v56 = vpop.permute.xlu0 %910  ;;  %v4679_v10 = vld [vmem:[%s7012_s3 + $0x28] sm:$0xff]   ;;  %v1359_v12 = vld [vmem:[%s7015_s6 + $0x240] sm:$0xff]  ;;  %v1378_v15 = vld [vmem:[%s7015_s6 + $0x2d8] sm:$0xff] }
  0xea   : > { %v1361_v16 = vld [vmem:[%s7015_s6 + $0x250] sm:$0xff]  ;;  %v1380_v19 = vld [vmem:[%s7015_s6 + $0x2e8] sm:$0xff]  ;;  %v1363_v21 = vld [vmem:[%s7015_s6 + $0x260] sm:$0xff] }
  0xeb   : > { %v809_v35 = vmax.f32 %v793_v22, 0.0  ;;  %v810_v43 = vmax.f32 %v794_v23, 0.0  ;;  %1002 = vmatprep.subr.bf16.mxu0 %v834_v24  ;;  %v1382_v23 = vld [vmem:[%s7015_s6 + $0x2f8] sm:$0xff]  ;;  %v1365_v24 = vld [vmem:[%s7015_s6 + $0x270] sm:$0xff] }
  0xec   : > { %1003 = vmatpush1.bf16.msra.mxu0 %v833_v32  ;;  %1742 = vperm.xlu0 %4671, %v1352_v31   ;;  %v5306_v58 = vpop.permute.xlu1 %855  ;;  %v4681_v32 = vld [vmem:[%s7012_s3 + $0x38] sm:$0xff]  }
  0xed   : > { %1657 = vperm.xlu1 %4673, %v1335_v33   ;;  %v836_v37 = vpack.c.bf16 %v812_v20, %v810_v43  ;;  %v835_v63 = vpack.c.bf16 %v811_v36, %v809_v35  ;;  %v5317_v62 = vpop.permute.xlu0 %920  ;;  %v1384_v35 = vld [vmem:[%s7015_s6 + $0x308] sm:$0xff]  ;;  %v1367_v43 = vld [vmem:[%s7015_s6 + $0x280] sm:$0xff]  ;;  %v1386_v36 = vld [vmem:[%s7015_s6 + $0x318] sm:$0xff] }
  0xef   : > { %1004 = vmatprep.subr.bf16.mxu0 %v836_v37  ;;  %v1369_v37 = vld [vmem:[%s7015_s6 + $0x290] sm:$0xff] }
  0xf0   : > { %1005 = vmatpush1.bf16.msra.mxu0 %v835_v63  ;;  %1752 = vperm.xlu0 %4671, %v1354_v38   ;;  %v5325_v27 = vpop.permute.xlu1 %865  ;;  %v1388_v38 = vld [vmem:[%s7015_s6 + $0x328] sm:$0xff] }
  0xf1   : > { %1667 = vperm.xlu1 %4673, %v1337_v39   ;;  %v5335_v3 = vpop.permute.xlu0 %930  ;;  %v1371_v39 = vld [vmem:[%s7015_s6 + $0x2a0] sm:$0xff] }
  0xf3   : > { %4524 = vmatmul.mubr.msk.bf16.vlgmr.msra.gmra.mrb[0].mxu0 %vm973_vm0, %v4674_v30 }
  0xf4   : > { %1040 = vmatprep.mubr.bf16.mxu0 %v7017_v1  ;;  %1762 = vperm.xlu0 %4671, %v1356_v54   ;;  %v5340_v6 = vpop.permute.xlu1 %875 }
  0xf5   : > { %1677 = vperm.xlu1 %4673, %v1339_v40   ;;  %v5350_v26 = vpop.permute.xlu0 %1422  ;;  %v1390_v40 = vld [vmem:[%s7015_s6 + $0x338] sm:$0xff] }
  0xf8   : > { %1772 = vperm.xlu0 %4671, %v1358_v41   ;;  %v5358_v45 = vpop.permute.xlu1 %885  ;;  %v1373_v41 = vld [vmem:[%s7015_s6 + $0x2b0] sm:$0xff] }
  0xf9   : > { %1687 = vperm.xlu1 %4673, %v1341_v57   ;;  %v5369_v13 = vpop.permute.xlu0 %1432 }
  0xfb   : > { %4525 = vmatmul.mubr.msk.bf16.gmra.mrb[4].mxu0 %vm973_vm0, %v4675_v42  ;;  %v1392_v42 = vld [vmem:[%s7015_s6 + $0x348] sm:$0xff] }
  0xfc   : > { %1050 = vmatprep.mubr.bf16.mxu0 %v7017_v1  ;;  %1782 = vperm.xlu0 %4671, %v1360_v53   ;;  %v5373_v14 = vpop.permute.xlu1 %895  ;;  %v1375_v53 = vld [vmem:[%s7015_s6 + $0x2c0] sm:$0xff] }
  0xfd   : > { %1697 = vperm.xlu1 %4673, %v1343_v46   ;;  %v5384_v18 = vpop.permute.xlu0 %1442 }
 0x100   : > { %1792 = vperm.xlu0 %4671, %v1362_v5   ;;  %v5392_v22 = vpop.permute.xlu1 %905  ;;  %v1394_v5 = vld [vmem:[%s7015_s6 + $0x358] sm:$0xff] }
 0x101   : > { %1707 = vperm.xlu1 %4673, %v1345_v48   ;;  %v5402_v31 = vpop.permute.xlu0 %1452  ;;  %v1377_v48 = vld [vmem:[%s7015_s6 + $0x2d0] sm:$0xff] }
 0x103   : > { %4526 = vmatmul.mubr.msk.bf16.gmra.mrb[8].mxu0 %vm973_vm0, %v4676_v25 }
 0x104   : > { %1060 = vmatprep.mubr.bf16.mxu0 %v7017_v1  ;;  %1802 = vperm.xlu0 %4671, %v1364_v52   ;;  %v5407_v33 = vpop.permute.xlu1 %915 }
 0x105   : > { %1717 = vperm.xlu1 %4673, %v1347_v55   ;;  %v5417_v20 = vpop.permute.xlu0 %1462  ;;  %v1396_v55 = vld [vmem:[%s7015_s6 + $0x368] sm:$0xff] }
 0x108   : > { %1812 = vperm.xlu0 %4671, %v1366_v50   ;;  %v5425_v63 = vpop.permute.xlu1 %925  ;;  %v1379_v50 = vld [vmem:[%s7015_s6 + $0x2e0] sm:$0xff] }
 0x109   : > { %1727 = vperm.xlu1 %4673, %v1349_v59   ;;  %v5433_v30 = vpop.permute.xlu0 %1472 }
 0x10b   : > { %4527 = vmatmul.mubr.msk.bf16.gmra.mrb[12].mxu0 %vm973_vm0, %v4677_v61  ;;  %v1398_v61 = vld [vmem:[%s7015_s6 + $0x378] sm:$0xff] }
 0x10c   : > { %1070 = vmatprep.mubr.bf16.mxu0 %v7017_v1  ;;  %1822 = vperm.xlu0 %4671, %v1368_v51   ;;  %v5435_v54 = vpop.permute.xlu1 %1417  ;;  %v1381_v51 = vld [vmem:[%s7015_s6 + $0x2f0] sm:$0xff] }
 0x10d   : > { %1737 = vperm.xlu1 %4673, %v1351_v0   ;;  %v5443_v57 = vpop.permute.xlu0 %1482 }
 0x110   : > { %1832 = vperm.xlu0 %4671, %v1370_v28   ;;  %v5451_v46 = vpop.permute.xlu1 %1427  ;;  %v1400_v28 = vld [vmem:[%s7015_s6 + $0x388] sm:$0xff] }
 0x111   : > { %1747 = vperm.xlu1 %4673, %v1353_v2   ;;  %v5459_v25 = vpop.permute.xlu0 %1492  ;;  %v1383_v2 = vld [vmem:[%s7015_s6 + $0x300] sm:$0xff] }
 0x113   : > { %4528 = vmatmul.mubr.msk.bf16.gmra.mrb[16].mxu0 %vm973_vm0, %v4678_v4 }
 0x114   : > { %1080 = vmatprep.mubr.bf16.mxu0 %v7017_v1  ;;  %1842 = vperm.xlu0 %4671, %v1372_v7   ;;  %v5461_v52 = vpop.permute.xlu1 %1437 }
 0x115   : > { %1757 = vperm.xlu1 %4673, %v1355_v8   ;;  %v5469_v59 = vpop.permute.xlu0 %1502  ;;  %v1402_v8 = vld [vmem:[%s7015_s6 + $0x398] sm:$0xff] }
 0x118   : > { %1852 = vperm.xlu0 %4671, %v1374_v60   ;;  %v5477_v0 = vpop.permute.xlu1 %1447  ;;  %v1385_v60 = vld [vmem:[%s7015_s6 + $0x310] sm:$0xff] }
 0x119   : > { %1767 = vperm.xlu1 %4673, %v1357_v44   ;;  %v5485_v4 = vpop.permute.xlu0 %1512 }
 0x11b   : > { %4529 = vmatmul.mubr.msk.bf16.gmra.mrb[20].mxu0 %vm973_vm0, %v4679_v10  ;;  %v1404_v10 = vld [vmem:[%s7015_s6 + $0x3a8] sm:$0xff] }
 0x11c   : > { %1090 = vmatprep.mubr.bf16.mxu0 %v7017_v1  ;;  %1862 = vperm.xlu0 %4671, %v1376_v11   ;;  %v5487_v7 = vpop.permute.xlu1 %1457  ;;  %v1387_v11 = vld [vmem:[%s7015_s6 + $0x320] sm:$0xff] }
 0x11d   : > { %1777 = vperm.xlu1 %4673, %v1359_v12   ;;  %v5495_v44 = vpop.permute.xlu0 %1522 }
 0x11e   : > { %7069 = vst [vmem:[#allocation3_spill] sm:$0xff] %v5495_v44 }
 0x120   : > { %1872 = vperm.xlu0 %4671, %v1378_v15   ;;  %v5503_v12 = vpop.permute.xlu1 %1467  ;;  %v1406_v15 = vld [vmem:[%s7015_s6 + $0x3b8] sm:$0xff] }
 0x121   : > { %1787 = vperm.xlu1 %4673, %v1361_v16   ;;  %v1389_v16 = vld [vmem:[%s7015_s6 + $0x330] sm:$0xff] }
 0x123   : > { %4530 = vmatmul.mubr.msk.bf16.gmra.mrb[24].mxu0 %vm973_vm0, %v4680_v17  ;;  %v5511_v17 = vpop.permute.xlu0 %1532 }
 0x124   : > { %1100 = vmatprep.mubr.bf16.mxu0 %v7017_v1  ;;  %1882 = vperm.xlu0 %4671, %v1380_v19   ;;  %7070 = vst [vmem:[#allocation4_spill] sm:$0xff] %v5511_v17  ;;  %v5513_v19 = vpop.permute.xlu1 %1477 }
 0x125   : > { %1797 = vperm.xlu1 %4673, %v1363_v21   ;;  %v1408_v21 = vld [vmem:[%s7015_s6 + $0x3c8] sm:$0xff] }
 0x128   : > { %1892 = vperm.xlu0 %4671, %v1382_v23   ;;  %v1391_v23 = vld [vmem:[%s7015_s6 + $0x340] sm:$0xff] }
 0x129   : > { %1807 = vperm.xlu1 %4673, %v1365_v24   ;;  %v5521_v24 = vpop.permute.xlu0 %1542 }
 0x12a   : > { %7071 = vst [vmem:[#allocation5_spill] sm:$0xff] %v5521_v24 }
 0x12b   : > { %4531 = vmatmul.mubr.msk.bf16.gmra.mrb[28].mxu0 %vm973_vm0, %v4681_v32  ;;  %v1410_v32 = vld [vmem:[%s7015_s6 + $0x3d8] sm:$0xff] }
 0x12c   : > { %2471 = vmatprep.mubr.bf16.mxu0 %v7017_v1  ;;  %1902 = vperm.xlu0 %4671, %v1384_v35   ;;  %v1393_v35 = vld [vmem:[%s7015_s6 + $0x350] sm:$0xff] }
 0x12d   : > { %1817 = vperm.xlu1 %4673, %v1367_v43   ;;  %v5529_v43 = vpop.permute.xlu1 %1487 }
 0x130   : > { %1912 = vperm.xlu0 %4671, %v1386_v36   ;;  %v1412_v36 = vld [vmem:[%s7015_s6 + $0x3e8] sm:$0xff] }
 0x131   : > { %1827 = vperm.xlu1 %4673, %v1369_v37   ;;  %v1395_v37 = vld [vmem:[%s7015_s6 + $0x360] sm:$0xff] }
 0x134   : > { %1922 = vperm.xlu0 %4671, %v1388_v38   ;;  %v5537_v38 = vpop.permute.xlu0 %1552 }
 0x135   : > { %1837 = vperm.xlu1 %4673, %v1371_v39   ;;  %7072 = vst [vmem:[#allocation6_spill] sm:$0xff] %v5537_v38  ;;  %v5539_v39 = vpop.permute.xlu1 %1497 }
 0x138   : > { %1932 = vperm.xlu0 %4671, %v1390_v40   ;;  %v1414_v40 = vld [vmem:[%s7015_s6 + $0x3f8] sm:$0xff] }
 0x139   : > { %1847 = vperm.xlu1 %4673, %v1373_v41   ;;  %v1397_v41 = vld [vmem:[%s7015_s6 + $0x370] sm:$0xff] }
 0x13c   : > { %1942 = vperm.xlu0 %4671, %v1392_v42   ;;  %v5547_v42 = vpop.permute.xlu0 %1562 }
 0x13d   : > { %1857 = vperm.xlu1 %4673, %v1375_v53   ;;  %7073 = vst [vmem:[#allocation7_spill] sm:$0xff] %v5547_v42  ;;  %v1399_v53 = vld [vmem:[%s7015_s6 + $0x380] sm:$0xff] }
 0x140   : > { %1952 = vperm.xlu0 %4671, %v1394_v5   ;;  %v5552_v5 = vpop.permute.xlu1 %1507 }
 0x141   : > { %1867 = vperm.xlu1 %4673, %v1377_v48   ;;  %v1401_v48 = vld [vmem:[%s7015_s6 + $0x390] sm:$0xff] }
 0x144   : > { %1962 = vperm.xlu0 %4671, %v1396_v55   ;;  %v5557_v55 = vpop.permute.xlu1 %1517 }
 0x145   : > { %1877 = vperm.xlu1 %4673, %v1379_v50   ;;  %v1403_v50 = vld [vmem:[%s7015_s6 + $0x3a0] sm:$0xff] }
 0x148   : > { %1972 = vperm.xlu0 %4671, %v1398_v61   ;;  %v1405_v61 = vld [vmem:[%s7015_s6 + $0x3b0] sm:$0xff] }
 0x149   : > { %1887 = vperm.xlu1 %4673, %v1381_v51   ;;  %v5565_v51 = vpop.permute.xlu1 %1527 }
 0x14a   : > { %7074 = vst [vmem:[#allocation8_spill] sm:$0xff] %v5565_v51 }
 0x14c   : > { %1982 = vperm.xlu0 %4671, %v1400_v28   ;;  %v1407_v28 = vld [vmem:[%s7015_s6 + $0x3c0] sm:$0xff] }
 0x14d   : > { %1897 = vperm.xlu1 %4673, %v1383_v2   ;;  %v5570_v2 = vpop.permute.xlu1 %1537 }
 0x14e   : > { %7075 = vst [vmem:[#allocation9_spill] sm:$0xff] %v5570_v2 }
 0x150   : > { %1992 = vperm.xlu0 %4671, %v1402_v8   ;;  %v1409_v8 = vld [vmem:[%s7015_s6 + $0x3d0] sm:$0xff] }
 0x151   : > { %1907 = vperm.xlu1 %4673, %v1385_v60   ;;  %v1411_v60 = vld [vmem:[%s7015_s6 + $0x3e0] sm:$0xff] }
 0x154   : > { %2002 = vperm.xlu0 %4671, %v1404_v10   ;;  %v5578_v10 = vpop.permute.xlu1 %1547 }
 0x155   : > { %1917 = vperm.xlu1 %4673, %v1387_v11   ;;  %7076 = vst [vmem:[#allocation10_spill] sm:$0xff] %v5578_v10  ;;  %v1413_v11 = vld [vmem:[%s7015_s6 + $0x3f0] sm:$0xff] }
 0x158   : > { %2012 = vperm.xlu0 %4671, %v1406_v15   ;;  %v5583_v15 = vpop.permute.xlu1 %1557 }
 0x159   : > { %1927 = vperm.xlu1 %4673, %v1389_v16   ;;  %7077 = vst [vmem:[#allocation11_spill] sm:$0xff] %v5583_v15  ;;  %v4734_v15 = vld [vmem:[%s7014_s5 + $0xd0] sm:$0xff]  }
 0x15c   : > { %2022 = vperm.xlu0 %4671, %v1408_v21  }
 0x15d   : > { %1937 = vperm.xlu1 %4673, %v1391_v23  }
 0x160   : > { %2032 = vperm.xlu0 %4671, %v1410_v32  }
 0x161   : > { %1947 = vperm.xlu1 %4673, %v1393_v35  }
 0x164   : > { %2042 = vperm.xlu0 %4671, %v1412_v36  }
 0x165   : > { %1957 = vperm.xlu1 %4673, %v1395_v37  }
 0x168   : > { %2052 = vperm.xlu0 %4671, %v1414_v40  }
 0x169   : > { %1967 = vperm.xlu1 %4673, %v1397_v41  }
 0x16d   : > { %1977 = vperm.xlu1 %4673, %v1399_v53  }
 0x171   : > { %1987 = vperm.xlu1 %4673, %v1401_v48  }
 0x175   : > { %1997 = vperm.xlu1 %4673, %v1403_v50  }
 0x179   : > { %2007 = vperm.xlu1 %4673, %v1405_v61  }
 0x17d   : > { %2017 = vperm.xlu1 %4673, %v1407_v28  }
 0x181   : > { %2027 = vperm.xlu1 %4673, %v1409_v8  }
 0x185   : > { %2037 = vperm.xlu1 %4673, %v1411_v60  }
 0x189   : > { %2047 = vperm.xlu1 %4673, %v1413_v11  }
 0x1c6   : > { %v1032_v16 = vpop.f32.mrb[0].mxu0 }
 0x1c7   : > { %v1034_v21 = vpop.f32.mrb[1].mxu0  ;;  %v1033_v23 = vadd.f32 %v1032_v16, %v5306_v58 }
 0x1c8   : > { %v1035_v32 = vadd.f32 %v1034_v21, %v5306_v58  ;;  %v1036_v35 = vpop.f32.mrb[2].mxu0 }
 0x1c9   : > { %v1037_v36 = vadd.f32 %v1036_v35, %v5231_v9  ;;  %v1038_v37 = vpop.f32.mrb[3].mxu0  ;;  %v1111_v41 = vmax.f32 %v1033_v23, 0.0 }
 0x1ca   : > { %v1039_v40 = vadd.f32 %v1038_v37, %v5231_v9  ;;  %v1112_v48 = vmax.f32 %v1035_v32, 0.0 }
 0x1cb   : > { %v1113_v53 = vmax.f32 %v1037_v36, 0.0 }
 0x1cc   : > { %v1114_v50 = vmax.f32 %v1039_v40, 0.0 }
 0x1cd   : > { %v1271_v61 = vpack.c.bf16 %v1113_v53, %v1111_v41 }
 0x1ce   : > { %v1042_v28 = vpop.f32.mrb[4].mxu0  ;;  %v1272_v8 = vpack.c.bf16 %v1114_v50, %v1112_v48 }
 0x1cf   : > { %v1044_v60 = vpop.f32.mrb[5].mxu0  ;;  %v1043_v11 = vadd.f32 %v1042_v28, %v5325_v27 }
 0x1d0   : > { %v1045_v16 = vadd.f32 %v1044_v60, %v5325_v27  ;;  %v1046_v1 = vpop.f32.mrb[6].mxu0  ;;  %2439 = vmatprep.subr.bf16.mxu0 %v1272_v8  ;;  %4599 = vmatprep.subr.bf16.mxu1 %v1272_v8 }
 0x1d1   : > { %v1047_v58 = vadd.f32 %v1046_v1, %v5245_v34  ;;  %v1048_v21 = vpop.f32.mrb[7].mxu0  ;;  %2440 = vmatpush1.bf16.msra.mxu0 %v1271_v61  ;;  %4607 = vmatpush1.bf16.msra.mxu1 %v1271_v61  ;;  %v1115_v23 = vmax.f32 %v1043_v11, 0.0 }
 0x1d2   : > { %v1049_v9 = vadd.f32 %v1048_v21, %v5245_v34  ;;  %v1116_v35 = vmax.f32 %v1045_v16, 0.0 }
 0x1d3   : > { %v1117_v32 = vmax.f32 %v1047_v58, 0.0 }
 0x1d4   : > { %v1118_v36 = vmax.f32 %v1049_v9, 0.0 }
 0x1d5   : > { %v1273_v37 = vpack.c.bf16 %v1117_v32, %v1115_v23 }
 0x1d6   : > { %v1052_v40 = vpop.f32.mrb[8].mxu0  ;;  %v1274_v41 = vpack.c.bf16 %v1118_v36, %v1116_v35 }
 0x1d7   : > { %v1054_v53 = vpop.f32.mrb[9].mxu0  ;;  %v1053_v27 = vadd.f32 %v1052_v40, %v5340_v6 }
 0x1d8   : > { %v1055_v48 = vadd.f32 %v1054_v53, %v5340_v6  ;;  %v1056_v50 = vpop.f32.mrb[10].mxu0  ;;  %2441 = vmatprep.subr.bf16.mxu0 %v1274_v41  ;;  %4600 = vmatprep.subr.bf16.mxu1 %v1274_v41 }
 0x1d9   : > { %v1057_v1 = vadd.f32 %v1056_v50, %v5256_v49  ;;  %v1058_v61 = vpop.f32.mrb[11].mxu0  ;;  %2442 = vmatpush1.bf16.msra.mxu0 %v1273_v37  ;;  %4608 = vmatpush1.bf16.msra.mxu1 %v1273_v37  ;;  %v1119_v28 = vmax.f32 %v1053_v27, 0.0 }
 0x1da   : > { %v1059_v34 = vadd.f32 %v1058_v61, %v5256_v49  ;;  %v1120_v60 = vmax.f32 %v1055_v48, 0.0 }
 0x1db   : > { %v1121_v8 = vmax.f32 %v1057_v1, 0.0 }
 0x1dc   : > { %v1122_v11 = vmax.f32 %v1059_v34, 0.0 }
 0x1dd   : > { %v1275_v16 = vpack.c.bf16 %v1121_v8, %v1119_v28 }
 0x1de   : > { %v1062_v58 = vpop.f32.mrb[12].mxu0  ;;  %v1276_v21 = vpack.c.bf16 %v1122_v11, %v1120_v60 }
 0x1df   : > { %v1064_v9 = vpop.f32.mrb[13].mxu0  ;;  %v1063_v6 = vadd.f32 %v1062_v58, %v5358_v45 }
 0x1e0   : > { %v1065_v23 = vadd.f32 %v1064_v9, %v5358_v45  ;;  %v1066_v32 = vpop.f32.mrb[14].mxu0  ;;  %2443 = vmatprep.subr.bf16.mxu0 %v1276_v21  ;;  %4601 = vmatprep.subr.bf16.mxu1 %v1276_v21 }
 0x1e1   : > { %v1067_v35 = vadd.f32 %v1066_v32, %v5272_v29  ;;  %v1068_v36 = vpop.f32.mrb[15].mxu0  ;;  %2444 = vmatpush1.bf16.msra.mxu0 %v1275_v16  ;;  %4609 = vmatpush1.bf16.msra.mxu1 %v1275_v16  ;;  %v1123_v37 = vmax.f32 %v1063_v6, 0.0 }
 0x1e2   : > { %v1069_v49 = vadd.f32 %v1068_v36, %v5272_v29  ;;  %v1124_v41 = vmax.f32 %v1065_v23, 0.0 }
 0x1e3   : > { %v1125_v40 = vmax.f32 %v1067_v35, 0.0 }
 0x1e4   : > { %v1126_v53 = vmax.f32 %v1069_v49, 0.0 }
 0x1e5   : > { %v1277_v27 = vpack.c.bf16 %v1125_v40, %v1123_v37 }
 0x1e6   : > { %v1072_v48 = vpop.f32.mrb[16].mxu0  ;;  %v1278_v50 = vpack.c.bf16 %v1126_v53, %v1124_v41 }
 0x1e7   : > { %v1074_v1 = vpop.f32.mrb[17].mxu0  ;;  %v1073_v45 = vadd.f32 %v1072_v48, %v5373_v14 }
 0x1e8   : > { %v1075_v61 = vadd.f32 %v1074_v1, %v5373_v14  ;;  %v1076_v34 = vpop.f32.mrb[18].mxu0  ;;  %2445 = vmatprep.subr.bf16.mxu0 %v1278_v50  ;;  %4602 = vmatprep.subr.bf16.mxu1 %v1278_v50 }
 0x1e9   : > { %v1077_v28 = vadd.f32 %v1076_v34, %v5285_v47  ;;  %v1078_v8 = vpop.f32.mrb[19].mxu0  ;;  %2446 = vmatpush1.bf16.msra.mxu0 %v1277_v27  ;;  %4610 = vmatpush1.bf16.msra.mxu1 %v1277_v27  ;;  %v1127_v60 = vmax.f32 %v1073_v45, 0.0 }
 0x1ea   : > { %v1079_v29 = vadd.f32 %v1078_v8, %v5285_v47  ;;  %v1128_v16 = vmax.f32 %v1075_v61, 0.0 }
 0x1eb   : > { %v1129_v11 = vmax.f32 %v1077_v28, 0.0 }
 0x1ec   : > { %v1130_v58 = vmax.f32 %v1079_v29, 0.0 }
 0x1ed   : > { %v1279_v21 = vpack.c.bf16 %v1129_v11, %v1127_v60 }
 0x1ee   : > { %v1082_v9 = vpop.f32.mrb[20].mxu0  ;;  %v1280_v6 = vpack.c.bf16 %v1130_v58, %v1128_v16 }
 0x1ef   : > { %v1083_v23 = vadd.f32 %v1082_v9, %v5392_v22  ;;  %v1084_v14 = vpop.f32.mrb[21].mxu0 }
 0x1f0   : > { %v1085_v32 = vadd.f32 %v1084_v14, %v5392_v22  ;;  %v1086_v35 = vpop.f32.mrb[22].mxu0  ;;  %2447 = vmatprep.subr.bf16.mxu0 %v1280_v6  ;;  %4603 = vmatprep.subr.bf16.mxu1 %v1280_v6 }
 0x1f1   : > { %v1087_v36 = vadd.f32 %v1086_v35, %v5302_v56  ;;  %v1088_v49 = vpop.f32.mrb[23].mxu0  ;;  %2448 = vmatpush1.bf16.msra.mxu0 %v1279_v21  ;;  %4611 = vmatpush1.bf16.msra.mxu1 %v1279_v21  ;;  %v1131_v37 = vmax.f32 %v1083_v23, 0.0 }
 0x1f2   : > { %v1089_v47 = vadd.f32 %v1088_v49, %v5302_v56  ;;  %v1132_v41 = vmax.f32 %v1085_v32, 0.0 }
 0x1f3   : > { %v1133_v40 = vmax.f32 %v1087_v36, 0.0 }
 0x1f4   : > { %v1134_v53 = vmax.f32 %v1089_v47, 0.0 }
 0x1f5   : > { %v1281_v27 = vpack.c.bf16 %v1133_v40, %v1131_v37 }
 0x1f6   : > { %v1282_v48 = vpack.c.bf16 %v1134_v53, %v1132_v41  ;;  %v1092_v50 = vpop.f32.mrb[24].mxu0  ;;  %v4683_v41 = vld [vmem:[%s7014_s5 + $0xe8] sm:$0xff]  }
 0x1f7   : > { %v1093_v1 = vadd.f32 %v1092_v50, %v5407_v33  ;;  %v1094_v22 = vpop.f32.mrb[25].mxu0  ;;  %v4684_v53 = vld [vmem:[%s7014_s5 + $0x8] sm:$0xff]   ;;  %v4687_v50 = vld [vmem:[%s7014_s5 + $0xf8] sm:$0xff]  }
 0x1f8   : > { %v1095_v45 = vadd.f32 %v1094_v22, %v5407_v33  ;;  %v1096_v61 = vpop.f32.mrb[26].mxu0  ;;  %2449 = vmatprep.subr.bf16.mxu0 %v1282_v48  ;;  %4604 = vmatprep.subr.bf16.mxu1 %v1282_v48  ;;  %v4686_v48 = vld [vmem:[%s7014_s5 + $0x10] sm:$0xff]   ;;  %v4689_v22 = vld [vmem:[%s7014_s5 + $0x100] sm:$0xff]  }
 0x1f9   : > { %v1097_v34 = vadd.f32 %v1096_v61, %v5317_v62  ;;  %v1098_v56 = vpop.f32.mrb[27].mxu0  ;;  %2450 = vmatpush1.bf16.msra.mxu0 %v1281_v27  ;;  %4612 = vmatpush1.bf16.msra.mxu1 %v1281_v27  ;;  %v1135_v8 = vmax.f32 %v1093_v1, 0.0  ;;  %v4685_v27 = vld [vmem:[%s7014_s5 + $0xf0] sm:$0xff]   ;;  %v4688_v1 = vld [vmem:[%s7014_s5 + $0x18] sm:$0xff]   ;;  %v4691_v61 = vld [vmem:[%s7014_s5 + $0x108] sm:$0xff]  }
 0x1fa   : > { %v1099_v28 = vadd.f32 %v1098_v56, %v5317_v62  ;;  %v1136_v60 = vmax.f32 %v1095_v45, 0.0  ;;  %v4690_v45 = vld [vmem:[%s7014_s5 + $0x20] sm:$0xff]   ;;  %v5657_v56 = vpop.permute.xlu1 %1567 }
 0x1fb   : > { %v1137_v29 = vmax.f32 %v1097_v34, 0.0  ;;  %v5655_v34 = vpop.permute.xlu0 %1572  ;;  %7080 = vst [vmem:[#allocation13_spill] sm:$0xff] %v5657_v56 }
 0x1fc   : > { %v1138_v11 = vmax.f32 %v1099_v28, 0.0  ;;  %7079 = vst [vmem:[#allocation12_spill] sm:$0xff] %v5655_v34  ;;  %v4733_v34 = vld [vmem:[%s7014_s5 + $0x1b0] sm:$0xff]  }
 0x1fd   : > { %v1283_v16 = vpack.c.bf16 %v1137_v29, %v1135_v8  ;;  %v4692_v29 = vld [vmem:[%s7014_s5 + $0x28] sm:$0xff]  }
 0x1fe   : > { %v1284_v58 = vpack.c.bf16 %v1138_v11, %v1136_v60  ;;  %v1102_v21 = vpop.f32.mrb[28].mxu0  ;;  %v5663_v8 = vpop.permute.xlu1 %1577  ;;  %v4693_v60 = vld [vmem:[%s7014_s5 + $0x110] sm:$0xff]  }
 0x1ff   : > { %v1103_v9 = vadd.f32 %v1102_v21, %v5425_v63  ;;  %v1104_v33 = vpop.f32.mrb[29].mxu0  ;;  %v5661_v28 = vpop.permute.xlu0 %1582  ;;  %7082 = vst [vmem:[#allocation15_spill] sm:$0xff] %v5663_v8  ;;  %v4695_v21 = vld [vmem:[%s7014_s5 + $0x118] sm:$0xff]  }
 0x200   : > { %v1105_v6 = vadd.f32 %v1104_v33, %v5425_v63  ;;  %v1106_v23 = vpop.f32.mrb[30].mxu0  ;;  %2451 = vmatprep.subr.bf16.mxu0 %v1284_v58  ;;  %4605 = vmatprep.subr.bf16.mxu1 %v1284_v58  ;;  %v4682_v63 = vld [vmem:[%s7014_s5] sm:$0xff]   ;;  %7081 = vst [vmem:[#allocation14_spill] sm:$0xff] %v5661_v28  ;;  %v4694_v58 = vld [vmem:[%s7014_s5 + $0x30] sm:$0xff]   ;;  %v4731_v28 = vld [vmem:[%s7014_s5 + $0x1a8] sm:$0xff]  }
 0x201   : > { %v1107_v14 = vadd.f32 %v1106_v23, %v5335_v3  ;;  %v1108_v32 = vpop.f32.mrb[31].mxu0  ;;  %2452 = vmatpush1.bf16.msra.mxu0 %v1283_v16  ;;  %4613 = vmatpush1.bf16.msra.mxu1 %v1283_v16  ;;  %v1139_v35 = vmax.f32 %v1103_v9, 0.0  ;;  %v4697_v23 = vld [vmem:[%s7014_s5 + $0x120] sm:$0xff]  }
 0x202   : > { %v1109_v62 = vadd.f32 %v1108_v32, %v5335_v3  ;;  %v1140_v49 = vmax.f32 %v1105_v6, 0.0  ;;  %v7078_v3 = vmov 0   ;;  %v5675_v16 = vpop.permute.xlu1 %1587  ;;  %v4696_v6 = vld [vmem:[%s7014_s5 + $0x38] sm:$0xff]  }
 0x203   : > { %v1141_v36 = vmax.f32 %v1107_v14, 0.0  ;;  %v5673_v11 = vpop.permute.xlu0 %1592  ;;  %7084 = vst [vmem:[#allocation17_spill] sm:$0xff] %v5675_v16  ;;  %v4730_v16 = vld [vmem:[%s7014_s5 + $0xc0] sm:$0xff]  }
 0x204   : > { %v1142_v47 = vmax.f32 %v1109_v62, 0.0  ;;  %7083 = vst [vmem:[#allocation16_spill] sm:$0xff] %v5673_v11  ;;  %v4729_v11 = vld [vmem:[%s7014_s5 + $0x1a0] sm:$0xff]  }
 0x205   : > { %v1285_v37 = vpack.c.bf16 %v1141_v36, %v1139_v35  ;;  %v4698_v36 = vld [vmem:[%s7014_s5 + $0x40] sm:$0xff]  }
 0x206   : > { %v1286_v40 = vpack.c.bf16 %v1142_v47, %v1140_v49  ;;  %v5685_v33 = vpop.permute.xlu1 %1597  ;;  %v4699_v49 = vld [vmem:[%s7014_s5 + $0x128] sm:$0xff]  }
 0x207   : > { %v5683_v9 = vpop.permute.xlu0 %1602  ;;  %7086 = vst [vmem:[#allocation19_spill] sm:$0xff] %v5685_v33  ;;  %v4728_v33 = vld [vmem:[%s7014_s5 + $0xb8] sm:$0xff]  }
 0x208   : > { %2453 = vmatprep.subr.bf16.mxu0 %v1286_v40  ;;  %4606 = vmatprep.subr.bf16.mxu1 %v1286_v40  ;;  %7085 = vst [vmem:[#allocation18_spill] sm:$0xff] %v5683_v9  ;;  %v4700_v40 = vld [vmem:[%s7014_s5 + $0x48] sm:$0xff]  }
 0x209   : > { %2454 = vmatpush1.bf16.msra.mxu0 %v1285_v37  ;;  %4614 = vmatpush1.bf16.msra.mxu1 %v1285_v37 }
 0x20a   : > { %v5697_v32 = vpop.permute.xlu1 %1607 }
 0x20b   : > { %v5695_v14 = vpop.permute.xlu0 %1612  ;;  %7088 = vst [vmem:[#allocation21_spill] sm:$0xff] %v5697_v32 }
 0x20c   : > { %2472 = vmatmul.mubr.bf16.vlgmr.msra.gmra.mrb[32].mxu0 %v4682_v63  ;;  %2762 = vmatmul.mubr.bf16.vlgmr.msra.gmra.mrb[0].mxu1 %v4683_v41  ;;  %7087 = vst [vmem:[#allocation20_spill] sm:$0xff] %v5695_v14  ;;  %v4701_v63 = vld [vmem:[%s7014_s5 + $0x130] sm:$0xff]   ;;  %v4727_v14 = vld [vmem:[%s7014_s5 + $0x198] sm:$0xff]  }
 0x20d   : > { %2481 = vmatprep.mubr.bf16.mxu0 %v7078_v3  ;;  %2771 = vmatprep.mubr.bf16.mxu1 %v7078_v3 }
 0x20e   : > { %v5703_v35 = vpop.permute.xlu1 %1617 }
 0x20f   : > { %v5701_v62 = vpop.permute.xlu0 %1622  ;;  %7090 = vst [vmem:[#allocation23_spill] sm:$0xff] %v5703_v35 }
 0x210   : > { %7089 = vst [vmem:[#allocation22_spill] sm:$0xff] %v5701_v62  ;;  %v4725_v62 = vld [vmem:[%s7014_s5 + $0x190] sm:$0xff]  }
 0x212   : > { %v5715_v37 = vpop.permute.xlu1 %1627 }
 0x213   : > { %v5713_v47 = vpop.permute.xlu0 %1632  ;;  %7092 = vst [vmem:[#allocation25_spill] sm:$0xff] %v5715_v37  ;;  %v4724_v37 = vld [vmem:[%s7014_s5 + $0xa8] sm:$0xff]  }
 0x214   : > { %2482 = vmatmul.mubr.bf16.gmra.mrb[36].mxu0 %v4684_v53  ;;  %2772 = vmatmul.mubr.bf16.gmra.mrb[4].mxu1 %v4685_v27  ;;  %7091 = vst [vmem:[#allocation24_spill] sm:$0xff] %v5713_v47  ;;  %v4702_v27 = vld [vmem:[%s7014_s5 + $0x50] sm:$0xff]   ;;  %v4723_v47 = vld [vmem:[%s7014_s5 + $0x188] sm:$0xff]  }
 0x215   : > { %2491 = vmatprep.mubr.bf16.mxu0 %v7078_v3  ;;  %2781 = vmatprep.mubr.bf16.mxu1 %v7078_v3 }
 0x216   : > { %v5725_v53 = vpop.permute.xlu1 %1637 }
 0x217   : > { %v5723_v41 = vpop.permute.xlu0 %1642  ;;  %7094 = vst [vmem:[#allocation27_spill] sm:$0xff] %v5725_v53  ;;  %v4722_v53 = vld [vmem:[%s7014_s5 + $0xa0] sm:$0xff]  }
 0x218   : > { %7093 = vst [vmem:[#allocation26_spill] sm:$0xff] %v5723_v41 }
 0x21c   : > { %2492 = vmatmul.mubr.bf16.gmra.mrb[40].mxu0 %v4686_v48  ;;  %2782 = vmatmul.mubr.bf16.gmra.mrb[8].mxu1 %v4687_v50  ;;  %v4703_v48 = vld [vmem:[%s7014_s5 + $0x138] sm:$0xff]   ;;  %v5735_v50 = vpop.permute.xlu0 %1652 }
 0x21d   : > { %2501 = vmatprep.mubr.bf16.mxu0 %v7078_v3  ;;  %2791 = vmatprep.mubr.bf16.mxu1 %v7078_v3  ;;  %7095 = vst [vmem:[#allocation28_spill] sm:$0xff] %v5735_v50  ;;  %v4721_v50 = vld [vmem:[%s7014_s5 + $0x180] sm:$0xff]  }
 0x224   : > { %2502 = vmatmul.mubr.bf16.gmra.mrb[44].mxu0 %v4688_v1  ;;  %2792 = vmatmul.mubr.bf16.gmra.mrb[12].mxu1 %v4689_v22  ;;  %v5737_v1 = vpop.permute.xlu1 %1647  ;;  %v5741_v22 = vpop.permute.xlu0 %1662 }
 0x225   : > { %2511 = vmatprep.mubr.bf16.mxu0 %v7078_v3  ;;  %2801 = vmatprep.mubr.bf16.mxu1 %v7078_v3  ;;  %7096 = vst [vmem:[#allocation29_spill] sm:$0xff] %v5737_v1  ;;  %7097 = vst [vmem:[#allocation30_spill] sm:$0xff] %v5741_v22  ;;  %v4719_v22 = vld [vmem:[%s7014_s5 + $0x178] sm:$0xff]  }
 0x22c   : > { %2512 = vmatmul.mubr.bf16.gmra.mrb[48].mxu0 %v4690_v45  ;;  %2802 = vmatmul.mubr.bf16.gmra.mrb[16].mxu1 %v4691_v61  ;;  %v5743_v45 = vpop.permute.xlu1 %1657  ;;  %v4704_v61 = vld [vmem:[%s7014_s5 + $0x58] sm:$0xff]  }
 0x22d   : > { %2521 = vmatprep.mubr.bf16.mxu0 %v7078_v3  ;;  %2811 = vmatprep.mubr.bf16.mxu1 %v7078_v3  ;;  %7098 = vst [vmem:[#allocation31_spill] sm:$0xff] %v5743_v45 }
 0x234   : > { %2522 = vmatmul.mubr.bf16.gmra.mrb[52].mxu0 %v4692_v29  ;;  %2812 = vmatmul.mubr.bf16.gmra.mrb[20].mxu1 %v4693_v60  ;;  %v4705_v29 = vld [vmem:[%s7014_s5 + $0x140] sm:$0xff]   ;;  %v5753_v60 = vpop.permute.xlu0 %1672 }
 0x235   : > { %2531 = vmatprep.mubr.bf16.mxu0 %v7078_v3  ;;  %2821 = vmatprep.mubr.bf16.mxu1 %v7078_v3  ;;  %7099 = vst [vmem:[#allocation32_spill] sm:$0xff] %v5753_v60  ;;  %v4717_v60 = vld [vmem:[%s7014_s5 + $0x170] sm:$0xff]  }
 0x23c   : > { %2532 = vmatmul.mubr.bf16.gmra.mrb[56].mxu0 %v4694_v58  ;;  %2822 = vmatmul.mubr.bf16.gmra.mrb[24].mxu1 %v4695_v21  ;;  %v5755_v58 = vpop.permute.xlu1 %1667  ;;  %v4706_v21 = vld [vmem:[%s7014_s5 + $0x60] sm:$0xff]  }
 0x23d   : > { %2541 = vmatprep.mubr.bf16.mxu0 %v7078_v3  ;;  %2831 = vmatprep.mubr.bf16.mxu1 %v7078_v3  ;;  %7100 = vst [vmem:[#allocation33_spill] sm:$0xff] %v5755_v58  ;;  %v4718_v58 = vld [vmem:[%s7014_s5 + $0x90] sm:$0xff]  }
 0x244   : > { %2542 = vmatmul.mubr.bf16.gmra.mrb[60].mxu0 %v4696_v6  ;;  %2832 = vmatmul.mubr.bf16.gmra.mrb[28].mxu1 %v4697_v23  ;;  %v4707_v6 = vld [vmem:[%s7014_s5 + $0x148] sm:$0xff]   ;;  %v5763_v23 = vpop.permute.xlu0 %1682 }
 0x245   : > { %2551 = vmatprep.mubr.bf16.mxu0 %v7078_v3  ;;  %2841 = vmatprep.mubr.bf16.mxu1 %v7078_v3  ;;  %7101 = vst [vmem:[#allocation34_spill] sm:$0xff] %v5763_v23 }
 0x24c   : > { %2552 = vmatmul.mubr.bf16.gmra.mrb[64].mxu0 %v4698_v36  ;;  %2842 = vmatmul.mubr.bf16.gmra.mrb[32].mxu1 %v4699_v49  ;;  %v5765_v36 = vpop.permute.xlu1 %1677  ;;  %v4708_v49 = vld [vmem:[%s7014_s5 + $0x68] sm:$0xff]  }
 0x24d   : > { %2561 = vmatprep.mubr.bf16.mxu0 %v7078_v3  ;;  %2851 = vmatprep.mubr.bf16.mxu1 %v7078_v3  ;;  %7102 = vst [vmem:[#allocation35_spill] sm:$0xff] %v5765_v36  ;;  %v4716_v36 = vld [vmem:[%s7014_s5 + $0x88] sm:$0xff]  }
 0x254   : > { %2562 = vmatmul.mubr.bf16.gmra.mrb[68].mxu0 %v4700_v40  ;;  %2852 = vmatmul.mubr.bf16.gmra.mrb[36].mxu1 %v4701_v63  ;;  %v4709_v40 = vld [vmem:[%s7014_s5 + $0x150] sm:$0xff]   ;;  %v5775_v63 = vpop.permute.xlu0 %1692 }
 0x255   : > { %2571 = vmatprep.mubr.bf16.mxu0 %v7078_v3  ;;  %2861 = vmatprep.mubr.bf16.mxu1 %v7078_v3  ;;  %7103 = vst [vmem:[#allocation36_spill] sm:$0xff] %v5775_v63  ;;  %v4715_v63 = vld [vmem:[%s7014_s5 + $0x168] sm:$0xff]  }
 0x25c   : > { %2572 = vmatmul.mubr.bf16.gmra.mrb[72].mxu0 %v4702_v27  ;;  %2862 = vmatmul.mubr.bf16.gmra.mrb[40].mxu1 %v4703_v48  ;;  %v5777_v27 = vpop.permute.xlu1 %1687  ;;  %v5781_v48 = vpop.permute.xlu0 %1702 }
 0x25d   : > { %2581 = vmatprep.mubr.bf16.mxu0 %v7078_v3  ;;  %2871 = vmatprep.mubr.bf16.mxu1 %v7078_v3  ;;  %7104 = vst [vmem:[#allocation37_spill] sm:$0xff] %v5777_v27  ;;  %7105 = vst [vmem:[#allocation38_spill] sm:$0xff] %v5781_v48  ;;  %v4713_v48 = vld [vmem:[%s7014_s5 + $0x160] sm:$0xff]  }
 0x264   : > { %2582 = vmatmul.mubr.bf16.gmra.mrb[76].mxu0 %v4704_v61  ;;  %2872 = vmatmul.mubr.bf16.gmra.mrb[44].mxu1 %v4705_v29  ;;  %v5783_v61 = vpop.permute.xlu1 %1697  ;;  %v4710_v29 = vld [vmem:[%s7014_s5 + $0x70] sm:$0xff]  }
 0x265   : > { %2591 = vmatprep.mubr.bf16.mxu0 %v7078_v3  ;;  %2881 = vmatprep.mubr.bf16.mxu1 %v7078_v3  ;;  %7106 = vst [vmem:[#allocation39_spill] sm:$0xff] %v5783_v61 }
 0x26c   : > { %2592 = vmatmul.mubr.bf16.gmra.mrb[80].mxu0 %v4706_v21  ;;  %2882 = vmatmul.mubr.bf16.gmra.mrb[48].mxu1 %v4707_v6  ;;  %v4711_v21 = vld [vmem:[%s7014_s5 + $0x158] sm:$0xff]   ;;  %v5793_v6 = vpop.permute.xlu0 %1712 }
 0x26d   : > { %2601 = vmatprep.mubr.bf16.mxu0 %v7078_v3  ;;  %2891 = vmatprep.mubr.bf16.mxu1 %v7078_v3 }
 0x270   : > { %v5803_v61 = vpop.permute.xlu0 %1722 }
 0x274   : > { %2602 = vmatmul.mubr.bf16.gmra.mrb[84].mxu0 %v4708_v49  ;;  %2892 = vmatmul.mubr.bf16.gmra.mrb[52].mxu1 %v4709_v40  ;;  %v5795_v49 = vpop.permute.xlu1 %1707  ;;  %v4712_v40 = vld [vmem:[%s7014_s5 + $0x78] sm:$0xff]   ;;  %v5815_v27 = vpop.permute.xlu0 %1732 }
 0x275   : > { %2611 = vmatprep.mubr.bf16.mxu0 %v7078_v3  ;;  %2901 = vmatprep.mubr.bf16.mxu1 %v7078_v3 }
 0x27c   : > { %2612 = vmatmul.mubr.bf16.gmra.mrb[88].mxu0 %v4710_v29  ;;  %2902 = vmatmul.mubr.bf16.gmra.mrb[56].mxu1 %v4711_v21  ;;  %v5805_v29 = vpop.permute.xlu1 %1717  ;;  %v4714_v21 = vld [vmem:[%s7014_s5 + $0x80] sm:$0xff]  }
 0x27d   : > { %2621 = vmatprep.mubr.bf16.mxu0 %v7078_v3  ;;  %2911 = vmatprep.mubr.bf16.mxu1 %v7078_v3 }
 0x280   : > { %v5817_v23 = vpop.permute.xlu1 %1727 }
 0x284   : > { %2622 = vmatmul.mubr.bf16.gmra.mrb[92].mxu0 %v4712_v40  ;;  %2912 = vmatmul.mubr.bf16.gmra.mrb[60].mxu1 %v4713_v48  ;;  %v5821_v48 = vpop.permute.xlu0 %1742  ;;  %v5823_v40 = vpop.permute.xlu1 %1737 }
 0x285   : > { %2631 = vmatprep.mubr.bf16.mxu0 %v7078_v3  ;;  %2921 = vmatprep.mubr.bf16.mxu1 %v7078_v3 }
 0x28c   : > { %2632 = vmatmul.mubr.bf16.gmra.mrb[96].mxu0 %v4714_v21  ;;  %2922 = vmatmul.mubr.bf16.gmra.mrb[64].mxu1 %v4715_v63  ;;  %v5833_v63 = vpop.permute.xlu0 %1752  ;;  %v5835_v21 = vpop.permute.xlu1 %1747 }
 0x28d   : > { %2641 = vmatprep.mubr.bf16.mxu0 %v7078_v3  ;;  %2931 = vmatprep.mubr.bf16.mxu1 %v7078_v3 }
 0x290   : > { %v5843_v45 = vpop.permute.xlu0 %1762 }
 0x294   : > { %2642 = vmatmul.mubr.bf16.gmra.mrb[100].mxu0 %v4716_v36  ;;  %2932 = vmatmul.mubr.bf16.gmra.mrb[68].mxu1 %v4717_v60  ;;  %v5845_v36 = vpop.permute.xlu1 %1757  ;;  %v4720_v60 = vld [vmem:[%s7014_s5 + $0x98] sm:$0xff]   ;;  %v5855_v1 = vpop.permute.xlu0 %1772 }
 0x295   : > { %2651 = vmatprep.mubr.bf16.mxu0 %v7078_v3  ;;  %2941 = vmatprep.mubr.bf16.mxu1 %v7078_v3 }
 0x298   : > { %v5857_v41 = vpop.permute.xlu1 %1767 }
 0x29c   : > { %2652 = vmatmul.mubr.bf16.gmra.mrb[104].mxu0 %v4718_v58  ;;  %2942 = vmatmul.mubr.bf16.gmra.mrb[72].mxu1 %v4719_v22  ;;  %v5861_v22 = vpop.permute.xlu0 %1782  ;;  %v5863_v58 = vpop.permute.xlu1 %1777 }
 0x29d   : > { %2661 = vmatprep.mubr.bf16.mxu0 %v7078_v3  ;;  %2951 = vmatprep.mubr.bf16.mxu1 %v7078_v3 }
 0x2a4   : > { %2662 = vmatmul.mubr.bf16.gmra.mrb[108].mxu0 %v4720_v60  ;;  %2952 = vmatmul.mubr.bf16.gmra.mrb[76].mxu1 %v4721_v50  ;;  %v5873_v50 = vpop.permute.xlu0 %1792  ;;  %v5875_v60 = vpop.permute.xlu1 %1787 }
 0x2a5   : > { %2671 = vmatprep.mubr.bf16.mxu0 %v7078_v3  ;;  %2961 = vmatprep.mubr.bf16.mxu1 %v7078_v3 }
 0x2a8   : > { %v5883_v35 = vpop.permute.xlu0 %1802 }
 0x2ac   : > { %2672 = vmatmul.mubr.bf16.gmra.mrb[112].mxu0 %v4722_v53  ;;  %2962 = vmatmul.mubr.bf16.gmra.mrb[80].mxu1 %v4723_v47  ;;  %v5885_v53 = vpop.permute.xlu1 %1797  ;;  %v4726_v47 = vld [vmem:[%s7014_s5 + $0xb0] sm:$0xff]   ;;  %v5895_v32 = vpop.permute.xlu0 %1812 }
 0x2ad   : > { %2681 = vmatprep.mubr.bf16.mxu0 %v7078_v3  ;;  %2971 = vmatprep.mubr.bf16.mxu1 %v7078_v3  ;;  %7107 = vst [vmem:[#allocation40_spill] sm:$0xff] %v5895_v32 }
 0x2b0   : > { %v5897_v9 = vpop.permute.xlu1 %1807 }
 0x2b4   : > { %2682 = vmatmul.mubr.bf16.gmra.mrb[116].mxu0 %v4724_v37  ;;  %2972 = vmatmul.mubr.bf16.gmra.mrb[84].mxu1 %v4725_v62  ;;  %v5901_v62 = vpop.permute.xlu0 %1822  ;;  %v5903_v37 = vpop.permute.xlu1 %1817 }
 0x2b5   : > { %2691 = vmatprep.mubr.bf16.mxu0 %v7078_v3  ;;  %2981 = vmatprep.mubr.bf16.mxu1 %v7078_v3  ;;  %7108 = vst [vmem:[#allocation41_spill] sm:$0xff] %v5901_v62  ;;  %7109 = vst [vmem:[#allocation42_spill] sm:$0xff] %v5903_v37 }
 0x2bc   : > { %2692 = vmatmul.mubr.bf16.gmra.mrb[120].mxu0 %v4726_v47  ;;  %2982 = vmatmul.mubr.bf16.gmra.mrb[88].mxu1 %v4727_v14  ;;  %v5913_v14 = vpop.permute.xlu0 %1832  ;;  %v5915_v47 = vpop.permute.xlu1 %1827 }
 0x2bd   : > { %2701 = vmatprep.mubr.bf16.mxu0 %v7078_v3  ;;  %2991 = vmatprep.mubr.bf16.mxu1 %v7078_v3  ;;  %7110 = vst [vmem:[#allocation43_spill] sm:$0xff] %v5913_v14  ;;  %7111 = vst [vmem:[#allocation44_spill] sm:$0xff] %v5915_v47 }
 0x2c0   : > { %v5923_v8 = vpop.permute.xlu0 %1842 }
 0x2c1   : > { %7112 = vst [vmem:[#allocation45_spill] sm:$0xff] %v5923_v8 }
 0x2c4   : > { %2702 = vmatmul.mubr.bf16.gmra.mrb[124].mxu0 %v4728_v33  ;;  %2992 = vmatmul.mubr.bf16.gmra.mrb[92].mxu1 %v4729_v11  ;;  %v5925_v33 = vpop.permute.xlu1 %1837  ;;  %v4732_v11 = vld [vmem:[%s7014_s5 + $0xc8] sm:$0xff]   ;;  %v5935_v56 = vpop.permute.xlu0 %1852 }
 0x2c5   : > { %2711 = vmatprep.mubr.bf16.mxu0 %v7078_v3  ;;  %3001 = vmatprep.mubr.bf16.mxu1 %v7078_v3  ;;  %7113 = vst [vmem:[#allocation46_spill] sm:$0xff] %v5925_v33  ;;  %7114 = vst [vmem:[#allocation47_spill] sm:$0xff] %v5935_v56  ;;  %v4735_v56 = vld [vmem:[%s7014_s5 + $0x1b8] sm:$0xff]  }
 0x2c8   : > { %v5937_v42 = vpop.permute.xlu1 %1847 }
 0x2c9   : > { %7115 = vst [vmem:[#allocation48_spill] sm:$0xff] %v5937_v42 }
 0x2cc   : > { %2712 = vmatmul.mubr.bf16.gmra.mrb[128].mxu0 %v4730_v16  ;;  %3002 = vmatmul.mubr.bf16.gmra.mrb[96].mxu1 %v4731_v28  ;;  %v5941_v28 = vpop.permute.xlu0 %1862  ;;  %v5943_v16 = vpop.permute.xlu1 %1857 }
 0x2cd   : > { %2721 = vmatprep.mubr.bf16.mxu0 %v7078_v3  ;;  %3011 = vmatprep.mubr.bf16.mxu1 %v7078_v3  ;;  %7116 = vst [vmem:[#allocation49_spill] sm:$0xff] %v5941_v28  ;;  %7117 = vst [vmem:[#allocation50_spill] sm:$0xff] %v5943_v16 }
 0x2d4   : > { %2722 = vmatmul.mubr.bf16.gmra.mrb[132].mxu0 %v4732_v11  ;;  %3012 = vmatmul.mubr.bf16.gmra.mrb[100].mxu1 %v4733_v34  ;;  %v5953_v34 = vpop.permute.xlu0 %1872  ;;  %v5955_v11 = vpop.permute.xlu1 %1867 }
 0x2d5   : > { %2731 = vmatprep.mubr.bf16.mxu0 %v7078_v3  ;;  %3021 = vmatprep.mubr.bf16.mxu1 %v7078_v3  ;;  %7118 = vst [vmem:[#allocation51_spill] sm:$0xff] %v5953_v34  ;;  %7119 = vst [vmem:[#allocation52_spill] sm:$0xff] %v5955_v11 }
 0x2dc   : > { %2732 = vmatmul.mubr.bf16.gmra.mrb[136].mxu0 %v4734_v15  ;;  %3022 = vmatmul.mubr.bf16.gmra.mrb[104].mxu1 %v4735_v56  ;;  %v4736_v15 = vld [vmem:[%s7014_s5 + $0xd8] sm:$0xff]   ;;  %v4737_v56 = vld [vmem:[%s7014_s5 + $0x1c0] sm:$0xff]  }
 0x2dd   : > { %2741 = vmatprep.mubr.bf16.mxu0 %v7078_v3  ;;  %3031 = vmatprep.mubr.bf16.mxu1 %v7078_v3 }
 0x2df   : > { %v2473_v28 = vpop.f32.mrb[32].mxu0  ;;  %v2763_v16 = vpop.f32.mrb[0].mxu1 }
 0x2e0   : > { %v2474_v42 = vadd.f32 %v2473_v28, %v5435_v54  ;;  %v2764_v8 = vadd.f32 %v2763_v16, %v5795_v49  ;;  %v2475_v38 = vpop.f32.mrb[33].mxu0  ;;  %v2765_v33 = vpop.f32.mrb[1].mxu1 }
 0x2e1   : > { %v2476_v34 = vadd.f32 %v2475_v38, %v5435_v54  ;;  %v2766_v11 = vadd.f32 %v2765_v33, %v5795_v49  ;;  %v2477_v10 = vpop.f32.mrb[34].mxu0  ;;  %v2767_v14 = vpop.f32.mrb[2].mxu1 }
 0x2e2   : > { %v3112_v24 = vmax.f32 %v2474_v42, 0.0  ;;  %v3228_v28 = vmax.f32 %v2764_v8, 0.0  ;;  %v2478_v16 = vadd.f32 %v2477_v10, %v5350_v26  ;;  %v2768_v47 = vadd.f32 %v2767_v14, %v5793_v6  ;;  %v2479_v2 = vpop.f32.mrb[35].mxu0  ;;  %v2769_v62 = vpop.f32.mrb[3].mxu1 }
 0x2e3   : > { %v3113_v17 = vmax.f32 %v2476_v34, 0.0  ;;  %v3229_v37 = vmax.f32 %v2766_v11, 0.0  ;;  %v2480_v51 = vadd.f32 %v2479_v2, %v5350_v26  ;;  %v2770_v32 = vadd.f32 %v2769_v62, %v5793_v6  ;;  %v5973_v10 = vpop.permute.xlu0 %1882  ;;  %v5975_v14 = vpop.permute.xlu1 %1877 }
 0x2e4   : > { %v3114_v44 = vmax.f32 %v2478_v16, 0.0  ;;  %v3230_v54 = vmax.f32 %v2768_v47, 0.0  ;;  %2742 = vmatmul.mubr.bf16.gmra.mrb[140].mxu0 %v4736_v15  ;;  %3032 = vmatmul.mubr.bf16.gmra.mrb[108].mxu1 %v4737_v56 }
 0x2e5   : > { %v3496_v38 = vmax.f32 %v3112_v24, %v3113_v17  ;;  %v3670_v49 = vmax.f32 %v3228_v28, %v3229_v37  ;;  %v3115_v42 = vmax.f32 %v2480_v51, 0.0  ;;  %v3231_v8 = vmax.f32 %v2770_v32, 0.0  ;;  %2751 = vmatprep.mubr.bf16.mxu0 %v7078_v3  ;;  %3041 = vmatprep.mubr.bf16.mxu1 %v7078_v3  ;;  %v4738_v32 = vld [vmem:[%s7014_s5 + $0xe0] sm:$0xff]   ;;  %v4739_v37 = vld [vmem:[%s7014_s5 + $0x1c8] sm:$0xff]  }
 0x2e7   : > { %v3499_v33 = vmax.f32 %v3114_v44, %v3115_v42  ;;  %v3673_v26 = vmax.f32 %v3230_v54, %v3231_v8  ;;  %v2773_v2 = vpop.f32.mrb[4].mxu1  ;;  %3671 = vmax.xlane.f32.xlu0 %v3670_v49  ;;  %v2483_v6 = vpop.f32.mrb[36].mxu0  ;;  %3497 = vmax.xlane.f32.xlu1 %v3496_v38 }
 0x2e8   : > { %v2774_v62 = vadd.f32 %v2773_v2, %v5805_v29  ;;  %v2484_v17 = vadd.f32 %v2483_v6, %v5451_v46  ;;  %v2485_v24 = vpop.f32.mrb[37].mxu0  ;;  %v2775_v51 = vpop.f32.mrb[5].mxu1 }
 0x2e9   : > { %v2486_v44 = vadd.f32 %v2485_v24, %v5451_v46  ;;  %v2776_v47 = vadd.f32 %v2775_v51, %v5805_v29  ;;  %v2487_v34 = vpop.f32.mrb[38].mxu0  ;;  %v2777_v11 = vpop.f32.mrb[6].mxu1 }
 0x2ea   : > { %v3232_v15 = vmax.f32 %v2774_v62, 0.0  ;;  %v3116_v56 = vmax.f32 %v2484_v17, 0.0  ;;  %v2488_v28 = vadd.f32 %v2487_v34, %v5369_v13  ;;  %v2778_v16 = vadd.f32 %v2777_v11, %v5803_v61  ;;  %v2489_v54 = vpop.f32.mrb[39].mxu0  ;;  %v2779_v38 = vpop.f32.mrb[7].mxu1 }
 0x2eb   : > { %v3117_v49 = vmax.f32 %v2486_v44, 0.0  ;;  %v3233_v42 = vmax.f32 %v2776_v47, 0.0  ;;  %v2490_v8 = vadd.f32 %v2489_v54, %v5369_v13  ;;  %v2780_v2 = vadd.f32 %v2779_v38, %v5803_v61  ;;  %3500 = vmax.xlane.f32.xlu0 %v3499_v33  ;;  %3674 = vmax.xlane.f32.xlu1 %v3673_v26  ;;  %v5994_v51 = vpop.permute.xlu0 %1892  ;;  %v5996_v44 = vpop.permute.xlu1 %1887 }
 0x2ec   : > { %v3118_v46 = vmax.f32 %v2488_v28, 0.0  ;;  %v3234_v29 = vmax.f32 %v2778_v16, 0.0  ;;  %2752 = vmatmul.mubr.bf16.gmra.mrb[144].mxu0 %v4738_v32  ;;  %3042 = vmatmul.mubr.bf16.gmra.mrb[112].mxu1 %v4739_v37  ;;  %v4789_v32 = vmov -inf  }
 0x2ed   : > { %v3502_v6 = vmax.f32 %v3116_v56, %v3117_v49  ;;  %v5991_v62 = vmax.f32 %v3232_v15, %v3233_v42  ;;  %v3119_v17 = vmax.f32 %v2490_v8, 0.0  ;;  %v3235_v24 = vmax.f32 %v2780_v2, 0.0  ;;  %3051 = vmatprep.mubr.bf16.mxu1 %v7078_v3  ;;  %415 = vst.msk [vmem:[#allocation2 + $0x1d0] sm:$0xff] %vm356_vm1, %v4789_v32  ;;  %357 = vst.msk [vmem:[#allocation2] sm:$0xff] %vm356_vm1, %v4789_v32  ;;  %v4740_v15 = vld [vmem:[%s7014_s5 + $0x1d0] sm:$0xff]  }
 0x2ee   : > { %358 = vst.msk [vmem:[#allocation2 + $0x8] sm:$0xff] %vm356_vm1, %v4789_v32  ;;  %359 = vst.msk [vmem:[#allocation2 + $0x10] sm:$0xff] %vm356_vm1, %v4789_v32 }
 0x2ef   : > { %v5998_v13 = vmax.f32 %v3118_v46, %v3119_v17  ;;  %v6000_v61 = vmax.f32 %v3234_v29, %v3235_v24  ;;  %v6002_v33 = vpop.f32.mrb[40].mxu0  ;;  %v6004_v26 = vpop.f32.mrb[8].mxu1  ;;  %3503 = vmax.xlane.f32.xlu0 %v3502_v6  ;;  %360 = vst.msk [vmem:[#allocation2 + $0x18] sm:$0xff] %vm356_vm1, %v4789_v32  ;;  %361 = vst.msk [vmem:[#allocation2 + $0x20] sm:$0xff] %vm356_vm1, %v4789_v32 }
 0x2f0   : > { %362 = vst.msk [vmem:[#allocation2 + $0x28] sm:$0xff] %vm356_vm1, %v4789_v32  ;;  %363 = vst.msk [vmem:[#allocation2 + $0x30] sm:$0xff] %vm356_vm1, %v4789_v32  ;;  %v2494_v37 = vadd.f32 %v6002_v33, %v5461_v52  ;;  %v2784_v47 = vadd.f32 %v6004_v26, %v5817_v23  ;;  %v2495_v34 = vpop.f32.mrb[41].mxu0  ;;  %v2785_v11 = vpop.f32.mrb[9].mxu1 }
 0x2f1   : > { %364 = vst.msk [vmem:[#allocation2 + $0x38] sm:$0xff] %vm356_vm1, %v4789_v32  ;;  %365 = vst.msk [vmem:[#allocation2 + $0x40] sm:$0xff] %vm356_vm1, %v4789_v32  ;;  %v2496_v56 = vadd.f32 %v2495_v34, %v5461_v52  ;;  %v2786_v28 = vadd.f32 %v2785_v11, %v5817_v23  ;;  %v2497_v16 = vpop.f32.mrb[42].mxu0  ;;  %v2787_v54 = vpop.f32.mrb[10].mxu1  ;;  %3506 = vmax.xlane.f32.xlu1 %v5998_v13 }
 0x2f2   : > { %366 = vst.msk [vmem:[#allocation2 + $0x48] sm:$0xff] %vm356_vm1, %v4789_v32  ;;  %367 = vst.msk [vmem:[#allocation2 + $0x50] sm:$0xff] %vm356_vm1, %v4789_v32  ;;  %v3120_v38 = vmax.f32 %v2494_v37, 0.0  ;;  %v3236_v49 = vmax.f32 %v2784_v47, 0.0  ;;  %v2498_v42 = vadd.f32 %v2497_v16, %v5384_v18  ;;  %v2788_v8 = vadd.f32 %v2787_v54, %v5815_v27  ;;  %v2499_v2 = vpop.f32.mrb[43].mxu0  ;;  %v2789_v46 = vpop.f32.mrb[11].mxu1 }
 0x2f3   : > { %368 = vst.msk [vmem:[#allocation2 + $0x58] sm:$0xff] %vm356_vm1, %v4789_v32  ;;  %369 = vst.msk [vmem:[#allocation2 + $0x60] sm:$0xff] %vm356_vm1, %v4789_v32  ;;  %v3121_v29 = vmax.f32 %v2496_v56, 0.0  ;;  %v3237_v6 = vmax.f32 %v2786_v28, 0.0  ;;  %v2500_v17 = vadd.f32 %v2499_v2, %v5384_v18  ;;  %v2790_v52 = vadd.f32 %v2789_v46, %v5815_v27  ;;  %3677 = vmax.xlane.f32.xlu0 %v5991_v62  ;;  %v6279_v37 = vpop.permute.xlu0 %1902  ;;  %v6281_v47 = vpop.permute.xlu1 %1897 }
 0x2f4   : > { %370 = vst.msk [vmem:[#allocation2 + $0x68] sm:$0xff] %vm356_vm1, %v4789_v32  ;;  %371 = vst.msk [vmem:[#allocation2 + $0x70] sm:$0xff] %vm356_vm1, %v4789_v32  ;;  %v3122_v23 = vmax.f32 %v2498_v42, 0.0  ;;  %v3238_v24 = vmax.f32 %v2788_v8, 0.0  ;;  %3052 = vmatmul.mubr.bf16.gmra.mrb[116].mxu1 %v4740_v15 }
 0x2f5   : > { %372 = vst.msk [vmem:[#allocation2 + $0x78] sm:$0xff] %vm356_vm1, %v4789_v32  ;;  %373 = vst.msk [vmem:[#allocation2 + $0x80] sm:$0xff] %vm356_vm1, %v4789_v32  ;;  %v3508_v13 = vmax.f32 %v3120_v38, %v3121_v29  ;;  %v3682_v33 = vmax.f32 %v3236_v49, %v3237_v6  ;;  %v3123_v26 = vmax.f32 %v2500_v17, 0.0  ;;  %3680 = vmax.xlane.f32.xlu1 %v6000_v61  ;;  %3061 = vmatprep.mubr.bf16.mxu1 %v7078_v3  ;;  %v4741_v61 = vld [vmem:[%s7014_s5 + $0x1d8] sm:$0xff]  }
 0x2f6   : > { %374 = vst.msk [vmem:[#allocation2 + $0x88] sm:$0xff] %vm356_vm1, %v4789_v32  ;;  %375 = vst.msk [vmem:[#allocation2 + $0x90] sm:$0xff] %vm356_vm1, %v4789_v32 }
 0x2f7   : > { %376 = vst.msk [vmem:[#allocation2 + $0x98] sm:$0xff] %vm356_vm1, %v4789_v32  ;;  %377 = vst.msk [vmem:[#allocation2 + $0xa0] sm:$0xff] %vm356_vm1, %v4789_v32  ;;  %v3511_v18 = vmax.f32 %v3122_v23, %v3123_v26  ;;  %v2503_v27 = vpop.f32.mrb[44].mxu0  ;;  %v2793_v11 = vpop.f32.mrb[12].mxu1  ;;  %3509 = vmax.xlane.f32.xlu0 %v3508_v13 }
 0x2f8   : > { %378 = vst.msk [vmem:[#allocation2 + $0xa8] sm:$0xff] %vm356_vm1, %v4789_v32  ;;  %379 = vst.msk [vmem:[#allocation2 + $0xb0] sm:$0xff] %vm356_vm1, %v4789_v32  ;;  %v2504_v62 = vadd.f32 %v2503_v27, %v5477_v0  ;;  %v2794_v15 = vadd.f32 %v2793_v11, %v5823_v40  ;;  %v2505_v56 = vpop.f32.mrb[45].mxu0  ;;  %v2795_v28 = vpop.f32.mrb[13].mxu1 }
 0x2f9   : > { %380 = vst.msk [vmem:[#allocation2 + $0xb8] sm:$0xff] %vm356_vm1, %v4789_v32  ;;  %381 = vst.msk [vmem:[#allocation2 + $0xc0] sm:$0xff] %vm356_vm1, %v4789_v32  ;;  %v2506_v16 = vadd.f32 %v2505_v56, %v5477_v0  ;;  %v2796_v54 = vadd.f32 %v2795_v28, %v5823_v40  ;;  %v2507_v38 = vpop.f32.mrb[46].mxu0  ;;  %v2797_v49 = vpop.f32.mrb[14].mxu1  ;;  %3512 = vmax.xlane.f32.xlu1 %v3511_v18 }
 0x2fa   : > { %382 = vst.msk [vmem:[#allocation2 + $0xc8] sm:$0xff] %vm356_vm1, %v4789_v32  ;;  %383 = vst.msk [vmem:[#allocation2 + $0xd0] sm:$0xff] %vm356_vm1, %v4789_v32  ;;  %v3124_v42 = vmax.f32 %v2504_v62, 0.0  ;;  %v3240_v8 = vmax.f32 %v2794_v15, 0.0  ;;  %v2508_v2 = vadd.f32 %v2507_v38, %v5402_v31  ;;  %v2798_v46 = vadd.f32 %v2797_v49, %v5821_v48  ;;  %v2509_v29 = vpop.f32.mrb[47].mxu0  ;;  %v2799_v6 = vpop.f32.mrb[15].mxu1 }
 0x2fb   : > { %384 = vst.msk [vmem:[#allocation2 + $0xd8] sm:$0xff] %vm356_vm1, %v4789_v32  ;;  %385 = vst.msk [vmem:[#allocation2 + $0xe0] sm:$0xff] %vm356_vm1, %v4789_v32  ;;  %v3125_v17 = vmax.f32 %v2506_v16, 0.0  ;;  %v2510_v23 = vadd.f32 %v2509_v29, %v5402_v31  ;;  %3683 = vmax.xlane.f32.xlu0 %v3682_v33  ;;  %v6295_v27 = vpop.permute.xlu0 %1912  ;;  %v6297_v11 = vpop.permute.xlu1 %1907 }
 0x2fc   : > { %386 = vst.msk [vmem:[#allocation2 + $0xe8] sm:$0xff] %vm356_vm1, %v4789_v32  ;;  %387 = vst.msk [vmem:[#allocation2 + $0xf0] sm:$0xff] %vm356_vm1, %v4789_v32  ;;  %v3126_v0 = vmax.f32 %v2508_v2, 0.0  ;;  %v3242_v40 = vmax.f32 %v2798_v46, 0.0  ;;  %3062 = vmatmul.mubr.bf16.gmra.mrb[120].mxu1 %v4741_v61 }
 0x2fd   : > { %388 = vst.msk [vmem:[#allocation2 + $0xf8] sm:$0xff] %vm356_vm1, %v4789_v32  ;;  %389 = vst.msk [vmem:[#allocation2 + $0x100] sm:$0xff] %vm356_vm1, %v4789_v32  ;;  %v3514_v13 = vmax.f32 %v3124_v42, %v3125_v17  ;;  %3071 = vmatprep.mubr.bf16.mxu1 %v7078_v3 }
 0x2fe   : > { %390 = vst.msk [vmem:[#allocation2 + $0x108] sm:$0xff] %vm356_vm1, %v4789_v32  ;;  %391 = vst.msk [vmem:[#allocation2 + $0x110] sm:$0xff] %vm356_vm1, %v4789_v32 }
 0x2ff   : > { %392 = vst.msk [vmem:[#allocation2 + $0x118] sm:$0xff] %vm356_vm1, %v4789_v32  ;;  %393 = vst.msk [vmem:[#allocation2 + $0x120] sm:$0xff] %vm356_vm1, %v4789_v32  ;;  %v2513_v31 = vpop.f32.mrb[48].mxu0  ;;  %v2803_v56 = vpop.f32.mrb[16].mxu1  ;;  %3515 = vmax.xlane.f32.xlu0 %v3514_v13 }
 0x300   : > { %394 = vst.msk [vmem:[#allocation2 + $0x128] sm:$0xff] %vm356_vm1, %v4789_v32  ;;  %395 = vst.msk [vmem:[#allocation2 + $0x130] sm:$0xff] %vm356_vm1, %v4789_v32  ;;  %v2804_v33 = vadd.f32 %v2803_v56, %v5835_v21  ;;  %v2515_v28 = vpop.f32.mrb[49].mxu0  ;;  %v2805_v61 = vpop.f32.mrb[17].mxu1 }
 0x301   : > { %396 = vst.msk [vmem:[#allocation2 + $0x138] sm:$0xff] %vm356_vm1, %v4789_v32  ;;  %397 = vst.msk [vmem:[#allocation2 + $0x140] sm:$0xff] %vm356_vm1, %v4789_v32  ;;  %v2516_v16 = vadd.f32 %v2515_v28, %v5487_v7  ;;  %v2517_v38 = vpop.f32.mrb[50].mxu0  ;;  %v2807_v49 = vpop.f32.mrb[18].mxu1 }
 0x302   : > { %398 = vst.msk [vmem:[#allocation2 + $0x148] sm:$0xff] %vm356_vm1, %v4789_v32  ;;  %399 = vst.msk [vmem:[#allocation2 + $0x150] sm:$0xff] %vm356_vm1, %v4789_v32  ;;  %v2518_v2 = vadd.f32 %v2517_v38, %v5417_v20  ;;  %v2808_v46 = vadd.f32 %v2807_v49, %v5833_v63  ;;  %v2519_v29 = vpop.f32.mrb[51].mxu0 }
 0x303   : > { %400 = vst.msk [vmem:[#allocation2 + $0x158] sm:$0xff] %vm356_vm1, %v4789_v32  ;;  %401 = vst.msk [vmem:[#allocation2 + $0x160] sm:$0xff] %vm356_vm1, %v4789_v32  ;;  %v3129_v17 = vmax.f32 %v2516_v16, 0.0 }
 0x304   : > { %402 = vst.msk [vmem:[#allocation2 + $0x168] sm:$0xff] %vm356_vm1, %v4789_v32  ;;  %403 = vst.msk [vmem:[#allocation2 + $0x170] sm:$0xff] %vm356_vm1, %v4789_v32 }
 0x305   : > { %404 = vst.msk [vmem:[#allocation2 + $0x178] sm:$0xff] %vm356_vm1, %v4789_v32  ;;  %405 = vst.msk [vmem:[#allocation2 + $0x180] sm:$0xff] %vm356_vm1, %v4789_v32 }
 0x306   : > { %406 = vst.msk [vmem:[#allocation2 + $0x188] sm:$0xff] %vm356_vm1, %v4789_v32  ;;  %407 = vst.msk [vmem:[#allocation2 + $0x190] sm:$0xff] %vm356_vm1, %v4789_v32 }
 0x307   : > { %408 = vst.msk [vmem:[#allocation2 + $0x198] sm:$0xff] %vm356_vm1, %v4789_v32  ;;  %409 = vst.msk [vmem:[#allocation2 + $0x1a0] sm:$0xff] %vm356_vm1, %v4789_v32 }
 0x308   : > { %410 = vst.msk [vmem:[#allocation2 + $0x1a8] sm:$0xff] %vm356_vm1, %v4789_v32  ;;  %411 = vst.msk [vmem:[#allocation2 + $0x1b0] sm:$0xff] %vm356_vm1, %v4789_v32 }
 0x309   : > { %412 = vst.msk [vmem:[#allocation2 + $0x1b8] sm:$0xff] %vm356_vm1, %v4789_v32  ;;  %413 = vst.msk [vmem:[#allocation2 + $0x1c0] sm:$0xff] %vm356_vm1, %v4789_v32 }
 0x30a   : > { %414 = vst.msk [vmem:[#allocation2 + $0x1c8] sm:$0xff] %vm356_vm1, %v4789_v32  ;;  %416 = vst.msk [vmem:[#allocation2 + $0x1d8] sm:$0xff] %vm356_vm1, %v4789_v32 }
 0x30b   : > { %417 = vst.msk [vmem:[#allocation2 + $0x1e0] sm:$0xff] %vm356_vm1, %v4789_v32  ;;  %418 = vst.msk [vmem:[#allocation2 + $0x1e8] sm:$0xff] %vm356_vm1, %v4789_v32 }
 0x30c   : > { %419 = vst.msk [vmem:[#allocation2 + $0x1f0] sm:$0xff] %vm356_vm1, %v4789_v32  ;;  %420 = vst.msk [vmem:[#allocation2 + $0x1f8] sm:$0xff] %vm356_vm1, %v4789_v32 }
 0x30d   : > { %421 = vst.msk [vmem:[#allocation2 + $0x200] sm:$0xff] %vm356_vm1, %v4789_v32  ;;  %422 = vst.msk [vmem:[#allocation2 + $0x208] sm:$0xff] %vm356_vm1, %v4789_v32 }
 0x30e   : > { %423 = vst.msk [vmem:[#allocation2 + $0x210] sm:$0xff] %vm356_vm1, %v4789_v32  ;;  %424 = vst.msk [vmem:[#allocation2 + $0x218] sm:$0xff] %vm356_vm1, %v4789_v32 }
 0x30f   : > { %425 = vst.msk [vmem:[#allocation2 + $0x220] sm:$0xff] %vm356_vm1, %v4789_v32  ;;  %426 = vst.msk [vmem:[#allocation2 + $0x228] sm:$0xff] %vm356_vm1, %v4789_v32 }
 0x310   : > { %427 = vst.msk [vmem:[#allocation2 + $0x230] sm:$0xff] %vm356_vm1, %v4789_v32  ;;  %428 = vst.msk [vmem:[#allocation2 + $0x238] sm:$0xff] %vm356_vm1, %v4789_v32 }
 0x311   : > { %429 = vst.msk [vmem:[#allocation2 + $0x240] sm:$0xff] %vm356_vm1, %v4789_v32  ;;  %430 = vst.msk [vmem:[#allocation2 + $0x248] sm:$0xff] %vm356_vm1, %v4789_v32 }
 0x312   : > { %431 = vst.msk [vmem:[#allocation2 + $0x250] sm:$0xff] %vm356_vm1, %v4789_v32  ;;  %432 = vst.msk [vmem:[#allocation2 + $0x258] sm:$0xff] %vm356_vm1, %v4789_v32 }
 0x313   : > { %433 = vst.msk [vmem:[#allocation2 + $0x260] sm:$0xff] %vm356_vm1, %v4789_v32  ;;  %434 = vst.msk [vmem:[#allocation2 + $0x268] sm:$0xff] %vm356_vm1, %v4789_v32 }
 0x314   : > { %435 = vst.msk [vmem:[#allocation2 + $0x270] sm:$0xff] %vm356_vm1, %v4789_v32  ;;  %436 = vst.msk [vmem:[#allocation2 + $0x278] sm:$0xff] %vm356_vm1, %v4789_v32 }
 0x315   : > { %437 = vst.msk [vmem:[#allocation2 + $0x280] sm:$0xff] %vm356_vm1, %v4789_v32  ;;  %438 = vst.msk [vmem:[#allocation2 + $0x288] sm:$0xff] %vm356_vm1, %v4789_v32 }
 0x316   : > { %439 = vst.msk [vmem:[#allocation2 + $0x290] sm:$0xff] %vm356_vm1, %v4789_v32  ;;  %440 = vst.msk [vmem:[#allocation2 + $0x298] sm:$0xff] %vm356_vm1, %v4789_v32 }
 0x317   : > { %441 = vst.msk [vmem:[#allocation2 + $0x2a0] sm:$0xff] %vm356_vm1, %v4789_v32  ;;  %442 = vst.msk [vmem:[#allocation2 + $0x2a8] sm:$0xff] %vm356_vm1, %v4789_v32 }
 0x318   : > { %443 = vst.msk [vmem:[#allocation2 + $0x2b0] sm:$0xff] %vm356_vm1, %v4789_v32  ;;  %444 = vst.msk [vmem:[#allocation2 + $0x2b8] sm:$0xff] %vm356_vm1, %v4789_v32 }
 0x319   : > { %445 = vst.msk [vmem:[#allocation2 + $0x2c0] sm:$0xff] %vm356_vm1, %v4789_v32  ;;  %446 = vst.msk [vmem:[#allocation2 + $0x2c8] sm:$0xff] %vm356_vm1, %v4789_v32 }
 0x31a   : > { %447 = vst.msk [vmem:[#allocation2 + $0x2d0] sm:$0xff] %vm356_vm1, %v4789_v32  ;;  %448 = vst.msk [vmem:[#allocation2 + $0x2d8] sm:$0xff] %vm356_vm1, %v4789_v32 }
 0x31b   : > { %449 = vst.msk [vmem:[#allocation2 + $0x2e0] sm:$0xff] %vm356_vm1, %v4789_v32  ;;  %450 = vst.msk [vmem:[#allocation2 + $0x2e8] sm:$0xff] %vm356_vm1, %v4789_v32 }
 0x31c   : > { %451 = vst.msk [vmem:[#allocation2 + $0x2f0] sm:$0xff] %vm356_vm1, %v4789_v32  ;;  %452 = vst.msk [vmem:[#allocation2 + $0x2f8] sm:$0xff] %vm356_vm1, %v4789_v32 }
 0x31d   : > { %453 = vst.msk [vmem:[#allocation2 + $0x300] sm:$0xff] %vm356_vm1, %v4789_v32  ;;  %454 = vst.msk [vmem:[#allocation2 + $0x308] sm:$0xff] %vm356_vm1, %v4789_v32 }
 0x31e   : > { %455 = vst.msk [vmem:[#allocation2 + $0x310] sm:$0xff] %vm356_vm1, %v4789_v32  ;;  %456 = vst.msk [vmem:[#allocation2 + $0x318] sm:$0xff] %vm356_vm1, %v4789_v32 }
 0x31f   : > { %457 = vst.msk [vmem:[#allocation2 + $0x320] sm:$0xff] %vm356_vm1, %v4789_v32  ;;  %458 = vst.msk [vmem:[#allocation2 + $0x328] sm:$0xff] %vm356_vm1, %v4789_v32 }
 0x320   : > { %459 = vst.msk [vmem:[#allocation2 + $0x330] sm:$0xff] %vm356_vm1, %v4789_v32  ;;  %460 = vst.msk [vmem:[#allocation2 + $0x338] sm:$0xff] %vm356_vm1, %v4789_v32 }
 0x321   : > { %461 = vst.msk [vmem:[#allocation2 + $0x340] sm:$0xff] %vm356_vm1, %v4789_v32  ;;  %462 = vst.msk [vmem:[#allocation2 + $0x348] sm:$0xff] %vm356_vm1, %v4789_v32 }
 0x322   : > { %463 = vst.msk [vmem:[#allocation2 + $0x350] sm:$0xff] %vm356_vm1, %v4789_v32  ;;  %464 = vst.msk [vmem:[#allocation2 + $0x358] sm:$0xff] %vm356_vm1, %v4789_v32 }
 0x323   : > { %465 = vst.msk [vmem:[#allocation2 + $0x360] sm:$0xff] %vm356_vm1, %v4789_v32  ;;  %466 = vst.msk [vmem:[#allocation2 + $0x368] sm:$0xff] %vm356_vm1, %v4789_v32 }
 0x324   : > { %467 = vst.msk [vmem:[#allocation2 + $0x370] sm:$0xff] %vm356_vm1, %v4789_v32  ;;  %468 = vst.msk [vmem:[#allocation2 + $0x378] sm:$0xff] %vm356_vm1, %v4789_v32 }
 0x325   : > { %469 = vst.msk [vmem:[#allocation2 + $0x380] sm:$0xff] %vm356_vm1, %v4789_v32  ;;  %470 = vst.msk [vmem:[#allocation2 + $0x388] sm:$0xff] %vm356_vm1, %v4789_v32 }
 0x326   : > { %471 = vst.msk [vmem:[#allocation2 + $0x390] sm:$0xff] %vm356_vm1, %v4789_v32  ;;  %472 = vst.msk [vmem:[#allocation2 + $0x398] sm:$0xff] %vm356_vm1, %v4789_v32 }
 0x327   : > { %473 = vst.msk [vmem:[#allocation2 + $0x3a0] sm:$0xff] %vm356_vm1, %v4789_v32  ;;  %474 = vst.msk [vmem:[#allocation2 + $0x3a8] sm:$0xff] %vm356_vm1, %v4789_v32 }
 0x328   : > { %475 = vst.msk [vmem:[#allocation2 + $0x3b0] sm:$0xff] %vm356_vm1, %v4789_v32  ;;  %476 = vst.msk [vmem:[#allocation2 + $0x3b8] sm:$0xff] %vm356_vm1, %v4789_v32 }
 0x329   : > { %477 = vst.msk [vmem:[#allocation2 + $0x3c0] sm:$0xff] %vm356_vm1, %v4789_v32  ;;  %478 = vst.msk [vmem:[#allocation2 + $0x3c8] sm:$0xff] %vm356_vm1, %v4789_v32 }
 0x32a   : > { %479 = vst.msk [vmem:[#allocation2 + $0x3d0] sm:$0xff] %vm356_vm1, %v4789_v32  ;;  %480 = vst.msk [vmem:[#allocation2 + $0x3d8] sm:$0xff] %vm356_vm1, %v4789_v32 }
 0x32b   : > { %481 = vst.msk [vmem:[#allocation2 + $0x3e0] sm:$0xff] %vm356_vm1, %v4789_v32  ;;  %482 = vst.msk [vmem:[#allocation2 + $0x3e8] sm:$0xff] %vm356_vm1, %v4789_v32 }
 0x32c   : > { %483 = vst.msk [vmem:[#allocation2 + $0x3f0] sm:$0xff] %vm356_vm1, %v4789_v32  ;;  %484 = vst.msk [vmem:[#allocation2 + $0x3f8] sm:$0xff] %vm356_vm1, %v4789_v32  ;;  %v3239_v32 = vmax.f32 %v2790_v52, 0.0  ;;  %v3241_v52 = vmax.f32 %v2796_v54, 0.0  ;;  %v2806_v54 = vadd.f32 %v2805_v61, %v5835_v21  ;;  %v3246_v21 = vmax.f32 %v2808_v46, 0.0 }
 0x32e   : > { %v3685_v34 = vmax.f32 %v3238_v24, %v3239_v32  ;;  %v2800_v24 = vadd.f32 %v2799_v6, %v5821_v48  ;;  %v3688_v26 = vmax.f32 %v3240_v8, %v3241_v52  ;;  %v3127_v32 = vmax.f32 %v2510_v23, 0.0  ;;  %v2809_v6 = vpop.f32.mrb[19].mxu1 }
 0x32f   : > { %v2514_v48 = vadd.f32 %v2513_v31, %v5487_v7  ;;  %v3244_v8 = vmax.f32 %v2804_v33, 0.0  ;;  %v3245_v52 = vmax.f32 %v2806_v54, 0.0  ;;  %v2520_v23 = vadd.f32 %v2519_v29, %v5417_v20  ;;  %v2523_v20 = vpop.f32.mrb[52].mxu0 }
 0x330   : > { %v3243_v18 = vmax.f32 %v2800_v24, 0.0  ;;  %3686 = vmax.xlane.f32.xlu1 %v3685_v34  ;;  %v3517_v62 = vmax.f32 %v3126_v0, %v3127_v32  ;;  %v4742_v34 = vld [vmem:[%s7014_s5 + $0x1e0] sm:$0xff]   ;;  %v2810_v24 = vadd.f32 %v2809_v6, %v5833_v63  ;;  %3689 = vmax.xlane.f32.xlu0 %v3688_v26  ;;  %v3130_v7 = vmax.f32 %v2518_v2, 0.0  ;;  %v2525_v33 = vpop.f32.mrb[53].mxu0 }
 0x331   : > { %v3128_v42 = vmax.f32 %v2514_v48, 0.0  ;;  %3072 = vmatmul.mubr.bf16.gmra.mrb[124].mxu1 %v4742_v34  ;;  %v3131_v13 = vmax.f32 %v2520_v23, 0.0  ;;  %v2813_v48 = vpop.f32.mrb[20].mxu1  ;;  %v2524_v63 = vadd.f32 %v2523_v20, %v5503_v12  ;;  %v2526_v61 = vadd.f32 %v2525_v33, %v5503_v12  ;;  %v2527_v16 = vpop.f32.mrb[54].mxu0 }
 0x332   : > { %v3691_v15 = vmax.f32 %v3242_v40, %v3243_v18  ;;  %v3694_v40 = vmax.f32 %v3244_v8, %v3245_v52  ;;  %v3247_v32 = vmax.f32 %v2810_v24, 0.0  ;;  %3081 = vmatprep.mubr.bf16.mxu1 %v7078_v3  ;;  %v6311_v18 = vpop.permute.xlu0 %1922  ;;  %v2814_v26 = vadd.f32 %v2813_v48, %v5845_v36  ;;  %v2815_v28 = vpop.f32.mrb[21].mxu1 }
 0x333   : > { %v3520_v0 = vmax.f32 %v3128_v42, %v3129_v17  ;;  %v3523_v31 = vmax.f32 %v3130_v7, %v3131_v13  ;;  %v2816_v34 = vadd.f32 %v2815_v28, %v5845_v36  ;;  %v2817_v54 = vpop.f32.mrb[22].mxu1  ;;  %v3132_v38 = vmax.f32 %v2524_v63, 0.0  ;;  %v2529_v2 = vpop.f32.mrb[55].mxu0 }
 0x334   : > { %3518 = vmax.xlane.f32.xlu1 %v3517_v62  ;;  %v6313_v62 = vpop.permute.xlu1 %1917  ;;  %v3697_v56 = vmax.f32 %v3246_v21, %v3247_v32  ;;  %v3248_v49 = vmax.f32 %v2814_v26, 0.0  ;;  %v2528_v42 = vadd.f32 %v2527_v16, %v5433_v30  ;;  %v2818_v8 = vadd.f32 %v2817_v54, %v5843_v45  ;;  %v2819_v46 = vpop.f32.mrb[23].mxu1 }
 0x335   : > { %3521 = vmax.xlane.f32.xlu0 %v3520_v0  ;;  %v3133_v29 = vmax.f32 %v2526_v61, 0.0  ;;  %v3249_v6 = vmax.f32 %v2816_v34, 0.0  ;;  %v2530_v17 = vadd.f32 %v2529_v2, %v5433_v30  ;;  %v2820_v52 = vadd.f32 %v2819_v46, %v5843_v45  ;;  %v2533_v30 = vpop.f32.mrb[56].mxu0  ;;  %v2823_v20 = vpop.f32.mrb[24].mxu1 }
 0x336   : > { %v3134_v12 = vmax.f32 %v2528_v42, 0.0  ;;  %v3250_v36 = vmax.f32 %v2818_v8, 0.0  ;;  %v6327_v0 = vpop.permute.xlu0 %1932  ;;  %v2534_v45 = vadd.f32 %v2533_v30, %v5513_v19  ;;  %v2535_v48 = vpop.f32.mrb[57].mxu0 }
 0x337   : > { %v3526_v23 = vmax.f32 %v3132_v38, %v3133_v29  ;;  %v3700_v24 = vmax.f32 %v3248_v49, %v3249_v6  ;;  %v3135_v7 = vmax.f32 %v2530_v17, 0.0  ;;  %v3251_v21 = vmax.f32 %v2820_v52, 0.0  ;;  %v2825_v63 = vpop.f32.mrb[25].mxu1  ;;  %v2537_v28 = vpop.f32.mrb[58].mxu0 }
 0x338   : > { %3692 = vmax.xlane.f32.xlu1 %v3691_v15  ;;  %v4743_v15 = vld [vmem:[%s7014_s5 + $0x1e8] sm:$0xff]   ;;  %v6329_v13 = vpop.permute.xlu1 %1927  ;;  %v2536_v26 = vadd.f32 %v2535_v48, %v5513_v19  ;;  %v2826_v33 = vadd.f32 %v2825_v63, %v5857_v41  ;;  %v3136_v61 = vmax.f32 %v2534_v45, 0.0  ;;  %v2538_v16 = vadd.f32 %v2537_v28, %v5443_v57  ;;  %v2539_v38 = vpop.f32.mrb[59].mxu0 }
 0x339   : > { %3695 = vmax.xlane.f32.xlu0 %v3694_v40  ;;  %3082 = vmatmul.mubr.bf16.gmra.mrb[128].mxu1 %v4743_v15  ;;  %v3529_v32 = vmax.f32 %v3134_v12, %v3135_v7  ;;  %v2824_v40 = vadd.f32 %v2823_v20, %v5857_v41  ;;  %v2827_v15 = vpop.f32.mrb[26].mxu1  ;;  %v2540_v2 = vadd.f32 %v2539_v38, %v5443_v57  ;;  %v2543_v57 = vpop.f32.mrb[60].mxu0 }
 0x33a   : > { %3091 = vmatprep.mubr.bf16.mxu1 %v7078_v3  ;;  %v2828_v54 = vadd.f32 %v2827_v15, %v5855_v1  ;;  %v2829_v49 = vpop.f32.mrb[27].mxu1  ;;  %v3137_v42 = vmax.f32 %v2536_v26, 0.0  ;;  %v3253_v8 = vmax.f32 %v2826_v33, 0.0  ;;  %v3138_v19 = vmax.f32 %v2538_v16, 0.0  ;;  %v6343_v12 = vpop.permute.xlu0 %1942 }
 0x33b   : > { %v3252_v34 = vmax.f32 %v2824_v40, 0.0  ;;  %v2830_v46 = vadd.f32 %v2829_v49, %v5855_v1  ;;  %v3139_v17 = vmax.f32 %v2540_v2, 0.0  ;;  %v2544_v1 = vadd.f32 %v2543_v57, %v5529_v43 }
 0x33c   : > { %3524 = vmax.xlane.f32.xlu1 %v3523_v31  ;;  %v3703_v31 = vmax.f32 %v3250_v36, %v3251_v21  ;;  %v3254_v41 = vmax.f32 %v2828_v54, 0.0  ;;  %v3532_v29 = vmax.f32 %v3136_v61, %v3137_v42  ;;  %v6345_v36 = vpop.permute.xlu1 %1937  ;;  %v2833_v21 = vpop.f32.mrb[28].mxu1 }
 0x33d   : > { %3527 = vmax.xlane.f32.xlu0 %v3526_v23  ;;  %v3706_v6 = vmax.f32 %v3252_v34, %v3253_v8  ;;  %v3255_v52 = vmax.f32 %v2830_v46, 0.0  ;;  %v3535_v23 = vmax.f32 %v3138_v19, %v3139_v17  ;;  %v2835_v30 = vpop.f32.mrb[29].mxu1  ;;  %v3140_v48 = vmax.f32 %v2544_v1, 0.0 }
 0x33e   : > { %v2836_v20 = vadd.f32 %v2835_v30, %v5863_v58  ;;  %v2837_v40 = vpop.f32.mrb[30].mxu1  ;;  %v6358_v8 = vpop.permute.xlu0 %1952 }
 0x33f   : > { %v3709_v7 = vmax.f32 %v3254_v41, %v3255_v52  ;;  %v2838_v26 = vadd.f32 %v2837_v40, %v5861_v22  ;;  %v2839_v28 = vpop.f32.mrb[31].mxu1 }
 0x340   : > { %3698 = vmax.xlane.f32.xlu1 %v3697_v56  ;;  %v4744_v56 = vld [vmem:[%s7014_s5 + $0x1f0] sm:$0xff]   ;;  %v3257_v61 = vmax.f32 %v2836_v20, 0.0  ;;  %v2840_v16 = vadd.f32 %v2839_v28, %v5861_v22  ;;  %v6360_v2 = vpop.permute.xlu1 %1947 }
 0x341   : > { %3701 = vmax.xlane.f32.xlu0 %v3700_v24  ;;  %3092 = vmatmul.mubr.bf16.gmra.mrb[132].mxu1 %v4744_v56  ;;  %v2834_v24 = vadd.f32 %v2833_v21, %v5863_v58  ;;  %v3258_v58 = vmax.f32 %v2838_v26, 0.0 }
 0x342   : > { %3101 = vmatprep.mubr.bf16.mxu1 %v7078_v3  ;;  %v3259_v42 = vmax.f32 %v2840_v16, 0.0 }
 0x343   : > { %v3256_v63 = vmax.f32 %v2834_v24, 0.0 }
 0x344   : > { %3530 = vmax.xlane.f32.xlu1 %v3529_v32  ;;  %v2545_v32 = vpop.f32.mrb[61].mxu0  ;;  %v3715_v19 = vmax.f32 %v3258_v58, %v3259_v42  ;;  %v6372_v28 = vpop.permute.xlu1 %1957 }
 0x345   : > { %3533 = vmax.xlane.f32.xlu0 %v3532_v29  ;;  %v2546_v3 = vadd.f32 %v2545_v32, %v5529_v43  ;;  %v2547_v45 = vpop.f32.mrb[62].mxu0  ;;  %v3712_v38 = vmax.f32 %v3256_v63, %v3257_v61  ;;  %v2843_v29 = vpop.f32.mrb[32].mxu1 }
 0x346   : > { %v2548_v56 = vadd.f32 %v2547_v45, %v5459_v25  ;;  %v2549_v33 = vpop.f32.mrb[63].mxu0  ;;  %v2844_v22 = vadd.f32 %v2843_v29, %v5875_v60  ;;  %v2845_v17 = vpop.f32.mrb[33].mxu1 }
 0x347   : > { %v3141_v15 = vmax.f32 %v2546_v3, 0.0  ;;  %v2550_v34 = vadd.f32 %v2549_v33, %v5459_v25  ;;  %v2553_v41 = vpop.f32.mrb[64].mxu0  ;;  %v2847_v57 = vpop.f32.mrb[34].mxu1 }
 0x348   : > { %3704 = vmax.xlane.f32.xlu1 %v3703_v31  ;;  %v4745_v31 = vld [vmem:[%s7014_s5 + $0x1f8] sm:$0xff]   ;;  %v3142_v43 = vmax.f32 %v2548_v56, 0.0  ;;  %v2554_v25 = vadd.f32 %v2553_v41, %v5539_v39  ;;  %v3260_v1 = vmax.f32 %v2844_v22, 0.0  ;;  %v2848_v32 = vadd.f32 %v2847_v57, %v5873_v50  ;;  %v6370_v33 = vpop.permute.xlu0 %1962 }
 0x349   : > { %3707 = vmax.xlane.f32.xlu0 %v3706_v6  ;;  %3102 = vmatmul.mubr.bf16.gmra.mrb[136].mxu1 %v4745_v31  ;;  %v3538_v54 = vmax.f32 %v3140_v48, %v3141_v15  ;;  %v3143_v49 = vmax.f32 %v2550_v34, 0.0  ;;  %v2555_v6 = vpop.f32.mrb[65].mxu0  ;;  %v2849_v31 = vpop.f32.mrb[35].mxu1 }
 0x34a   : > { %v2556_v52 = vadd.f32 %v2555_v6, %v5539_v39  ;;  %v3144_v21 = vmax.f32 %v2554_v25, 0.0  ;;  %v2850_v40 = vadd.f32 %v2849_v31, %v5873_v50  ;;  %v2853_v16 = vpop.f32.mrb[36].mxu1 }
 0x34b   : > { %v3541_v46 = vmax.f32 %v3142_v43, %v3143_v49  ;;  %v2854_v50 = vadd.f32 %v2853_v16, %v5885_v53  ;;  %v2855_v58 = vpop.f32.mrb[37].mxu1 }
 0x34c   : > { %3536 = vmax.xlane.f32.xlu1 %v3535_v23  ;;  %v2846_v23 = vadd.f32 %v2845_v17, %v5875_v60  ;;  %v3145_v3 = vmax.f32 %v2556_v52, 0.0  ;;  %v3262_v60 = vmax.f32 %v2848_v32, 0.0  ;;  %v3263_v26 = vmax.f32 %v2850_v40, 0.0  ;;  %v2857_v42 = vpop.f32.mrb[38].mxu1  ;;  %v6384_v32 = vpop.permute.xlu1 %1967 }
 0x34d   : > { %3539 = vmax.xlane.f32.xlu0 %v3538_v54  ;;  %v2858_v29 = vadd.f32 %v2857_v42, %v5883_v35  ;;  %v2859_v22 = vpop.f32.mrb[39].mxu1 }
 0x34e   : > { %v3261_v20 = vmax.f32 %v2846_v23, 0.0  ;;  %v3544_v48 = vmax.f32 %v3144_v21, %v3145_v3  ;;  %v3721_v61 = vmax.f32 %v3262_v60, %v3263_v26  ;;  %v2860_v23 = vadd.f32 %v2859_v22, %v5883_v35 }
 0x350   : > { %3710 = vmax.xlane.f32.xlu1 %v3709_v7  ;;  %v2557_v7 = vpop.f32.mrb[66].mxu0  ;;  %v3718_v63 = vmax.f32 %v3260_v1, %v3261_v20  ;;  %v3267_v1 = vmax.f32 %v2860_v23, 0.0  ;;  %v2863_v20 = vpop.f32.mrb[40].mxu1 }
 0x351   : > { %v2558_v24 = vadd.f32 %v2557_v7, %v5469_v59  ;;  %v2559_v30 = vpop.f32.mrb[67].mxu0  ;;  %3713 = vmax.xlane.f32.xlu0 %v3712_v38  ;;  %v2856_v38 = vadd.f32 %v2855_v58, %v5885_v53  ;;  %v3266_v53 = vmax.f32 %v2858_v29, 0.0  ;;  %v2864_v35 = vadd.f32 %v2863_v20, %v5897_v9  ;;  %v2865_v40 = vpop.f32.mrb[41].mxu1 }
 0x352   : > { %v2560_v45 = vadd.f32 %v2559_v30, %v5469_v59  ;;  %v2563_v34 = vpop.f32.mrb[68].mxu0  ;;  %v2866_v60 = vadd.f32 %v2865_v40, %v5897_v9  ;;  %v6396_v29 = vpop.permute.xlu1 %1977 }
 0x353   : > { %v3146_v39 = vmax.f32 %v2558_v24, 0.0  ;;  %v2564_v59 = vadd.f32 %v2563_v34, %v5552_v5  ;;  %v2565_v43 = vpop.f32.mrb[69].mxu0  ;;  %v3265_v17 = vmax.f32 %v2856_v38, 0.0  ;;  %v6382_v24 = vpop.permute.xlu0 %1972  ;;  %v3727_v31 = vmax.f32 %v3266_v53, %v3267_v1  ;;  %v7121_v34 = vld [vmem:[#allocation40_spill] sm:$0xff] }
 0x354   : > { %3542 = vmax.xlane.f32.xlu1 %v3541_v46  ;;  %v3147_v56 = vmax.f32 %v2560_v45, 0.0  ;;  %v2566_v54 = vadd.f32 %v2565_v43, %v5552_v5  ;;  %v2567_v49 = vpop.f32.mrb[70].mxu0  ;;  %v3268_v26 = vmax.f32 %v2864_v35, 0.0  ;;  %v3269_v58 = vmax.f32 %v2866_v60, 0.0 }
 0x355   : > { %3545 = vmax.xlane.f32.xlu0 %v3544_v48  ;;  %v3148_v46 = vmax.f32 %v2564_v59, 0.0  ;;  %v2568_v41 = vadd.f32 %v2567_v49, %v5485_v4  ;;  %v2569_v25 = vpop.f32.mrb[71].mxu0 }
 0x356   : > { %v3547_v15 = vmax.f32 %v3146_v39, %v3147_v56  ;;  %v3149_v6 = vmax.f32 %v2566_v54, 0.0  ;;  %v2570_v52 = vadd.f32 %v2569_v25, %v5485_v4  ;;  %v2573_v3 = vpop.f32.mrb[72].mxu0  ;;  %v3730_v42 = vmax.f32 %v3268_v26, %v3269_v58  ;;  %v6408_v58 = vpop.permute.xlu1 %1987 }
 0x357   : > { %v3150_v5 = vmax.f32 %v2568_v41, 0.0  ;;  %v2574_v4 = vadd.f32 %v2573_v3, %v5557_v55  ;;  %v2575_v45 = vpop.f32.mrb[73].mxu0  ;;  %v6394_v41 = vpop.permute.xlu0 %1982 }
 0x358   : > { %3716 = vmax.xlane.f32.xlu1 %v3715_v19  ;;  %v3264_v19 = vmax.f32 %v2854_v50, 0.0  ;;  %v3550_v7 = vmax.f32 %v3148_v46, %v3149_v6  ;;  %v3151_v21 = vmax.f32 %v2570_v52, 0.0  ;;  %v2576_v39 = vadd.f32 %v2575_v45, %v5557_v55  ;;  %v2577_v48 = vpop.f32.mrb[74].mxu0  ;;  %v7122_v52 = vld [vmem:[#allocation8_spill] sm:$0xff]  ;;  %v7125_v45 = vld [vmem:[#allocation41_spill] sm:$0xff] }
 0x359   : > { %3719 = vmax.xlane.f32.xlu0 %v3718_v63  ;;  %v2867_v63 = vpop.f32.mrb[42].mxu1  ;;  %v3152_v56 = vmax.f32 %v2574_v4, 0.0  ;;  %v2579_v59 = vpop.f32.mrb[75].mxu0  ;;  %v7124_v4 = vld [vmem:[#allocation4_spill] sm:$0xff] }
 0x35a   : > { %v3724_v57 = vmax.f32 %v3264_v19, %v3265_v17  ;;  %v3553_v30 = vmax.f32 %v3150_v5, %v3151_v21  ;;  %v2868_v16 = vadd.f32 %v2867_v63, %v7121_v34  ;;  %v2869_v50 = vpop.f32.mrb[43].mxu1  ;;  %v3153_v43 = vmax.f32 %v2576_v39, 0.0  ;;  %v2583_v6 = vpop.f32.mrb[76].mxu0  ;;  %v7123_v5 = vld [vmem:[#allocation42_spill] sm:$0xff] }
 0x35b   : > { %v2870_v38 = vadd.f32 %v2869_v50, %v7121_v34  ;;  %v2873_v17 = vpop.f32.mrb[44].mxu1  ;;  %v2584_v23 = vadd.f32 %v2583_v6, %v7122_v52 }
 0x35c   : > { %3548 = vmax.xlane.f32.xlu1 %v3547_v15  ;;  %v7120_v15 = vld [vmem:[#allocation3_spill] sm:$0xff]  ;;  %v3270_v9 = vmax.f32 %v2868_v16, 0.0  ;;  %v3556_v49 = vmax.f32 %v3152_v56, %v3153_v43  ;;  %v2874_v53 = vadd.f32 %v2873_v17, %v7123_v5  ;;  %v6406_v43 = vpop.permute.xlu0 %1992 }
 0x35d   : > { %3551 = vmax.xlane.f32.xlu0 %v3550_v7  ;;  %v2580_v54 = vadd.f32 %v2579_v59, %v7120_v15  ;;  %v3271_v19 = vmax.f32 %v2870_v38, 0.0  ;;  %v2585_v7 = vpop.f32.mrb[77].mxu0  ;;  %v3156_v3 = vmax.f32 %v2584_v23, 0.0 }
 0x35e   : > { %v2586_v21 = vadd.f32 %v2585_v7, %v7122_v52  ;;  %v3272_v20 = vmax.f32 %v2874_v53, 0.0  ;;  %v7128_v7 = vld [vmem:[#allocation5_spill] sm:$0xff] }
 0x35f   : > { %v3155_v46 = vmax.f32 %v2580_v54, 0.0  ;;  %v3733_v22 = vmax.f32 %v3270_v9, %v3271_v19  ;;  %v7127_v19 = vld [vmem:[#allocation44_spill] sm:$0xff] }
 0x360   : > { %3722 = vmax.xlane.f32.xlu1 %v3721_v61  ;;  %v2578_v61 = vadd.f32 %v2577_v48, %v7120_v15  ;;  %v3157_v48 = vmax.f32 %v2586_v21, 0.0  ;;  %v7129_v21 = vld [vmem:[#allocation43_spill] sm:$0xff] }
 0x361   : > { %3725 = vmax.xlane.f32.xlu0 %v3724_v57  ;;  %v2875_v57 = vpop.f32.mrb[45].mxu1 }
 0x362   : > { %v3154_v55 = vmax.f32 %v2578_v61, 0.0  ;;  %v2876_v1 = vadd.f32 %v2875_v57, %v7123_v5  ;;  %v3562_v34 = vmax.f32 %v3156_v3, %v3157_v48 }
 0x364   : > { %3554 = vmax.xlane.f32.xlu1 %v3553_v30  ;;  %v3559_v25 = vmax.f32 %v3154_v55, %v3155_v46  ;;  %v2587_v30 = vpop.f32.mrb[78].mxu0  ;;  %v3273_v63 = vmax.f32 %v2876_v1, 0.0 }
 0x365   : > { %3557 = vmax.xlane.f32.xlu0 %v3556_v49  ;;  %v2588_v35 = vadd.f32 %v2587_v30, %v7124_v4  ;;  %v2589_v39 = vpop.f32.mrb[79].mxu0  ;;  %v7126_v49 = vld [vmem:[#allocation9_spill] sm:$0xff] }
 0x366   : > { %v2590_v56 = vadd.f32 %v2589_v39, %v7124_v4  ;;  %v3736_v16 = vmax.f32 %v3272_v20, %v3273_v63  ;;  %v2593_v55 = vpop.f32.mrb[80].mxu0 }
 0x367   : > { %v3158_v15 = vmax.f32 %v2588_v35, 0.0  ;;  %v2594_v46 = vadd.f32 %v2593_v55, %v7126_v49  ;;  %v7131_v55 = vld [vmem:[#allocation46_spill] sm:$0xff] }
 0x368   : > { %3728 = vmax.xlane.f32.xlu1 %v3727_v31  ;;  %v2877_v31 = vpop.f32.mrb[46].mxu1  ;;  %v3159_v59 = vmax.f32 %v2590_v56, 0.0  ;;  %v6418_v56 = vpop.permute.xlu0 %2002 }
 0x369   : > { %v2878_v40 = vadd.f32 %v2877_v31, %v7125_v45  ;;  %v2879_v60 = vpop.f32.mrb[47].mxu1  ;;  %3731 = vmax.xlane.f32.xlu0 %v3730_v42  ;;  %v3160_v5 = vmax.f32 %v2594_v46, 0.0 }
 0x36a   : > { %v2880_v26 = vadd.f32 %v2879_v60, %v7125_v45  ;;  %v3565_v54 = vmax.f32 %v3158_v15, %v3159_v59  ;;  %v2883_v9 = vpop.f32.mrb[48].mxu1 }
 0x36b   : > { %v3274_v61 = vmax.f32 %v2878_v40, 0.0  ;;  %v2884_v42 = vadd.f32 %v2883_v9, %v7127_v19  ;;  %v2885_v6 = vpop.f32.mrb[49].mxu1 }
 0x36c   : > { %3560 = vmax.xlane.f32.xlu1 %v3559_v25  ;;  %v3275_v50 = vmax.f32 %v2880_v26, 0.0  ;;  %v2595_v25 = vpop.f32.mrb[81].mxu0  ;;  %v2886_v52 = vadd.f32 %v2885_v6, %v7127_v19  ;;  %v2887_v23 = vpop.f32.mrb[50].mxu1 }
 0x36d   : > { %3563 = vmax.xlane.f32.xlu0 %v3562_v34  ;;  %v2596_v17 = vadd.f32 %v2595_v25, %v7126_v49  ;;  %v3276_v53 = vmax.f32 %v2884_v42, 0.0  ;;  %v2888_v1 = vadd.f32 %v2887_v23, %v7129_v21  ;;  %v2889_v31 = vpop.f32.mrb[51].mxu1  ;;  %v6420_v26 = vpop.permute.xlu1 %1997 }
 0x36e   : > { %v3739_v38 = vmax.f32 %v3274_v61, %v3275_v50  ;;  %v3277_v20 = vmax.f32 %v2886_v52, 0.0  ;;  %v2890_v35 = vadd.f32 %v2889_v31, %v7129_v21  ;;  %v2893_v59 = vpop.f32.mrb[52].mxu1  ;;  %v7130_v50 = vld [vmem:[#allocation10_spill] sm:$0xff] }
 0x36f   : > { %v3161_v3 = vmax.f32 %v2596_v17, 0.0  ;;  %v3278_v40 = vmax.f32 %v2888_v1, 0.0  ;;  %v2895_v49 = vpop.f32.mrb[53].mxu1  ;;  %v7132_v17 = vld [vmem:[#allocation6_spill] sm:$0xff] }
 0x370   : > { %3734 = vmax.xlane.f32.xlu1 %v3733_v22  ;;  %v2597_v22 = vpop.f32.mrb[82].mxu0  ;;  %v3742_v60 = vmax.f32 %v3276_v53, %v3277_v20  ;;  %v3279_v63 = vmax.f32 %v2890_v35, 0.0  ;;  %v2896_v19 = vadd.f32 %v2895_v49, %v7131_v55  ;;  %v2897_v42 = vpop.f32.mrb[54].mxu1 }
 0x371   : > { %v2598_v57 = vadd.f32 %v2597_v22, %v7128_v7  ;;  %v2599_v30 = vpop.f32.mrb[83].mxu0  ;;  %3737 = vmax.xlane.f32.xlu0 %v3736_v16  ;;  %v3568_v39 = vmax.f32 %v3160_v5, %v3161_v3  ;;  %v2894_v16 = vadd.f32 %v2893_v59, %v7131_v55  ;;  %v7133_v22 = vld [vmem:[#allocation45_spill] sm:$0xff]  ;;  %v2899_v53 = vpop.f32.mrb[55].mxu1 }
 0x372   : > { %v2600_v4 = vadd.f32 %v2599_v30, %v7128_v7  ;;  %v3745_v61 = vmax.f32 %v3278_v40, %v3279_v63  ;;  %v2603_v34 = vpop.f32.mrb[84].mxu0  ;;  %v2898_v23 = vadd.f32 %v2897_v42, %v7133_v22  ;;  %v2900_v1 = vadd.f32 %v2899_v53, %v7133_v22  ;;  %v6432_v40 = vpop.permute.xlu1 %2007 }
 0x373   : > { %v3162_v45 = vmax.f32 %v2598_v57, 0.0  ;;  %v2605_v9 = vpop.f32.mrb[85].mxu0  ;;  %v3280_v6 = vmax.f32 %v2894_v16, 0.0  ;;  %v3281_v57 = vmax.f32 %v2896_v19, 0.0 }
 0x374   : > { %3566 = vmax.xlane.f32.xlu1 %v3565_v54  ;;  %v3163_v48 = vmax.f32 %v2600_v4, 0.0  ;;  %v2604_v54 = vadd.f32 %v2603_v34, %v7130_v50  ;;  %v2606_v46 = vadd.f32 %v2605_v9, %v7130_v50  ;;  %v3282_v31 = vmax.f32 %v2898_v23, 0.0  ;;  %v7134_v34 = vld [vmem:[#allocation11_spill] sm:$0xff]  ;;  %v7135_v50 = vld [vmem:[#allocation48_spill] sm:$0xff] }
 0x375   : > { %3569 = vmax.xlane.f32.xlu0 %v3568_v39  ;;  %v3748_v20 = vmax.f32 %v3280_v6, %v3281_v57  ;;  %v3283_v35 = vmax.f32 %v2900_v1, 0.0 }
 0x376   : > { %v3571_v15 = vmax.f32 %v3162_v45, %v3163_v48  ;;  %v3164_v25 = vmax.f32 %v2604_v54, 0.0  ;;  %v3165_v7 = vmax.f32 %v2606_v46, 0.0  ;;  %v6430_v45 = vpop.permute.xlu0 %2012 }
 0x377   : > { %v3751_v48 = vmax.f32 %v3282_v31, %v3283_v35 }
 0x378   : > { %3740 = vmax.xlane.f32.xlu1 %v3739_v38  ;;  %v2607_v38 = vpop.f32.mrb[86].mxu0  ;;  %v3574_v3 = vmax.f32 %v3164_v25, %v3165_v7  ;;  %v7137_v25 = vld [vmem:[#allocation47_spill] sm:$0xff] }
 0x379   : > { %v2608_v52 = vadd.f32 %v2607_v38, %v7132_v17  ;;  %v2609_v5 = vpop.f32.mrb[87].mxu0  ;;  %3743 = vmax.xlane.f32.xlu0 %v3742_v60  ;;  %v7136_v38 = vld [vmem:[#allocation7_spill] sm:$0xff] }
 0x37a   : > { %v2610_v21 = vadd.f32 %v2609_v5, %v7132_v17  ;;  %v2613_v63 = vpop.f32.mrb[88].mxu0 }
 0x37b   : > { %v3166_v30 = vmax.f32 %v2608_v52, 0.0  ;;  %v2614_v59 = vadd.f32 %v2613_v63, %v7134_v34  ;;  %v2615_v54 = vpop.f32.mrb[89].mxu0 }
 0x37c   : > { %3572 = vmax.xlane.f32.xlu1 %v3571_v15  ;;  %v3167_v4 = vmax.f32 %v2610_v21, 0.0  ;;  %v2903_v15 = vpop.f32.mrb[56].mxu1  ;;  %v2616_v16 = vadd.f32 %v2615_v54, %v7134_v34  ;;  %v7138_v34 = vld [vmem:[#allocation13_spill] sm:$0xff] }
 0x37d   : > { %3575 = vmax.xlane.f32.xlu0 %v3574_v3  ;;  %v2904_v60 = vadd.f32 %v2903_v15, %v7135_v50  ;;  %v2905_v55 = vpop.f32.mrb[57].mxu1  ;;  %v3168_v46 = vmax.f32 %v2614_v59, 0.0  ;;  %v6442_v3 = vpop.permute.xlu0 %2022 }
 0x37e   : > { %v3577_v39 = vmax.f32 %v3166_v30, %v3167_v4  ;;  %v2906_v9 = vadd.f32 %v2905_v55, %v7135_v50  ;;  %v2907_v49 = vpop.f32.mrb[58].mxu1  ;;  %v3169_v22 = vmax.f32 %v2616_v16, 0.0  ;;  %v6444_v4 = vpop.permute.xlu1 %2017  ;;  %v7139_v50 = vld [vmem:[#allocation50_spill] sm:$0xff] }
 0x37f   : > { %v3284_v19 = vmax.f32 %v2904_v60, 0.0  ;;  %v2908_v6 = vadd.f32 %v2907_v49, %v7137_v25  ;;  %v2909_v52 = vpop.f32.mrb[59].mxu1 }
 0x380   : > { %3746 = vmax.xlane.f32.xlu1 %v3745_v61  ;;  %v2617_v61 = vpop.f32.mrb[90].mxu0  ;;  %v3285_v23 = vmax.f32 %v2906_v9, 0.0  ;;  %v2910_v53 = vadd.f32 %v2909_v52, %v7137_v25  ;;  %v3580_v21 = vmax.f32 %v3168_v46, %v3169_v22  ;;  %v2913_v15 = vpop.f32.mrb[60].mxu1  ;;  %v7140_v46 = vld [vmem:[#allocation12_spill] sm:$0xff] }
 0x381   : > { %v2618_v42 = vadd.f32 %v2617_v61, %v7136_v38  ;;  %v2619_v17 = vpop.f32.mrb[91].mxu0  ;;  %3749 = vmax.xlane.f32.xlu0 %v3748_v20  ;;  %v3286_v57 = vmax.f32 %v2908_v6, 0.0  ;;  %v2914_v20 = vadd.f32 %v2913_v15, %v7139_v50  ;;  %v2915_v54 = vpop.f32.mrb[61].mxu1 }
 0x382   : > { %v2620_v5 = vadd.f32 %v2619_v17, %v7136_v38  ;;  %v3754_v1 = vmax.f32 %v3284_v19, %v3285_v23  ;;  %v3287_v31 = vmax.f32 %v2910_v53, 0.0  ;;  %v2623_v63 = vpop.f32.mrb[92].mxu0  ;;  %v2916_v16 = vadd.f32 %v2915_v54, %v7139_v50  ;;  %v2917_v9 = vpop.f32.mrb[62].mxu1  ;;  %v7141_v38 = vld [vmem:[#allocation49_spill] sm:$0xff]  ;;  %v7142_v50 = vld [vmem:[#allocation15_spill] sm:$0xff] }
 0x383   : > { %v3170_v7 = vmax.f32 %v2618_v42, 0.0  ;;  %v2624_v59 = vadd.f32 %v2623_v63, %v7138_v34  ;;  %v2625_v60 = vpop.f32.mrb[93].mxu0  ;;  %v3288_v49 = vmax.f32 %v2914_v20, 0.0  ;;  %v2918_v42 = vadd.f32 %v2917_v9, %v7141_v38  ;;  %v2919_v6 = vpop.f32.mrb[63].mxu1 }
 0x384   : > { %3578 = vmax.xlane.f32.xlu1 %v3577_v39  ;;  %v3171_v30 = vmax.f32 %v2620_v5, 0.0  ;;  %v3757_v39 = vmax.f32 %v3286_v57, %v3287_v31  ;;  %v2626_v55 = vadd.f32 %v2625_v60, %v7138_v34  ;;  %v3289_v52 = vmax.f32 %v2916_v16, 0.0  ;;  %v6454_v31 = vpop.permute.xlu0 %2032  ;;  %v7143_v60 = vld [vmem:[#allocation52_spill] sm:$0xff] }
 0x385   : > { %3581 = vmax.xlane.f32.xlu0 %v3580_v21  ;;  %v3172_v61 = vmax.f32 %v2624_v59, 0.0  ;;  %v2920_v23 = vadd.f32 %v2919_v6, %v7141_v38  ;;  %v3290_v53 = vmax.f32 %v2918_v42, 0.0  ;;  %v2923_v59 = vpop.f32.mrb[64].mxu1  ;;  %v7145_v38 = vld [vmem:[#allocation51_spill] sm:$0xff] }
 0x386   : > { %v3583_v35 = vmax.f32 %v3170_v7, %v3171_v30  ;;  %v3173_v17 = vmax.f32 %v2626_v55, 0.0  ;;  %v3760_v57 = vmax.f32 %v3288_v49, %v3289_v52  ;;  %v2925_v55 = vpop.f32.mrb[65].mxu1 }
 0x387   : > { %v3291_v30 = vmax.f32 %v2920_v23, 0.0  ;;  %v2927_v9 = vpop.f32.mrb[66].mxu1 }
 0x388   : > { %3752 = vmax.xlane.f32.xlu1 %v3751_v48  ;;  %v2627_v48 = vpop.f32.mrb[94].mxu0  ;;  %v3586_v7 = vmax.f32 %v3172_v61, %v3173_v17  ;;  %v2928_v42 = vadd.f32 %v2927_v9, %v7145_v38  ;;  %v2929_v6 = vpop.f32.mrb[67].mxu1 }
 0x389   : > { %v2628_v19 = vadd.f32 %v2627_v48, %v7140_v46  ;;  %v2629_v25 = vpop.f32.mrb[95].mxu0  ;;  %3755 = vmax.xlane.f32.xlu0 %v3754_v1  ;;  %v3763_v15 = vmax.f32 %v3290_v53, %v3291_v30  ;;  %v2924_v1 = vadd.f32 %v2923_v59, %v7143_v60  ;;  %v2926_v48 = vadd.f32 %v2925_v55, %v7143_v60 }
 0x38a   : > { %v2630_v22 = vadd.f32 %v2629_v25, %v7140_v46  ;;  %v2633_v34 = vpop.f32.mrb[96].mxu0  ;;  %v7144_v46 = vld [vmem:[#allocation14_spill] sm:$0xff]  ;;  %v2930_v23 = vadd.f32 %v2929_v6, %v7145_v38  ;;  %v3294_v53 = vmax.f32 %v2928_v42, 0.0 }
 0x38b   : > { %v3174_v5 = vmax.f32 %v2628_v19, 0.0  ;;  %v2634_v20 = vadd.f32 %v2633_v34, %v7142_v50  ;;  %v2635_v54 = vpop.f32.mrb[97].mxu0  ;;  %v3292_v49 = vmax.f32 %v2924_v1, 0.0  ;;  %v3293_v52 = vmax.f32 %v2926_v48, 0.0  ;;  %v6466_v34 = vpop.permute.xlu0 %2042 }
 0x38c   : > { %3584 = vmax.xlane.f32.xlu1 %v3583_v35  ;;  %v3175_v21 = vmax.f32 %v2630_v22, 0.0  ;;  %v6456_v35 = vpop.permute.xlu1 %2027  ;;  %v2636_v16 = vadd.f32 %v2635_v54, %v7142_v50  ;;  %v2933_v1 = vpop.f32.mrb[68].mxu1  ;;  %v7146_v54 = vld [vmem:[#allocation17_spill] sm:$0xff] }
 0x38d   : > { %3587 = vmax.xlane.f32.xlu0 %v3586_v7  ;;  %v3176_v61 = vmax.f32 %v2634_v20, 0.0  ;;  %v2935_v48 = vpop.f32.mrb[69].mxu1 }
 0x38e   : > { %v3589_v63 = vmax.f32 %v3174_v5, %v3175_v21  ;;  %v3177_v17 = vmax.f32 %v2636_v16, 0.0  ;;  %v3766_v21 = vmax.f32 %v3292_v49, %v3293_v52 }
 0x390   : > { %3758 = vmax.xlane.f32.xlu1 %v3757_v39  ;;  %v2637_v39 = vpop.f32.mrb[98].mxu0  ;;  %v3592_v7 = vmax.f32 %v3176_v61, %v3177_v17  ;;  %v6468_v59 = vpop.permute.xlu1 %2037 }
 0x391   : > { %v2638_v19 = vadd.f32 %v2637_v39, %v7144_v46  ;;  %v2639_v25 = vpop.f32.mrb[99].mxu0  ;;  %3761 = vmax.xlane.f32.xlu0 %v3760_v57  ;;  %v2934_v57 = vadd.f32 %v2933_v1, %v5975_v14  ;;  %v2937_v61 = vpop.f32.mrb[70].mxu1 }
 0x392   : > { %v2640_v22 = vadd.f32 %v2639_v25, %v7144_v46  ;;  %v2643_v60 = vpop.f32.mrb[100].mxu0  ;;  %v2938_v42 = vadd.f32 %v2937_v61, %v5973_v10  ;;  %v2939_v6 = vpop.f32.mrb[71].mxu1 }
 0x393   : > { %v3178_v5 = vmax.f32 %v2638_v19, 0.0  ;;  %v2644_v55 = vadd.f32 %v2643_v60, %v7146_v54  ;;  %v2645_v16 = vpop.f32.mrb[101].mxu0  ;;  %v3296_v46 = vmax.f32 %v2934_v57, 0.0  ;;  %v7147_v19 = vld [vmem:[#allocation16_spill] sm:$0xff]  ;;  %v2943_v57 = vpop.f32.mrb[72].mxu1 }
 0x394   : > { %3590 = vmax.xlane.f32.xlu1 %v3589_v63  ;;  %v3179_v30 = vmax.f32 %v2640_v22, 0.0  ;;  %v3295_v63 = vmax.f32 %v2930_v23, 0.0  ;;  %v2646_v39 = vadd.f32 %v2645_v16, %v7146_v54  ;;  %v2647_v9 = vpop.f32.mrb[102].mxu0  ;;  %v2940_v23 = vadd.f32 %v2939_v6, %v5973_v10  ;;  %v6481_v60 = vpop.permute.xlu1 %2047  ;;  %v7148_v10 = vld [vmem:[#allocation19_spill] sm:$0xff] }
 0x395   : > { %3593 = vmax.xlane.f32.xlu0 %v3592_v7  ;;  %v3180_v49 = vmax.f32 %v2644_v55, 0.0  ;;  %v2648_v38 = vadd.f32 %v2647_v9, %v7147_v19  ;;  %v2649_v25 = vpop.f32.mrb[103].mxu0  ;;  %v2944_v16 = vadd.f32 %v2943_v57, %v5996_v44 }
 0x396   : > { %v3595_v50 = vmax.f32 %v3178_v5, %v3179_v30  ;;  %v3769_v20 = vmax.f32 %v3294_v53, %v3295_v63  ;;  %v3181_v17 = vmax.f32 %v2646_v39, 0.0  ;;  %v2650_v22 = vadd.f32 %v2649_v25, %v7147_v19  ;;  %v2653_v55 = vpop.f32.mrb[104].mxu0  ;;  %v2945_v39 = vpop.f32.mrb[73].mxu1  ;;  %v7149_v19 = vld [vmem:[#allocation18_spill] sm:$0xff] }
 0x397   : > { %v3298_v5 = vmax.f32 %v2938_v42, 0.0  ;;  %v3299_v63 = vmax.f32 %v2940_v23, 0.0  ;;  %v2947_v61 = vpop.f32.mrb[74].mxu1 }
 0x398   : > { %3764 = vmax.xlane.f32.xlu1 %v3763_v15  ;;  %v2936_v15 = vadd.f32 %v2935_v48, %v5975_v14  ;;  %v3182_v14 = vmax.f32 %v2648_v38, 0.0  ;;  %v3598_v53 = vmax.f32 %v3180_v49, %v3181_v17  ;;  %v3183_v30 = vmax.f32 %v2650_v22, 0.0  ;;  %v2655_v48 = vpop.f32.mrb[105].mxu0  ;;  %v2949_v6 = vpop.f32.mrb[75].mxu1 }
 0x399   : > { %3767 = vmax.xlane.f32.xlu0 %v3766_v21  ;;  %v3775_v54 = vmax.f32 %v3298_v5, %v3299_v63  ;;  %v2654_v21 = vadd.f32 %v2653_v55, %v7148_v10  ;;  %v2657_v9 = vpop.f32.mrb[106].mxu0  ;;  %v2948_v42 = vadd.f32 %v2947_v61, %v5994_v51  ;;  %v2950_v23 = vadd.f32 %v2949_v6, %v5994_v51  ;;  %v3498_v63 = vpop.xlane.xlu1 %3497 }
 0x39a   : > { %v3297_v52 = vmax.f32 %v2936_v15, 0.0  ;;  %v3601_v1 = vmax.f32 %v3182_v14, %v3183_v30  ;;  %v2946_v15 = vadd.f32 %v2945_v39, %v5996_v44  ;;  %v2658_v38 = vadd.f32 %v2657_v9, %v7149_v19  ;;  %v2659_v25 = vpop.f32.mrb[107].mxu0  ;;  %v3426_v44 = vld [vmem:[#allocation2 + $0x1d0] sm:$0xff]  ;;  %v3368_v14 = vld [vmem:[#allocation2] sm:$0xff]  ;;  %v2953_v39 = vpop.f32.mrb[76].mxu1 }
 0x39b   : > { %v3184_v49 = vmax.f32 %v2654_v21, 0.0  ;;  %v2660_v22 = vadd.f32 %v2659_v25, %v7149_v19  ;;  %v7150_v9 = vld [vmem:[#allocation21_spill] sm:$0xff] }
 0x39c   : > { %3596 = vmax.xlane.f32.xlu1 %v3595_v50  ;;  %v3772_v7 = vmax.f32 %v3296_v46, %v3297_v52  ;;  %v6479_v50 = vpop.permute.xlu0 %2052  ;;  %v3300_v46 = vmax.f32 %v2944_v16, 0.0  ;;  %v3301_v52 = vmax.f32 %v2946_v15, 0.0  ;;  %v3186_v5 = vmax.f32 %v2658_v38, 0.0  ;;  %v3427_v15 = vld [vmem:[#allocation2 + $0x1d8] sm:$0xff] }
 0x39d   : > { %3599 = vmax.xlane.f32.xlu0 %v3598_v53  ;;  %v3302_v53 = vmax.f32 %v2948_v42, 0.0  ;;  %v3187_v57 = vmax.f32 %v2660_v22, 0.0  ;;  %v3880_v16 = vmax.f32 %v3368_v14, %v3498_v63  ;;  %v3675_v25 = vpop.xlane.xlu1 %3674 }
 0x39e   : > { %v3778_v55 = vmax.f32 %v3300_v46, %v3301_v52  ;;  %v2955_v46 = vpop.f32.mrb[77].mxu1  ;;  %v3939_v22 = vmax.f32 %v3427_v15, %v3675_v25 }
 0x39f   : > { %4009 = vst.msk [vmem:[#allocation2] sm:$0xff] %vm356_vm1, %v3880_v16  ;;  %v2956_v38 = vadd.f32 %v2955_v46, %v6281_v47  ;;  %v3371_v16 = vld [vmem:[#allocation2 + $0x18] sm:$0xff] }
 0x3a0   : > { %3770 = vmax.xlane.f32.xlu1 %v3769_v20  ;;  %v2656_v20 = vadd.f32 %v2655_v48, %v7148_v10  ;;  %v3672_v30 = vpop.xlane.xlu0 %3671  ;;  %v3303_v10 = vmax.f32 %v2950_v23, 0.0  ;;  %v3607_v48 = vmax.f32 %v3186_v5, %v3187_v57  ;;  %4068 = vst.msk [vmem:[#allocation2 + $0x1d8] sm:$0xff] %vm356_vm1, %v3939_v22 }
 0x3a1   : > { %3773 = vmax.xlane.f32.xlu0 %v3772_v7  ;;  %v3938_v21 = vmax.f32 %v3426_v44, %v3672_v30  ;;  %v2663_v7 = vpop.f32.mrb[108].mxu0  ;;  %v2957_v44 = vpop.f32.mrb[78].mxu1  ;;  %v3305_v5 = vmax.f32 %v2956_v38, 0.0 }
 0x3a2   : > { %v3185_v17 = vmax.f32 %v2656_v20, 0.0  ;;  %v3781_v51 = vmax.f32 %v3302_v53, %v3303_v10  ;;  %v3369_v20 = vld [vmem:[#allocation2 + $0x8] sm:$0xff]  ;;  %v2664_v61 = vadd.f32 %v2663_v7, %v7150_v9  ;;  %v2958_v63 = vadd.f32 %v2957_v44, %v6279_v37  ;;  %v2959_v57 = vpop.f32.mrb[79].mxu1 }
 0x3a3   : > { %4067 = vst.msk [vmem:[#allocation2 + $0x1d0] sm:$0xff] %vm356_vm1, %v3938_v21  ;;  %v7151_v53 = vld [vmem:[#allocation20_spill] sm:$0xff]  ;;  %v2960_v21 = vadd.f32 %v2959_v57, %v6279_v37  ;;  %v2963_v38 = vpop.f32.mrb[80].mxu1 }
 0x3a4   : > { %3602 = vmax.xlane.f32.xlu1 %v3601_v1  ;;  %v3604_v1 = vmax.f32 %v3184_v49, %v3185_v17  ;;  %v2665_v49 = vpop.f32.mrb[109].mxu0  ;;  %v3501_v42 = vpop.xlane.xlu0 %3500  ;;  %v3188_v6 = vmax.f32 %v2664_v61, 0.0 }
 0x3a5   : > { %v2666_v19 = vadd.f32 %v2665_v49, %v7150_v9  ;;  %v3881_v52 = vmax.f32 %v3369_v20, %v3501_v42  ;;  %v2667_v23 = vpop.f32.mrb[110].mxu0  ;;  %v3307_v9 = vmax.f32 %v2960_v21, 0.0  ;;  %v3428_v42 = vld [vmem:[#allocation2 + $0x1e0] sm:$0xff] }
 0x3a6   : > { %3605 = vmax.xlane.f32.xlu0 %v3604_v1  ;;  %v2668_v30 = vadd.f32 %v2667_v23, %v7151_v53  ;;  %v2669_v1 = vpop.f32.mrb[111].mxu0  ;;  %v4140_v37 = vld [vmem:[#allocation2] sm:$0xff]  ;;  %v2965_v23 = vpop.f32.mrb[81].mxu1 }
 0x3a7   : > { %v3189_v14 = vmax.f32 %v2666_v19, 0.0  ;;  %4010 = vst.msk [vmem:[#allocation2 + $0x8] sm:$0xff] %vm356_vm1, %v3881_v52  ;;  %v2670_v10 = vadd.f32 %v2669_v1, %v7151_v53  ;;  %v2673_v19 = vpop.f32.mrb[112].mxu0  ;;  %4268 = vst.msk [vmem:[%s6516_s23] sm:$0xff] %vm356_vm1, %v4140_v37  ;;  %v2964_v52 = vadd.f32 %v2963_v38, %v6297_v11  ;;  %v2967_v21 = vpop.f32.mrb[82].mxu1 }
 0x3a8   : > { %3776 = vmax.xlane.f32.xlu1 %v3775_v54  ;;  %v2954_v54 = vadd.f32 %v2953_v39, %v6281_v47  ;;  %v3370_v47 = vld [vmem:[#allocation2 + $0x10] sm:$0xff]  ;;  %v3190_v39 = vmax.f32 %v2668_v30, 0.0  ;;  %v3504_v20 = vpop.xlane.xlu0 %3503  ;;  %v2675_v22 = vpop.f32.mrb[113].mxu0  ;;  %v3429_v30 = vld [vmem:[#allocation2 + $0x1e8] sm:$0xff] }
 0x3a9   : > { %v3191_v15 = vmax.f32 %v2670_v10, 0.0  ;;  %v3882_v61 = vmax.f32 %v3370_v47, %v3504_v20  ;;  %v2677_v53 = vpop.f32.mrb[114].mxu0  ;;  %v3308_v1 = vmax.f32 %v2964_v52, 0.0  ;;  %v7153_v47 = vld [vmem:[#allocation22_spill] sm:$0xff] }
 0x3aa   : > { %v3304_v17 = vmax.f32 %v2954_v54, 0.0  ;;  %3779 = vmax.xlane.f32.xlu0 %v3778_v55  ;;  %v3306_v55 = vmax.f32 %v2958_v63, 0.0  ;;  %v3507_v54 = vpop.xlane.xlu1 %3506  ;;  %v4198_v49 = vld [vmem:[#allocation2 + $0x1d0] sm:$0xff]  ;;  %v2678_v10 = vadd.f32 %v2677_v53, %v7153_v47 }
 0x3ab   : > { %v3883_v46 = vmax.f32 %v3371_v16, %v3507_v54  ;;  %4326 = vst.msk [vmem:[%s6516_s23 + $0x1d0] sm:$0xff] %vm356_vm1, %v4198_v49  ;;  %v3613_v25 = vmax.f32 %v3190_v39, %v3191_v15  ;;  %4011 = vst.msk [vmem:[#allocation2 + $0x10] sm:$0xff] %vm356_vm1, %v3882_v61  ;;  %v2679_v16 = vpop.f32.mrb[115].mxu0  ;;  %v4199_v39 = vld [vmem:[#allocation2 + $0x1d8] sm:$0xff]  ;;  %v2968_v15 = vadd.f32 %v2967_v21, %v6295_v27  ;;  %v3372_v54 = vld [vmem:[#allocation2 + $0x20] sm:$0xff] }
 0x3ac   : > { %3608 = vmax.xlane.f32.xlu1 %v3607_v48  ;;  %v3610_v48 = vmax.f32 %v3188_v6, %v3189_v14  ;;  %v3784_v7 = vmax.f32 %v3304_v17, %v3305_v5  ;;  %v3787_v6 = vmax.f32 %v3306_v55, %v3307_v9  ;;  %v2966_v14 = vadd.f32 %v2965_v23, %v6297_v11  ;;  %v3678_v5 = vpop.xlane.xlu0 %3677  ;;  %v2969_v9 = vpop.f32.mrb[83].mxu1 }
 0x3ad   : > { %4012 = vst.msk [vmem:[#allocation2 + $0x18] sm:$0xff] %vm356_vm1, %v3883_v46  ;;  %v3940_v57 = vmax.f32 %v3428_v42, %v3678_v5  ;;  %v2680_v11 = vadd.f32 %v2679_v16, %v7153_v47  ;;  %4327 = vst.msk [vmem:[%s6516_s23 + $0x1d8] sm:$0xff] %vm356_vm1, %v4199_v39  ;;  %v3194_v49 = vmax.f32 %v2678_v10, 0.0  ;;  %v2970_v37 = vadd.f32 %v2969_v9, %v6295_v27  ;;  %v3430_v27 = vld [vmem:[#allocation2 + $0x1f0] sm:$0xff] }
 0x3ae   : > { %3611 = vmax.xlane.f32.xlu0 %v3610_v48  ;;  %v4141_v48 = vld [vmem:[#allocation2 + $0x8] sm:$0xff]  ;;  %v3309_v20 = vmax.f32 %v2966_v14, 0.0  ;;  %v3681_v61 = vpop.xlane.xlu1 %3680  ;;  %v3310_v42 = vmax.f32 %v2968_v15, 0.0  ;;  %v2683_v14 = vpop.f32.mrb[116].mxu0 }
 0x3af   : > { %4269 = vst.msk [vmem:[%s6516_s23 + $0x8] sm:$0xff] %vm356_vm1, %v4141_v48  ;;  %4069 = vst.msk [vmem:[#allocation2 + $0x1e0] sm:$0xff] %vm356_vm1, %v3940_v57  ;;  %v3941_v46 = vmax.f32 %v3429_v30, %v3681_v61  ;;  %v3311_v52 = vmax.f32 %v2970_v37, 0.0  ;;  %v2973_v57 = vpop.f32.mrb[84].mxu1  ;;  %v2685_v47 = vpop.f32.mrb[117].mxu0 }
 0x3b0   : > { %3782 = vmax.xlane.f32.xlu1 %v3781_v51  ;;  %v7152_v51 = vld [vmem:[#allocation23_spill] sm:$0xff]  ;;  %v3790_v38 = vmax.f32 %v3308_v1, %v3309_v20  ;;  %v2975_v21 = vpop.f32.mrb[85].mxu1  ;;  %v2687_v20 = vpop.f32.mrb[118].mxu0 }
 0x3b1   : > { %v2674_v17 = vadd.f32 %v2673_v19, %v7152_v51  ;;  %v2676_v44 = vadd.f32 %v2675_v22, %v7152_v51  ;;  %v3510_v51 = vpop.xlane.xlu0 %3509  ;;  %4070 = vst.msk [vmem:[#allocation2 + $0x1e8] sm:$0xff] %vm356_vm1, %v3941_v46  ;;  %v3793_v53 = vmax.f32 %v3310_v42, %v3311_v52  ;;  %v2976_v39 = vadd.f32 %v2975_v21, %v6313_v62  ;;  %v2977_v15 = vpop.f32.mrb[86].mxu1 }
 0x3b2   : > { %3785 = vmax.xlane.f32.xlu0 %v3784_v7  ;;  %v3884_v7 = vmax.f32 %v3372_v54, %v3510_v51  ;;  %v4142_v22 = vld [vmem:[#allocation2 + $0x10] sm:$0xff]  ;;  %v2978_v46 = vadd.f32 %v2977_v15, %v6311_v18  ;;  %v2979_v42 = vpop.f32.mrb[87].mxu1 }
 0x3b3   : > { %v3192_v63 = vmax.f32 %v2674_v17, 0.0  ;;  %v3193_v55 = vmax.f32 %v2676_v44, 0.0  ;;  %v3373_v17 = vld [vmem:[#allocation2 + $0x28] sm:$0xff]  ;;  %v3513_v44 = vpop.xlane.xlu1 %3512  ;;  %4270 = vst.msk [vmem:[%s6516_s23 + $0x10] sm:$0xff] %vm356_vm1, %v4142_v22 }
 0x3b4   : > { %3614 = vmax.xlane.f32.xlu1 %v3613_v25  ;;  %v3195_v25 = vmax.f32 %v2680_v11, 0.0  ;;  %v4143_v5 = vld [vmem:[#allocation2 + $0x18] sm:$0xff]  ;;  %4013 = vst.msk [vmem:[#allocation2 + $0x20] sm:$0xff] %vm356_vm1, %v3884_v7  ;;  %v3885_v30 = vmax.f32 %v3373_v17, %v3513_v44  ;;  %v2980_v17 = vadd.f32 %v2979_v42, %v6311_v18  ;;  %v3314_v44 = vmax.f32 %v2978_v46, 0.0 }
 0x3b5   : > { %v3616_v19 = vmax.f32 %v3192_v63, %v3193_v55  ;;  %v7154_v63 = vld [vmem:[#allocation25_spill] sm:$0xff]  ;;  %4271 = vst.msk [vmem:[%s6516_s23 + $0x18] sm:$0xff] %vm356_vm1, %v4143_v5  ;;  %v3684_v16 = vpop.xlane.xlu0 %3683  ;;  %v3431_v11 = vld [vmem:[#allocation2 + $0x1f8] sm:$0xff] }
 0x3b6   : > { %v3619_v23 = vmax.f32 %v3194_v49, %v3195_v25  ;;  %v2684_v1 = vadd.f32 %v2683_v14, %v7154_v63  ;;  %v2686_v10 = vadd.f32 %v2685_v47, %v7154_v63  ;;  %4014 = vst.msk [vmem:[#allocation2 + $0x28] sm:$0xff] %vm356_vm1, %v3885_v30  ;;  %v3942_v55 = vmax.f32 %v3430_v27, %v3684_v16  ;;  %v4200_v9 = vld [vmem:[#allocation2 + $0x1e0] sm:$0xff]  ;;  %v7155_v49 = vld [vmem:[#allocation24_spill] sm:$0xff]  ;;  %v3374_v25 = vld [vmem:[#allocation2 + $0x30] sm:$0xff]  ;;  %v2983_v47 = vpop.f32.mrb[88].mxu1 }
 0x3b7   : > { %3617 = vmax.xlane.f32.xlu0 %v3616_v19  ;;  %v2688_v37 = vadd.f32 %v2687_v20, %v7155_v49  ;;  %v2689_v19 = vpop.f32.mrb[119].mxu0  ;;  %4328 = vst.msk [vmem:[%s6516_s23 + $0x1e0] sm:$0xff] %vm356_vm1, %v4200_v9  ;;  %v3315_v30 = vmax.f32 %v2980_v17, 0.0  ;;  %v2985_v9 = vpop.f32.mrb[89].mxu1  ;;  %v7157_v17 = vld [vmem:[#allocation26_spill] sm:$0xff] }
 0x3b8   : > { %3788 = vmax.xlane.f32.xlu1 %v3787_v6  ;;  %v2974_v6 = vadd.f32 %v2973_v57, %v6313_v62  ;;  %v3196_v48 = vmax.f32 %v2684_v1, 0.0  ;;  %v3197_v54 = vmax.f32 %v2686_v10, 0.0  ;;  %v3313_v62 = vmax.f32 %v2976_v39, 0.0  ;;  %4071 = vst.msk [vmem:[#allocation2 + $0x1f0] sm:$0xff] %vm356_vm1, %v3942_v55  ;;  %v4201_v7 = vld [vmem:[#allocation2 + $0x1e8] sm:$0xff]  ;;  %v3375_v1 = vld [vmem:[#allocation2 + $0x38] sm:$0xff] }
 0x3b9   : > { %v2690_v51 = vadd.f32 %v2689_v19, %v7155_v49  ;;  %v3516_v27 = vpop.xlane.xlu0 %3515  ;;  %4329 = vst.msk [vmem:[%s6516_s23 + $0x1e8] sm:$0xff] %vm356_vm1, %v4201_v7  ;;  %v2693_v18 = vpop.f32.mrb[120].mxu0  ;;  %v3799_v21 = vmax.f32 %v3314_v44, %v3315_v30  ;;  %v3376_v44 = vld [vmem:[#allocation2 + $0x40] sm:$0xff] }
 0x3ba   : > { %v3312_v61 = vmax.f32 %v2974_v6, 0.0  ;;  %v3622_v22 = vmax.f32 %v3196_v48, %v3197_v54  ;;  %v3886_v63 = vmax.f32 %v3374_v25, %v3516_v27  ;;  %v3432_v6 = vld [vmem:[#allocation2 + $0x200] sm:$0xff]  ;;  %v2695_v55 = vpop.f32.mrb[121].mxu0  ;;  %v2987_v42 = vpop.f32.mrb[90].mxu1  ;;  %v3433_v25 = vld [vmem:[#allocation2 + $0x208] sm:$0xff] }
 0x3bb   : > { %3791 = vmax.xlane.f32.xlu0 %v3790_v38  ;;  %v3199_v5 = vmax.f32 %v2690_v51, 0.0  ;;  %v4144_v57 = vld [vmem:[#allocation2 + $0x20] sm:$0xff]  ;;  %v2697_v19 = vpop.f32.mrb[122].mxu0  ;;  %v2988_v7 = vadd.f32 %v2987_v42, %v6327_v0 }
 0x3bc   : > { %3620 = vmax.xlane.f32.xlu1 %v3619_v23  ;;  %v3198_v23 = vmax.f32 %v2688_v37, 0.0  ;;  %v3796_v38 = vmax.f32 %v3312_v61, %v3313_v62  ;;  %4272 = vst.msk [vmem:[%s6516_s23 + $0x20] sm:$0xff] %vm356_vm1, %v4144_v57  ;;  %4015 = vst.msk [vmem:[#allocation2 + $0x30] sm:$0xff] %vm356_vm1, %v3886_v63  ;;  %v7156_v48 = vld [vmem:[#allocation27_spill] sm:$0xff]  ;;  %v2986_v37 = vadd.f32 %v2985_v9, %v6329_v13  ;;  %v7158_v9 = vld [vmem:[#allocation29_spill] sm:$0xff] }
 0x3bd   : > { %v3687_v52 = vpop.xlane.xlu1 %3686  ;;  %v2694_v39 = vadd.f32 %v2693_v18, %v7156_v48  ;;  %v4145_v20 = vld [vmem:[#allocation2 + $0x28] sm:$0xff]  ;;  %v3690_v61 = vpop.xlane.xlu0 %3689 }
 0x3be   : > { %v3943_v14 = vmax.f32 %v3431_v11, %v3687_v52  ;;  %v3625_v10 = vmax.f32 %v3198_v23, %v3199_v5  ;;  %v2696_v11 = vadd.f32 %v2695_v55, %v7156_v48  ;;  %4273 = vst.msk [vmem:[%s6516_s23 + $0x28] sm:$0xff] %vm356_vm1, %v4145_v20  ;;  %v3944_v46 = vmax.f32 %v3432_v6, %v3690_v61  ;;  %v2989_v23 = vpop.f32.mrb[91].mxu1  ;;  %v3377_v48 = vld [vmem:[#allocation2 + $0x48] sm:$0xff]  ;;  %v3434_v55 = vld [vmem:[#allocation2 + $0x210] sm:$0xff] }
 0x3bf   : > { %3623 = vmax.xlane.f32.xlu0 %v3622_v22  ;;  %v3200_v54 = vmax.f32 %v2694_v39, 0.0  ;;  %v4202_v62 = vld [vmem:[#allocation2 + $0x1f0] sm:$0xff]  ;;  %v2698_v52 = vadd.f32 %v2697_v19, %v7157_v17  ;;  %v2699_v22 = vpop.f32.mrb[123].mxu0  ;;  %v2990_v27 = vadd.f32 %v2989_v23, %v6327_v0 }
 0x3c0   : > { %3794 = vmax.xlane.f32.xlu1 %v3793_v53  ;;  %4072 = vst.msk [vmem:[#allocation2 + $0x1f8] sm:$0xff] %vm356_vm1, %v3943_v14  ;;  %v2984_v53 = vadd.f32 %v2983_v47, %v6329_v13  ;;  %v3201_v51 = vmax.f32 %v2696_v11, 0.0  ;;  %4330 = vst.msk [vmem:[%s6516_s23 + $0x1f0] sm:$0xff] %vm356_vm1, %v4202_v62  ;;  %v3317_v13 = vmax.f32 %v2986_v37, 0.0  ;;  %v2700_v14 = vadd.f32 %v2699_v22, %v7157_v17  ;;  %v2703_v0 = vpop.f32.mrb[124].mxu0  ;;  %v3435_v22 = vld [vmem:[#allocation2 + $0x218] sm:$0xff] }
 0x3c1   : > { %v3519_v16 = vpop.xlane.xlu1 %3518  ;;  %4073 = vst.msk [vmem:[#allocation2 + $0x200] sm:$0xff] %vm356_vm1, %v3944_v46  ;;  %v3202_v63 = vmax.f32 %v2698_v52, 0.0  ;;  %v2704_v61 = vadd.f32 %v2703_v0, %v7158_v9 }
 0x3c2   : > { %v3887_v15 = vmax.f32 %v3375_v1, %v3519_v16  ;;  %v3316_v49 = vmax.f32 %v2984_v53, 0.0  ;;  %v3628_v30 = vmax.f32 %v3200_v54, %v3201_v51  ;;  %v3318_v1 = vmax.f32 %v2988_v7, 0.0  ;;  %v3522_v18 = vpop.xlane.xlu0 %3521  ;;  %v2993_v53 = vpop.f32.mrb[92].mxu1 }
 0x3c3   : > { %3797 = vmax.xlane.f32.xlu0 %v3796_v38  ;;  %v3203_v6 = vmax.f32 %v2700_v14, 0.0  ;;  %v3888_v16 = vmax.f32 %v3376_v44, %v3522_v18  ;;  %v4146_v39 = vld [vmem:[#allocation2 + $0x30] sm:$0xff]  ;;  %v2705_v54 = vpop.f32.mrb[125].mxu0  ;;  %v2995_v46 = vpop.f32.mrb[93].mxu1 }
 0x3c4   : > { %3626 = vmax.xlane.f32.xlu1 %v3625_v10  ;;  %4016 = vst.msk [vmem:[#allocation2 + $0x38] sm:$0xff] %vm356_vm1, %v3887_v15  ;;  %v3802_v38 = vmax.f32 %v3316_v49, %v3317_v13  ;;  %v3319_v10 = vmax.f32 %v2990_v27, 0.0  ;;  %4274 = vst.msk [vmem:[%s6516_s23 + $0x30] sm:$0xff] %vm356_vm1, %v4146_v39  ;;  %v2706_v37 = vadd.f32 %v2705_v54, %v7158_v9  ;;  %v2707_v52 = vpop.f32.mrb[126].mxu0  ;;  %v2997_v7 = vpop.f32.mrb[94].mxu1  ;;  %v7159_v13 = vld [vmem:[#allocation28_spill] sm:$0xff] }
 0x3c5   : > { %v3693_v5 = vpop.xlane.xlu1 %3692  ;;  %v3631_v20 = vmax.f32 %v3202_v63, %v3203_v6  ;;  %4017 = vst.msk [vmem:[#allocation2 + $0x40] sm:$0xff] %vm356_vm1, %v3888_v16  ;;  %v2996_v51 = vadd.f32 %v2995_v46, %v6345_v36  ;;  %v2708_v14 = vadd.f32 %v2707_v52, %v7159_v13  ;;  %v2998_v27 = vadd.f32 %v2997_v7, %v6343_v12 }
 0x3c6   : > { %v3945_v57 = vmax.f32 %v3433_v25, %v3693_v5  ;;  %v3805_v15 = vmax.f32 %v3318_v1, %v3319_v10  ;;  %v3696_v19 = vpop.xlane.xlu0 %3695  ;;  %v3204_v25 = vmax.f32 %v2704_v61, 0.0  ;;  %v3205_v44 = vmax.f32 %v2706_v37, 0.0  ;;  %v2709_v5 = vpop.f32.mrb[127].mxu0  ;;  %v3436_v61 = vld [vmem:[#allocation2 + $0x220] sm:$0xff] }
 0x3c7   : > { %v4203_v47 = vld [vmem:[#allocation2 + $0x1f8] sm:$0xff]  ;;  %3629 = vmax.xlane.f32.xlu0 %v3628_v30  ;;  %v3946_v17 = vmax.f32 %v3434_v55, %v3696_v19  ;;  %v2999_v30 = vpop.f32.mrb[95].mxu1  ;;  %v3321_v63 = vmax.f32 %v2996_v51, 0.0  ;;  %v2710_v1 = vadd.f32 %v2709_v5, %v7159_v13  ;;  %v3206_v6 = vmax.f32 %v2708_v14, 0.0  ;;  %v7160_v37 = vld [vmem:[#allocation31_spill] sm:$0xff]  ;;  %v3437_v14 = vld [vmem:[#allocation2 + $0x228] sm:$0xff] }
 0x3c8   : > { %3800 = vmax.xlane.f32.xlu1 %v3799_v21  ;;  %4331 = vst.msk [vmem:[%s6516_s23 + $0x1f8] sm:$0xff] %vm356_vm1, %v4203_v47  ;;  %4074 = vst.msk [vmem:[#allocation2 + $0x208] sm:$0xff] %vm356_vm1, %v3945_v57  ;;  %v2994_v21 = vadd.f32 %v2993_v53, %v6345_v36  ;;  %v4204_v23 = vld [vmem:[#allocation2 + $0x200] sm:$0xff]  ;;  %v3378_v36 = vld [vmem:[#allocation2 + $0x50] sm:$0xff]  ;;  %v3000_v57 = vadd.f32 %v2999_v30, %v6343_v12  ;;  %v3634_v47 = vmax.f32 %v3204_v25, %v3205_v44  ;;  %v2713_v12 = vpop.f32.mrb[128].mxu0  ;;  %v3003_v9 = vpop.f32.mrb[96].mxu1 }
 0x3c9   : > { %v3525_v11 = vpop.xlane.xlu1 %3524  ;;  %4332 = vst.msk [vmem:[%s6516_s23 + $0x200] sm:$0xff] %vm356_vm1, %v4204_v23  ;;  %4075 = vst.msk [vmem:[#allocation2 + $0x210] sm:$0xff] %vm356_vm1, %v3946_v17  ;;  %v3322_v10 = vmax.f32 %v2998_v27, 0.0  ;;  %v3207_v0 = vmax.f32 %v2710_v1, 0.0  ;;  %v2714_v46 = vadd.f32 %v2713_v12, %v7160_v37  ;;  %v2715_v19 = vpop.f32.mrb[129].mxu0  ;;  %v7161_v30 = vld [vmem:[#allocation30_spill] sm:$0xff] }
 0x3ca   : > { %v3889_v49 = vmax.f32 %v3377_v48, %v3525_v11  ;;  %v3320_v62 = vmax.f32 %v2994_v21, 0.0  ;;  %v3528_v48 = vpop.xlane.xlu0 %3527  ;;  %v3323_v53 = vmax.f32 %v3000_v57, 0.0  ;;  %v2716_v25 = vadd.f32 %v2715_v19, %v7160_v37  ;;  %v2717_v44 = vpop.f32.mrb[130].mxu0  ;;  %v7162_v19 = vld [vmem:[#allocation33_spill] sm:$0xff] }
 0x3cb   : > { %v4147_v42 = vld [vmem:[#allocation2 + $0x38] sm:$0xff]  ;;  %3803 = vmax.xlane.f32.xlu0 %v3802_v38  ;;  %v3890_v55 = vmax.f32 %v3378_v36, %v3528_v48  ;;  %v3637_v21 = vmax.f32 %v3206_v6, %v3207_v0  ;;  %v3208_v52 = vmax.f32 %v2714_v46, 0.0  ;;  %v2718_v36 = vadd.f32 %v2717_v44, %v7161_v30  ;;  %v2719_v1 = vpop.f32.mrb[131].mxu0 }
 0x3cc   : > { %3632 = vmax.xlane.f32.xlu1 %v3631_v20  ;;  %4275 = vst.msk [vmem:[%s6516_s23 + $0x38] sm:$0xff] %vm356_vm1, %v4147_v42  ;;  %4018 = vst.msk [vmem:[#allocation2 + $0x48] sm:$0xff] %vm356_vm1, %v3889_v49  ;;  %v3808_v38 = vmax.f32 %v3320_v62, %v3321_v63  ;;  %v3379_v20 = vld [vmem:[#allocation2 + $0x58] sm:$0xff]  ;;  %v4148_v11 = vld [vmem:[#allocation2 + $0x40] sm:$0xff]  ;;  %v3811_v54 = vmax.f32 %v3322_v10, %v3323_v53  ;;  %v3005_v62 = vpop.f32.mrb[97].mxu1  ;;  %v3209_v5 = vmax.f32 %v2716_v25, 0.0 }
 0x3cd   : > { %v3699_v18 = vpop.xlane.xlu1 %3698  ;;  %4276 = vst.msk [vmem:[%s6516_s23 + $0x40] sm:$0xff] %vm356_vm1, %v4148_v11  ;;  %4019 = vst.msk [vmem:[#allocation2 + $0x50] sm:$0xff] %vm356_vm1, %v3890_v55  ;;  %v3007_v13 = vpop.f32.mrb[98].mxu1  ;;  %v3210_v48 = vmax.f32 %v2718_v36, 0.0 }
 0x3ce   : > { %v3947_v16 = vmax.f32 %v3435_v22, %v3699_v18  ;;  %v3702_v51 = vpop.xlane.xlu0 %3701  ;;  %v3006_v22 = vadd.f32 %v3005_v62, %v6360_v2  ;;  %v3008_v63 = vadd.f32 %v3007_v13, %v6358_v8  ;;  %v3009_v57 = vpop.f32.mrb[99].mxu1 }
 0x3cf   : > { %v4205_v39 = vld [vmem:[#allocation2 + $0x208] sm:$0xff]  ;;  %3635 = vmax.xlane.f32.xlu0 %v3634_v47  ;;  %v3948_v23 = vmax.f32 %v3436_v61, %v3702_v51  ;;  %v2720_v47 = vadd.f32 %v2719_v1, %v7161_v30  ;;  %v3010_v6 = vadd.f32 %v3009_v57, %v6358_v8  ;;  %v2723_v8 = vpop.f32.mrb[132].mxu0 }
 0x3d0   : > { %3806 = vmax.xlane.f32.xlu1 %v3805_v15  ;;  %4333 = vst.msk [vmem:[%s6516_s23 + $0x208] sm:$0xff] %vm356_vm1, %v4205_v39  ;;  %4076 = vst.msk [vmem:[#allocation2 + $0x218] sm:$0xff] %vm356_vm1, %v3947_v16  ;;  %v3004_v15 = vadd.f32 %v3003_v9, %v6360_v2  ;;  %v4206_v27 = vld [vmem:[#allocation2 + $0x210] sm:$0xff]  ;;  %v3380_v2 = vld [vmem:[#allocation2 + $0x60] sm:$0xff]  ;;  %v3325_v18 = vmax.f32 %v3006_v22, 0.0  ;;  %v3640_v16 = vmax.f32 %v3208_v52, %v3209_v5  ;;  %v3326_v39 = vmax.f32 %v3008_v63, 0.0 }
 0x3d1   : > { %v3531_v49 = vpop.xlane.xlu1 %3530  ;;  %4334 = vst.msk [vmem:[%s6516_s23 + $0x210] sm:$0xff] %vm356_vm1, %v4206_v27  ;;  %4077 = vst.msk [vmem:[#allocation2 + $0x220] sm:$0xff] %vm356_vm1, %v3948_v23  ;;  %v3327_v11 = vmax.f32 %v3010_v6, 0.0  ;;  %v3381_v9 = vld [vmem:[#allocation2 + $0x68] sm:$0xff]  ;;  %v2725_v25 = vpop.f32.mrb[133].mxu0  ;;  %v3439_v5 = vld [vmem:[#allocation2 + $0x238] sm:$0xff] }
 0x3d2   : > { %v3891_v42 = vmax.f32 %v3379_v20, %v3531_v49  ;;  %v3324_v7 = vmax.f32 %v3004_v15, 0.0  ;;  %v3534_v53 = vpop.xlane.xlu0 %3533  ;;  %v3211_v20 = vmax.f32 %v2720_v47, 0.0  ;;  %v3438_v49 = vld [vmem:[#allocation2 + $0x230] sm:$0xff]  ;;  %v2726_v51 = vadd.f32 %v2725_v25, %v7162_v19  ;;  %v7163_v63 = vld [vmem:[#allocation32_spill] sm:$0xff] }
 0x3d3   : > { %v4149_v17 = vld [vmem:[#allocation2 + $0x48] sm:$0xff]  ;;  %3809 = vmax.xlane.f32.xlu0 %v3808_v38  ;;  %v3892_v12 = vmax.f32 %v3380_v2, %v3534_v53  ;;  %v3817_v46 = vmax.f32 %v3326_v39, %v3327_v11 }
 0x3d4   : > { %3638 = vmax.xlane.f32.xlu1 %v3637_v21  ;;  %4277 = vst.msk [vmem:[%s6516_s23 + $0x48] sm:$0xff] %vm356_vm1, %v4149_v17  ;;  %4020 = vst.msk [vmem:[#allocation2 + $0x58] sm:$0xff] %vm356_vm1, %v3891_v42  ;;  %v3814_v38 = vmax.f32 %v3324_v7, %v3325_v18  ;;  %v4150_v61 = vld [vmem:[#allocation2 + $0x50] sm:$0xff]  ;;  %v3013_v21 = vpop.f32.mrb[100].mxu1  ;;  %v3643_v37 = vmax.f32 %v3210_v48, %v3211_v20  ;;  %v2724_v42 = vadd.f32 %v2723_v8, %v7162_v19 }
 0x3d5   : > { %v3705_v10 = vpop.xlane.xlu1 %3704  ;;  %4278 = vst.msk [vmem:[%s6516_s23 + $0x50] sm:$0xff] %vm356_vm1, %v4150_v61  ;;  %4021 = vst.msk [vmem:[#allocation2 + $0x60] sm:$0xff] %vm356_vm1, %v3892_v12  ;;  %v3015_v17 = vpop.f32.mrb[101].mxu1  ;;  %v3213_v36 = vmax.f32 %v2726_v51, 0.0  ;;  %v3383_v61 = vld [vmem:[#allocation2 + $0x78] sm:$0xff] }
 0x3d6   : > { %v3949_v0 = vmax.f32 %v3437_v14, %v3705_v10  ;;  %v3708_v52 = vpop.xlane.xlu0 %3707  ;;  %v3212_v22 = vmax.f32 %v2724_v42, 0.0  ;;  %v3016_v44 = vadd.f32 %v3015_v17, %v6372_v28  ;;  %v2727_v14 = vpop.f32.mrb[134].mxu0  ;;  %v7164_v42 = vld [vmem:[#allocation35_spill] sm:$0xff] }
 0x3d7   : > { %v4207_v55 = vld [vmem:[#allocation2 + $0x218] sm:$0xff]  ;;  %3641 = vmax.xlane.f32.xlu0 %v3640_v16  ;;  %v3950_v13 = vmax.f32 %v3438_v49, %v3708_v52  ;;  %v3017_v27 = vpop.f32.mrb[102].mxu1  ;;  %v2728_v1 = vadd.f32 %v2727_v14, %v7163_v63  ;;  %v2729_v2 = vpop.f32.mrb[135].mxu0  ;;  %v3440_v49 = vld [vmem:[#allocation2 + $0x240] sm:$0xff] }
 0x3d8   : > { %3812 = vmax.xlane.f32.xlu1 %v3811_v54  ;;  %4335 = vst.msk [vmem:[%s6516_s23 + $0x218] sm:$0xff] %vm356_vm1, %v4207_v55  ;;  %4078 = vst.msk [vmem:[#allocation2 + $0x228] sm:$0xff] %vm356_vm1, %v3949_v0  ;;  %v3014_v54 = vadd.f32 %v3013_v21, %v6372_v28  ;;  %v4208_v30 = vld [vmem:[#allocation2 + $0x220] sm:$0xff]  ;;  %v3018_v57 = vadd.f32 %v3017_v27, %v6370_v33  ;;  %v3019_v18 = vpop.f32.mrb[103].mxu1  ;;  %v3382_v28 = vld [vmem:[#allocation2 + $0x70] sm:$0xff]  ;;  %v3329_v47 = vmax.f32 %v3016_v44, 0.0 }
 0x3d9   : > { %v3537_v15 = vpop.xlane.xlu1 %3536  ;;  %4336 = vst.msk [vmem:[%s6516_s23 + $0x220] sm:$0xff] %vm356_vm1, %v4208_v30  ;;  %4079 = vst.msk [vmem:[#allocation2 + $0x230] sm:$0xff] %vm356_vm1, %v3950_v13  ;;  %v2730_v6 = vadd.f32 %v2729_v2, %v7163_v63  ;;  %v3020_v10 = vadd.f32 %v3019_v18, %v6370_v33  ;;  %v3646_v48 = vmax.f32 %v3212_v22, %v3213_v36  ;;  %v3214_v39 = vmax.f32 %v2728_v1, 0.0  ;;  %v2733_v33 = vpop.f32.mrb[136].mxu0  ;;  %v7165_v63 = vld [vmem:[#allocation34_spill] sm:$0xff] }
 0x3da   : > { %v3893_v62 = vmax.f32 %v3381_v9, %v3537_v15  ;;  %v3328_v23 = vmax.f32 %v3014_v54, 0.0  ;;  %v3330_v0 = vmax.f32 %v3018_v57, 0.0  ;;  %v3540_v55 = vpop.xlane.xlu0 %3539  ;;  %v3023_v21 = vpop.f32.mrb[104].mxu1  ;;  %v2734_v54 = vadd.f32 %v2733_v33, %v7164_v42  ;;  %v3442_v33 = vld [vmem:[#allocation2 + $0x250] sm:$0xff] }
 0x3db   : > { %v4151_v7 = vld [vmem:[#allocation2 + $0x58] sm:$0xff]  ;;  %3815 = vmax.xlane.f32.xlu0 %v3814_v38  ;;  %v3215_v11 = vmax.f32 %v2730_v6, 0.0  ;;  %v3331_v12 = vmax.f32 %v3020_v10, 0.0  ;;  %v3894_v9 = vmax.f32 %v3382_v28, %v3540_v55  ;;  %v2735_v25 = vpop.f32.mrb[137].mxu0  ;;  %v3025_v17 = vpop.f32.mrb[105].mxu1 }
 0x3dc   : > { %3644 = vmax.xlane.f32.xlu1 %v3643_v37  ;;  %4279 = vst.msk [vmem:[%s6516_s23 + $0x58] sm:$0xff] %vm356_vm1, %v4151_v7  ;;  %4022 = vst.msk [vmem:[#allocation2 + $0x68] sm:$0xff] %vm356_vm1, %v3893_v62  ;;  %v3820_v38 = vmax.f32 %v3328_v23, %v3329_v47  ;;  %v4152_v8 = vld [vmem:[#allocation2 + $0x60] sm:$0xff]  ;;  %v2736_v51 = vadd.f32 %v2735_v25, %v7164_v42  ;;  %v3216_v22 = vmax.f32 %v2734_v54, 0.0  ;;  %v2737_v14 = vpop.f32.mrb[138].mxu0  ;;  %v3027_v27 = vpop.f32.mrb[106].mxu1 }
 0x3dd   : > { %v3711_v16 = vpop.xlane.xlu1 %3710  ;;  %4280 = vst.msk [vmem:[%s6516_s23 + $0x60] sm:$0xff] %vm356_vm1, %v4152_v8  ;;  %v3649_v37 = vmax.f32 %v3214_v39, %v3215_v11  ;;  %v3823_v15 = vmax.f32 %v3330_v0, %v3331_v12  ;;  %4023 = vst.msk [vmem:[#allocation2 + $0x70] sm:$0xff] %vm356_vm1, %v3894_v9  ;;  %v3026_v44 = vadd.f32 %v3025_v17, %v6384_v32  ;;  %v2739_v2 = vpop.f32.mrb[139].mxu0  ;;  %v3385_v9 = vld [vmem:[#allocation2 + $0x88] sm:$0xff] }
 0x3de   : > { %v3951_v53 = vmax.f32 %v3439_v5, %v3711_v16  ;;  %v3714_v52 = vpop.xlane.xlu0 %3713  ;;  %v3441_v5 = vld [vmem:[#allocation2 + $0x248] sm:$0xff]  ;;  %v3217_v36 = vmax.f32 %v2736_v51, 0.0  ;;  %v2738_v1 = vadd.f32 %v2737_v14, %v7165_v63  ;;  %v3028_v57 = vadd.f32 %v3027_v27, %v6382_v24  ;;  %v3029_v18 = vpop.f32.mrb[107].mxu1  ;;  %v3443_v14 = vld [vmem:[#allocation2 + $0x258] sm:$0xff] }
 0x3df   : > { %v4209_v20 = vld [vmem:[#allocation2 + $0x228] sm:$0xff]  ;;  %3647 = vmax.xlane.f32.xlu0 %v3646_v48  ;;  %v3952_v13 = vmax.f32 %v3440_v49, %v3714_v52  ;;  %v3333_v28 = vmax.f32 %v3026_v44, 0.0  ;;  %v2740_v47 = vadd.f32 %v2739_v2, %v7165_v63  ;;  %v3030_v6 = vadd.f32 %v3029_v18, %v6382_v24  ;;  %v2743_v24 = vpop.f32.mrb[140].mxu0  ;;  %v3033_v8 = vpop.f32.mrb[108].mxu1 }
 0x3e0   : > { %3818 = vmax.xlane.f32.xlu1 %v3817_v46  ;;  %4337 = vst.msk [vmem:[%s6516_s23 + $0x228] sm:$0xff] %vm356_vm1, %v4209_v20  ;;  %4080 = vst.msk [vmem:[#allocation2 + $0x238] sm:$0xff] %vm356_vm1, %v3951_v53  ;;  %v3024_v46 = vadd.f32 %v3023_v21, %v6384_v32  ;;  %v4210_v30 = vld [vmem:[#allocation2 + $0x230] sm:$0xff]  ;;  %v3384_v32 = vld [vmem:[#allocation2 + $0x80] sm:$0xff]  ;;  %v3652_v16 = vmax.f32 %v3216_v22, %v3217_v36  ;;  %v3218_v48 = vmax.f32 %v2738_v1, 0.0  ;;  %v3334_v39 = vmax.f32 %v3028_v57, 0.0 }
 0x3e1   : > { %v3543_v19 = vpop.xlane.xlu1 %3542  ;;  %4338 = vst.msk [vmem:[%s6516_s23 + $0x230] sm:$0xff] %vm356_vm1, %v4210_v30  ;;  %4081 = vst.msk [vmem:[#allocation2 + $0x240] sm:$0xff] %vm356_vm1, %v3952_v13  ;;  %v3335_v11 = vmax.f32 %v3030_v6, 0.0  ;;  %v2745_v54 = vpop.f32.mrb[141].mxu0  ;;  %v7167_v30 = vld [vmem:[#allocation36_spill] sm:$0xff] }
 0x3e2   : > { %v3895_v62 = vmax.f32 %v3383_v61, %v3543_v19  ;;  %v3332_v23 = vmax.f32 %v3024_v46, 0.0  ;;  %v3546_v53 = vpop.xlane.xlu0 %3545  ;;  %v7166_v19 = vld [vmem:[#allocation37_spill] sm:$0xff]  ;;  %v2747_v44 = vpop.f32.mrb[142].mxu0 }
 0x3e3   : > { %v4153_v7 = vld [vmem:[#allocation2 + $0x68] sm:$0xff]  ;;  %3821 = vmax.xlane.f32.xlu0 %v3820_v38  ;;  %v3219_v38 = vmax.f32 %v2740_v47, 0.0  ;;  %v3896_v12 = vmax.f32 %v3384_v32, %v3546_v53  ;;  %v3829_v49 = vmax.f32 %v3334_v39, %v3335_v11  ;;  %v2744_v42 = vadd.f32 %v2743_v24, %v7166_v19  ;;  %v2749_v1 = vpop.f32.mrb[143].mxu0 }
 0x3e4   : > { %3650 = vmax.xlane.f32.xlu1 %v3649_v37  ;;  %4281 = vst.msk [vmem:[%s6516_s23 + $0x68] sm:$0xff] %vm356_vm1, %v4153_v7  ;;  %4024 = vst.msk [vmem:[#allocation2 + $0x78] sm:$0xff] %vm356_vm1, %v3895_v62  ;;  %v3826_v20 = vmax.f32 %v3332_v23, %v3333_v28  ;;  %v4154_v61 = vld [vmem:[#allocation2 + $0x70] sm:$0xff]  ;;  %v2746_v25 = vadd.f32 %v2745_v54, %v7166_v19  ;;  %v3035_v62 = vpop.f32.mrb[109].mxu1  ;;  %v2748_v36 = vadd.f32 %v2747_v44, %v7167_v30 }
 0x3e5   : > { %v3717_v10 = vpop.xlane.xlu1 %3716  ;;  %4282 = vst.msk [vmem:[%s6516_s23 + $0x70] sm:$0xff] %vm356_vm1, %v4154_v61  ;;  %v3655_v21 = vmax.f32 %v3218_v48, %v3219_v38  ;;  %4025 = vst.msk [vmem:[#allocation2 + $0x80] sm:$0xff] %vm356_vm1, %v3896_v12  ;;  %v3220_v52 = vmax.f32 %v2744_v42, 0.0  ;;  %v3036_v22 = vadd.f32 %v3035_v62, %v6396_v29  ;;  %v3037_v13 = vpop.f32.mrb[110].mxu1  ;;  %v2750_v18 = vadd.f32 %v2749_v1, %v7167_v30  ;;  %v3387_v38 = vld [vmem:[#allocation2 + $0x98] sm:$0xff] }
 0x3e6   : > { %v3953_v0 = vmax.f32 %v3441_v5, %v3717_v10  ;;  %v3720_v51 = vpop.xlane.xlu0 %3719  ;;  %v3221_v5 = vmax.f32 %v2746_v25, 0.0  ;;  %v3038_v63 = vadd.f32 %v3037_v13, %v6394_v41  ;;  %v3039_v57 = vpop.f32.mrb[111].mxu1  ;;  %v3222_v6 = vmax.f32 %v2748_v36, 0.0  ;;  %v7169_v13 = vld [vmem:[#allocation38_spill] sm:$0xff] }
 0x3e7   : > { %v4211_v55 = vld [vmem:[#allocation2 + $0x238] sm:$0xff]  ;;  %3653 = vmax.xlane.f32.xlu0 %v3652_v16  ;;  %v3954_v23 = vmax.f32 %v3442_v33, %v3720_v51  ;;  %v3337_v2 = vmax.f32 %v3036_v22, 0.0  ;;  %v3040_v32 = vadd.f32 %v3039_v57, %v6394_v41  ;;  %v3223_v53 = vmax.f32 %v2750_v18, 0.0  ;;  %v2753_v41 = vpop.f32.mrb[144].mxu0  ;;  %v3043_v12 = vpop.f32.mrb[112].mxu1  ;;  %v7168_v33 = vld [vmem:[#allocation39_spill] sm:$0xff] }
 0x3e8   : > { %3824 = vmax.xlane.f32.xlu1 %v3823_v15  ;;  %4339 = vst.msk [vmem:[%s6516_s23 + $0x238] sm:$0xff] %vm356_vm1, %v4211_v55  ;;  %4082 = vst.msk [vmem:[#allocation2 + $0x248] sm:$0xff] %vm356_vm1, %v3953_v0  ;;  %v3034_v15 = vadd.f32 %v3033_v8, %v6396_v29  ;;  %v4212_v27 = vld [vmem:[#allocation2 + $0x240] sm:$0xff]  ;;  %v3386_v29 = vld [vmem:[#allocation2 + $0x90] sm:$0xff]  ;;  %v3658_v47 = vmax.f32 %v3220_v52, %v3221_v5  ;;  %v3338_v10 = vmax.f32 %v3038_v63, 0.0 }
 0x3e9   : > { %v3549_v37 = vpop.xlane.xlu1 %3548  ;;  %4340 = vst.msk [vmem:[%s6516_s23 + $0x240] sm:$0xff] %vm356_vm1, %v4212_v27  ;;  %4083 = vst.msk [vmem:[#allocation2 + $0x250] sm:$0xff] %vm356_vm1, %v3954_v23  ;;  %v3339_v55 = vmax.f32 %v3040_v32, 0.0  ;;  %v3661_v61 = vmax.f32 %v3222_v6, %v3223_v53  ;;  %v3445_v22 = vld [vmem:[#allocation2 + $0x268] sm:$0xff]  ;;  %v3446_v53 = vld [vmem:[#allocation2 + $0x270] sm:$0xff] }
 0x3ea   : > { %v3897_v46 = vmax.f32 %v3385_v9, %v3549_v37  ;;  %v3336_v7 = vmax.f32 %v3034_v15, 0.0  ;;  %v3552_v48 = vpop.xlane.xlu0 %3551  ;;  %v3444_v9 = vld [vmem:[#allocation2 + $0x260] sm:$0xff]  ;;  %v2755_v37 = vpop.f32.mrb[145].mxu0 }
 0x3eb   : > { %v4155_v17 = vld [vmem:[#allocation2 + $0x78] sm:$0xff]  ;;  %3827 = vmax.xlane.f32.xlu0 %v3826_v20  ;;  %v3898_v20 = vmax.f32 %v3386_v29, %v3552_v48  ;;  %v3835_v24 = vmax.f32 %v3338_v10, %v3339_v55  ;;  %v2756_v42 = vadd.f32 %v2755_v37, %v7168_v33  ;;  %v3045_v15 = vpop.f32.mrb[113].mxu1  ;;  %v2757_v52 = vpop.f32.mrb[146].mxu0 }
 0x3ec   : > { %3656 = vmax.xlane.f32.xlu1 %v3655_v21  ;;  %4283 = vst.msk [vmem:[%s6516_s23 + $0x78] sm:$0xff] %vm356_vm1, %v4155_v17  ;;  %4026 = vst.msk [vmem:[#allocation2 + $0x88] sm:$0xff] %vm356_vm1, %v3897_v46  ;;  %v3832_v0 = vmax.f32 %v3336_v7, %v3337_v2  ;;  %v4156_v11 = vld [vmem:[#allocation2 + $0x80] sm:$0xff]  ;;  %v2754_v21 = vadd.f32 %v2753_v41, %v7168_v33  ;;  %v3046_v51 = vadd.f32 %v3045_v15, %v6408_v58  ;;  %v3047_v7 = vpop.f32.mrb[114].mxu1  ;;  %v2759_v5 = vpop.f32.mrb[147].mxu0 }
 0x3ed   : > { %v3723_v28 = vpop.xlane.xlu1 %3722  ;;  %4284 = vst.msk [vmem:[%s6516_s23 + $0x80] sm:$0xff] %vm356_vm1, %v4156_v11  ;;  %4027 = vst.msk [vmem:[#allocation2 + $0x90] sm:$0xff] %vm356_vm1, %v3898_v20  ;;  %v3225_v44 = vmax.f32 %v2756_v42, 0.0  ;;  %v3048_v27 = vadd.f32 %v3047_v7, %v6406_v43  ;;  %v3049_v30 = vpop.f32.mrb[115].mxu1  ;;  %v2760_v63 = vadd.f32 %v2759_v5, %v7169_v13 }
 0x3ee   : > { %v3955_v16 = vmax.f32 %v3443_v14, %v3723_v28  ;;  %v3726_v54 = vpop.xlane.xlu0 %3725  ;;  %v3224_v25 = vmax.f32 %v2754_v21, 0.0  ;;  %v2758_v14 = vadd.f32 %v2757_v52, %v7169_v13  ;;  %v3341_v36 = vmax.f32 %v3046_v51, 0.0 }
 0x3ef   : > { %v4213_v39 = vld [vmem:[#allocation2 + $0x248] sm:$0xff]  ;;  %3659 = vmax.xlane.f32.xlu0 %v3658_v47  ;;  %v3956_v17 = vmax.f32 %v3444_v9, %v3726_v54  ;;  %v3050_v1 = vadd.f32 %v3049_v30, %v6406_v43  ;;  %v3342_v18 = vmax.f32 %v3048_v27, 0.0  ;;  %v3227_v10 = vmax.f32 %v2760_v63, 0.0  ;;  %v3053_v43 = vpop.f32.mrb[116].mxu1  ;;  %v3390_v54 = vld [vmem:[#allocation2 + $0xb0] sm:$0xff] }
 0x3f0   : > { %3830 = vmax.xlane.f32.xlu1 %v3829_v49  ;;  %4341 = vst.msk [vmem:[%s6516_s23 + $0x248] sm:$0xff] %vm356_vm1, %v4213_v39  ;;  %4084 = vst.msk [vmem:[#allocation2 + $0x258] sm:$0xff] %vm356_vm1, %v3955_v16  ;;  %v3044_v49 = vadd.f32 %v3043_v12, %v6408_v58  ;;  %v4214_v23 = vld [vmem:[#allocation2 + $0x250] sm:$0xff]  ;;  %v3388_v58 = vld [vmem:[#allocation2 + $0xa0] sm:$0xff]  ;;  %v3664_v29 = vmax.f32 %v3224_v25, %v3225_v44  ;;  %v3226_v2 = vmax.f32 %v2758_v14, 0.0  ;;  %v3055_v41 = vpop.f32.mrb[117].mxu1 }
 0x3f1   : > { %v3555_v8 = vpop.xlane.xlu1 %3554  ;;  %4342 = vst.msk [vmem:[%s6516_s23 + $0x250] sm:$0xff] %vm356_vm1, %v4214_v23  ;;  %4085 = vst.msk [vmem:[#allocation2 + $0x260] sm:$0xff] %vm356_vm1, %v3956_v17  ;;  %v3343_v16 = vmax.f32 %v3050_v1, 0.0  ;;  %v3389_v39 = vld [vmem:[#allocation2 + $0xa8] sm:$0xff]  ;;  %v3054_v11 = vadd.f32 %v3053_v43, %v6420_v26  ;;  %v3056_v9 = vadd.f32 %v3055_v41, %v6420_v26  ;;  %v3391_v23 = vld [vmem:[#allocation2 + $0xb8] sm:$0xff] }
 0x3f2   : > { %v3899_v19 = vmax.f32 %v3387_v38, %v3555_v8  ;;  %v3340_v62 = vmax.f32 %v3044_v49, 0.0  ;;  %v3558_v28 = vpop.xlane.xlu0 %3557  ;;  %v3667_v55 = vmax.f32 %v3226_v2, %v3227_v10  ;;  %v3448_v14 = vld [vmem:[#allocation2 + $0x280] sm:$0xff] }
 0x3f3   : > { %v4157_v46 = vld [vmem:[#allocation2 + $0x88] sm:$0xff]  ;;  %3833 = vmax.xlane.f32.xlu0 %v3832_v0  ;;  %v3900_v48 = vmax.f32 %v3388_v58, %v3558_v28  ;;  %v3841_v20 = vmax.f32 %v3342_v18, %v3343_v16  ;;  %v3344_v33 = vmax.f32 %v3054_v11, 0.0  ;;  %v3345_v15 = vmax.f32 %v3056_v9, 0.0  ;;  %v3392_v10 = vld [vmem:[#allocation2 + $0xc0] sm:$0xff] }
 0x3f4   : > { %3662 = vmax.xlane.f32.xlu1 %v3661_v61  ;;  %4285 = vst.msk [vmem:[%s6516_s23 + $0x88] sm:$0xff] %vm356_vm1, %v4157_v46  ;;  %4028 = vst.msk [vmem:[#allocation2 + $0x98] sm:$0xff] %vm356_vm1, %v3899_v19  ;;  %v3838_v6 = vmax.f32 %v3340_v62, %v3341_v36  ;;  %v4158_v0 = vld [vmem:[#allocation2 + $0x90] sm:$0xff]  ;;  %v3447_v19 = vld [vmem:[#allocation2 + $0x278] sm:$0xff] }
 0x3f5   : > { %v3729_v57 = vpop.xlane.xlu1 %3728  ;;  %4286 = vst.msk [vmem:[%s6516_s23 + $0x90] sm:$0xff] %vm356_vm1, %v4158_v0  ;;  %4029 = vst.msk [vmem:[#allocation2 + $0xa0] sm:$0xff] %vm356_vm1, %v3900_v48  ;;  %v3844_v62 = vmax.f32 %v3344_v33, %v3345_v15  ;;  %v3449_v28 = vld [vmem:[#allocation2 + $0x288] sm:$0xff] }
 0x3f6   : > { %v3957_v32 = vmax.f32 %v3445_v22, %v3729_v57  ;;  %v3732_v61 = vpop.xlane.xlu0 %3731 }
 0x3f7   : > { %v4215_v47 = vld [vmem:[#allocation2 + $0x258] sm:$0xff]  ;;  %3665 = vmax.xlane.f32.xlu0 %v3664_v29  ;;  %v3958_v21 = vmax.f32 %v3446_v53, %v3732_v61 }
 0x3f8   : > { %3836 = vmax.xlane.f32.xlu1 %v3835_v24  ;;  %4343 = vst.msk [vmem:[%s6516_s23 + $0x258] sm:$0xff] %vm356_vm1, %v4215_v47  ;;  %4086 = vst.msk [vmem:[#allocation2 + $0x268] sm:$0xff] %vm356_vm1, %v3957_v32  ;;  %v3057_v24 = vpop.f32.mrb[118].mxu1  ;;  %v4216_v42 = vld [vmem:[#allocation2 + $0x260] sm:$0xff] }
 0x3f9   : > { %v3561_v38 = vpop.xlane.xlu1 %3560  ;;  %v3058_v49 = vadd.f32 %v3057_v24, %v6418_v56  ;;  %v3059_v37 = vpop.f32.mrb[119].mxu1  ;;  %4344 = vst.msk [vmem:[%s6516_s23 + $0x260] sm:$0xff] %vm356_vm1, %v4216_v42  ;;  %4087 = vst.msk [vmem:[#allocation2 + $0x270] sm:$0xff] %vm356_vm1, %v3958_v21 }
 0x3fa   : > { %v3901_v12 = vmax.f32 %v3389_v39, %v3561_v38  ;;  %v3060_v26 = vadd.f32 %v3059_v37, %v6418_v56  ;;  %v3564_v52 = vpop.xlane.xlu0 %3563  ;;  %v3063_v13 = vpop.f32.mrb[120].mxu1  ;;  %v3393_v38 = vld [vmem:[#allocation2 + $0xc8] sm:$0xff] }
 0x3fb   : > { %v4159_v8 = vld [vmem:[#allocation2 + $0x98] sm:$0xff]  ;;  %3839 = vmax.xlane.f32.xlu0 %v3838_v6  ;;  %v3346_v46 = vmax.f32 %v3058_v49, 0.0  ;;  %v3902_v22 = vmax.f32 %v3390_v54, %v3564_v52  ;;  %v3064_v5 = vadd.f32 %v3063_v13, %v6432_v40  ;;  %v3065_v30 = vpop.f32.mrb[121].mxu1 }
 0x3fc   : > { %3668 = vmax.xlane.f32.xlu1 %v3667_v55  ;;  %4287 = vst.msk [vmem:[%s6516_s23 + $0x98] sm:$0xff] %vm356_vm1, %v4159_v8  ;;  %4030 = vst.msk [vmem:[#allocation2 + $0xa8] sm:$0xff] %vm356_vm1, %v3901_v12  ;;  %v3347_v51 = vmax.f32 %v3060_v26, 0.0  ;;  %v4160_v56 = vld [vmem:[#allocation2 + $0xa0] sm:$0xff]  ;;  %v3066_v36 = vadd.f32 %v3065_v30, %v6432_v40  ;;  %v3067_v1 = vpop.f32.mrb[122].mxu1  ;;  %v3450_v12 = vld [vmem:[#allocation2 + $0x290] sm:$0xff] }
 0x3fd   : > { %v3735_v25 = vpop.xlane.xlu1 %3734  ;;  %4288 = vst.msk [vmem:[%s6516_s23 + $0xa0] sm:$0xff] %vm356_vm1, %v4160_v56  ;;  %4031 = vst.msk [vmem:[#allocation2 + $0xb0] sm:$0xff] %vm356_vm1, %v3902_v22  ;;  %v3348_v29 = vmax.f32 %v3064_v5, 0.0  ;;  %v3068_v18 = vadd.f32 %v3067_v1, %v6430_v45  ;;  %v3069_v32 = vpop.f32.mrb[123].mxu1  ;;  %v3451_v54 = vld [vmem:[#allocation2 + $0x298] sm:$0xff]  ;;  %v3452_v5 = vld [vmem:[#allocation2 + $0x2a0] sm:$0xff] }
 0x3fe   : > { %v3959_v17 = vmax.f32 %v3447_v19, %v3735_v25  ;;  %v3847_v44 = vmax.f32 %v3346_v46, %v3347_v51  ;;  %v3738_v63 = vpop.xlane.xlu0 %3737  ;;  %v3349_v6 = vmax.f32 %v3066_v36, 0.0  ;;  %v3070_v40 = vadd.f32 %v3069_v32, %v6430_v45  ;;  %v3395_v13 = vld [vmem:[#allocation2 + $0xd8] sm:$0xff] }
 0x3ff   : > { %v4217_v7 = vld [vmem:[#allocation2 + $0x268] sm:$0xff]  ;;  %3845 = vmax.xlane.f32.xlu0 %v3844_v62  ;;  %v3960_v2 = vmax.f32 %v3448_v14, %v3738_v63  ;;  %v3350_v16 = vmax.f32 %v3068_v18, 0.0  ;;  %v3394_v62 = vld [vmem:[#allocation2 + $0xd0] sm:$0xff] }
 0x400   : > { %3842 = vmax.xlane.f32.xlu1 %v3841_v20  ;;  %4345 = vst.msk [vmem:[%s6516_s23 + $0x268] sm:$0xff] %vm356_vm1, %v4217_v7  ;;  %4088 = vst.msk [vmem:[#allocation2 + $0x278] sm:$0xff] %vm356_vm1, %v3959_v17  ;;  %v4218_v47 = vld [vmem:[#allocation2 + $0x270] sm:$0xff]  ;;  %v3850_v39 = vmax.f32 %v3348_v29, %v3349_v6  ;;  %v3351_v0 = vmax.f32 %v3070_v40, 0.0  ;;  %v3453_v6 = vld [vmem:[#allocation2 + $0x2a8] sm:$0xff] }
 0x401   : > { %v3567_v27 = vpop.xlane.xlu1 %3566  ;;  %4346 = vst.msk [vmem:[%s6516_s23 + $0x270] sm:$0xff] %vm356_vm1, %v4218_v47  ;;  %4089 = vst.msk [vmem:[#allocation2 + $0x280] sm:$0xff] %vm356_vm1, %v3960_v2 }
 0x402   : > { %v3903_v58 = vmax.f32 %v3391_v23, %v3567_v27  ;;  %v3570_v53 = vpop.xlane.xlu0 %3569  ;;  %v3853_v41 = vmax.f32 %v3350_v16, %v3351_v0  ;;  %v3396_v16 = vld [vmem:[#allocation2 + $0xe0] sm:$0xff] }
 0x403   : > { %v4161_v57 = vld [vmem:[#allocation2 + $0xa8] sm:$0xff]  ;;  %v3904_v20 = vmax.f32 %v3392_v10, %v3570_v53  ;;  %3851 = vmax.xlane.f32.xlu0 %v3850_v39 }
 0x404   : > { %3848 = vmax.xlane.f32.xlu1 %v3847_v44  ;;  %4289 = vst.msk [vmem:[%s6516_s23 + $0xa8] sm:$0xff] %vm356_vm1, %v4161_v57  ;;  %4032 = vst.msk [vmem:[#allocation2 + $0xb8] sm:$0xff] %vm356_vm1, %v3903_v58  ;;  %v4162_v11 = vld [vmem:[#allocation2 + $0xb0] sm:$0xff]  ;;  %v3073_v45 = vpop.f32.mrb[124].mxu1 }
 0x405   : > { %v3741_v48 = vpop.xlane.xlu1 %3740  ;;  %4290 = vst.msk [vmem:[%s6516_s23 + $0xb0] sm:$0xff] %vm356_vm1, %v4162_v11  ;;  %4033 = vst.msk [vmem:[#allocation2 + $0xc0] sm:$0xff] %vm356_vm1, %v3904_v20  ;;  %v3074_v61 = vadd.f32 %v3073_v45, %v6444_v4  ;;  %v3075_v24 = vpop.f32.mrb[125].mxu1  ;;  %v3397_v11 = vld [vmem:[#allocation2 + $0xe8] sm:$0xff] }
 0x406   : > { %v3961_v43 = vmax.f32 %v3449_v28, %v3741_v48  ;;  %v3076_v33 = vadd.f32 %v3075_v24, %v6444_v4  ;;  %v3744_v21 = vpop.xlane.xlu0 %3743  ;;  %v3077_v49 = vpop.f32.mrb[126].mxu1 }
 0x407   : > { %v4219_v55 = vld [vmem:[#allocation2 + $0x278] sm:$0xff]  ;;  %v3352_v19 = vmax.f32 %v3074_v61, 0.0  ;;  %v3962_v42 = vmax.f32 %v3450_v12, %v3744_v21  ;;  %v3078_v15 = vadd.f32 %v3077_v49, %v6442_v3  ;;  %v3079_v26 = vpop.f32.mrb[127].mxu1  ;;  %v3454_v12 = vld [vmem:[#allocation2 + $0x2b0] sm:$0xff] }
 0x408   : > { %4347 = vst.msk [vmem:[%s6516_s23 + $0x278] sm:$0xff] %vm356_vm1, %v4219_v55  ;;  %4090 = vst.msk [vmem:[#allocation2 + $0x288] sm:$0xff] %vm356_vm1, %v3961_v43  ;;  %3854 = vmax.xlane.f32.xlu1 %v3853_v41  ;;  %v4220_v46 = vld [vmem:[#allocation2 + $0x280] sm:$0xff]  ;;  %v3353_v25 = vmax.f32 %v3076_v33, 0.0  ;;  %v3080_v4 = vadd.f32 %v3079_v26, %v6442_v3 }
 0x409   : > { %v3573_v9 = vpop.xlane.xlu1 %3572  ;;  %4348 = vst.msk [vmem:[%s6516_s23 + $0x280] sm:$0xff] %vm356_vm1, %v4220_v46  ;;  %4091 = vst.msk [vmem:[#allocation2 + $0x290] sm:$0xff] %vm356_vm1, %v3962_v42  ;;  %v3354_v51 = vmax.f32 %v3078_v15, 0.0 }
 0x40a   : > { %v3905_v8 = vmax.f32 %v3393_v38, %v3573_v9  ;;  %v3856_v52 = vmax.f32 %v3352_v19, %v3353_v25  ;;  %v3355_v7 = vmax.f32 %v3080_v4, 0.0  ;;  %v3576_v23 = vpop.xlane.xlu0 %3575  ;;  %v3398_v4 = vld [vmem:[#allocation2 + $0xf0] sm:$0xff] }
 0x40b   : > { %v4163_v37 = vld [vmem:[#allocation2 + $0xb8] sm:$0xff]  ;;  %v3906_v44 = vmax.f32 %v3394_v62, %v3576_v23 }
 0x40c   : > { %4291 = vst.msk [vmem:[%s6516_s23 + $0xb8] sm:$0xff] %vm356_vm1, %v4163_v37  ;;  %4034 = vst.msk [vmem:[#allocation2 + $0xc8] sm:$0xff] %vm356_vm1, %v3905_v8  ;;  %v4164_v14 = vld [vmem:[#allocation2 + $0xc0] sm:$0xff]  ;;  %v3859_v27 = vmax.f32 %v3354_v51, %v3355_v7  ;;  %v3083_v3 = vpop.f32.mrb[128].mxu1  ;;  %3857 = vmax.xlane.f32.xlu0 %v3856_v52 }
 0x40d   : > { %v3747_v17 = vpop.xlane.xlu1 %3746  ;;  %4292 = vst.msk [vmem:[%s6516_s23 + $0xc0] sm:$0xff] %vm356_vm1, %v4164_v14  ;;  %4035 = vst.msk [vmem:[#allocation2 + $0xd0] sm:$0xff] %vm356_vm1, %v3906_v44  ;;  %v3084_v58 = vadd.f32 %v3083_v3, %v6456_v35  ;;  %v3085_v36 = vpop.f32.mrb[129].mxu1  ;;  %v3399_v44 = vld [vmem:[#allocation2 + $0xf8] sm:$0xff] }
 0x40e   : > { %v3963_v22 = vmax.f32 %v3451_v54, %v3747_v17  ;;  %v3086_v1 = vadd.f32 %v3085_v36, %v6456_v35  ;;  %v3750_v57 = vpop.xlane.xlu0 %3749  ;;  %v3087_v29 = vpop.f32.mrb[130].mxu1  ;;  %3860 = vmax.xlane.f32.xlu1 %v3859_v27  ;;  %v3455_v54 = vld [vmem:[#allocation2 + $0x2b8] sm:$0xff]  ;;  %v3456_v27 = vld [vmem:[#allocation2 + $0x2c0] sm:$0xff] }
 0x40f   : > { %v4221_v56 = vld [vmem:[#allocation2 + $0x288] sm:$0xff]  ;;  %v3356_v18 = vmax.f32 %v3084_v58, 0.0  ;;  %v3964_v32 = vmax.f32 %v3452_v5, %v3750_v57  ;;  %v3088_v28 = vadd.f32 %v3087_v29, %v6454_v31  ;;  %v3089_v47 = vpop.f32.mrb[131].mxu1 }
 0x410   : > { %4349 = vst.msk [vmem:[%s6516_s23 + $0x288] sm:$0xff] %vm356_vm1, %v4221_v56  ;;  %4092 = vst.msk [vmem:[#allocation2 + $0x298] sm:$0xff] %vm356_vm1, %v3963_v22  ;;  %v4222_v40 = vld [vmem:[#allocation2 + $0x290] sm:$0xff]  ;;  %v3357_v10 = vmax.f32 %v3086_v1, 0.0  ;;  %v3090_v35 = vadd.f32 %v3089_v47, %v6454_v31 }
 0x411   : > { %v3579_v30 = vpop.xlane.xlu1 %3578  ;;  %4350 = vst.msk [vmem:[%s6516_s23 + $0x290] sm:$0xff] %vm356_vm1, %v4222_v40  ;;  %4093 = vst.msk [vmem:[#allocation2 + $0x2a0] sm:$0xff] %vm356_vm1, %v3964_v32  ;;  %v3358_v48 = vmax.f32 %v3088_v28, 0.0  ;;  %v3457_v28 = vld [vmem:[#allocation2 + $0x2c8] sm:$0xff]  ;;  %v3400_v40 = vld [vmem:[#allocation2 + $0x100] sm:$0xff] }
 0x412   : > { %v3907_v63 = vmax.f32 %v3395_v13, %v3579_v30  ;;  %v3862_v0 = vmax.f32 %v3356_v18, %v3357_v10  ;;  %v3359_v43 = vmax.f32 %v3090_v35, 0.0  ;;  %v3582_v55 = vpop.xlane.xlu0 %3581 }
 0x413   : > { %v4165_v2 = vld [vmem:[#allocation2 + $0xc8] sm:$0xff]  ;;  %v3908_v38 = vmax.f32 %v3396_v16, %v3582_v55 }
 0x414   : > { %4293 = vst.msk [vmem:[%s6516_s23 + $0xc8] sm:$0xff] %vm356_vm1, %v4165_v2  ;;  %4036 = vst.msk [vmem:[#allocation2 + $0xd8] sm:$0xff] %vm356_vm1, %v3907_v63  ;;  %v4166_v41 = vld [vmem:[#allocation2 + $0xd0] sm:$0xff]  ;;  %v3865_v45 = vmax.f32 %v3358_v48, %v3359_v43  ;;  %v3093_v31 = vpop.f32.mrb[132].mxu1  ;;  %3863 = vmax.xlane.f32.xlu0 %v3862_v0  ;;  %v3401_v55 = vld [vmem:[#allocation2 + $0x108] sm:$0xff] }
 0x415   : > { %v3753_v39 = vpop.xlane.xlu1 %3752  ;;  %4294 = vst.msk [vmem:[%s6516_s23 + $0xd0] sm:$0xff] %vm356_vm1, %v4166_v41  ;;  %4037 = vst.msk [vmem:[#allocation2 + $0xe0] sm:$0xff] %vm356_vm1, %v3908_v38  ;;  %v3094_v61 = vadd.f32 %v3093_v31, %v6468_v59  ;;  %v3095_v24 = vpop.f32.mrb[133].mxu1  ;;  %v3458_v38 = vld [vmem:[#allocation2 + $0x2d0] sm:$0xff] }
 0x416   : > { %v3965_v53 = vmax.f32 %v3453_v6, %v3753_v39  ;;  %v3096_v33 = vadd.f32 %v3095_v24, %v6468_v59  ;;  %v3756_v21 = vpop.xlane.xlu0 %3755  ;;  %v3097_v49 = vpop.f32.mrb[134].mxu1  ;;  %3866 = vmax.xlane.f32.xlu1 %v3865_v45  ;;  %v3402_v24 = vld [vmem:[#allocation2 + $0x110] sm:$0xff] }
 0x417   : > { %v4223_v20 = vld [vmem:[#allocation2 + $0x298] sm:$0xff]  ;;  %v3360_v19 = vmax.f32 %v3094_v61, 0.0  ;;  %v3966_v42 = vmax.f32 %v3454_v12, %v3756_v21  ;;  %v3098_v15 = vadd.f32 %v3097_v49, %v6466_v34  ;;  %v3099_v26 = vpop.f32.mrb[135].mxu1 }
 0x418   : > { %4351 = vst.msk [vmem:[%s6516_s23 + $0x298] sm:$0xff] %vm356_vm1, %v4223_v20  ;;  %4094 = vst.msk [vmem:[#allocation2 + $0x2a8] sm:$0xff] %vm356_vm1, %v3965_v53  ;;  %v4224_v46 = vld [vmem:[#allocation2 + $0x2a0] sm:$0xff]  ;;  %v3361_v25 = vmax.f32 %v3096_v33, 0.0  ;;  %v3100_v59 = vadd.f32 %v3099_v26, %v6466_v34 }
 0x419   : > { %v3585_v9 = vpop.xlane.xlu1 %3584  ;;  %4352 = vst.msk [vmem:[%s6516_s23 + $0x2a0] sm:$0xff] %vm356_vm1, %v4224_v46  ;;  %4095 = vst.msk [vmem:[#allocation2 + $0x2b0] sm:$0xff] %vm356_vm1, %v3966_v42  ;;  %v3362_v62 = vmax.f32 %v3098_v15, 0.0  ;;  %v3460_v15 = vld [vmem:[#allocation2 + $0x2e0] sm:$0xff] }
 0x41a   : > { %v3909_v8 = vmax.f32 %v3397_v11, %v3585_v9  ;;  %v3868_v17 = vmax.f32 %v3360_v19, %v3361_v25  ;;  %v3363_v52 = vmax.f32 %v3100_v59, 0.0  ;;  %v3588_v22 = vpop.xlane.xlu0 %3587  ;;  %v3459_v9 = vld [vmem:[#allocation2 + $0x2d8] sm:$0xff] }
 0x41b   : > { %v4167_v37 = vld [vmem:[#allocation2 + $0xd8] sm:$0xff]  ;;  %v3910_v56 = vmax.f32 %v3398_v4, %v3588_v22  ;;  %v3461_v4 = vld [vmem:[#allocation2 + $0x2e8] sm:$0xff] }
 0x41c   : > { %4295 = vst.msk [vmem:[%s6516_s23 + $0xd8] sm:$0xff] %vm356_vm1, %v4167_v37  ;;  %4038 = vst.msk [vmem:[#allocation2 + $0xe8] sm:$0xff] %vm356_vm1, %v3909_v8  ;;  %v4168_v13 = vld [vmem:[#allocation2 + $0xe0] sm:$0xff]  ;;  %v3871_v14 = vmax.f32 %v3362_v62, %v3363_v52  ;;  %v3103_v34 = vpop.f32.mrb[136].mxu1  ;;  %3869 = vmax.xlane.f32.xlu0 %v3868_v17  ;;  %v3403_v19 = vld [vmem:[#allocation2 + $0x118] sm:$0xff] }
 0x41d   : > { %v3759_v51 = vpop.xlane.xlu1 %3758  ;;  %4296 = vst.msk [vmem:[%s6516_s23 + $0xe0] sm:$0xff] %vm356_vm1, %v4168_v13  ;;  %4039 = vst.msk [vmem:[#allocation2 + $0xf0] sm:$0xff] %vm356_vm1, %v3910_v56  ;;  %v3104_v5 = vadd.f32 %v3103_v34, %v6481_v60  ;;  %v3105_v30 = vpop.f32.mrb[137].mxu1  ;;  %v3405_v56 = vld [vmem:[#allocation2 + $0x128] sm:$0xff]  ;;  %v3462_v13 = vld [vmem:[#allocation2 + $0x2f0] sm:$0xff] }
 0x41e   : > { %v3967_v7 = vmax.f32 %v3455_v54, %v3759_v51  ;;  %v3106_v36 = vadd.f32 %v3105_v30, %v6481_v60  ;;  %v3762_v63 = vpop.xlane.xlu0 %3761  ;;  %v3107_v1 = vpop.f32.mrb[138].mxu1  ;;  %3872 = vmax.xlane.f32.xlu1 %v3871_v14  ;;  %v3404_v51 = vld [vmem:[#allocation2 + $0x120] sm:$0xff]  ;;  %v3463_v30 = vld [vmem:[#allocation2 + $0x2f8] sm:$0xff] }
 0x41f   : > { %v4225_v23 = vld [vmem:[#allocation2 + $0x2a8] sm:$0xff]  ;;  %v3364_v29 = vmax.f32 %v3104_v5, 0.0  ;;  %v3968_v2 = vmax.f32 %v3456_v27, %v3762_v63  ;;  %v3108_v18 = vadd.f32 %v3107_v1, %v6479_v50  ;;  %v3109_v32 = vpop.f32.mrb[139].mxu1 }
 0x420   : > { %4353 = vst.msk [vmem:[%s6516_s23 + $0x2a8] sm:$0xff] %vm356_vm1, %v4225_v23  ;;  %4096 = vst.msk [vmem:[#allocation2 + $0x2b8] sm:$0xff] %vm356_vm1, %v3967_v7  ;;  %v4226_v47 = vld [vmem:[#allocation2 + $0x2b0] sm:$0xff]  ;;  %v3365_v6 = vmax.f32 %v3106_v36, 0.0  ;;  %v3110_v60 = vadd.f32 %v3109_v32, %v6479_v50 }
 0x421   : > { %v3591_v3 = vpop.xlane.xlu1 %3590  ;;  %4354 = vst.msk [vmem:[%s6516_s23 + $0x2b0] sm:$0xff] %vm356_vm1, %v4226_v47  ;;  %4097 = vst.msk [vmem:[#allocation2 + $0x2c0] sm:$0xff] %vm356_vm1, %v3968_v2  ;;  %v3366_v10 = vmax.f32 %v3108_v18, 0.0  ;;  %v3406_v36 = vld [vmem:[#allocation2 + $0x130] sm:$0xff]  ;;  %v3407_v18 = vld [vmem:[#allocation2 + $0x138] sm:$0xff] }
 0x422   : > { %v3911_v58 = vmax.f32 %v3399_v44, %v3591_v3  ;;  %v3874_v16 = vmax.f32 %v3364_v29, %v3365_v6  ;;  %v3367_v48 = vmax.f32 %v3110_v60, 0.0  ;;  %v3594_v0 = vpop.xlane.xlu0 %3593 }
 0x423   : > { %v4169_v57 = vld [vmem:[#allocation2 + $0xe8] sm:$0xff]  ;;  %v3912_v53 = vmax.f32 %v3400_v40, %v3594_v0 }
 0x424   : > { %4297 = vst.msk [vmem:[%s6516_s23 + $0xe8] sm:$0xff] %vm356_vm1, %v4169_v57  ;;  %4040 = vst.msk [vmem:[#allocation2 + $0xf8] sm:$0xff] %vm356_vm1, %v3911_v58  ;;  %v4170_v20 = vld [vmem:[#allocation2 + $0xf0] sm:$0xff]  ;;  %v3877_v50 = vmax.f32 %v3366_v10, %v3367_v48  ;;  %3875 = vmax.xlane.f32.xlu0 %v3874_v16  ;;  %v3408_v48 = vld [vmem:[#allocation2 + $0x140] sm:$0xff] }
 0x425   : > { %v3765_v35 = vpop.xlane.xlu1 %3764  ;;  %4298 = vst.msk [vmem:[%s6516_s23 + $0xf0] sm:$0xff] %vm356_vm1, %v4170_v20  ;;  %4041 = vst.msk [vmem:[#allocation2 + $0x100] sm:$0xff] %vm356_vm1, %v3912_v53  ;;  %v3409_v20 = vld [vmem:[#allocation2 + $0x148] sm:$0xff] }
 0x426   : > { %v3969_v39 = vmax.f32 %v3457_v28, %v3765_v35  ;;  %v3768_v45 = vpop.xlane.xlu0 %3767  ;;  %3878 = vmax.xlane.f32.xlu1 %v3877_v50  ;;  %v3464_v28 = vld [vmem:[#allocation2 + $0x300] sm:$0xff]  ;;  %v3465_v35 = vld [vmem:[#allocation2 + $0x308] sm:$0xff] }
 0x427   : > { %v4227_v43 = vld [vmem:[#allocation2 + $0x2b8] sm:$0xff]  ;;  %v3970_v12 = vmax.f32 %v3458_v38, %v3768_v45  ;;  %v3466_v38 = vld [vmem:[#allocation2 + $0x310] sm:$0xff] }
 0x428   : > { %4355 = vst.msk [vmem:[%s6516_s23 + $0x2b8] sm:$0xff] %vm356_vm1, %v4227_v43  ;;  %4098 = vst.msk [vmem:[#allocation2 + $0x2c8] sm:$0xff] %vm356_vm1, %v3969_v39  ;;  %v4228_v61 = vld [vmem:[#allocation2 + $0x2c0] sm:$0xff] }
 0x429   : > { %v3597_v11 = vpop.xlane.xlu1 %3596  ;;  %4356 = vst.msk [vmem:[%s6516_s23 + $0x2c0] sm:$0xff] %vm356_vm1, %v4228_v61  ;;  %4099 = vst.msk [vmem:[#allocation2 + $0x2d0] sm:$0xff] %vm356_vm1, %v3970_v12 }
 0x42a   : > { %v3913_v41 = vmax.f32 %v3401_v55, %v3597_v11  ;;  %v3600_v21 = vpop.xlane.xlu0 %3599 }
 0x42b   : > { %v4171_v31 = vld [vmem:[#allocation2 + $0xf8] sm:$0xff]  ;;  %v3914_v37 = vmax.f32 %v3402_v24, %v3600_v21  ;;  %v3410_v24 = vld [vmem:[#allocation2 + $0x150] sm:$0xff] }
 0x42c   : > { %4299 = vst.msk [vmem:[%s6516_s23 + $0xf8] sm:$0xff] %vm356_vm1, %v4171_v31  ;;  %4042 = vst.msk [vmem:[#allocation2 + $0x108] sm:$0xff] %vm356_vm1, %v3913_v41  ;;  %v4172_v42 = vld [vmem:[#allocation2 + $0x100] sm:$0xff] }
 0x42d   : > { %v3771_v8 = vpop.xlane.xlu1 %3770  ;;  %4300 = vst.msk [vmem:[%s6516_s23 + $0x100] sm:$0xff] %vm356_vm1, %v4172_v42  ;;  %4043 = vst.msk [vmem:[#allocation2 + $0x110] sm:$0xff] %vm356_vm1, %v3914_v37 }
 0x42e   : > { %v3971_v33 = vmax.f32 %v3459_v9, %v3771_v8  ;;  %v3774_v46 = vpop.xlane.xlu0 %3773  ;;  %v3467_v9 = vld [vmem:[#allocation2 + $0x318] sm:$0xff] }
 0x42f   : > { %v4229_v49 = vld [vmem:[#allocation2 + $0x2c8] sm:$0xff]  ;;  %v3972_v59 = vmax.f32 %v3460_v15, %v3774_v46  ;;  %v3468_v15 = vld [vmem:[#allocation2 + $0x320] sm:$0xff] }
 0x430   : > { %4357 = vst.msk [vmem:[%s6516_s23 + $0x2c8] sm:$0xff] %vm356_vm1, %v4229_v49  ;;  %4100 = vst.msk [vmem:[#allocation2 + $0x2d8] sm:$0xff] %vm356_vm1, %v3971_v33  ;;  %v4230_v62 = vld [vmem:[#allocation2 + $0x2d0] sm:$0xff] }
 0x431   : > { %v3603_v26 = vpop.xlane.xlu1 %3602  ;;  %4358 = vst.msk [vmem:[%s6516_s23 + $0x2d0] sm:$0xff] %vm356_vm1, %v4230_v62  ;;  %4101 = vst.msk [vmem:[#allocation2 + $0x2e0] sm:$0xff] %vm356_vm1, %v3972_v59 }
 0x432   : > { %v3915_v54 = vmax.f32 %v3403_v19, %v3603_v26  ;;  %v3411_v19 = vld [vmem:[#allocation2 + $0x158] sm:$0xff] }
 0x433   : > { %v4173_v25 = vld [vmem:[#allocation2 + $0x108] sm:$0xff]  ;;  %v3606_v7 = vpop.xlane.xlu0 %3605 }
 0x434   : > { %4301 = vst.msk [vmem:[%s6516_s23 + $0x108] sm:$0xff] %vm356_vm1, %v4173_v25  ;;  %4044 = vst.msk [vmem:[#allocation2 + $0x118] sm:$0xff] %vm356_vm1, %v3915_v54  ;;  %v3916_v23 = vmax.f32 %v3404_v51, %v3606_v7  ;;  %v4174_v44 = vld [vmem:[#allocation2 + $0x110] sm:$0xff]  ;;  %v3412_v51 = vld [vmem:[#allocation2 + $0x160] sm:$0xff] }
 0x435   : > { %v3777_v17 = vpop.xlane.xlu1 %3776  ;;  %4302 = vst.msk [vmem:[%s6516_s23 + $0x110] sm:$0xff] %vm356_vm1, %v4174_v44 }
 0x436   : > { %v3973_v52 = vmax.f32 %v3461_v4, %v3777_v17  ;;  %4045 = vst.msk [vmem:[#allocation2 + $0x120] sm:$0xff] %vm356_vm1, %v3916_v23  ;;  %v3469_v4 = vld [vmem:[#allocation2 + $0x328] sm:$0xff] }
 0x437   : > { %v4231_v22 = vld [vmem:[#allocation2 + $0x2d8] sm:$0xff]  ;;  %v3780_v27 = vpop.xlane.xlu0 %3779 }
 0x438   : > { %4359 = vst.msk [vmem:[%s6516_s23 + $0x2d8] sm:$0xff] %vm356_vm1, %v4231_v22  ;;  %4102 = vst.msk [vmem:[#allocation2 + $0x2e8] sm:$0xff] %vm356_vm1, %v3973_v52  ;;  %v3974_v5 = vmax.f32 %v3462_v13, %v3780_v27  ;;  %v4232_v58 = vld [vmem:[#allocation2 + $0x2e0] sm:$0xff]  ;;  %v3470_v13 = vld [vmem:[#allocation2 + $0x330] sm:$0xff] }
 0x439   : > { %v3609_v14 = vpop.xlane.xlu1 %3608  ;;  %4360 = vst.msk [vmem:[%s6516_s23 + $0x2e0] sm:$0xff] %vm356_vm1, %v4232_v58 }
 0x43a   : > { %v3917_v34 = vmax.f32 %v3405_v56, %v3609_v14  ;;  %4103 = vst.msk [vmem:[#allocation2 + $0x2f0] sm:$0xff] %vm356_vm1, %v3974_v5  ;;  %v3413_v56 = vld [vmem:[#allocation2 + $0x168] sm:$0xff] }
 0x43b   : > { %v4175_v3 = vld [vmem:[#allocation2 + $0x118] sm:$0xff]  ;;  %v3612_v57 = vpop.xlane.xlu0 %3611 }
 0x43c   : > { %4303 = vst.msk [vmem:[%s6516_s23 + $0x118] sm:$0xff] %vm356_vm1, %v4175_v3  ;;  %4046 = vst.msk [vmem:[#allocation2 + $0x128] sm:$0xff] %vm356_vm1, %v3917_v34  ;;  %v3918_v2 = vmax.f32 %v3406_v36, %v3612_v57  ;;  %v3414_v36 = vld [vmem:[#allocation2 + $0x170] sm:$0xff] }
 0x43d   : > { %v3783_v63 = vpop.xlane.xlu1 %3782  ;;  %v4176_v32 = vld [vmem:[#allocation2 + $0x120] sm:$0xff] }
 0x43e   : > { %v3975_v1 = vmax.f32 %v3463_v30, %v3783_v63  ;;  %4304 = vst.msk [vmem:[%s6516_s23 + $0x120] sm:$0xff] %vm356_vm1, %v4176_v32  ;;  %4047 = vst.msk [vmem:[#allocation2 + $0x130] sm:$0xff] %vm356_vm1, %v3918_v2  ;;  %v3471_v30 = vld [vmem:[#allocation2 + $0x338] sm:$0xff] }
 0x43f   : > { %v4233_v29 = vld [vmem:[#allocation2 + $0x2e8] sm:$0xff]  ;;  %v3786_v60 = vpop.xlane.xlu0 %3785 }
 0x440   : > { %4361 = vst.msk [vmem:[%s6516_s23 + $0x2e8] sm:$0xff] %vm356_vm1, %v4233_v29  ;;  %4104 = vst.msk [vmem:[#allocation2 + $0x2f8] sm:$0xff] %vm356_vm1, %v3975_v1  ;;  %v3976_v10 = vmax.f32 %v3464_v28, %v3786_v60  ;;  %v3472_v28 = vld [vmem:[#allocation2 + $0x340] sm:$0xff] }
 0x441   : > { %v3615_v47 = vpop.xlane.xlu1 %3614  ;;  %v4234_v16 = vld [vmem:[#allocation2 + $0x2f0] sm:$0xff] }
 0x442   : > { %v3919_v6 = vmax.f32 %v3407_v18, %v3615_v47  ;;  %4362 = vst.msk [vmem:[%s6516_s23 + $0x2f0] sm:$0xff] %vm356_vm1, %v4234_v16  ;;  %4105 = vst.msk [vmem:[#allocation2 + $0x300] sm:$0xff] %vm356_vm1, %v3976_v10  ;;  %v3415_v18 = vld [vmem:[#allocation2 + $0x178] sm:$0xff] }
 0x443   : > { %v4177_v40 = vld [vmem:[#allocation2 + $0x128] sm:$0xff] }
 0x444   : > { %4305 = vst.msk [vmem:[%s6516_s23 + $0x128] sm:$0xff] %vm356_vm1, %v4177_v40  ;;  %4048 = vst.msk [vmem:[#allocation2 + $0x138] sm:$0xff] %vm356_vm1, %v3919_v6  ;;  %v3618_v43 = vpop.xlane.xlu0 %3617 }
 0x445   : > { %v3789_v39 = vpop.xlane.xlu1 %3788  ;;  %v3920_v55 = vmax.f32 %v3408_v48, %v3618_v43  ;;  %v4178_v50 = vld [vmem:[#allocation2 + $0x130] sm:$0xff]  ;;  %v3416_v48 = vld [vmem:[#allocation2 + $0x180] sm:$0xff] }
 0x446   : > { %v3977_v0 = vmax.f32 %v3465_v35, %v3789_v39  ;;  %4306 = vst.msk [vmem:[%s6516_s23 + $0x130] sm:$0xff] %vm356_vm1, %v4178_v50  ;;  %v3473_v35 = vld [vmem:[#allocation2 + $0x348] sm:$0xff] }
 0x447   : > { %v4235_v53 = vld [vmem:[#allocation2 + $0x2f8] sm:$0xff]  ;;  %4049 = vst.msk [vmem:[#allocation2 + $0x140] sm:$0xff] %vm356_vm1, %v3920_v55 }
 0x448   : > { %4363 = vst.msk [vmem:[%s6516_s23 + $0x2f8] sm:$0xff] %vm356_vm1, %v4235_v53  ;;  %4106 = vst.msk [vmem:[#allocation2 + $0x308] sm:$0xff] %vm356_vm1, %v3977_v0  ;;  %v3792_v45 = vpop.xlane.xlu0 %3791 }
 0x449   : > { %v3621_v11 = vpop.xlane.xlu1 %3620  ;;  %v3978_v12 = vmax.f32 %v3466_v38, %v3792_v45  ;;  %v4236_v61 = vld [vmem:[#allocation2 + $0x300] sm:$0xff]  ;;  %v3474_v38 = vld [vmem:[#allocation2 + $0x350] sm:$0xff] }
 0x44a   : > { %v3921_v41 = vmax.f32 %v3409_v20, %v3621_v11  ;;  %4364 = vst.msk [vmem:[%s6516_s23 + $0x300] sm:$0xff] %vm356_vm1, %v4236_v61  ;;  %v3417_v20 = vld [vmem:[#allocation2 + $0x188] sm:$0xff] }
 0x44b   : > { %v4179_v31 = vld [vmem:[#allocation2 + $0x138] sm:$0xff]  ;;  %4107 = vst.msk [vmem:[#allocation2 + $0x310] sm:$0xff] %vm356_vm1, %v3978_v12 }
 0x44c   : > { %4307 = vst.msk [vmem:[%s6516_s23 + $0x138] sm:$0xff] %vm356_vm1, %v4179_v31  ;;  %4050 = vst.msk [vmem:[#allocation2 + $0x148] sm:$0xff] %vm356_vm1, %v3921_v41  ;;  %v3624_v21 = vpop.xlane.xlu0 %3623 }
 0x44d   : > { %v3795_v8 = vpop.xlane.xlu1 %3794  ;;  %v3922_v37 = vmax.f32 %v3410_v24, %v3624_v21  ;;  %v3418_v24 = vld [vmem:[#allocation2 + $0x190] sm:$0xff] }
 0x44e   : > { %v3979_v33 = vmax.f32 %v3467_v9, %v3795_v8  ;;  %v4180_v42 = vld [vmem:[#allocation2 + $0x140] sm:$0xff]  ;;  %v3475_v9 = vld [vmem:[#allocation2 + $0x358] sm:$0xff] }
 0x44f   : > { %v4237_v49 = vld [vmem:[#allocation2 + $0x308] sm:$0xff]  ;;  %4308 = vst.msk [vmem:[%s6516_s23 + $0x140] sm:$0xff] %vm356_vm1, %v4180_v42  ;;  %4051 = vst.msk [vmem:[#allocation2 + $0x150] sm:$0xff] %vm356_vm1, %v3922_v37 }
 0x450   : > { %4365 = vst.msk [vmem:[%s6516_s23 + $0x308] sm:$0xff] %vm356_vm1, %v4237_v49  ;;  %4108 = vst.msk [vmem:[#allocation2 + $0x318] sm:$0xff] %vm356_vm1, %v3979_v33  ;;  %v3798_v46 = vpop.xlane.xlu0 %3797 }
 0x451   : > { %v3627_v26 = vpop.xlane.xlu1 %3626  ;;  %v3980_v59 = vmax.f32 %v3468_v15, %v3798_v46  ;;  %v3476_v15 = vld [vmem:[#allocation2 + $0x360] sm:$0xff] }
 0x452   : > { %v3923_v54 = vmax.f32 %v3411_v19, %v3627_v26  ;;  %v4238_v62 = vld [vmem:[#allocation2 + $0x310] sm:$0xff]  ;;  %v3419_v19 = vld [vmem:[#allocation2 + $0x198] sm:$0xff] }
 0x453   : > { %v4181_v25 = vld [vmem:[#allocation2 + $0x148] sm:$0xff]  ;;  %4366 = vst.msk [vmem:[%s6516_s23 + $0x310] sm:$0xff] %vm356_vm1, %v4238_v62  ;;  %4109 = vst.msk [vmem:[#allocation2 + $0x320] sm:$0xff] %vm356_vm1, %v3980_v59 }
 0x454   : > { %4309 = vst.msk [vmem:[%s6516_s23 + $0x148] sm:$0xff] %vm356_vm1, %v4181_v25  ;;  %4052 = vst.msk [vmem:[#allocation2 + $0x158] sm:$0xff] %vm356_vm1, %v3923_v54  ;;  %v3630_v7 = vpop.xlane.xlu0 %3629 }
 0x455   : > { %v3801_v17 = vpop.xlane.xlu1 %3800  ;;  %v3924_v23 = vmax.f32 %v3412_v51, %v3630_v7  ;;  %v3420_v51 = vld [vmem:[#allocation2 + $0x1a0] sm:$0xff] }
 0x456   : > { %v3981_v52 = vmax.f32 %v3469_v4, %v3801_v17  ;;  %v4182_v44 = vld [vmem:[#allocation2 + $0x150] sm:$0xff]  ;;  %v3477_v4 = vld [vmem:[#allocation2 + $0x368] sm:$0xff] }
 0x457   : > { %v4239_v22 = vld [vmem:[#allocation2 + $0x318] sm:$0xff]  ;;  %4310 = vst.msk [vmem:[%s6516_s23 + $0x150] sm:$0xff] %vm356_vm1, %v4182_v44  ;;  %4053 = vst.msk [vmem:[#allocation2 + $0x160] sm:$0xff] %vm356_vm1, %v3924_v23 }
 0x458   : > { %4367 = vst.msk [vmem:[%s6516_s23 + $0x318] sm:$0xff] %vm356_vm1, %v4239_v22  ;;  %4110 = vst.msk [vmem:[#allocation2 + $0x328] sm:$0xff] %vm356_vm1, %v3981_v52  ;;  %v3804_v27 = vpop.xlane.xlu0 %3803 }
 0x459   : > { %v3633_v14 = vpop.xlane.xlu1 %3632  ;;  %v3982_v5 = vmax.f32 %v3470_v13, %v3804_v27  ;;  %v3478_v13 = vld [vmem:[#allocation2 + $0x370] sm:$0xff] }
 0x45a   : > { %v3925_v34 = vmax.f32 %v3413_v56, %v3633_v14  ;;  %v4240_v58 = vld [vmem:[#allocation2 + $0x320] sm:$0xff]  ;;  %v3421_v56 = vld [vmem:[#allocation2 + $0x1a8] sm:$0xff] }
 0x45b   : > { %v4183_v3 = vld [vmem:[#allocation2 + $0x158] sm:$0xff]  ;;  %4368 = vst.msk [vmem:[%s6516_s23 + $0x320] sm:$0xff] %vm356_vm1, %v4240_v58  ;;  %4111 = vst.msk [vmem:[#allocation2 + $0x330] sm:$0xff] %vm356_vm1, %v3982_v5 }
 0x45c   : > { %4311 = vst.msk [vmem:[%s6516_s23 + $0x158] sm:$0xff] %vm356_vm1, %v4183_v3  ;;  %4054 = vst.msk [vmem:[#allocation2 + $0x168] sm:$0xff] %vm356_vm1, %v3925_v34  ;;  %v3636_v57 = vpop.xlane.xlu0 %3635 }
 0x45d   : > { %v3807_v63 = vpop.xlane.xlu1 %3806  ;;  %v3926_v2 = vmax.f32 %v3414_v36, %v3636_v57  ;;  %v3422_v36 = vld [vmem:[#allocation2 + $0x1b0] sm:$0xff] }
 0x45e   : > { %v3983_v1 = vmax.f32 %v3471_v30, %v3807_v63  ;;  %v4184_v32 = vld [vmem:[#allocation2 + $0x160] sm:$0xff]  ;;  %v3479_v30 = vld [vmem:[#allocation2 + $0x378] sm:$0xff] }
 0x45f   : > { %v4241_v29 = vld [vmem:[#allocation2 + $0x328] sm:$0xff]  ;;  %4312 = vst.msk [vmem:[%s6516_s23 + $0x160] sm:$0xff] %vm356_vm1, %v4184_v32  ;;  %4055 = vst.msk [vmem:[#allocation2 + $0x170] sm:$0xff] %vm356_vm1, %v3926_v2 }
 0x460   : > { %4369 = vst.msk [vmem:[%s6516_s23 + $0x328] sm:$0xff] %vm356_vm1, %v4241_v29  ;;  %4112 = vst.msk [vmem:[#allocation2 + $0x338] sm:$0xff] %vm356_vm1, %v3983_v1  ;;  %v3810_v60 = vpop.xlane.xlu0 %3809 }
 0x461   : > { %v3639_v47 = vpop.xlane.xlu1 %3638  ;;  %v3984_v10 = vmax.f32 %v3472_v28, %v3810_v60  ;;  %v3480_v28 = vld [vmem:[#allocation2 + $0x380] sm:$0xff] }
 0x462   : > { %v3927_v6 = vmax.f32 %v3415_v18, %v3639_v47  ;;  %v4242_v16 = vld [vmem:[#allocation2 + $0x330] sm:$0xff]  ;;  %v3423_v18 = vld [vmem:[#allocation2 + $0x1b8] sm:$0xff] }
 0x463   : > { %v4185_v40 = vld [vmem:[#allocation2 + $0x168] sm:$0xff]  ;;  %4370 = vst.msk [vmem:[%s6516_s23 + $0x330] sm:$0xff] %vm356_vm1, %v4242_v16  ;;  %4113 = vst.msk [vmem:[#allocation2 + $0x340] sm:$0xff] %vm356_vm1, %v3984_v10 }
 0x464   : > { %4313 = vst.msk [vmem:[%s6516_s23 + $0x168] sm:$0xff] %vm356_vm1, %v4185_v40  ;;  %4056 = vst.msk [vmem:[#allocation2 + $0x178] sm:$0xff] %vm356_vm1, %v3927_v6  ;;  %v3642_v43 = vpop.xlane.xlu0 %3641 }
 0x465   : > { %v3813_v39 = vpop.xlane.xlu1 %3812  ;;  %v3928_v55 = vmax.f32 %v3416_v48, %v3642_v43  ;;  %v3424_v48 = vld [vmem:[#allocation2 + $0x1c0] sm:$0xff] }
 0x466   : > { %v3985_v0 = vmax.f32 %v3473_v35, %v3813_v39  ;;  %v4186_v50 = vld [vmem:[#allocation2 + $0x170] sm:$0xff]  ;;  %v3481_v35 = vld [vmem:[#allocation2 + $0x388] sm:$0xff] }
 0x467   : > { %v4243_v53 = vld [vmem:[#allocation2 + $0x338] sm:$0xff]  ;;  %4314 = vst.msk [vmem:[%s6516_s23 + $0x170] sm:$0xff] %vm356_vm1, %v4186_v50  ;;  %4057 = vst.msk [vmem:[#allocation2 + $0x180] sm:$0xff] %vm356_vm1, %v3928_v55 }
 0x468   : > { %4371 = vst.msk [vmem:[%s6516_s23 + $0x338] sm:$0xff] %vm356_vm1, %v4243_v53  ;;  %4114 = vst.msk [vmem:[#allocation2 + $0x348] sm:$0xff] %vm356_vm1, %v3985_v0  ;;  %v3816_v45 = vpop.xlane.xlu0 %3815 }
 0x469   : > { %v3645_v11 = vpop.xlane.xlu1 %3644  ;;  %v3986_v12 = vmax.f32 %v3474_v38, %v3816_v45  ;;  %v3482_v38 = vld [vmem:[#allocation2 + $0x390] sm:$0xff] }
 0x46a   : > { %v3929_v41 = vmax.f32 %v3417_v20, %v3645_v11  ;;  %v4244_v61 = vld [vmem:[#allocation2 + $0x340] sm:$0xff]  ;;  %v3425_v20 = vld [vmem:[#allocation2 + $0x1c8] sm:$0xff] }
 0x46b   : > { %v4187_v31 = vld [vmem:[#allocation2 + $0x178] sm:$0xff]  ;;  %4372 = vst.msk [vmem:[%s6516_s23 + $0x340] sm:$0xff] %vm356_vm1, %v4244_v61  ;;  %4115 = vst.msk [vmem:[#allocation2 + $0x350] sm:$0xff] %vm356_vm1, %v3986_v12 }
 0x46c   : > { %4315 = vst.msk [vmem:[%s6516_s23 + $0x178] sm:$0xff] %vm356_vm1, %v4187_v31  ;;  %4058 = vst.msk [vmem:[#allocation2 + $0x188] sm:$0xff] %vm356_vm1, %v3929_v41  ;;  %v3648_v21 = vpop.xlane.xlu0 %3647 }
 0x46d   : > { %v3819_v8 = vpop.xlane.xlu1 %3818  ;;  %v3930_v37 = vmax.f32 %v3418_v24, %v3648_v21  ;;  %v3484_v24 = vld [vmem:[#allocation2 + $0x3a0] sm:$0xff] }
 0x46e   : > { %v3987_v33 = vmax.f32 %v3475_v9, %v3819_v8  ;;  %v4188_v42 = vld [vmem:[#allocation2 + $0x180] sm:$0xff]  ;;  %v3483_v9 = vld [vmem:[#allocation2 + $0x398] sm:$0xff] }
 0x46f   : > { %v4245_v49 = vld [vmem:[#allocation2 + $0x348] sm:$0xff]  ;;  %4316 = vst.msk [vmem:[%s6516_s23 + $0x180] sm:$0xff] %vm356_vm1, %v4188_v42  ;;  %4059 = vst.msk [vmem:[#allocation2 + $0x190] sm:$0xff] %vm356_vm1, %v3930_v37 }
 0x470   : > { %4373 = vst.msk [vmem:[%s6516_s23 + $0x348] sm:$0xff] %vm356_vm1, %v4245_v49  ;;  %4116 = vst.msk [vmem:[#allocation2 + $0x358] sm:$0xff] %vm356_vm1, %v3987_v33  ;;  %v3822_v46 = vpop.xlane.xlu0 %3821 }
 0x471   : > { %v3651_v26 = vpop.xlane.xlu1 %3650  ;;  %v3988_v59 = vmax.f32 %v3476_v15, %v3822_v46  ;;  %v3486_v46 = vld [vmem:[#allocation2 + $0x3b0] sm:$0xff] }
 0x472   : > { %v3931_v54 = vmax.f32 %v3419_v19, %v3651_v26  ;;  %v4246_v62 = vld [vmem:[#allocation2 + $0x350] sm:$0xff]  ;;  %v3485_v19 = vld [vmem:[#allocation2 + $0x3a8] sm:$0xff] }
 0x473   : > { %v4189_v25 = vld [vmem:[#allocation2 + $0x188] sm:$0xff]  ;;  %4374 = vst.msk [vmem:[%s6516_s23 + $0x350] sm:$0xff] %vm356_vm1, %v4246_v62  ;;  %4117 = vst.msk [vmem:[#allocation2 + $0x360] sm:$0xff] %vm356_vm1, %v3988_v59 }
 0x474   : > { %4317 = vst.msk [vmem:[%s6516_s23 + $0x188] sm:$0xff] %vm356_vm1, %v4189_v25  ;;  %4060 = vst.msk [vmem:[#allocation2 + $0x198] sm:$0xff] %vm356_vm1, %v3931_v54  ;;  %v3654_v7 = vpop.xlane.xlu0 %3653 }
 0x475   : > { %v3825_v17 = vpop.xlane.xlu1 %3824  ;;  %v3932_v23 = vmax.f32 %v3420_v51, %v3654_v7 }
 0x476   : > { %v3989_v52 = vmax.f32 %v3477_v4, %v3825_v17  ;;  %v4190_v44 = vld [vmem:[#allocation2 + $0x190] sm:$0xff]  ;;  %v3487_v4 = vld [vmem:[#allocation2 + $0x3b8] sm:$0xff] }
 0x477   : > { %v4247_v22 = vld [vmem:[#allocation2 + $0x358] sm:$0xff]  ;;  %4318 = vst.msk [vmem:[%s6516_s23 + $0x190] sm:$0xff] %vm356_vm1, %v4190_v44  ;;  %4061 = vst.msk [vmem:[#allocation2 + $0x1a0] sm:$0xff] %vm356_vm1, %v3932_v23  ;;  %v3488_v23 = vld [vmem:[#allocation2 + $0x3c0] sm:$0xff] }
 0x478   : > { %4375 = vst.msk [vmem:[%s6516_s23 + $0x358] sm:$0xff] %vm356_vm1, %v4247_v22  ;;  %4118 = vst.msk [vmem:[#allocation2 + $0x368] sm:$0xff] %vm356_vm1, %v3989_v52  ;;  %v3828_v27 = vpop.xlane.xlu0 %3827  ;;  %v3489_v44 = vld [vmem:[#allocation2 + $0x3c8] sm:$0xff] }
 0x479   : > { %v3657_v14 = vpop.xlane.xlu1 %3656  ;;  %v3990_v5 = vmax.f32 %v3478_v13, %v3828_v27 }
 0x47a   : > { %v3933_v34 = vmax.f32 %v3421_v56, %v3657_v14  ;;  %v4248_v58 = vld [vmem:[#allocation2 + $0x360] sm:$0xff] }
 0x47b   : > { %v4191_v3 = vld [vmem:[#allocation2 + $0x198] sm:$0xff]  ;;  %4376 = vst.msk [vmem:[%s6516_s23 + $0x360] sm:$0xff] %vm356_vm1, %v4248_v58  ;;  %4119 = vst.msk [vmem:[#allocation2 + $0x370] sm:$0xff] %vm356_vm1, %v3990_v5  ;;  %v3490_v5 = vld [vmem:[#allocation2 + $0x3d0] sm:$0xff] }
 0x47c   : > { %4319 = vst.msk [vmem:[%s6516_s23 + $0x198] sm:$0xff] %vm356_vm1, %v4191_v3  ;;  %4062 = vst.msk [vmem:[#allocation2 + $0x1a8] sm:$0xff] %vm356_vm1, %v3933_v34  ;;  %v3660_v57 = vpop.xlane.xlu0 %3659  ;;  %v3491_v58 = vld [vmem:[#allocation2 + $0x3d8] sm:$0xff] }
 0x47d   : > { %v3831_v63 = vpop.xlane.xlu1 %3830  ;;  %v3934_v2 = vmax.f32 %v3422_v36, %v3660_v57 }
 0x47e   : > { %v3991_v1 = vmax.f32 %v3479_v30, %v3831_v63  ;;  %v4192_v32 = vld [vmem:[#allocation2 + $0x1a0] sm:$0xff] }
 0x47f   : > { %v4249_v29 = vld [vmem:[#allocation2 + $0x368] sm:$0xff]  ;;  %4320 = vst.msk [vmem:[%s6516_s23 + $0x1a0] sm:$0xff] %vm356_vm1, %v4192_v32  ;;  %4063 = vst.msk [vmem:[#allocation2 + $0x1b0] sm:$0xff] %vm356_vm1, %v3934_v2  ;;  %v3492_v2 = vld [vmem:[#allocation2 + $0x3e0] sm:$0xff] }
 0x480   : > { %4377 = vst.msk [vmem:[%s6516_s23 + $0x368] sm:$0xff] %vm356_vm1, %v4249_v29  ;;  %4120 = vst.msk [vmem:[#allocation2 + $0x378] sm:$0xff] %vm356_vm1, %v3991_v1  ;;  %v3834_v60 = vpop.xlane.xlu0 %3833  ;;  %v3493_v32 = vld [vmem:[#allocation2 + $0x3e8] sm:$0xff] }
 0x481   : > { %v3663_v47 = vpop.xlane.xlu1 %3662  ;;  %v3992_v10 = vmax.f32 %v3480_v28, %v3834_v60 }
 0x482   : > { %v3935_v6 = vmax.f32 %v3423_v18, %v3663_v47  ;;  %v4250_v16 = vld [vmem:[#allocation2 + $0x370] sm:$0xff] }
 0x483   : > { %v4193_v40 = vld [vmem:[#allocation2 + $0x1a8] sm:$0xff]  ;;  %4378 = vst.msk [vmem:[%s6516_s23 + $0x370] sm:$0xff] %vm356_vm1, %v4250_v16  ;;  %4121 = vst.msk [vmem:[#allocation2 + $0x380] sm:$0xff] %vm356_vm1, %v3992_v10  ;;  %v3494_v10 = vld [vmem:[#allocation2 + $0x3f0] sm:$0xff] }
 0x484   : > { %4321 = vst.msk [vmem:[%s6516_s23 + $0x1a8] sm:$0xff] %vm356_vm1, %v4193_v40  ;;  %4064 = vst.msk [vmem:[#allocation2 + $0x1b8] sm:$0xff] %vm356_vm1, %v3935_v6  ;;  %v3666_v43 = vpop.xlane.xlu0 %3665  ;;  %v3495_v16 = vld [vmem:[#allocation2 + $0x3f8] sm:$0xff] }
 0x485   : > { %v3837_v39 = vpop.xlane.xlu1 %3836  ;;  %v3936_v55 = vmax.f32 %v3424_v48, %v3666_v43 }
 0x486   : > { %v3993_v0 = vmax.f32 %v3481_v35, %v3837_v39  ;;  %v4194_v50 = vld [vmem:[#allocation2 + $0x1b0] sm:$0xff] }
 0x487   : > { %v4251_v53 = vld [vmem:[#allocation2 + $0x378] sm:$0xff]  ;;  %4322 = vst.msk [vmem:[%s6516_s23 + $0x1b0] sm:$0xff] %vm356_vm1, %v4194_v50  ;;  %4065 = vst.msk [vmem:[#allocation2 + $0x1c0] sm:$0xff] %vm356_vm1, %v3936_v55 }
 0x488   : > { %4379 = vst.msk [vmem:[%s6516_s23 + $0x378] sm:$0xff] %vm356_vm1, %v4251_v53  ;;  %4122 = vst.msk [vmem:[#allocation2 + $0x388] sm:$0xff] %vm356_vm1, %v3993_v0  ;;  %v3840_v45 = vpop.xlane.xlu0 %3839 }
 0x489   : > { %v3669_v11 = vpop.xlane.xlu1 %3668  ;;  %v3994_v12 = vmax.f32 %v3482_v38, %v3840_v45 }
 0x48a   : > { %v3937_v41 = vmax.f32 %v3425_v20, %v3669_v11  ;;  %v4252_v61 = vld [vmem:[#allocation2 + $0x380] sm:$0xff] }
 0x48b   : > { %v4195_v31 = vld [vmem:[#allocation2 + $0x1b8] sm:$0xff]  ;;  %4380 = vst.msk [vmem:[%s6516_s23 + $0x380] sm:$0xff] %vm356_vm1, %v4252_v61  ;;  %4123 = vst.msk [vmem:[#allocation2 + $0x390] sm:$0xff] %vm356_vm1, %v3994_v12 }
 0x48c   : > { %4323 = vst.msk [vmem:[%s6516_s23 + $0x1b8] sm:$0xff] %vm356_vm1, %v4195_v31  ;;  %4066 = vst.msk [vmem:[#allocation2 + $0x1c8] sm:$0xff] %vm356_vm1, %v3937_v41  ;;  %v3846_v21 = vpop.xlane.xlu0 %3845 }
 0x48d   : > { %v3843_v8 = vpop.xlane.xlu1 %3842  ;;  %v3996_v37 = vmax.f32 %v3484_v24, %v3846_v21 }
 0x48e   : > { %v3995_v33 = vmax.f32 %v3483_v9, %v3843_v8  ;;  %v4196_v42 = vld [vmem:[#allocation2 + $0x1c0] sm:$0xff] }
 0x48f   : > { %v4253_v49 = vld [vmem:[#allocation2 + $0x388] sm:$0xff]  ;;  %4324 = vst.msk [vmem:[%s6516_s23 + $0x1c0] sm:$0xff] %vm356_vm1, %v4196_v42  ;;  %4125 = vst.msk [vmem:[#allocation2 + $0x3a0] sm:$0xff] %vm356_vm1, %v3996_v37 }
 0x490   : > { %4381 = vst.msk [vmem:[%s6516_s23 + $0x388] sm:$0xff] %vm356_vm1, %v4253_v49  ;;  %4124 = vst.msk [vmem:[#allocation2 + $0x398] sm:$0xff] %vm356_vm1, %v3995_v33  ;;  %v3852_v59 = vpop.xlane.xlu0 %3851 }
 0x491   : > { %v3849_v15 = vpop.xlane.xlu1 %3848  ;;  %v3998_v62 = vmax.f32 %v3486_v46, %v3852_v59 }
 0x492   : > { %v3997_v26 = vmax.f32 %v3485_v19, %v3849_v15  ;;  %v4254_v25 = vld [vmem:[#allocation2 + $0x390] sm:$0xff] }
 0x493   : > { %v4197_v54 = vld [vmem:[#allocation2 + $0x1c8] sm:$0xff]  ;;  %4382 = vst.msk [vmem:[%s6516_s23 + $0x390] sm:$0xff] %vm356_vm1, %v4254_v25  ;;  %4127 = vst.msk [vmem:[#allocation2 + $0x3b0] sm:$0xff] %vm356_vm1, %v3998_v62 }
 0x494   : > { %4325 = vst.msk [vmem:[%s6516_s23 + $0x1c8] sm:$0xff] %vm356_vm1, %v4197_v54  ;;  %4126 = vst.msk [vmem:[#allocation2 + $0x3a8] sm:$0xff] %vm356_vm1, %v3997_v26 }
 0x495   : > { %v3855_v17 = vpop.xlane.xlu1 %3854 }
 0x496   : > { %v4256_v52 = vld [vmem:[#allocation2 + $0x3a0] sm:$0xff]  ;;  %v3999_v7 = vmax.f32 %v3487_v4, %v3855_v17 }
 0x497   : > { %v4255_v51 = vld [vmem:[#allocation2 + $0x398] sm:$0xff]  ;;  %4384 = vst.msk [vmem:[%s6516_s23 + $0x3a0] sm:$0xff] %vm356_vm1, %v4256_v52 }
 0x498   : > { %4383 = vst.msk [vmem:[%s6516_s23 + $0x398] sm:$0xff] %vm356_vm1, %v4255_v51  ;;  %4128 = vst.msk [vmem:[#allocation2 + $0x3b8] sm:$0xff] %vm356_vm1, %v3999_v7 }
 0x499   : > { %v3858_v56 = vpop.xlane.xlu0 %3857 }
 0x49a   : > { %v4000_v13 = vmax.f32 %v3488_v23, %v3858_v56  ;;  %v4258_v14 = vld [vmem:[#allocation2 + $0x3b0] sm:$0xff] }
 0x49b   : > { %v4257_v22 = vld [vmem:[#allocation2 + $0x3a8] sm:$0xff]  ;;  %v3861_v34 = vpop.xlane.xlu1 %3860  ;;  %4386 = vst.msk [vmem:[%s6516_s23 + $0x3b0] sm:$0xff] %vm356_vm1, %v4258_v14 }
 0x49c   : > { %4385 = vst.msk [vmem:[%s6516_s23 + $0x3a8] sm:$0xff] %vm356_vm1, %v4257_v22  ;;  %4129 = vst.msk [vmem:[#allocation2 + $0x3c0] sm:$0xff] %vm356_vm1, %v4000_v13  ;;  %v4001_v27 = vmax.f32 %v3489_v44, %v3861_v34 }
 0x49e   : > { %4130 = vst.msk [vmem:[#allocation2 + $0x3c8] sm:$0xff] %vm356_vm1, %v4001_v27 }
 0x49f   : > { %v4259_v3 = vld [vmem:[#allocation2 + $0x3b8] sm:$0xff] }
 0x4a0   : > { %4387 = vst.msk [vmem:[%s6516_s23 + $0x3b8] sm:$0xff] %vm356_vm1, %v4259_v3 }
 0x4a1   : > { %v3864_v30 = vpop.xlane.xlu0 %3863 }
 0x4a2   : > { %v4002_v36 = vmax.f32 %v3490_v5, %v3864_v30 }
 0x4a3   : > { %v4260_v63 = vld [vmem:[#allocation2 + $0x3c0] sm:$0xff]  ;;  %v3867_v1 = vpop.xlane.xlu1 %3866 }
 0x4a4   : > { %4388 = vst.msk [vmem:[%s6516_s23 + $0x3c0] sm:$0xff] %vm356_vm1, %v4260_v63  ;;  %4131 = vst.msk [vmem:[#allocation2 + $0x3d0] sm:$0xff] %vm356_vm1, %v4002_v36  ;;  %v4003_v57 = vmax.f32 %v3491_v58, %v3867_v1 }
 0x4a5   : > { %v4261_v29 = vld [vmem:[#allocation2 + $0x3c8] sm:$0xff] }
 0x4a6   : > { %4389 = vst.msk [vmem:[%s6516_s23 + $0x3c8] sm:$0xff] %vm356_vm1, %v4261_v29  ;;  %4132 = vst.msk [vmem:[#allocation2 + $0x3d8] sm:$0xff] %vm356_vm1, %v4003_v57 }
 0x4a9   : > { %v3870_v18 = vpop.xlane.xlu0 %3869 }
 0x4aa   : > { %v4004_v28 = vmax.f32 %v3492_v2, %v3870_v18 }
 0x4ab   : > { %v4262_v47 = vld [vmem:[#allocation2 + $0x3d0] sm:$0xff]  ;;  %v3873_v6 = vpop.xlane.xlu1 %3872 }
 0x4ac   : > { %4390 = vst.msk [vmem:[%s6516_s23 + $0x3d0] sm:$0xff] %vm356_vm1, %v4262_v47  ;;  %4133 = vst.msk [vmem:[#allocation2 + $0x3e0] sm:$0xff] %vm356_vm1, %v4004_v28  ;;  %v4005_v60 = vmax.f32 %v3493_v32, %v3873_v6 }
 0x4ad   : > { %v4263_v40 = vld [vmem:[#allocation2 + $0x3d8] sm:$0xff] }
 0x4ae   : > { %4391 = vst.msk [vmem:[%s6516_s23 + $0x3d8] sm:$0xff] %vm356_vm1, %v4263_v40  ;;  %4134 = vst.msk [vmem:[#allocation2 + $0x3e8] sm:$0xff] %vm356_vm1, %v4005_v60 }
 0x4b1   : > { %v3876_v35 = vpop.xlane.xlu0 %3875 }
 0x4b2   : > { %v4006_v48 = vmax.f32 %v3494_v10, %v3876_v35 }
 0x4b3   : > { %v4264_v39 = vld [vmem:[#allocation2 + $0x3e0] sm:$0xff]  ;;  %v3879_v0 = vpop.xlane.xlu1 %3878 }
 0x4b4   : > { %4392 = vst.msk [vmem:[%s6516_s23 + $0x3e0] sm:$0xff] %vm356_vm1, %v4264_v39  ;;  %4135 = vst.msk [vmem:[#allocation2 + $0x3f0] sm:$0xff] %vm356_vm1, %v4006_v48  ;;  %v4007_v43 = vmax.f32 %v3495_v16, %v3879_v0 }
 0x4b5   : > { %v4265_v53 = vld [vmem:[#allocation2 + $0x3e8] sm:$0xff] }
 0x4b6   : > { %4393 = vst.msk [vmem:[%s6516_s23 + $0x3e8] sm:$0xff] %vm356_vm1, %v4265_v53  ;;  %4136 = vst.msk [vmem:[#allocation2 + $0x3f8] sm:$0xff] %vm356_vm1, %v4007_v43 }
 0x4bb   : > { %v4266_v55 = vld [vmem:[#allocation2 + $0x3f0] sm:$0xff] }
 0x4bc   : > { %4394 = vst.msk [vmem:[%s6516_s23 + $0x3f0] sm:$0xff] %vm356_vm1, %v4266_v55 }
 0x4bd   : > { %v4267_v20 = vld [vmem:[#allocation2 + $0x3f8] sm:$0xff] }
 0x4be   : > { %4395 = vst.msk [vmem:[%s6516_s23 + $0x3f8] sm:$0xff] %vm356_vm1, %v4267_v20 }
 0x4bf PF: > { %s17_s28 = sadd.s32 1, %s4784_s28   ;;  %s7170_s24 = smov %s4776_s26 }
 0x4c0   : > { %p14_p8 = scmp.ge.s32.totalorder %s17_s28, 6   ;;  %s7171_s25 = smov %s4780_s27 }
 0x4c1   : > { %s7172_s26 = smov %s7175_s29  ;;  %s7173_s27 = smov %s7179_s30 }
 0x4c2   :  { %16 = sbr.rel (!%p14_p8) target bundleno = 3 (0x3), region = 89 }

</bundles_post_ra>
